<compile_context>
chip_gen: v6e
topology: v6e:2x2x1
jax: 0.10.0
libtpu: 0.0.40
codegen_flags: <defaults>
</compile_context>

<pallas_src>
import functools
import jax
import jax.numpy as jnp
from jax.experimental import pallas as pl
from jax.experimental.pallas import tpu as pltpu


def _decoder_kernel(xg0_ref, h0_ref, c0_ref, ctx_ref,
                    wih_ref, whh_ref, b_ref,
                    win_ref, bin_ref, wout_c_ref, wout_x_ref, bout_ref,
                    out_ref, attn_ref, hT_ref, cT_ref,
                    *, num_layers, hidden, time_chunk):
    """One grid step == `time_chunk` decoder time steps.

    The recurrent state lives directly in the hT/cT output blocks: their index_map is
    constant, so the blocks stay VMEM-resident across all grid steps and are written
    back to HBM only once at the end.
    """
    H = hidden
    L = num_layers
    tc = pl.program_id(0)

    @pl.when(tc == 0)
    def _():
        hT_ref[...] = h0_ref[...]
        cT_ref[...] = c0_ref[...]

    # Hoist loop-invariant loads out of the (unrolled) time loop.
    ctx = ctx_ref[...]                                    # (B, S, H)
    w_in = win_ref[...]                                   # (H, H), pre-transposed
    b_in = bin_ref[0]                                     # (H,)
    w_out_c = wout_c_ref[...]                             # (H, H), pre-transposed
    w_out_x = wout_x_ref[...]                             # (H, H), pre-transposed
    b_out = bout_ref[0]                                   # (H,)
    w_hh = [whh_ref[l] for l in range(L)]                 # (H, 4H) each, pre-transposed
    w_ih = {l: wih_ref[l] for l in range(1, L)}           # layer-0 part hoisted outside
    bias = {l: b_ref[l] for l in range(1, L)}             # layer-0 bias folded outside

    # Static Python loop == fully unrolled at trace time (equivalent to
    # lax.fori_loop(..., unroll=True) for these small static chunk sizes), which gives
    # the LLO scheduler full visibility across the chunk.
    for t in range(time_chunk):
        # ---- StackedLSTM (PyTorch LSTMCell gate order: i, f, g, o) ----
        x = None
        for l in range(L):
            h_prev = hT_ref[l]                            # (B, H)
            c_prev = cT_ref[l]                            # (B, H)
            if l == 0:
                # input->hidden matmul (+ summed biases) precomputed outside the kernel
                gates = xg0_ref[t] + jnp.dot(
                    h_prev, w_hh[0], preferred_element_type=jnp.float32)
            else:
                gates = (jnp.dot(x, w_ih[l], preferred_element_type=jnp.float32)
                         + jnp.dot(h_prev, w_hh[l], preferred_element_type=jnp.float32)
                         + bias[l])                       # (B, 4H)
            i_g = jax.nn.sigmoid(gates[:, 0 * H:1 * H])
            f_g = jax.nn.sigmoid(gates[:, 1 * H:2 * H])
            g_g = jnp.tanh(gates[:, 2 * H:3 * H])
            o_g = jax.nn.sigmoid(gates[:, 3 * H:4 * H])
            c_new = f_g * c_prev + i_g * g_g
            h_new = o_g * jnp.tanh(c_new)
            hT_ref[l] = h_new
            cT_ref[l] = c_new
            x = h_new   # inter-layer dropout is identity in eval mode

        # ---- global attention (Luong, activation=None) ----
        gamma = jnp.dot(x, w_in, preferred_element_type=jnp.float32) + b_in   # (B, H)
        scores = jnp.sum(ctx * gamma[:, None, :], axis=-1)                    # (B, S)
        m = jnp.max(scores, axis=-1, keepdims=True)
        e = jnp.exp(scores - m)
        denom = jnp.sum(e, axis=-1, keepdims=True)
        weights = e * pl.reciprocal(denom, approx=False)                      # (B, S)
        c_att = jnp.sum(weights[:, :, None] * ctx, axis=1)                    # (B, H)
        # linear_out([c_t ; h]) split into two matmuls to avoid an in-kernel concat
        out = jnp.tanh(
            jnp.dot(c_att, w_out_c, preferred_element_type=jnp.float32)
            + jnp.dot(x, w_out_x, preferred_element_type=jnp.float32)
            + b_out)                                                          # (B, H)

        out_ref[t] = out.astype(out_ref.dtype)
        attn_ref[t] = weights.astype(attn_ref.dtype)


def rnn_decoder_forward(inputs, init_state, contexts, params, *, time_chunk=None):
    """Matches rnn_decoder.forward: returns (outputs, (h_T, c_T)); attns also returned."""
    emb_w = params["embedding"]                       # (V, H)
    h0, c0 = init_state
    L, B, H = h0.shape
    T = inputs.shape[0]
    S = contexts.shape[1]

    # ---- trace-time (free) parameter preprocessing ----
    w_ih_t = jnp.swapaxes(params["W_ih"], 1, 2)       # (L, H, 4H)  -> kernel does x @ w
    w_hh_t = jnp.swapaxes(params["W_hh"], 1, 2)       # (L, H, 4H)
    bias = params["b_ih"] + params["b_hh"]            # (L, 4H) pre-summed LSTM biases
    w_in_t = params["W_in"].T                         # (H, H)
    w_out_c_t = params["W_out_c"].T                   # (H, H)
    w_out_x_t = params["W_out_x"].T                   # (H, H)

    # Embedding gather + hoisted layer-0 input->hidden matmul: one big MXU-friendly
    # (T*B, H) @ (H, 4H) matmul instead of T tiny ones inside the recurrence.
    embs = jnp.take(emb_w, inputs, axis=0)            # (T, B, H)
    x_gates0 = (embs.reshape(T * B, H) @ w_ih_t[0] + bias[0]).reshape(T, B, 4 * H)

    # Time chunking: process TT steps per grid step to amortize per-step pipeline overhead.
    if time_chunk is None:
        time_chunk = T if T <= 16 else max(d for d in range(1, 17) if T % d == 0)
    assert T % time_chunk == 0, "time_chunk must divide T"
    TT = time_chunk

    kernel = functools.partial(_decoder_kernel, num_layers=L, hidden=H, time_chunk=TT)

    grid_spec = pltpu.PrefetchScalarGridSpec(
        num_scalar_prefetch=0,
        grid=(T // TT,),
        in_specs=[
            pl.BlockSpec((TT, B, 4 * H), lambda c: (c, 0, 0)),   # hoisted layer-0 gates
            pl.BlockSpec((L, B, H), lambda c: (0, 0, 0)),        # h0
            pl.BlockSpec((L, B, H), lambda c: (0, 0, 0)),        # c0
            pl.BlockSpec((B, S, H), lambda c: (0, 0, 0)),        # contexts
            pl.BlockSpec((L, H, 4 * H), lambda c: (0, 0, 0)),    # W_ih^T
            pl.BlockSpec((L, H, 4 * H), lambda c: (0, 0, 0)),    # W_hh^T
            pl.BlockSpec((L, 4 * H), lambda c: (0, 0)),          # b_ih + b_hh
            pl.BlockSpec((H, H), lambda c: (0, 0)),              # W_in^T
            pl.BlockSpec((1, H), lambda c: (0, 0)),              # b_in
            pl.BlockSpec((H, H), lambda c: (0, 0)),              # W_out^T (c_t half)
            pl.BlockSpec((H, H), lambda c: (0, 0)),              # W_out^T (h half)
            pl.BlockSpec((1, H), lambda c: (0, 0)),              # b_out
        ],
        out_specs=[
            pl.BlockSpec((TT, B, H), lambda c: (c, 0, 0)),       # outputs chunk
            pl.BlockSpec((TT, B, S), lambda c: (c, 0, 0)),       # attns chunk
            pl.BlockSpec((L, B, H), lambda c: (0, 0, 0)),        # h_T (state carry)
            pl.BlockSpec((L, B, H), lambda c: (0, 0, 0)),        # c_T (state carry)
        ],
    )

    outputs, attns, hT, cT = pl.pallas_call(
        kernel,
        grid_spec=grid_spec,
        out_shape=(
            jax.ShapeDtypeStruct((T, B, H), jnp.float32),
            jax.ShapeDtypeStruct((T, B, S), jnp.float32),
            jax.ShapeDtypeStruct((L, B, H), jnp.float32),
            jax.ShapeDtypeStruct((L, B, H), jnp.float32),
        ),
        compiler_params=pltpu.CompilerParams(
            dimension_semantics=("arbitrary",)),   # time is a sequential carry axis
    )(x_gates0, h0, c0, contexts,
      w_ih_t, w_hh_t, bias,
      w_in_t, params["b_in"], w_out_c_t, w_out_x_t, params["b_out"])

    return outputs, (hT, cT), attns


def _reference_forward(inputs, init_state, contexts, params):
    """Pure-JAX reference mirroring the PyTorch module (eval mode)."""
    embs = jnp.take(params["embedding"], inputs, axis=0)
    h, c = init_state
    L, _, H = h.shape
    outs, attns = [], []
    for t in range(inputs.shape[0]):
        x = embs[t]
        new_h, new_c = [], []
        for l in range(L):
            gates = (x @ params["W_ih"][l].T + params["b_ih"][l]
                     + h[l] @ params["W_hh"][l].T + params["b_hh"][l])
            i_g = jax.nn.sigmoid(gates[:, 0 * H:1 * H])
            f_g = jax.nn.sigmoid(gates[:, 1 * H:2 * H])
            g_g = jnp.tanh(gates[:, 2 * H:3 * H])
            o_g = jax.nn.sigmoid(gates[:, 3 * H:4 * H])
            cn = f_g * c[l] + i_g * g_g
            hn = o_g * jnp.tanh(cn)
            new_h.append(hn); new_c.append(cn)
            x = hn
        h = jnp.stack(new_h); c = jnp.stack(new_c)
        gamma = x @ params["W_in"].T + params["b_in"][0]
        scores = jnp.einsum("bsh,bh->bs", contexts, gamma)
        w = jax.nn.softmax(scores, axis=-1)
        c_t = jnp.einsum("bs,bsh->bh", w, contexts)
        out = jnp.tanh(c_t @ params["W_out_c"].T + x @ params["W_out_x"].T
                       + params["b_out"][0])
        outs.append(out); attns.append(w)
    return jnp.stack(outs), (h, c), jnp.stack(attns)


def _make_params(key, vocab, hidden, num_layers):
    ks = jax.random.split(key, 10)
    s = 0.1
    return {
        "embedding": s * jax.random.normal(ks[0], (vocab, hidden), jnp.float32),
        "W_ih": s * jax.random.normal(ks[1], (num_layers, 4 * hidden, hidden), jnp.float32),
        "W_hh": s * jax.random.normal(ks[2], (num_layers, 4 * hidden, hidden), jnp.float32),
        "b_ih": s * jax.random.normal(ks[3], (num_layers, 4 * hidden), jnp.float32),
        "b_hh": s * jax.random.normal(ks[4], (num_layers, 4 * hidden), jnp.float32),
        "W_in": s * jax.random.normal(ks[5], (hidden, hidden), jnp.float32),
        "b_in": s * jax.random.normal(ks[6], (1, hidden), jnp.float32),
        "W_out_c": s * jax.random.normal(ks[7], (hidden, hidden), jnp.float32),
        "W_out_x": s * jax.random.normal(ks[8], (hidden, hidden), jnp.float32),
        "b_out": s * jax.random.normal(ks[9], (1, hidden), jnp.float32),
    }


if __name__ == "__main__":
    V, H, L = 16, 32, 2        # tgt_vocab_size, hidden_size, num_layers
    T, B, S = 6, 8, 10         # decoder steps, batch, source length

    root = jax.random.PRNGKey(0)
    k_par, k_tok, k_ctx, k_h, k_c = jax.random.split(root, 5)

    params = _make_params(k_par, V, H, L)
    inputs = jax.random.randint(k_tok, (T, B), 0, V, dtype=jnp.int32)
    contexts = 0.1 * jax.random.normal(k_ctx, (B, S, H), jnp.float32)
    h0 = 0.1 * jax.random.normal(k_h, (L, B, H), jnp.float32)
    c0 = 0.1 * jax.random.normal(k_c, (L, B, H), jnp.float32)

    outputs, (hT, cT), attns = jax.jit(rnn_decoder_forward)(
        inputs, (h0, c0), contexts, params)
    jax.block_until_ready((outputs, hT, cT, attns))

    # sanity check against a pure-JAX reference
    ref_out, (ref_h, ref_c), ref_attn = _reference_forward(
        inputs, (h0, c0), contexts, params)
    assert jnp.allclose(outputs, ref_out, atol=1e-4, rtol=1e-4)
    assert jnp.allclose(attns, ref_attn, atol=1e-4, rtol=1e-4)
    assert jnp.allclose(hT, ref_h, atol=1e-4, rtol=1e-4)
    assert jnp.allclose(cT, ref_c, atol=1e-4, rtol=1e-4)

    print("KERNEL_OK")
</pallas_src>

<mosaic_0001>
module attributes {stable_mosaic.version = 11 : i64} {
  func.func @_decoder_kernel(%arg0: i32, %arg1: memref<6x8x128xf32, #tpu.memory_space<vmem>>, %arg2: memref<2x8x32xf32, #tpu.memory_space<vmem>>, %arg3: memref<2x8x32xf32, #tpu.memory_space<vmem>>, %arg4: memref<8x10x32xf32, #tpu.memory_space<vmem>>, %arg5: memref<2x32x128xf32, #tpu.memory_space<vmem>>, %arg6: memref<2x32x128xf32, #tpu.memory_space<vmem>>, %arg7: memref<2x128xf32, #tpu.memory_space<vmem>>, %arg8: memref<32x32xf32, #tpu.memory_space<vmem>>, %arg9: memref<1x32xf32, #tpu.memory_space<vmem>>, %arg10: memref<32x32xf32, #tpu.memory_space<vmem>>, %arg11: memref<32x32xf32, #tpu.memory_space<vmem>>, %arg12: memref<1x32xf32, #tpu.memory_space<vmem>>, %arg13: memref<6x8x32xf32, #tpu.memory_space<vmem>>, %arg14: memref<6x8x10xf32, #tpu.memory_space<vmem>>, %arg15: memref<2x8x32xf32, #tpu.memory_space<vmem>>, %arg16: memref<2x8x32xf32, #tpu.memory_space<vmem>>) attributes {dimension_semantics = [#tpu.dimension_semantics<arbitrary>], iteration_bounds = array<i64: 1>, scalar_prefetch = 0 : i64, scratch_operands = 0 : i64, tpu.core_type = #tpu.core_type<tc>, window_params = [{transform_indices = @transform_0, window_bounds = array<i64: 6, 8, 128>}, {pipeline_mode = #tpu.pipeline_mode<synchronous>, transform_indices = @transform_1, window_bounds = array<i64: 2, 8, 32>}, {pipeline_mode = #tpu.pipeline_mode<synchronous>, transform_indices = @transform_2, window_bounds = array<i64: 2, 8, 32>}, {pipeline_mode = #tpu.pipeline_mode<synchronous>, transform_indices = @transform_3, window_bounds = array<i64: 8, 10, 32>}, {pipeline_mode = #tpu.pipeline_mode<synchronous>, transform_indices = @transform_4, window_bounds = array<i64: 2, 32, 128>}, {pipeline_mode = #tpu.pipeline_mode<synchronous>, transform_indices = @transform_5, window_bounds = array<i64: 2, 32, 128>}, {pipeline_mode = #tpu.pipeline_mode<synchronous>, transform_indices = @transform_6, window_bounds = array<i64: 2, 128>}, {pipeline_mode = #tpu.pipeline_mode<synchronous>, transform_indices = @transform_7, window_bounds = array<i64: 32, 32>}, {pipeline_mode = #tpu.pipeline_mode<synchronous>, transform_indices = @transform_8, window_bounds = array<i64: 1, 32>}, {pipeline_mode = #tpu.pipeline_mode<synchronous>, transform_indices = @transform_9, window_bounds = array<i64: 32, 32>}, {pipeline_mode = #tpu.pipeline_mode<synchronous>, transform_indices = @transform_10, window_bounds = array<i64: 32, 32>}, {pipeline_mode = #tpu.pipeline_mode<synchronous>, transform_indices = @transform_11, window_bounds = array<i64: 1, 32>}, {transform_indices = @transform_12, window_bounds = array<i64: 6, 8, 32>}, {transform_indices = @transform_13, window_bounds = array<i64: 6, 8, 10>}, {pipeline_mode = #tpu.pipeline_mode<synchronous>, transform_indices = @transform_14, window_bounds = array<i64: 2, 8, 32>}, {pipeline_mode = #tpu.pipeline_mode<synchronous>, transform_indices = @transform_15, window_bounds = array<i64: 2, 8, 32>}]} {
    %c0_i32 = arith.constant 0 : i32
    %0 = arith.cmpi eq, %arg0, %c0_i32 : i32
    %1 = arith.extui %0 : i1 to i32
    %c0_i32_0 = arith.constant 0 : i32
    %2 = arith.cmpi ne, %1, %c0_i32_0 : i32
    scf.if %2 {
      %c0_312 = arith.constant 0 : index
      %c0_313 = arith.constant 0 : index
      %c0_314 = arith.constant 0 : index
      %709 = vector.load %arg2[%c0_312, %c0_313, %c0_314] : memref<2x8x32xf32, #tpu.memory_space<vmem>>, vector<2x8x32xf32>
      %c0_315 = arith.constant 0 : index
      %c0_316 = arith.constant 0 : index
      %c0_317 = arith.constant 0 : index
      %710 = vector.load %arg15[%c0_315, %c0_316, %c0_317] : memref<2x8x32xf32, #tpu.memory_space<vmem>>, vector<2x8x32xf32>
      tpu.vector_store %arg15[%c0_315, %c0_316, %c0_317], %709 {strides = array<i32>} : memref<2x8x32xf32, #tpu.memory_space<vmem>>, vector<2x8x32xf32>,
      %c0_318 = arith.constant 0 : index
      %c0_319 = arith.constant 0 : index
      %c0_320 = arith.constant 0 : index
      %711 = vector.load %arg3[%c0_318, %c0_319, %c0_320] : memref<2x8x32xf32, #tpu.memory_space<vmem>>, vector<2x8x32xf32>
      %c0_321 = arith.constant 0 : index
      %c0_322 = arith.constant 0 : index
      %c0_323 = arith.constant 0 : index
      %712 = vector.load %arg16[%c0_321, %c0_322, %c0_323] : memref<2x8x32xf32, #tpu.memory_space<vmem>>, vector<2x8x32xf32>
      tpu.vector_store %arg16[%c0_321, %c0_322, %c0_323], %711 {strides = array<i32>} : memref<2x8x32xf32, #tpu.memory_space<vmem>>, vector<2x8x32xf32>,
    } else {
    }
    %c0 = arith.constant 0 : index
    %c0_1 = arith.constant 0 : index
    %c0_2 = arith.constant 0 : index
    %3 = vector.load %arg4[%c0, %c0_1, %c0_2] : memref<8x10x32xf32, #tpu.memory_space<vmem>>, vector<8x10x32xf32>
    %c0_3 = arith.constant 0 : index
    %c0_4 = arith.constant 0 : index
    %4 = vector.load %arg8[%c0_3, %c0_4] : memref<32x32xf32, #tpu.memory_space<vmem>>, vector<32x32xf32>
    %c0_5 = arith.constant 0 : index
    %c0_6 = arith.constant 0 : index
    %5 = vector.load %arg9[%c0_5, %c0_6] : memref<1x32xf32, #tpu.memory_space<vmem>>, vector<1x32xf32>
    %6 = vector.shape_cast %5 : vector<1x32xf32> to vector<32xf32>
    %c0_7 = arith.constant 0 : index
    %c0_8 = arith.constant 0 : index
    %7 = vector.load %arg10[%c0_7, %c0_8] : memref<32x32xf32, #tpu.memory_space<vmem>>, vector<32x32xf32>
    %c0_9 = arith.constant 0 : index
    %c0_10 = arith.constant 0 : index
    %8 = vector.load %arg11[%c0_9, %c0_10] : memref<32x32xf32, #tpu.memory_space<vmem>>, vector<32x32xf32>
    %c0_11 = arith.constant 0 : index
    %c0_12 = arith.constant 0 : index
    %9 = vector.load %arg12[%c0_11, %c0_12] : memref<1x32xf32, #tpu.memory_space<vmem>>, vector<1x32xf32>
    %10 = vector.shape_cast %9 : vector<1x32xf32> to vector<32xf32>
    %c0_13 = arith.constant 0 : index
    %c0_14 = arith.constant 0 : index
    %c0_15 = arith.constant 0 : index
    %11 = vector.load %arg6[%c0_13, %c0_14, %c0_15] : memref<2x32x128xf32, #tpu.memory_space<vmem>>, vector<1x32x128xf32>
    %12 = vector.shape_cast %11 : vector<1x32x128xf32> to vector<32x128xf32>
    %c1 = arith.constant 1 : index
    %c0_16 = arith.constant 0 : index
    %c0_17 = arith.constant 0 : index
    %13 = vector.load %arg6[%c1, %c0_16, %c0_17] : memref<2x32x128xf32, #tpu.memory_space<vmem>>, vector<1x32x128xf32>
    %14 = vector.shape_cast %13 : vector<1x32x128xf32> to vector<32x128xf32>
    %c1_18 = arith.constant 1 : index
    %c0_19 = arith.constant 0 : index
    %c0_20 = arith.constant 0 : index
    %15 = vector.load %arg5[%c1_18, %c0_19, %c0_20] : memref<2x32x128xf32, #tpu.memory_space<vmem>>, vector<1x32x128xf32>
    %16 = vector.shape_cast %15 : vector<1x32x128xf32> to vector<32x128xf32>
    %c1_21 = arith.constant 1 : index
    %c0_22 = arith.constant 0 : index
    %17 = vector.load %arg7[%c1_21, %c0_22] : memref<2x128xf32, #tpu.memory_space<vmem>>, vector<1x128xf32>
    %18 = vector.shape_cast %17 : vector<1x128xf32> to vector<128xf32>
    %c0_23 = arith.constant 0 : index
    %c0_24 = arith.constant 0 : index
    %c0_25 = arith.constant 0 : index
    %19 = vector.load %arg15[%c0_23, %c0_24, %c0_25] : memref<2x8x32xf32, #tpu.memory_space<vmem>>, vector<1x8x32xf32>
    %20 = vector.shape_cast %19 : vector<1x8x32xf32> to vector<8x32xf32>
    %c0_26 = arith.constant 0 : index
    %c0_27 = arith.constant 0 : index
    %c0_28 = arith.constant 0 : index
    %21 = vector.load %arg16[%c0_26, %c0_27, %c0_28] : memref<2x8x32xf32, #tpu.memory_space<vmem>>, vector<1x8x32xf32>
    %22 = vector.shape_cast %21 : vector<1x8x32xf32> to vector<8x32xf32>
    %c0_29 = arith.constant 0 : index
    %c0_30 = arith.constant 0 : index
    %c0_31 = arith.constant 0 : index
    %23 = vector.load %arg1[%c0_29, %c0_30, %c0_31] : memref<6x8x128xf32, #tpu.memory_space<vmem>>, vector<1x8x128xf32>
    %24 = vector.shape_cast %23 : vector<1x8x128xf32> to vector<8x128xf32>
    %cst = arith.constant dense<0.000000e+00> : vector<8x128xf32>
    %25 = tpu.matmul %20, %12, %cst {dimension_numbers = #tpu.dot_dimension_numbers<[1], [0], [0], [1], [0, 0, 1, 1], [], []>} : vector<8x32xf32>, vector<32x128xf32>, vector<8x128xf32> -> vector<8x128xf32>
    %26 = arith.addf %24, %25 : vector<8x128xf32>
    %27 = vector.extract_strided_slice %26 {offsets = [0, 0], sizes = [8, 32], strides = [1, 1]} : vector<8x128xf32> to vector<8x32xf32>
    %28 = arith.negf %27 : vector<8x32xf32>
    %29 = math.exp %28 : vector<8x32xf32>
    %cst_32 = arith.constant 1.000000e+00 : f32
    %30 = vector.broadcast %cst_32 : f32 to vector<8x32xf32>
    %31 = arith.addf %30, %29 : vector<8x32xf32>
    %32 = arith.divf %30, %31 : vector<8x32xf32>
    %33 = vector.extract_strided_slice %26 {offsets = [0, 32], sizes = [8, 32], strides = [1, 1]} : vector<8x128xf32> to vector<8x32xf32>
    %34 = arith.negf %33 : vector<8x32xf32>
    %35 = math.exp %34 : vector<8x32xf32>
    %cst_33 = arith.constant 1.000000e+00 : f32
    %36 = vector.broadcast %cst_33 : f32 to vector<8x32xf32>
    %37 = arith.addf %36, %35 : vector<8x32xf32>
    %38 = arith.divf %36, %37 : vector<8x32xf32>
    %39 = vector.extract_strided_slice %26 {offsets = [0, 64], sizes = [8, 32], strides = [1, 1]} : vector<8x128xf32> to vector<8x32xf32>
    %40 = math.tanh %39 : vector<8x32xf32>
    %41 = vector.extract_strided_slice %26 {offsets = [0, 96], sizes = [8, 32], strides = [1, 1]} : vector<8x128xf32> to vector<8x32xf32>
    %42 = arith.negf %41 : vector<8x32xf32>
    %43 = math.exp %42 : vector<8x32xf32>
    %cst_34 = arith.constant 1.000000e+00 : f32
    %44 = vector.broadcast %cst_34 : f32 to vector<8x32xf32>
    %45 = arith.addf %44, %43 : vector<8x32xf32>
    %46 = arith.divf %44, %45 : vector<8x32xf32>
    %47 = arith.mulf %38, %22 : vector<8x32xf32>
    %48 = arith.mulf %32, %40 : vector<8x32xf32>
    %49 = arith.addf %47, %48 : vector<8x32xf32>
    %50 = math.tanh %49 : vector<8x32xf32>
    %51 = arith.mulf %46, %50 : vector<8x32xf32>
    %c0_35 = arith.constant 0 : index
    %c0_36 = arith.constant 0 : index
    %c0_37 = arith.constant 0 : index
    %52 = vector.load %arg15[%c0_35, %c0_36, %c0_37] : memref<2x8x32xf32, #tpu.memory_space<vmem>>, vector<1x8x32xf32>
    %53 = vector.shape_cast %52 : vector<1x8x32xf32> to vector<8x32xf32>
    %54 = vector.shape_cast %51 : vector<8x32xf32> to vector<1x8x32xf32>
    tpu.vector_store %arg15[%c0_35, %c0_36, %c0_37], %54 {strides = array<i32>} : memref<2x8x32xf32, #tpu.memory_space<vmem>>, vector<1x8x32xf32>,
    %c0_38 = arith.constant 0 : index
    %c0_39 = arith.constant 0 : index
    %c0_40 = arith.constant 0 : index
    %55 = vector.load %arg16[%c0_38, %c0_39, %c0_40] : memref<2x8x32xf32, #tpu.memory_space<vmem>>, vector<1x8x32xf32>
    %56 = vector.shape_cast %55 : vector<1x8x32xf32> to vector<8x32xf32>
    %57 = vector.shape_cast %49 : vector<8x32xf32> to vector<1x8x32xf32>
    tpu.vector_store %arg16[%c0_38, %c0_39, %c0_40], %57 {strides = array<i32>} : memref<2x8x32xf32, #tpu.memory_space<vmem>>, vector<1x8x32xf32>,
    %c1_41 = arith.constant 1 : index
    %c0_42 = arith.constant 0 : index
    %c0_43 = arith.constant 0 : index
    %58 = vector.load %arg15[%c1_41, %c0_42, %c0_43] : memref<2x8x32xf32, #tpu.memory_space<vmem>>, vector<1x8x32xf32>
    %59 = vector.shape_cast %58 : vector<1x8x32xf32> to vector<8x32xf32>
    %c1_44 = arith.constant 1 : index
    %c0_45 = arith.constant 0 : index
    %c0_46 = arith.constant 0 : index
    %60 = vector.load %arg16[%c1_44, %c0_45, %c0_46] : memref<2x8x32xf32, #tpu.memory_space<vmem>>, vector<1x8x32xf32>
    %61 = vector.shape_cast %60 : vector<1x8x32xf32> to vector<8x32xf32>
    %cst_47 = arith.constant dense<0.000000e+00> : vector<8x128xf32>
    %62 = tpu.matmul %51, %16, %cst_47 {dimension_numbers = #tpu.dot_dimension_numbers<[1], [0], [0], [1], [0, 0, 1, 1], [], []>} : vector<8x32xf32>, vector<32x128xf32>, vector<8x128xf32> -> vector<8x128xf32>
    %cst_48 = arith.constant dense<0.000000e+00> : vector<8x128xf32>
    %63 = tpu.matmul %59, %14, %cst_48 {dimension_numbers = #tpu.dot_dimension_numbers<[1], [0], [0], [1], [0, 0, 1, 1], [], []>} : vector<8x32xf32>, vector<32x128xf32>, vector<8x128xf32> -> vector<8x128xf32>
    %64 = arith.addf %62, %63 : vector<8x128xf32>
    %65 = vector.shape_cast %18 : vector<128xf32> to vector<1x128xf32>
    %66 = vector.broadcast %65 : vector<1x128xf32> to vector<8x128xf32>
    %67 = arith.addf %64, %66 : vector<8x128xf32>
    %68 = vector.extract_strided_slice %67 {offsets = [0, 0], sizes = [8, 32], strides = [1, 1]} : vector<8x128xf32> to vector<8x32xf32>
    %69 = arith.negf %68 : vector<8x32xf32>
    %70 = math.exp %69 : vector<8x32xf32>
    %cst_49 = arith.constant 1.000000e+00 : f32
    %71 = vector.broadcast %cst_49 : f32 to vector<8x32xf32>
    %72 = arith.addf %71, %70 : vector<8x32xf32>
    %73 = arith.divf %71, %72 : vector<8x32xf32>
    %74 = vector.extract_strided_slice %67 {offsets = [0, 32], sizes = [8, 32], strides = [1, 1]} : vector<8x128xf32> to vector<8x32xf32>
    %75 = arith.negf %74 : vector<8x32xf32>
    %76 = math.exp %75 : vector<8x32xf32>
    %cst_50 = arith.constant 1.000000e+00 : f32
    %77 = vector.broadcast %cst_50 : f32 to vector<8x32xf32>
    %78 = arith.addf %77, %76 : vector<8x32xf32>
    %79 = arith.divf %77, %78 : vector<8x32xf32>
    %80 = vector.extract_strided_slice %67 {offsets = [0, 64], sizes = [8, 32], strides = [1, 1]} : vector<8x128xf32> to vector<8x32xf32>
    %81 = math.tanh %80 : vector<8x32xf32>
    %82 = vector.extract_strided_slice %67 {offsets = [0, 96], sizes = [8, 32], strides = [1, 1]} : vector<8x128xf32> to vector<8x32xf32>
    %83 = arith.negf %82 : vector<8x32xf32>
    %84 = math.exp %83 : vector<8x32xf32>
    %cst_51 = arith.constant 1.000000e+00 : f32
    %85 = vector.broadcast %cst_51 : f32 to vector<8x32xf32>
    %86 = arith.addf %85, %84 : vector<8x32xf32>
    %87 = arith.divf %85, %86 : vector<8x32xf32>
    %88 = arith.mulf %79, %61 : vector<8x32xf32>
    %89 = arith.mulf %73, %81 : vector<8x32xf32>
    %90 = arith.addf %88, %89 : vector<8x32xf32>
    %91 = math.tanh %90 : vector<8x32xf32>
    %92 = arith.mulf %87, %91 : vector<8x32xf32>
    %c1_52 = arith.constant 1 : index
    %c0_53 = arith.constant 0 : index
    %c0_54 = arith.constant 0 : index
    %93 = vector.load %arg15[%c1_52, %c0_53, %c0_54] : memref<2x8x32xf32, #tpu.memory_space<vmem>>, vector<1x8x32xf32>
    %94 = vector.shape_cast %93 : vector<1x8x32xf32> to vector<8x32xf32>
    %95 = vector.shape_cast %92 : vector<8x32xf32> to vector<1x8x32xf32>
    tpu.vector_store %arg15[%c1_52, %c0_53, %c0_54], %95 {strides = array<i32>} : memref<2x8x32xf32, #tpu.memory_space<vmem>>, vector<1x8x32xf32>,
    %c1_55 = arith.constant 1 : index
    %c0_56 = arith.constant 0 : index
    %c0_57 = arith.constant 0 : index
    %96 = vector.load %arg16[%c1_55, %c0_56, %c0_57] : memref<2x8x32xf32, #tpu.memory_space<vmem>>, vector<1x8x32xf32>
    %97 = vector.shape_cast %96 : vector<1x8x32xf32> to vector<8x32xf32>
    %98 = vector.shape_cast %90 : vector<8x32xf32> to vector<1x8x32xf32>
    tpu.vector_store %arg16[%c1_55, %c0_56, %c0_57], %98 {strides = array<i32>} : memref<2x8x32xf32, #tpu.memory_space<vmem>>, vector<1x8x32xf32>,
    %cst_58 = arith.constant dense<0.000000e+00> : vector<8x32xf32>
    %99 = tpu.matmul %92, %4, %cst_58 {dimension_numbers = #tpu.dot_dimension_numbers<[1], [0], [0], [1], [0, 0, 1, 1], [], []>} : vector<8x32xf32>, vector<32x32xf32>, vector<8x32xf32> -> vector<8x32xf32>
    %100 = vector.shape_cast %6 : vector<32xf32> to vector<1x32xf32>
    %101 = vector.broadcast %100 : vector<1x32xf32> to vector<8x32xf32>
    %102 = arith.addf %99, %101 : vector<8x32xf32>
    %103 = vector.shape_cast %102 : vector<8x32xf32> to vector<8x1x32xf32>
    %104 = vector.broadcast %103 : vector<8x1x32xf32> to vector<8x10x32xf32>
    %105 = arith.mulf %3, %104 : vector<8x10x32xf32>
    %cst_59 = arith.constant dense<0.000000e+00> : vector<8x10xf32>
    %106 = vector.multi_reduction <add>, %105, %cst_59 [2] : vector<8x10x32xf32> to vector<8x10xf32>
    %cst_60 = arith.constant dense<0xFF800000> : vector<8xf32>
    %107 = vector.multi_reduction <maximumf>, %106, %cst_60 [1] : vector<8x10xf32> to vector<8xf32>
    %108 = vector.shape_cast %107 : vector<8xf32> to vector<8x1xf32>
    %109 = vector.broadcast %108 : vector<8x1xf32> to vector<8x10xf32>
    %110 = arith.subf %106, %109 : vector<8x10xf32>
    %111 = math.exp %110 : vector<8x10xf32>
    %cst_61 = arith.constant dense<0.000000e+00> : vector<8xf32>
    %112 = vector.multi_reduction <add>, %111, %cst_61 [1] : vector<8x10xf32> to vector<8xf32>
    %113 = vector.shape_cast %112 : vector<8xf32> to vector<8x1xf32>
    %114 = tpu.reciprocal %113 : vector<8x1xf32> -> vector<8x1xf32>
    %115 = vector.broadcast %114 : vector<8x1xf32> to vector<8x10xf32>
    %116 = arith.mulf %111, %115 : vector<8x10xf32>
    %117 = vector.shape_cast %116 : vector<8x10xf32> to vector<8x10x1xf32>
    %118 = vector.broadcast %117 : vector<8x10x1xf32> to vector<8x10x32xf32>
    %119 = arith.mulf %118, %3 : vector<8x10x32xf32>
    %cst_62 = arith.constant dense<0.000000e+00> : vector<8x32xf32>
    %120 = vector.multi_reduction <add>, %119, %cst_62 [1] : vector<8x10x32xf32> to vector<8x32xf32>
    %cst_63 = arith.constant dense<0.000000e+00> : vector<8x32xf32>
    %121 = tpu.matmul %120, %7, %cst_63 {dimension_numbers = #tpu.dot_dimension_numbers<[1], [0], [0], [1], [0, 0, 1, 1], [], []>} : vector<8x32xf32>, vector<32x32xf32>, vector<8x32xf32> -> vector<8x32xf32>
    %cst_64 = arith.constant dense<0.000000e+00> : vector<8x32xf32>
    %122 = tpu.matmul %92, %8, %cst_64 {dimension_numbers = #tpu.dot_dimension_numbers<[1], [0], [0], [1], [0, 0, 1, 1], [], []>} : vector<8x32xf32>, vector<32x32xf32>, vector<8x32xf32> -> vector<8x32xf32>
    %123 = arith.addf %121, %122 : vector<8x32xf32>
    %124 = vector.shape_cast %10 : vector<32xf32> to vector<1x32xf32>
    %125 = vector.broadcast %124 : vector<1x32xf32> to vector<8x32xf32>
    %126 = arith.addf %123, %125 : vector<8x32xf32>
    %127 = math.tanh %126 : vector<8x32xf32>
    %c0_65 = arith.constant 0 : index
    %c0_66 = arith.constant 0 : index
    %c0_67 = arith.constant 0 : index
    %128 = vector.load %arg13[%c0_65, %c0_66, %c0_67] : memref<6x8x32xf32, #tpu.memory_space<vmem>>, vector<1x8x32xf32>
    %129 = vector.shape_cast %128 : vector<1x8x32xf32> to vector<8x32xf32>
    %130 = vector.shape_cast %127 : vector<8x32xf32> to vector<1x8x32xf32>
    tpu.vector_store %arg13[%c0_65, %c0_66, %c0_67], %130 {strides = array<i32>} : memref<6x8x32xf32, #tpu.memory_space<vmem>>, vector<1x8x32xf32>,
    %c0_68 = arith.constant 0 : index
    %c0_69 = arith.constant 0 : index
    %c0_70 = arith.constant 0 : index
    %131 = vector.load %arg14[%c0_68, %c0_69, %c0_70] : memref<6x8x10xf32, #tpu.memory_space<vmem>>, vector<1x8x10xf32>
    %132 = vector.shape_cast %131 : vector<1x8x10xf32> to vector<8x10xf32>
    %133 = vector.shape_cast %116 : vector<8x10xf32> to vector<1x8x10xf32>
    tpu.vector_store %arg14[%c0_68, %c0_69, %c0_70], %133 {strides = array<i32>} : memref<6x8x10xf32, #tpu.memory_space<vmem>>, vector<1x8x10xf32>,
    %c0_71 = arith.constant 0 : index
    %c0_72 = arith.constant 0 : index
    %c0_73 = arith.constant 0 : index
    %134 = vector.load %arg15[%c0_71, %c0_72, %c0_73] : memref<2x8x32xf32, #tpu.memory_space<vmem>>, vector<1x8x32xf32>
    %135 = vector.shape_cast %134 : vector<1x8x32xf32> to vector<8x32xf32>
    %c0_74 = arith.constant 0 : index
    %c0_75 = arith.constant 0 : index
    %c0_76 = arith.constant 0 : index
    %136 = vector.load %arg16[%c0_74, %c0_75, %c0_76] : memref<2x8x32xf32, #tpu.memory_space<vmem>>, vector<1x8x32xf32>
    %137 = vector.shape_cast %136 : vector<1x8x32xf32> to vector<8x32xf32>
    %c1_77 = arith.constant 1 : index
    %c0_78 = arith.constant 0 : index
    %c0_79 = arith.constant 0 : index
    %138 = vector.load %arg1[%c1_77, %c0_78, %c0_79] : memref<6x8x128xf32, #tpu.memory_space<vmem>>, vector<1x8x128xf32>
    %139 = vector.shape_cast %138 : vector<1x8x128xf32> to vector<8x128xf32>
    %cst_80 = arith.constant dense<0.000000e+00> : vector<8x128xf32>
    %140 = tpu.matmul %135, %12, %cst_80 {dimension_numbers = #tpu.dot_dimension_numbers<[1], [0], [0], [1], [0, 0, 1, 1], [], []>} : vector<8x32xf32>, vector<32x128xf32>, vector<8x128xf32> -> vector<8x128xf32>
    %141 = arith.addf %139, %140 : vector<8x128xf32>
    %142 = vector.extract_strided_slice %141 {offsets = [0, 0], sizes = [8, 32], strides = [1, 1]} : vector<8x128xf32> to vector<8x32xf32>
    %143 = arith.negf %142 : vector<8x32xf32>
    %144 = math.exp %143 : vector<8x32xf32>
    %cst_81 = arith.constant 1.000000e+00 : f32
    %145 = vector.broadcast %cst_81 : f32 to vector<8x32xf32>
    %146 = arith.addf %145, %144 : vector<8x32xf32>
    %147 = arith.divf %145, %146 : vector<8x32xf32>
    %148 = vector.extract_strided_slice %141 {offsets = [0, 32], sizes = [8, 32], strides = [1, 1]} : vector<8x128xf32> to vector<8x32xf32>
    %149 = arith.negf %148 : vector<8x32xf32>
    %150 = math.exp %149 : vector<8x32xf32>
    %cst_82 = arith.constant 1.000000e+00 : f32
    %151 = vector.broadcast %cst_82 : f32 to vector<8x32xf32>
    %152 = arith.addf %151, %150 : vector<8x32xf32>
    %153 = arith.divf %151, %152 : vector<8x32xf32>
    %154 = vector.extract_strided_slice %141 {offsets = [0, 64], sizes = [8, 32], strides = [1, 1]} : vector<8x128xf32> to vector<8x32xf32>
    %155 = math.tanh %154 : vector<8x32xf32>
    %156 = vector.extract_strided_slice %141 {offsets = [0, 96], sizes = [8, 32], strides = [1, 1]} : vector<8x128xf32> to vector<8x32xf32>
    %157 = arith.negf %156 : vector<8x32xf32>
    %158 = math.exp %157 : vector<8x32xf32>
    %cst_83 = arith.constant 1.000000e+00 : f32
    %159 = vector.broadcast %cst_83 : f32 to vector<8x32xf32>
    %160 = arith.addf %159, %158 : vector<8x32xf32>
    %161 = arith.divf %159, %160 : vector<8x32xf32>
    %162 = arith.mulf %153, %137 : vector<8x32xf32>
    %163 = arith.mulf %147, %155 : vector<8x32xf32>
    %164 = arith.addf %162, %163 : vector<8x32xf32>
    %165 = math.tanh %164 : vector<8x32xf32>
    %166 = arith.mulf %161, %165 : vector<8x32xf32>
    %c0_84 = arith.constant 0 : index
    %c0_85 = arith.constant 0 : index
    %c0_86 = arith.constant 0 : index
    %167 = vector.load %arg15[%c0_84, %c0_85, %c0_86] : memref<2x8x32xf32, #tpu.memory_space<vmem>>, vector<1x8x32xf32>
    %168 = vector.shape_cast %167 : vector<1x8x32xf32> to vector<8x32xf32>
    %169 = vector.shape_cast %166 : vector<8x32xf32> to vector<1x8x32xf32>
    tpu.vector_store %arg15[%c0_84, %c0_85, %c0_86], %169 {strides = array<i32>} : memref<2x8x32xf32, #tpu.memory_space<vmem>>, vector<1x8x32xf32>,
    %c0_87 = arith.constant 0 : index
    %c0_88 = arith.constant 0 : index
    %c0_89 = arith.constant 0 : index
    %170 = vector.load %arg16[%c0_87, %c0_88, %c0_89] : memref<2x8x32xf32, #tpu.memory_space<vmem>>, vector<1x8x32xf32>
    %171 = vector.shape_cast %170 : vector<1x8x32xf32> to vector<8x32xf32>
    %172 = vector.shape_cast %164 : vector<8x32xf32> to vector<1x8x32xf32>
    tpu.vector_store %arg16[%c0_87, %c0_88, %c0_89], %172 {strides = array<i32>} : memref<2x8x32xf32, #tpu.memory_space<vmem>>, vector<1x8x32xf32>,
    %c1_90 = arith.constant 1 : index
    %c0_91 = arith.constant 0 : index
    %c0_92 = arith.constant 0 : index
    %173 = vector.load %arg15[%c1_90, %c0_91, %c0_92] : memref<2x8x32xf32, #tpu.memory_space<vmem>>, vector<1x8x32xf32>
    %174 = vector.shape_cast %173 : vector<1x8x32xf32> to vector<8x32xf32>
    %c1_93 = arith.constant 1 : index
    %c0_94 = arith.constant 0 : index
    %c0_95 = arith.constant 0 : index
    %175 = vector.load %arg16[%c1_93, %c0_94, %c0_95] : memref<2x8x32xf32, #tpu.memory_space<vmem>>, vector<1x8x32xf32>
    %176 = vector.shape_cast %175 : vector<1x8x32xf32> to vector<8x32xf32>
    %cst_96 = arith.constant dense<0.000000e+00> : vector<8x128xf32>
    %177 = tpu.matmul %166, %16, %cst_96 {dimension_numbers = #tpu.dot_dimension_numbers<[1], [0], [0], [1], [0, 0, 1, 1], [], []>} : vector<8x32xf32>, vector<32x128xf32>, vector<8x128xf32> -> vector<8x128xf32>
    %cst_97 = arith.constant dense<0.000000e+00> : vector<8x128xf32>
    %178 = tpu.matmul %174, %14, %cst_97 {dimension_numbers = #tpu.dot_dimension_numbers<[1], [0], [0], [1], [0, 0, 1, 1], [], []>} : vector<8x32xf32>, vector<32x128xf32>, vector<8x128xf32> -> vector<8x128xf32>
    %179 = arith.addf %177, %178 : vector<8x128xf32>
    %180 = vector.shape_cast %18 : vector<128xf32> to vector<1x128xf32>
    %181 = vector.broadcast %180 : vector<1x128xf32> to vector<8x128xf32>
    %182 = arith.addf %179, %181 : vector<8x128xf32>
    %183 = vector.extract_strided_slice %182 {offsets = [0, 0], sizes = [8, 32], strides = [1, 1]} : vector<8x128xf32> to vector<8x32xf32>
    %184 = arith.negf %183 : vector<8x32xf32>
    %185 = math.exp %184 : vector<8x32xf32>
    %cst_98 = arith.constant 1.000000e+00 : f32
    %186 = vector.broadcast %cst_98 : f32 to vector<8x32xf32>
    %187 = arith.addf %186, %185 : vector<8x32xf32>
    %188 = arith.divf %186, %187 : vector<8x32xf32>
    %189 = vector.extract_strided_slice %182 {offsets = [0, 32], sizes = [8, 32], strides = [1, 1]} : vector<8x128xf32> to vector<8x32xf32>
    %190 = arith.negf %189 : vector<8x32xf32>
    %191 = math.exp %190 : vector<8x32xf32>
    %cst_99 = arith.constant 1.000000e+00 : f32
    %192 = vector.broadcast %cst_99 : f32 to vector<8x32xf32>
    %193 = arith.addf %192, %191 : vector<8x32xf32>
    %194 = arith.divf %192, %193 : vector<8x32xf32>
    %195 = vector.extract_strided_slice %182 {offsets = [0, 64], sizes = [8, 32], strides = [1, 1]} : vector<8x128xf32> to vector<8x32xf32>
    %196 = math.tanh %195 : vector<8x32xf32>
    %197 = vector.extract_strided_slice %182 {offsets = [0, 96], sizes = [8, 32], strides = [1, 1]} : vector<8x128xf32> to vector<8x32xf32>
    %198 = arith.negf %197 : vector<8x32xf32>
    %199 = math.exp %198 : vector<8x32xf32>
    %cst_100 = arith.constant 1.000000e+00 : f32
    %200 = vector.broadcast %cst_100 : f32 to vector<8x32xf32>
    %201 = arith.addf %200, %199 : vector<8x32xf32>
    %202 = arith.divf %200, %201 : vector<8x32xf32>
    %203 = arith.mulf %194, %176 : vector<8x32xf32>
    %204 = arith.mulf %188, %196 : vector<8x32xf32>
    %205 = arith.addf %203, %204 : vector<8x32xf32>
    %206 = math.tanh %205 : vector<8x32xf32>
    %207 = arith.mulf %202, %206 : vector<8x32xf32>
    %c1_101 = arith.constant 1 : index
    %c0_102 = arith.constant 0 : index
    %c0_103 = arith.constant 0 : index
    %208 = vector.load %arg15[%c1_101, %c0_102, %c0_103] : memref<2x8x32xf32, #tpu.memory_space<vmem>>, vector<1x8x32xf32>
    %209 = vector.shape_cast %208 : vector<1x8x32xf32> to vector<8x32xf32>
    %210 = vector.shape_cast %207 : vector<8x32xf32> to vector<1x8x32xf32>
    tpu.vector_store %arg15[%c1_101, %c0_102, %c0_103], %210 {strides = array<i32>} : memref<2x8x32xf32, #tpu.memory_space<vmem>>, vector<1x8x32xf32>,
    %c1_104 = arith.constant 1 : index
    %c0_105 = arith.constant 0 : index
    %c0_106 = arith.constant 0 : index
    %211 = vector.load %arg16[%c1_104, %c0_105, %c0_106] : memref<2x8x32xf32, #tpu.memory_space<vmem>>, vector<1x8x32xf32>
    %212 = vector.shape_cast %211 : vector<1x8x32xf32> to vector<8x32xf32>
    %213 = vector.shape_cast %205 : vector<8x32xf32> to vector<1x8x32xf32>
    tpu.vector_store %arg16[%c1_104, %c0_105, %c0_106], %213 {strides = array<i32>} : memref<2x8x32xf32, #tpu.memory_space<vmem>>, vector<1x8x32xf32>,
    %cst_107 = arith.constant dense<0.000000e+00> : vector<8x32xf32>
    %214 = tpu.matmul %207, %4, %cst_107 {dimension_numbers = #tpu.dot_dimension_numbers<[1], [0], [0], [1], [0, 0, 1, 1], [], []>} : vector<8x32xf32>, vector<32x32xf32>, vector<8x32xf32> -> vector<8x32xf32>
    %215 = vector.shape_cast %6 : vector<32xf32> to vector<1x32xf32>
    %216 = vector.broadcast %215 : vector<1x32xf32> to vector<8x32xf32>
    %217 = arith.addf %214, %216 : vector<8x32xf32>
    %218 = vector.shape_cast %217 : vector<8x32xf32> to vector<8x1x32xf32>
    %219 = vector.broadcast %218 : vector<8x1x32xf32> to vector<8x10x32xf32>
    %220 = arith.mulf %3, %219 : vector<8x10x32xf32>
    %cst_108 = arith.constant dense<0.000000e+00> : vector<8x10xf32>
    %221 = vector.multi_reduction <add>, %220, %cst_108 [2] : vector<8x10x32xf32> to vector<8x10xf32>
    %cst_109 = arith.constant dense<0xFF800000> : vector<8xf32>
    %222 = vector.multi_reduction <maximumf>, %221, %cst_109 [1] : vector<8x10xf32> to vector<8xf32>
    %223 = vector.shape_cast %222 : vector<8xf32> to vector<8x1xf32>
    %224 = vector.broadcast %223 : vector<8x1xf32> to vector<8x10xf32>
    %225 = arith.subf %221, %224 : vector<8x10xf32>
    %226 = math.exp %225 : vector<8x10xf32>
    %cst_110 = arith.constant dense<0.000000e+00> : vector<8xf32>
    %227 = vector.multi_reduction <add>, %226, %cst_110 [1] : vector<8x10xf32> to vector<8xf32>
    %228 = vector.shape_cast %227 : vector<8xf32> to vector<8x1xf32>
    %229 = tpu.reciprocal %228 : vector<8x1xf32> -> vector<8x1xf32>
    %230 = vector.broadcast %229 : vector<8x1xf32> to vector<8x10xf32>
    %231 = arith.mulf %226, %230 : vector<8x10xf32>
    %232 = vector.shape_cast %231 : vector<8x10xf32> to vector<8x10x1xf32>
    %233 = vector.broadcast %232 : vector<8x10x1xf32> to vector<8x10x32xf32>
    %234 = arith.mulf %233, %3 : vector<8x10x32xf32>
    %cst_111 = arith.constant dense<0.000000e+00> : vector<8x32xf32>
    %235 = vector.multi_reduction <add>, %234, %cst_111 [1] : vector<8x10x32xf32> to vector<8x32xf32>
    %cst_112 = arith.constant dense<0.000000e+00> : vector<8x32xf32>
    %236 = tpu.matmul %235, %7, %cst_112 {dimension_numbers = #tpu.dot_dimension_numbers<[1], [0], [0], [1], [0, 0, 1, 1], [], []>} : vector<8x32xf32>, vector<32x32xf32>, vector<8x32xf32> -> vector<8x32xf32>
    %cst_113 = arith.constant dense<0.000000e+00> : vector<8x32xf32>
    %237 = tpu.matmul %207, %8, %cst_113 {dimension_numbers = #tpu.dot_dimension_numbers<[1], [0], [0], [1], [0, 0, 1, 1], [], []>} : vector<8x32xf32>, vector<32x32xf32>, vector<8x32xf32> -> vector<8x32xf32>
    %238 = arith.addf %236, %237 : vector<8x32xf32>
    %239 = vector.shape_cast %10 : vector<32xf32> to vector<1x32xf32>
    %240 = vector.broadcast %239 : vector<1x32xf32> to vector<8x32xf32>
    %241 = arith.addf %238, %240 : vector<8x32xf32>
    %242 = math.tanh %241 : vector<8x32xf32>
    %c1_114 = arith.constant 1 : index
    %c0_115 = arith.constant 0 : index
    %c0_116 = arith.constant 0 : index
    %243 = vector.load %arg13[%c1_114, %c0_115, %c0_116] : memref<6x8x32xf32, #tpu.memory_space<vmem>>, vector<1x8x32xf32>
    %244 = vector.shape_cast %243 : vector<1x8x32xf32> to vector<8x32xf32>
    %245 = vector.shape_cast %242 : vector<8x32xf32> to vector<1x8x32xf32>
    tpu.vector_store %arg13[%c1_114, %c0_115, %c0_116], %245 {strides = array<i32>} : memref<6x8x32xf32, #tpu.memory_space<vmem>>, vector<1x8x32xf32>,
    %c1_117 = arith.constant 1 : index
    %c0_118 = arith.constant 0 : index
    %c0_119 = arith.constant 0 : index
    %246 = vector.load %arg14[%c1_117, %c0_118, %c0_119] : memref<6x8x10xf32, #tpu.memory_space<vmem>>, vector<1x8x10xf32>
    %247 = vector.shape_cast %246 : vector<1x8x10xf32> to vector<8x10xf32>
    %248 = vector.shape_cast %231 : vector<8x10xf32> to vector<1x8x10xf32>
    tpu.vector_store %arg14[%c1_117, %c0_118, %c0_119], %248 {strides = array<i32>} : memref<6x8x10xf32, #tpu.memory_space<vmem>>, vector<1x8x10xf32>,
    %c0_120 = arith.constant 0 : index
    %c0_121 = arith.constant 0 : index
    %c0_122 = arith.constant 0 : index
    %249 = vector.load %arg15[%c0_120, %c0_121, %c0_122] : memref<2x8x32xf32, #tpu.memory_space<vmem>>, vector<1x8x32xf32>
    %250 = vector.shape_cast %249 : vector<1x8x32xf32> to vector<8x32xf32>
    %c0_123 = arith.constant 0 : index
    %c0_124 = arith.constant 0 : index
    %c0_125 = arith.constant 0 : index
    %251 = vector.load %arg16[%c0_123, %c0_124, %c0_125] : memref<2x8x32xf32, #tpu.memory_space<vmem>>, vector<1x8x32xf32>
    %252 = vector.shape_cast %251 : vector<1x8x32xf32> to vector<8x32xf32>
    %c2 = arith.constant 2 : index
    %c0_126 = arith.constant 0 : index
    %c0_127 = arith.constant 0 : index
    %253 = vector.load %arg1[%c2, %c0_126, %c0_127] : memref<6x8x128xf32, #tpu.memory_space<vmem>>, vector<1x8x128xf32>
    %254 = vector.shape_cast %253 : vector<1x8x128xf32> to vector<8x128xf32>
    %cst_128 = arith.constant dense<0.000000e+00> : vector<8x128xf32>
    %255 = tpu.matmul %250, %12, %cst_128 {dimension_numbers = #tpu.dot_dimension_numbers<[1], [0], [0], [1], [0, 0, 1, 1], [], []>} : vector<8x32xf32>, vector<32x128xf32>, vector<8x128xf32> -> vector<8x128xf32>
    %256 = arith.addf %254, %255 : vector<8x128xf32>
    %257 = vector.extract_strided_slice %256 {offsets = [0, 0], sizes = [8, 32], strides = [1, 1]} : vector<8x128xf32> to vector<8x32xf32>
    %258 = arith.negf %257 : vector<8x32xf32>
    %259 = math.exp %258 : vector<8x32xf32>
    %cst_129 = arith.constant 1.000000e+00 : f32
    %260 = vector.broadcast %cst_129 : f32 to vector<8x32xf32>
    %261 = arith.addf %260, %259 : vector<8x32xf32>
    %262 = arith.divf %260, %261 : vector<8x32xf32>
    %263 = vector.extract_strided_slice %256 {offsets = [0, 32], sizes = [8, 32], strides = [1, 1]} : vector<8x128xf32> to vector<8x32xf32>
    %264 = arith.negf %263 : vector<8x32xf32>
    %265 = math.exp %264 : vector<8x32xf32>
    %cst_130 = arith.constant 1.000000e+00 : f32
    %266 = vector.broadcast %cst_130 : f32 to vector<8x32xf32>
    %267 = arith.addf %266, %265 : vector<8x32xf32>
    %268 = arith.divf %266, %267 : vector<8x32xf32>
    %269 = vector.extract_strided_slice %256 {offsets = [0, 64], sizes = [8, 32], strides = [1, 1]} : vector<8x128xf32> to vector<8x32xf32>
    %270 = math.tanh %269 : vector<8x32xf32>
    %271 = vector.extract_strided_slice %256 {offsets = [0, 96], sizes = [8, 32], strides = [1, 1]} : vector<8x128xf32> to vector<8x32xf32>
    %272 = arith.negf %271 : vector<8x32xf32>
    %273 = math.exp %272 : vector<8x32xf32>
    %cst_131 = arith.constant 1.000000e+00 : f32
    %274 = vector.broadcast %cst_131 : f32 to vector<8x32xf32>
    %275 = arith.addf %274, %273 : vector<8x32xf32>
    %276 = arith.divf %274, %275 : vector<8x32xf32>
    %277 = arith.mulf %268, %252 : vector<8x32xf32>
    %278 = arith.mulf %262, %270 : vector<8x32xf32>
    %279 = arith.addf %277, %278 : vector<8x32xf32>
    %280 = math.tanh %279 : vector<8x32xf32>
    %281 = arith.mulf %276, %280 : vector<8x32xf32>
    %c0_132 = arith.constant 0 : index
    %c0_133 = arith.constant 0 : index
    %c0_134 = arith.constant 0 : index
    %282 = vector.load %arg15[%c0_132, %c0_133, %c0_134] : memref<2x8x32xf32, #tpu.memory_space<vmem>>, vector<1x8x32xf32>
    %283 = vector.shape_cast %282 : vector<1x8x32xf32> to vector<8x32xf32>
    %284 = vector.shape_cast %281 : vector<8x32xf32> to vector<1x8x32xf32>
    tpu.vector_store %arg15[%c0_132, %c0_133, %c0_134], %284 {strides = array<i32>} : memref<2x8x32xf32, #tpu.memory_space<vmem>>, vector<1x8x32xf32>,
    %c0_135 = arith.constant 0 : index
    %c0_136 = arith.constant 0 : index
    %c0_137 = arith.constant 0 : index
    %285 = vector.load %arg16[%c0_135, %c0_136, %c0_137] : memref<2x8x32xf32, #tpu.memory_space<vmem>>, vector<1x8x32xf32>
    %286 = vector.shape_cast %285 : vector<1x8x32xf32> to vector<8x32xf32>
    %287 = vector.shape_cast %279 : vector<8x32xf32> to vector<1x8x32xf32>
    tpu.vector_store %arg16[%c0_135, %c0_136, %c0_137], %287 {strides = array<i32>} : memref<2x8x32xf32, #tpu.memory_space<vmem>>, vector<1x8x32xf32>,
    %c1_138 = arith.constant 1 : index
    %c0_139 = arith.constant 0 : index
    %c0_140 = arith.constant 0 : index
    %288 = vector.load %arg15[%c1_138, %c0_139, %c0_140] : memref<2x8x32xf32, #tpu.memory_space<vmem>>, vector<1x8x32xf32>
    %289 = vector.shape_cast %288 : vector<1x8x32xf32> to vector<8x32xf32>
    %c1_141 = arith.constant 1 : index
    %c0_142 = arith.constant 0 : index
    %c0_143 = arith.constant 0 : index
    %290 = vector.load %arg16[%c1_141, %c0_142, %c0_143] : memref<2x8x32xf32, #tpu.memory_space<vmem>>, vector<1x8x32xf32>
    %291 = vector.shape_cast %290 : vector<1x8x32xf32> to vector<8x32xf32>
    %cst_144 = arith.constant dense<0.000000e+00> : vector<8x128xf32>
    %292 = tpu.matmul %281, %16, %cst_144 {dimension_numbers = #tpu.dot_dimension_numbers<[1], [0], [0], [1], [0, 0, 1, 1], [], []>} : vector<8x32xf32>, vector<32x128xf32>, vector<8x128xf32> -> vector<8x128xf32>
    %cst_145 = arith.constant dense<0.000000e+00> : vector<8x128xf32>
    %293 = tpu.matmul %289, %14, %cst_145 {dimension_numbers = #tpu.dot_dimension_numbers<[1], [0], [0], [1], [0, 0, 1, 1], [], []>} : vector<8x32xf32>, vector<32x128xf32>, vector<8x128xf32> -> vector<8x128xf32>
    %294 = arith.addf %292, %293 : vector<8x128xf32>
    %295 = vector.shape_cast %18 : vector<128xf32> to vector<1x128xf32>
    %296 = vector.broadcast %295 : vector<1x128xf32> to vector<8x128xf32>
    %297 = arith.addf %294, %296 : vector<8x128xf32>
    %298 = vector.extract_strided_slice %297 {offsets = [0, 0], sizes = [8, 32], strides = [1, 1]} : vector<8x128xf32> to vector<8x32xf32>
    %299 = arith.negf %298 : vector<8x32xf32>
    %300 = math.exp %299 : vector<8x32xf32>
    %cst_146 = arith.constant 1.000000e+00 : f32
    %301 = vector.broadcast %cst_146 : f32 to vector<8x32xf32>
    %302 = arith.addf %301, %300 : vector<8x32xf32>
    %303 = arith.divf %301, %302 : vector<8x32xf32>
    %304 = vector.extract_strided_slice %297 {offsets = [0, 32], sizes = [8, 32], strides = [1, 1]} : vector<8x128xf32> to vector<8x32xf32>
    %305 = arith.negf %304 : vector<8x32xf32>
    %306 = math.exp %305 : vector<8x32xf32>
    %cst_147 = arith.constant 1.000000e+00 : f32
    %307 = vector.broadcast %cst_147 : f32 to vector<8x32xf32>
    %308 = arith.addf %307, %306 : vector<8x32xf32>
    %309 = arith.divf %307, %308 : vector<8x32xf32>
    %310 = vector.extract_strided_slice %297 {offsets = [0, 64], sizes = [8, 32], strides = [1, 1]} : vector<8x128xf32> to vector<8x32xf32>
    %311 = math.tanh %310 : vector<8x32xf32>
    %312 = vector.extract_strided_slice %297 {offsets = [0, 96], sizes = [8, 32], strides = [1, 1]} : vector<8x128xf32> to vector<8x32xf32>
    %313 = arith.negf %312 : vector<8x32xf32>
    %314 = math.exp %313 : vector<8x32xf32>
    %cst_148 = arith.constant 1.000000e+00 : f32
    %315 = vector.broadcast %cst_148 : f32 to vector<8x32xf32>
    %316 = arith.addf %315, %314 : vector<8x32xf32>
    %317 = arith.divf %315, %316 : vector<8x32xf32>
    %318 = arith.mulf %309, %291 : vector<8x32xf32>
    %319 = arith.mulf %303, %311 : vector<8x32xf32>
    %320 = arith.addf %318, %319 : vector<8x32xf32>
    %321 = math.tanh %320 : vector<8x32xf32>
    %322 = arith.mulf %317, %321 : vector<8x32xf32>
    %c1_149 = arith.constant 1 : index
    %c0_150 = arith.constant 0 : index
    %c0_151 = arith.constant 0 : index
    %323 = vector.load %arg15[%c1_149, %c0_150, %c0_151] : memref<2x8x32xf32, #tpu.memory_space<vmem>>, vector<1x8x32xf32>
    %324 = vector.shape_cast %323 : vector<1x8x32xf32> to vector<8x32xf32>
    %325 = vector.shape_cast %322 : vector<8x32xf32> to vector<1x8x32xf32>
    tpu.vector_store %arg15[%c1_149, %c0_150, %c0_151], %325 {strides = array<i32>} : memref<2x8x32xf32, #tpu.memory_space<vmem>>, vector<1x8x32xf32>,
    %c1_152 = arith.constant 1 : index
    %c0_153 = arith.constant 0 : index
    %c0_154 = arith.constant 0 : index
    %326 = vector.load %arg16[%c1_152, %c0_153, %c0_154] : memref<2x8x32xf32, #tpu.memory_space<vmem>>, vector<1x8x32xf32>
    %327 = vector.shape_cast %326 : vector<1x8x32xf32> to vector<8x32xf32>
    %328 = vector.shape_cast %320 : vector<8x32xf32> to vector<1x8x32xf32>
    tpu.vector_store %arg16[%c1_152, %c0_153, %c0_154], %328 {strides = array<i32>} : memref<2x8x32xf32, #tpu.memory_space<vmem>>, vector<1x8x32xf32>,
    %cst_155 = arith.constant dense<0.000000e+00> : vector<8x32xf32>
    %329 = tpu.matmul %322, %4, %cst_155 {dimension_numbers = #tpu.dot_dimension_numbers<[1], [0], [0], [1], [0, 0, 1, 1], [], []>} : vector<8x32xf32>, vector<32x32xf32>, vector<8x32xf32> -> vector<8x32xf32>
    %330 = vector.shape_cast %6 : vector<32xf32> to vector<1x32xf32>
    %331 = vector.broadcast %330 : vector<1x32xf32> to vector<8x32xf32>
    %332 = arith.addf %329, %331 : vector<8x32xf32>
    %333 = vector.shape_cast %332 : vector<8x32xf32> to vector<8x1x32xf32>
    %334 = vector.broadcast %333 : vector<8x1x32xf32> to vector<8x10x32xf32>
    %335 = arith.mulf %3, %334 : vector<8x10x32xf32>
    %cst_156 = arith.constant dense<0.000000e+00> : vector<8x10xf32>
    %336 = vector.multi_reduction <add>, %335, %cst_156 [2] : vector<8x10x32xf32> to vector<8x10xf32>
    %cst_157 = arith.constant dense<0xFF800000> : vector<8xf32>
    %337 = vector.multi_reduction <maximumf>, %336, %cst_157 [1] : vector<8x10xf32> to vector<8xf32>
    %338 = vector.shape_cast %337 : vector<8xf32> to vector<8x1xf32>
    %339 = vector.broadcast %338 : vector<8x1xf32> to vector<8x10xf32>
    %340 = arith.subf %336, %339 : vector<8x10xf32>
    %341 = math.exp %340 : vector<8x10xf32>
    %cst_158 = arith.constant dense<0.000000e+00> : vector<8xf32>
    %342 = vector.multi_reduction <add>, %341, %cst_158 [1] : vector<8x10xf32> to vector<8xf32>
    %343 = vector.shape_cast %342 : vector<8xf32> to vector<8x1xf32>
    %344 = tpu.reciprocal %343 : vector<8x1xf32> -> vector<8x1xf32>
    %345 = vector.broadcast %344 : vector<8x1xf32> to vector<8x10xf32>
    %346 = arith.mulf %341, %345 : vector<8x10xf32>
    %347 = vector.shape_cast %346 : vector<8x10xf32> to vector<8x10x1xf32>
    %348 = vector.broadcast %347 : vector<8x10x1xf32> to vector<8x10x32xf32>
    %349 = arith.mulf %348, %3 : vector<8x10x32xf32>
    %cst_159 = arith.constant dense<0.000000e+00> : vector<8x32xf32>
    %350 = vector.multi_reduction <add>, %349, %cst_159 [1] : vector<8x10x32xf32> to vector<8x32xf32>
    %cst_160 = arith.constant dense<0.000000e+00> : vector<8x32xf32>
    %351 = tpu.matmul %350, %7, %cst_160 {dimension_numbers = #tpu.dot_dimension_numbers<[1], [0], [0], [1], [0, 0, 1, 1], [], []>} : vector<8x32xf32>, vector<32x32xf32>, vector<8x32xf32> -> vector<8x32xf32>
    %cst_161 = arith.constant dense<0.000000e+00> : vector<8x32xf32>
    %352 = tpu.matmul %322, %8, %cst_161 {dimension_numbers = #tpu.dot_dimension_numbers<[1], [0], [0], [1], [0, 0, 1, 1], [], []>} : vector<8x32xf32>, vector<32x32xf32>, vector<8x32xf32> -> vector<8x32xf32>
    %353 = arith.addf %351, %352 : vector<8x32xf32>
    %354 = vector.shape_cast %10 : vector<32xf32> to vector<1x32xf32>
    %355 = vector.broadcast %354 : vector<1x32xf32> to vector<8x32xf32>
    %356 = arith.addf %353, %355 : vector<8x32xf32>
    %357 = math.tanh %356 : vector<8x32xf32>
    %c2_162 = arith.constant 2 : index
    %c0_163 = arith.constant 0 : index
    %c0_164 = arith.constant 0 : index
    %358 = vector.load %arg13[%c2_162, %c0_163, %c0_164] : memref<6x8x32xf32, #tpu.memory_space<vmem>>, vector<1x8x32xf32>
    %359 = vector.shape_cast %358 : vector<1x8x32xf32> to vector<8x32xf32>
    %360 = vector.shape_cast %357 : vector<8x32xf32> to vector<1x8x32xf32>
    tpu.vector_store %arg13[%c2_162, %c0_163, %c0_164], %360 {strides = array<i32>} : memref<6x8x32xf32, #tpu.memory_space<vmem>>, vector<1x8x32xf32>,
    %c2_165 = arith.constant 2 : index
    %c0_166 = arith.constant 0 : index
    %c0_167 = arith.constant 0 : index
    %361 = vector.load %arg14[%c2_165, %c0_166, %c0_167] : memref<6x8x10xf32, #tpu.memory_space<vmem>>, vector<1x8x10xf32>
    %362 = vector.shape_cast %361 : vector<1x8x10xf32> to vector<8x10xf32>
    %363 = vector.shape_cast %346 : vector<8x10xf32> to vector<1x8x10xf32>
    tpu.vector_store %arg14[%c2_165, %c0_166, %c0_167], %363 {strides = array<i32>} : memref<6x8x10xf32, #tpu.memory_space<vmem>>, vector<1x8x10xf32>,
    %c0_168 = arith.constant 0 : index
    %c0_169 = arith.constant 0 : index
    %c0_170 = arith.constant 0 : index
    %364 = vector.load %arg15[%c0_168, %c0_169, %c0_170] : memref<2x8x32xf32, #tpu.memory_space<vmem>>, vector<1x8x32xf32>
    %365 = vector.shape_cast %364 : vector<1x8x32xf32> to vector<8x32xf32>
    %c0_171 = arith.constant 0 : index
    %c0_172 = arith.constant 0 : index
    %c0_173 = arith.constant 0 : index
    %366 = vector.load %arg16[%c0_171, %c0_172, %c0_173] : memref<2x8x32xf32, #tpu.memory_space<vmem>>, vector<1x8x32xf32>
    %367 = vector.shape_cast %366 : vector<1x8x32xf32> to vector<8x32xf32>
    %c3 = arith.constant 3 : index
    %c0_174 = arith.constant 0 : index
    %c0_175 = arith.constant 0 : index
    %368 = vector.load %arg1[%c3, %c0_174, %c0_175] : memref<6x8x128xf32, #tpu.memory_space<vmem>>, vector<1x8x128xf32>
    %369 = vector.shape_cast %368 : vector<1x8x128xf32> to vector<8x128xf32>
    %cst_176 = arith.constant dense<0.000000e+00> : vector<8x128xf32>
    %370 = tpu.matmul %365, %12, %cst_176 {dimension_numbers = #tpu.dot_dimension_numbers<[1], [0], [0], [1], [0, 0, 1, 1], [], []>} : vector<8x32xf32>, vector<32x128xf32>, vector<8x128xf32> -> vector<8x128xf32>
    %371 = arith.addf %369, %370 : vector<8x128xf32>
    %372 = vector.extract_strided_slice %371 {offsets = [0, 0], sizes = [8, 32], strides = [1, 1]} : vector<8x128xf32> to vector<8x32xf32>
    %373 = arith.negf %372 : vector<8x32xf32>
    %374 = math.exp %373 : vector<8x32xf32>
    %cst_177 = arith.constant 1.000000e+00 : f32
    %375 = vector.broadcast %cst_177 : f32 to vector<8x32xf32>
    %376 = arith.addf %375, %374 : vector<8x32xf32>
    %377 = arith.divf %375, %376 : vector<8x32xf32>
    %378 = vector.extract_strided_slice %371 {offsets = [0, 32], sizes = [8, 32], strides = [1, 1]} : vector<8x128xf32> to vector<8x32xf32>
    %379 = arith.negf %378 : vector<8x32xf32>
    %380 = math.exp %379 : vector<8x32xf32>
    %cst_178 = arith.constant 1.000000e+00 : f32
    %381 = vector.broadcast %cst_178 : f32 to vector<8x32xf32>
    %382 = arith.addf %381, %380 : vector<8x32xf32>
    %383 = arith.divf %381, %382 : vector<8x32xf32>
    %384 = vector.extract_strided_slice %371 {offsets = [0, 64], sizes = [8, 32], strides = [1, 1]} : vector<8x128xf32> to vector<8x32xf32>
    %385 = math.tanh %384 : vector<8x32xf32>
    %386 = vector.extract_strided_slice %371 {offsets = [0, 96], sizes = [8, 32], strides = [1, 1]} : vector<8x128xf32> to vector<8x32xf32>
    %387 = arith.negf %386 : vector<8x32xf32>
    %388 = math.exp %387 : vector<8x32xf32>
    %cst_179 = arith.constant 1.000000e+00 : f32
    %389 = vector.broadcast %cst_179 : f32 to vector<8x32xf32>
    %390 = arith.addf %389, %388 : vector<8x32xf32>
    %391 = arith.divf %389, %390 : vector<8x32xf32>
    %392 = arith.mulf %383, %367 : vector<8x32xf32>
    %393 = arith.mulf %377, %385 : vector<8x32xf32>
    %394 = arith.addf %392, %393 : vector<8x32xf32>
    %395 = math.tanh %394 : vector<8x32xf32>
    %396 = arith.mulf %391, %395 : vector<8x32xf32>
    %c0_180 = arith.constant 0 : index
    %c0_181 = arith.constant 0 : index
    %c0_182 = arith.constant 0 : index
    %397 = vector.load %arg15[%c0_180, %c0_181, %c0_182] : memref<2x8x32xf32, #tpu.memory_space<vmem>>, vector<1x8x32xf32>
    %398 = vector.shape_cast %397 : vector<1x8x32xf32> to vector<8x32xf32>
    %399 = vector.shape_cast %396 : vector<8x32xf32> to vector<1x8x32xf32>
    tpu.vector_store %arg15[%c0_180, %c0_181, %c0_182], %399 {strides = array<i32>} : memref<2x8x32xf32, #tpu.memory_space<vmem>>, vector<1x8x32xf32>,
    %c0_183 = arith.constant 0 : index
    %c0_184 = arith.constant 0 : index
    %c0_185 = arith.constant 0 : index
    %400 = vector.load %arg16[%c0_183, %c0_184, %c0_185] : memref<2x8x32xf32, #tpu.memory_space<vmem>>, vector<1x8x32xf32>
    %401 = vector.shape_cast %400 : vector<1x8x32xf32> to vector<8x32xf32>
    %402 = vector.shape_cast %394 : vector<8x32xf32> to vector<1x8x32xf32>
    tpu.vector_store %arg16[%c0_183, %c0_184, %c0_185], %402 {strides = array<i32>} : memref<2x8x32xf32, #tpu.memory_space<vmem>>, vector<1x8x32xf32>,
    %c1_186 = arith.constant 1 : index
    %c0_187 = arith.constant 0 : index
    %c0_188 = arith.constant 0 : index
    %403 = vector.load %arg15[%c1_186, %c0_187, %c0_188] : memref<2x8x32xf32, #tpu.memory_space<vmem>>, vector<1x8x32xf32>
    %404 = vector.shape_cast %403 : vector<1x8x32xf32> to vector<8x32xf32>
    %c1_189 = arith.constant 1 : index
    %c0_190 = arith.constant 0 : index
    %c0_191 = arith.constant 0 : index
    %405 = vector.load %arg16[%c1_189, %c0_190, %c0_191] : memref<2x8x32xf32, #tpu.memory_space<vmem>>, vector<1x8x32xf32>
    %406 = vector.shape_cast %405 : vector<1x8x32xf32> to vector<8x32xf32>
    %cst_192 = arith.constant dense<0.000000e+00> : vector<8x128xf32>
    %407 = tpu.matmul %396, %16, %cst_192 {dimension_numbers = #tpu.dot_dimension_numbers<[1], [0], [0], [1], [0, 0, 1, 1], [], []>} : vector<8x32xf32>, vector<32x128xf32>, vector<8x128xf32> -> vector<8x128xf32>
    %cst_193 = arith.constant dense<0.000000e+00> : vector<8x128xf32>
    %408 = tpu.matmul %404, %14, %cst_193 {dimension_numbers = #tpu.dot_dimension_numbers<[1], [0], [0], [1], [0, 0, 1, 1], [], []>} : vector<8x32xf32>, vector<32x128xf32>, vector<8x128xf32> -> vector<8x128xf32>
    %409 = arith.addf %407, %408 : vector<8x128xf32>
    %410 = vector.shape_cast %18 : vector<128xf32> to vector<1x128xf32>
    %411 = vector.broadcast %410 : vector<1x128xf32> to vector<8x128xf32>
    %412 = arith.addf %409, %411 : vector<8x128xf32>
    %413 = vector.extract_strided_slice %412 {offsets = [0, 0], sizes = [8, 32], strides = [1, 1]} : vector<8x128xf32> to vector<8x32xf32>
    %414 = arith.negf %413 : vector<8x32xf32>
    %415 = math.exp %414 : vector<8x32xf32>
    %cst_194 = arith.constant 1.000000e+00 : f32
    %416 = vector.broadcast %cst_194 : f32 to vector<8x32xf32>
    %417 = arith.addf %416, %415 : vector<8x32xf32>
    %418 = arith.divf %416, %417 : vector<8x32xf32>
    %419 = vector.extract_strided_slice %412 {offsets = [0, 32], sizes = [8, 32], strides = [1, 1]} : vector<8x128xf32> to vector<8x32xf32>
    %420 = arith.negf %419 : vector<8x32xf32>
    %421 = math.exp %420 : vector<8x32xf32>
    %cst_195 = arith.constant 1.000000e+00 : f32
    %422 = vector.broadcast %cst_195 : f32 to vector<8x32xf32>
    %423 = arith.addf %422, %421 : vector<8x32xf32>
    %424 = arith.divf %422, %423 : vector<8x32xf32>
    %425 = vector.extract_strided_slice %412 {offsets = [0, 64], sizes = [8, 32], strides = [1, 1]} : vector<8x128xf32> to vector<8x32xf32>
    %426 = math.tanh %425 : vector<8x32xf32>
    %427 = vector.extract_strided_slice %412 {offsets = [0, 96], sizes = [8, 32], strides = [1, 1]} : vector<8x128xf32> to vector<8x32xf32>
    %428 = arith.negf %427 : vector<8x32xf32>
    %429 = math.exp %428 : vector<8x32xf32>
    %cst_196 = arith.constant 1.000000e+00 : f32
    %430 = vector.broadcast %cst_196 : f32 to vector<8x32xf32>
    %431 = arith.addf %430, %429 : vector<8x32xf32>
    %432 = arith.divf %430, %431 : vector<8x32xf32>
    %433 = arith.mulf %424, %406 : vector<8x32xf32>
    %434 = arith.mulf %418, %426 : vector<8x32xf32>
    %435 = arith.addf %433, %434 : vector<8x32xf32>
    %436 = math.tanh %435 : vector<8x32xf32>
    %437 = arith.mulf %432, %436 : vector<8x32xf32>
    %c1_197 = arith.constant 1 : index
    %c0_198 = arith.constant 0 : index
    %c0_199 = arith.constant 0 : index
    %438 = vector.load %arg15[%c1_197, %c0_198, %c0_199] : memref<2x8x32xf32, #tpu.memory_space<vmem>>, vector<1x8x32xf32>
    %439 = vector.shape_cast %438 : vector<1x8x32xf32> to vector<8x32xf32>
    %440 = vector.shape_cast %437 : vector<8x32xf32> to vector<1x8x32xf32>
    tpu.vector_store %arg15[%c1_197, %c0_198, %c0_199], %440 {strides = array<i32>} : memref<2x8x32xf32, #tpu.memory_space<vmem>>, vector<1x8x32xf32>,
    %c1_200 = arith.constant 1 : index
    %c0_201 = arith.constant 0 : index
    %c0_202 = arith.constant 0 : index
    %441 = vector.load %arg16[%c1_200, %c0_201, %c0_202] : memref<2x8x32xf32, #tpu.memory_space<vmem>>, vector<1x8x32xf32>
    %442 = vector.shape_cast %441 : vector<1x8x32xf32> to vector<8x32xf32>
    %443 = vector.shape_cast %435 : vector<8x32xf32> to vector<1x8x32xf32>
    tpu.vector_store %arg16[%c1_200, %c0_201, %c0_202], %443 {strides = array<i32>} : memref<2x8x32xf32, #tpu.memory_space<vmem>>, vector<1x8x32xf32>,
    %cst_203 = arith.constant dense<0.000000e+00> : vector<8x32xf32>
    %444 = tpu.matmul %437, %4, %cst_203 {dimension_numbers = #tpu.dot_dimension_numbers<[1], [0], [0], [1], [0, 0, 1, 1], [], []>} : vector<8x32xf32>, vector<32x32xf32>, vector<8x32xf32> -> vector<8x32xf32>
    %445 = vector.shape_cast %6 : vector<32xf32> to vector<1x32xf32>
    %446 = vector.broadcast %445 : vector<1x32xf32> to vector<8x32xf32>
    %447 = arith.addf %444, %446 : vector<8x32xf32>
    %448 = vector.shape_cast %447 : vector<8x32xf32> to vector<8x1x32xf32>
    %449 = vector.broadcast %448 : vector<8x1x32xf32> to vector<8x10x32xf32>
    %450 = arith.mulf %3, %449 : vector<8x10x32xf32>
    %cst_204 = arith.constant dense<0.000000e+00> : vector<8x10xf32>
    %451 = vector.multi_reduction <add>, %450, %cst_204 [2] : vector<8x10x32xf32> to vector<8x10xf32>
    %cst_205 = arith.constant dense<0xFF800000> : vector<8xf32>
    %452 = vector.multi_reduction <maximumf>, %451, %cst_205 [1] : vector<8x10xf32> to vector<8xf32>
    %453 = vector.shape_cast %452 : vector<8xf32> to vector<8x1xf32>
    %454 = vector.broadcast %453 : vector<8x1xf32> to vector<8x10xf32>
    %455 = arith.subf %451, %454 : vector<8x10xf32>
    %456 = math.exp %455 : vector<8x10xf32>
    %cst_206 = arith.constant dense<0.000000e+00> : vector<8xf32>
    %457 = vector.multi_reduction <add>, %456, %cst_206 [1] : vector<8x10xf32> to vector<8xf32>
    %458 = vector.shape_cast %457 : vector<8xf32> to vector<8x1xf32>
    %459 = tpu.reciprocal %458 : vector<8x1xf32> -> vector<8x1xf32>
    %460 = vector.broadcast %459 : vector<8x1xf32> to vector<8x10xf32>
    %461 = arith.mulf %456, %460 : vector<8x10xf32>
    %462 = vector.shape_cast %461 : vector<8x10xf32> to vector<8x10x1xf32>
    %463 = vector.broadcast %462 : vector<8x10x1xf32> to vector<8x10x32xf32>
    %464 = arith.mulf %463, %3 : vector<8x10x32xf32>
    %cst_207 = arith.constant dense<0.000000e+00> : vector<8x32xf32>
    %465 = vector.multi_reduction <add>, %464, %cst_207 [1] : vector<8x10x32xf32> to vector<8x32xf32>
    %cst_208 = arith.constant dense<0.000000e+00> : vector<8x32xf32>
    %466 = tpu.matmul %465, %7, %cst_208 {dimension_numbers = #tpu.dot_dimension_numbers<[1], [0], [0], [1], [0, 0, 1, 1], [], []>} : vector<8x32xf32>, vector<32x32xf32>, vector<8x32xf32> -> vector<8x32xf32>
    %cst_209 = arith.constant dense<0.000000e+00> : vector<8x32xf32>
    %467 = tpu.matmul %437, %8, %cst_209 {dimension_numbers = #tpu.dot_dimension_numbers<[1], [0], [0], [1], [0, 0, 1, 1], [], []>} : vector<8x32xf32>, vector<32x32xf32>, vector<8x32xf32> -> vector<8x32xf32>
    %468 = arith.addf %466, %467 : vector<8x32xf32>
    %469 = vector.shape_cast %10 : vector<32xf32> to vector<1x32xf32>
    %470 = vector.broadcast %469 : vector<1x32xf32> to vector<8x32xf32>
    %471 = arith.addf %468, %470 : vector<8x32xf32>
    %472 = math.tanh %471 : vector<8x32xf32>
    %c3_210 = arith.constant 3 : index
    %c0_211 = arith.constant 0 : index
    %c0_212 = arith.constant 0 : index
    %473 = vector.load %arg13[%c3_210, %c0_211, %c0_212] : memref<6x8x32xf32, #tpu.memory_space<vmem>>, vector<1x8x32xf32>
    %474 = vector.shape_cast %473 : vector<1x8x32xf32> to vector<8x32xf32>
    %475 = vector.shape_cast %472 : vector<8x32xf32> to vector<1x8x32xf32>
    tpu.vector_store %arg13[%c3_210, %c0_211, %c0_212], %475 {strides = array<i32>} : memref<6x8x32xf32, #tpu.memory_space<vmem>>, vector<1x8x32xf32>,
    %c3_213 = arith.constant 3 : index
    %c0_214 = arith.constant 0 : index
    %c0_215 = arith.constant 0 : index
    %476 = vector.load %arg14[%c3_213, %c0_214, %c0_215] : memref<6x8x10xf32, #tpu.memory_space<vmem>>, vector<1x8x10xf32>
    %477 = vector.shape_cast %476 : vector<1x8x10xf32> to vector<8x10xf32>
    %478 = vector.shape_cast %461 : vector<8x10xf32> to vector<1x8x10xf32>
    tpu.vector_store %arg14[%c3_213, %c0_214, %c0_215], %478 {strides = array<i32>} : memref<6x8x10xf32, #tpu.memory_space<vmem>>, vector<1x8x10xf32>,
    %c0_216 = arith.constant 0 : index
    %c0_217 = arith.constant 0 : index
    %c0_218 = arith.constant 0 : index
    %479 = vector.load %arg15[%c0_216, %c0_217, %c0_218] : memref<2x8x32xf32, #tpu.memory_space<vmem>>, vector<1x8x32xf32>
    %480 = vector.shape_cast %479 : vector<1x8x32xf32> to vector<8x32xf32>
    %c0_219 = arith.constant 0 : index
    %c0_220 = arith.constant 0 : index
    %c0_221 = arith.constant 0 : index
    %481 = vector.load %arg16[%c0_219, %c0_220, %c0_221] : memref<2x8x32xf32, #tpu.memory_space<vmem>>, vector<1x8x32xf32>
    %482 = vector.shape_cast %481 : vector<1x8x32xf32> to vector<8x32xf32>
    %c4 = arith.constant 4 : index
    %c0_222 = arith.constant 0 : index
    %c0_223 = arith.constant 0 : index
    %483 = vector.load %arg1[%c4, %c0_222, %c0_223] : memref<6x8x128xf32, #tpu.memory_space<vmem>>, vector<1x8x128xf32>
    %484 = vector.shape_cast %483 : vector<1x8x128xf32> to vector<8x128xf32>
    %cst_224 = arith.constant dense<0.000000e+00> : vector<8x128xf32>
    %485 = tpu.matmul %480, %12, %cst_224 {dimension_numbers = #tpu.dot_dimension_numbers<[1], [0], [0], [1], [0, 0, 1, 1], [], []>} : vector<8x32xf32>, vector<32x128xf32>, vector<8x128xf32> -> vector<8x128xf32>
    %486 = arith.addf %484, %485 : vector<8x128xf32>
    %487 = vector.extract_strided_slice %486 {offsets = [0, 0], sizes = [8, 32], strides = [1, 1]} : vector<8x128xf32> to vector<8x32xf32>
    %488 = arith.negf %487 : vector<8x32xf32>
    %489 = math.exp %488 : vector<8x32xf32>
    %cst_225 = arith.constant 1.000000e+00 : f32
    %490 = vector.broadcast %cst_225 : f32 to vector<8x32xf32>
    %491 = arith.addf %490, %489 : vector<8x32xf32>
    %492 = arith.divf %490, %491 : vector<8x32xf32>
    %493 = vector.extract_strided_slice %486 {offsets = [0, 32], sizes = [8, 32], strides = [1, 1]} : vector<8x128xf32> to vector<8x32xf32>
    %494 = arith.negf %493 : vector<8x32xf32>
    %495 = math.exp %494 : vector<8x32xf32>
    %cst_226 = arith.constant 1.000000e+00 : f32
    %496 = vector.broadcast %cst_226 : f32 to vector<8x32xf32>
    %497 = arith.addf %496, %495 : vector<8x32xf32>
    %498 = arith.divf %496, %497 : vector<8x32xf32>
    %499 = vector.extract_strided_slice %486 {offsets = [0, 64], sizes = [8, 32], strides = [1, 1]} : vector<8x128xf32> to vector<8x32xf32>
    %500 = math.tanh %499 : vector<8x32xf32>
    %501 = vector.extract_strided_slice %486 {offsets = [0, 96], sizes = [8, 32], strides = [1, 1]} : vector<8x128xf32> to vector<8x32xf32>
    %502 = arith.negf %501 : vector<8x32xf32>
    %503 = math.exp %502 : vector<8x32xf32>
    %cst_227 = arith.constant 1.000000e+00 : f32
    %504 = vector.broadcast %cst_227 : f32 to vector<8x32xf32>
    %505 = arith.addf %504, %503 : vector<8x32xf32>
    %506 = arith.divf %504, %505 : vector<8x32xf32>
    %507 = arith.mulf %498, %482 : vector<8x32xf32>
    %508 = arith.mulf %492, %500 : vector<8x32xf32>
    %509 = arith.addf %507, %508 : vector<8x32xf32>
    %510 = math.tanh %509 : vector<8x32xf32>
    %511 = arith.mulf %506, %510 : vector<8x32xf32>
    %c0_228 = arith.constant 0 : index
    %c0_229 = arith.constant 0 : index
    %c0_230 = arith.constant 0 : index
    %512 = vector.load %arg15[%c0_228, %c0_229, %c0_230] : memref<2x8x32xf32, #tpu.memory_space<vmem>>, vector<1x8x32xf32>
    %513 = vector.shape_cast %512 : vector<1x8x32xf32> to vector<8x32xf32>
    %514 = vector.shape_cast %511 : vector<8x32xf32> to vector<1x8x32xf32>
    tpu.vector_store %arg15[%c0_228, %c0_229, %c0_230], %514 {strides = array<i32>} : memref<2x8x32xf32, #tpu.memory_space<vmem>>, vector<1x8x32xf32>,
    %c0_231 = arith.constant 0 : index
    %c0_232 = arith.constant 0 : index
    %c0_233 = arith.constant 0 : index
    %515 = vector.load %arg16[%c0_231, %c0_232, %c0_233] : memref<2x8x32xf32, #tpu.memory_space<vmem>>, vector<1x8x32xf32>
    %516 = vector.shape_cast %515 : vector<1x8x32xf32> to vector<8x32xf32>
    %517 = vector.shape_cast %509 : vector<8x32xf32> to vector<1x8x32xf32>
    tpu.vector_store %arg16[%c0_231, %c0_232, %c0_233], %517 {strides = array<i32>} : memref<2x8x32xf32, #tpu.memory_space<vmem>>, vector<1x8x32xf32>,
    %c1_234 = arith.constant 1 : index
    %c0_235 = arith.constant 0 : index
    %c0_236 = arith.constant 0 : index
    %518 = vector.load %arg15[%c1_234, %c0_235, %c0_236] : memref<2x8x32xf32, #tpu.memory_space<vmem>>, vector<1x8x32xf32>
    %519 = vector.shape_cast %518 : vector<1x8x32xf32> to vector<8x32xf32>
    %c1_237 = arith.constant 1 : index
    %c0_238 = arith.constant 0 : index
    %c0_239 = arith.constant 0 : index
    %520 = vector.load %arg16[%c1_237, %c0_238, %c0_239] : memref<2x8x32xf32, #tpu.memory_space<vmem>>, vector<1x8x32xf32>
    %521 = vector.shape_cast %520 : vector<1x8x32xf32> to vector<8x32xf32>
    %cst_240 = arith.constant dense<0.000000e+00> : vector<8x128xf32>
    %522 = tpu.matmul %511, %16, %cst_240 {dimension_numbers = #tpu.dot_dimension_numbers<[1], [0], [0], [1], [0, 0, 1, 1], [], []>} : vector<8x32xf32>, vector<32x128xf32>, vector<8x128xf32> -> vector<8x128xf32>
    %cst_241 = arith.constant dense<0.000000e+00> : vector<8x128xf32>
    %523 = tpu.matmul %519, %14, %cst_241 {dimension_numbers = #tpu.dot_dimension_numbers<[1], [0], [0], [1], [0, 0, 1, 1], [], []>} : vector<8x32xf32>, vector<32x128xf32>, vector<8x128xf32> -> vector<8x128xf32>
    %524 = arith.addf %522, %523 : vector<8x128xf32>
    %525 = vector.shape_cast %18 : vector<128xf32> to vector<1x128xf32>
    %526 = vector.broadcast %525 : vector<1x128xf32> to vector<8x128xf32>
    %527 = arith.addf %524, %526 : vector<8x128xf32>
    %528 = vector.extract_strided_slice %527 {offsets = [0, 0], sizes = [8, 32], strides = [1, 1]} : vector<8x128xf32> to vector<8x32xf32>
    %529 = arith.negf %528 : vector<8x32xf32>
    %530 = math.exp %529 : vector<8x32xf32>
    %cst_242 = arith.constant 1.000000e+00 : f32
    %531 = vector.broadcast %cst_242 : f32 to vector<8x32xf32>
    %532 = arith.addf %531, %530 : vector<8x32xf32>
    %533 = arith.divf %531, %532 : vector<8x32xf32>
    %534 = vector.extract_strided_slice %527 {offsets = [0, 32], sizes = [8, 32], strides = [1, 1]} : vector<8x128xf32> to vector<8x32xf32>
    %535 = arith.negf %534 : vector<8x32xf32>
    %536 = math.exp %535 : vector<8x32xf32>
    %cst_243 = arith.constant 1.000000e+00 : f32
    %537 = vector.broadcast %cst_243 : f32 to vector<8x32xf32>
    %538 = arith.addf %537, %536 : vector<8x32xf32>
    %539 = arith.divf %537, %538 : vector<8x32xf32>
    %540 = vector.extract_strided_slice %527 {offsets = [0, 64], sizes = [8, 32], strides = [1, 1]} : vector<8x128xf32> to vector<8x32xf32>
    %541 = math.tanh %540 : vector<8x32xf32>
    %542 = vector.extract_strided_slice %527 {offsets = [0, 96], sizes = [8, 32], strides = [1, 1]} : vector<8x128xf32> to vector<8x32xf32>
    %543 = arith.negf %542 : vector<8x32xf32>
    %544 = math.exp %543 : vector<8x32xf32>
    %cst_244 = arith.constant 1.000000e+00 : f32
    %545 = vector.broadcast %cst_244 : f32 to vector<8x32xf32>
    %546 = arith.addf %545, %544 : vector<8x32xf32>
    %547 = arith.divf %545, %546 : vector<8x32xf32>
    %548 = arith.mulf %539, %521 : vector<8x32xf32>
    %549 = arith.mulf %533, %541 : vector<8x32xf32>
    %550 = arith.addf %548, %549 : vector<8x32xf32>
    %551 = math.tanh %550 : vector<8x32xf32>
    %552 = arith.mulf %547, %551 : vector<8x32xf32>
    %c1_245 = arith.constant 1 : index
    %c0_246 = arith.constant 0 : index
    %c0_247 = arith.constant 0 : index
    %553 = vector.load %arg15[%c1_245, %c0_246, %c0_247] : memref<2x8x32xf32, #tpu.memory_space<vmem>>, vector<1x8x32xf32>
    %554 = vector.shape_cast %553 : vector<1x8x32xf32> to vector<8x32xf32>
    %555 = vector.shape_cast %552 : vector<8x32xf32> to vector<1x8x32xf32>
    tpu.vector_store %arg15[%c1_245, %c0_246, %c0_247], %555 {strides = array<i32>} : memref<2x8x32xf32, #tpu.memory_space<vmem>>, vector<1x8x32xf32>,
    %c1_248 = arith.constant 1 : index
    %c0_249 = arith.constant 0 : index
    %c0_250 = arith.constant 0 : index
    %556 = vector.load %arg16[%c1_248, %c0_249, %c0_250] : memref<2x8x32xf32, #tpu.memory_space<vmem>>, vector<1x8x32xf32>
    %557 = vector.shape_cast %556 : vector<1x8x32xf32> to vector<8x32xf32>
    %558 = vector.shape_cast %550 : vector<8x32xf32> to vector<1x8x32xf32>
    tpu.vector_store %arg16[%c1_248, %c0_249, %c0_250], %558 {strides = array<i32>} : memref<2x8x32xf32, #tpu.memory_space<vmem>>, vector<1x8x32xf32>,
    %cst_251 = arith.constant dense<0.000000e+00> : vector<8x32xf32>
    %559 = tpu.matmul %552, %4, %cst_251 {dimension_numbers = #tpu.dot_dimension_numbers<[1], [0], [0], [1], [0, 0, 1, 1], [], []>} : vector<8x32xf32>, vector<32x32xf32>, vector<8x32xf32> -> vector<8x32xf32>
    %560 = vector.shape_cast %6 : vector<32xf32> to vector<1x32xf32>
    %561 = vector.broadcast %560 : vector<1x32xf32> to vector<8x32xf32>
    %562 = arith.addf %559, %561 : vector<8x32xf32>
    %563 = vector.shape_cast %562 : vector<8x32xf32> to vector<8x1x32xf32>
    %564 = vector.broadcast %563 : vector<8x1x32xf32> to vector<8x10x32xf32>
    %565 = arith.mulf %3, %564 : vector<8x10x32xf32>
    %cst_252 = arith.constant dense<0.000000e+00> : vector<8x10xf32>
    %566 = vector.multi_reduction <add>, %565, %cst_252 [2] : vector<8x10x32xf32> to vector<8x10xf32>
    %cst_253 = arith.constant dense<0xFF800000> : vector<8xf32>
    %567 = vector.multi_reduction <maximumf>, %566, %cst_253 [1] : vector<8x10xf32> to vector<8xf32>
    %568 = vector.shape_cast %567 : vector<8xf32> to vector<8x1xf32>
    %569 = vector.broadcast %568 : vector<8x1xf32> to vector<8x10xf32>
    %570 = arith.subf %566, %569 : vector<8x10xf32>
    %571 = math.exp %570 : vector<8x10xf32>
    %cst_254 = arith.constant dense<0.000000e+00> : vector<8xf32>
    %572 = vector.multi_reduction <add>, %571, %cst_254 [1] : vector<8x10xf32> to vector<8xf32>
    %573 = vector.shape_cast %572 : vector<8xf32> to vector<8x1xf32>
    %574 = tpu.reciprocal %573 : vector<8x1xf32> -> vector<8x1xf32>
    %575 = vector.broadcast %574 : vector<8x1xf32> to vector<8x10xf32>
    %576 = arith.mulf %571, %575 : vector<8x10xf32>
    %577 = vector.shape_cast %576 : vector<8x10xf32> to vector<8x10x1xf32>
    %578 = vector.broadcast %577 : vector<8x10x1xf32> to vector<8x10x32xf32>
    %579 = arith.mulf %578, %3 : vector<8x10x32xf32>
    %cst_255 = arith.constant dense<0.000000e+00> : vector<8x32xf32>
    %580 = vector.multi_reduction <add>, %579, %cst_255 [1] : vector<8x10x32xf32> to vector<8x32xf32>
    %cst_256 = arith.constant dense<0.000000e+00> : vector<8x32xf32>
    %581 = tpu.matmul %580, %7, %cst_256 {dimension_numbers = #tpu.dot_dimension_numbers<[1], [0], [0], [1], [0, 0, 1, 1], [], []>} : vector<8x32xf32>, vector<32x32xf32>, vector<8x32xf32> -> vector<8x32xf32>
    %cst_257 = arith.constant dense<0.000000e+00> : vector<8x32xf32>
    %582 = tpu.matmul %552, %8, %cst_257 {dimension_numbers = #tpu.dot_dimension_numbers<[1], [0], [0], [1], [0, 0, 1, 1], [], []>} : vector<8x32xf32>, vector<32x32xf32>, vector<8x32xf32> -> vector<8x32xf32>
    %583 = arith.addf %581, %582 : vector<8x32xf32>
    %584 = vector.shape_cast %10 : vector<32xf32> to vector<1x32xf32>
    %585 = vector.broadcast %584 : vector<1x32xf32> to vector<8x32xf32>
    %586 = arith.addf %583, %585 : vector<8x32xf32>
    %587 = math.tanh %586 : vector<8x32xf32>
    %c4_258 = arith.constant 4 : index
    %c0_259 = arith.constant 0 : index
    %c0_260 = arith.constant 0 : index
    %588 = vector.load %arg13[%c4_258, %c0_259, %c0_260] : memref<6x8x32xf32, #tpu.memory_space<vmem>>, vector<1x8x32xf32>
    %589 = vector.shape_cast %588 : vector<1x8x32xf32> to vector<8x32xf32>
    %590 = vector.shape_cast %587 : vector<8x32xf32> to vector<1x8x32xf32>
    tpu.vector_store %arg13[%c4_258, %c0_259, %c0_260], %590 {strides = array<i32>} : memref<6x8x32xf32, #tpu.memory_space<vmem>>, vector<1x8x32xf32>,
    %c4_261 = arith.constant 4 : index
    %c0_262 = arith.constant 0 : index
    %c0_263 = arith.constant 0 : index
    %591 = vector.load %arg14[%c4_261, %c0_262, %c0_263] : memref<6x8x10xf32, #tpu.memory_space<vmem>>, vector<1x8x10xf32>
    %592 = vector.shape_cast %591 : vector<1x8x10xf32> to vector<8x10xf32>
    %593 = vector.shape_cast %576 : vector<8x10xf32> to vector<1x8x10xf32>
    tpu.vector_store %arg14[%c4_261, %c0_262, %c0_263], %593 {strides = array<i32>} : memref<6x8x10xf32, #tpu.memory_space<vmem>>, vector<1x8x10xf32>,
    %c0_264 = arith.constant 0 : index
    %c0_265 = arith.constant 0 : index
    %c0_266 = arith.constant 0 : index
    %594 = vector.load %arg15[%c0_264, %c0_265, %c0_266] : memref<2x8x32xf32, #tpu.memory_space<vmem>>, vector<1x8x32xf32>
    %595 = vector.shape_cast %594 : vector<1x8x32xf32> to vector<8x32xf32>
    %c0_267 = arith.constant 0 : index
    %c0_268 = arith.constant 0 : index
    %c0_269 = arith.constant 0 : index
    %596 = vector.load %arg16[%c0_267, %c0_268, %c0_269] : memref<2x8x32xf32, #tpu.memory_space<vmem>>, vector<1x8x32xf32>
    %597 = vector.shape_cast %596 : vector<1x8x32xf32> to vector<8x32xf32>
    %c5 = arith.constant 5 : index
    %c0_270 = arith.constant 0 : index
    %c0_271 = arith.constant 0 : index
    %598 = vector.load %arg1[%c5, %c0_270, %c0_271] : memref<6x8x128xf32, #tpu.memory_space<vmem>>, vector<1x8x128xf32>
    %599 = vector.shape_cast %598 : vector<1x8x128xf32> to vector<8x128xf32>
    %cst_272 = arith.constant dense<0.000000e+00> : vector<8x128xf32>
    %600 = tpu.matmul %595, %12, %cst_272 {dimension_numbers = #tpu.dot_dimension_numbers<[1], [0], [0], [1], [0, 0, 1, 1], [], []>} : vector<8x32xf32>, vector<32x128xf32>, vector<8x128xf32> -> vector<8x128xf32>
    %601 = arith.addf %599, %600 : vector<8x128xf32>
    %602 = vector.extract_strided_slice %601 {offsets = [0, 0], sizes = [8, 32], strides = [1, 1]} : vector<8x128xf32> to vector<8x32xf32>
    %603 = arith.negf %602 : vector<8x32xf32>
    %604 = math.exp %603 : vector<8x32xf32>
    %cst_273 = arith.constant 1.000000e+00 : f32
    %605 = vector.broadcast %cst_273 : f32 to vector<8x32xf32>
    %606 = arith.addf %605, %604 : vector<8x32xf32>
    %607 = arith.divf %605, %606 : vector<8x32xf32>
    %608 = vector.extract_strided_slice %601 {offsets = [0, 32], sizes = [8, 32], strides = [1, 1]} : vector<8x128xf32> to vector<8x32xf32>
    %609 = arith.negf %608 : vector<8x32xf32>
    %610 = math.exp %609 : vector<8x32xf32>
    %cst_274 = arith.constant 1.000000e+00 : f32
    %611 = vector.broadcast %cst_274 : f32 to vector<8x32xf32>
    %612 = arith.addf %611, %610 : vector<8x32xf32>
    %613 = arith.divf %611, %612 : vector<8x32xf32>
    %614 = vector.extract_strided_slice %601 {offsets = [0, 64], sizes = [8, 32], strides = [1, 1]} : vector<8x128xf32> to vector<8x32xf32>
    %615 = math.tanh %614 : vector<8x32xf32>
    %616 = vector.extract_strided_slice %601 {offsets = [0, 96], sizes = [8, 32], strides = [1, 1]} : vector<8x128xf32> to vector<8x32xf32>
    %617 = arith.negf %616 : vector<8x32xf32>
    %618 = math.exp %617 : vector<8x32xf32>
    %cst_275 = arith.constant 1.000000e+00 : f32
    %619 = vector.broadcast %cst_275 : f32 to vector<8x32xf32>
    %620 = arith.addf %619, %618 : vector<8x32xf32>
    %621 = arith.divf %619, %620 : vector<8x32xf32>
    %622 = arith.mulf %613, %597 : vector<8x32xf32>
    %623 = arith.mulf %607, %615 : vector<8x32xf32>
    %624 = arith.addf %622, %623 : vector<8x32xf32>
    %625 = math.tanh %624 : vector<8x32xf32>
    %626 = arith.mulf %621, %625 : vector<8x32xf32>
    %c0_276 = arith.constant 0 : index
    %c0_277 = arith.constant 0 : index
    %c0_278 = arith.constant 0 : index
    %627 = vector.load %arg15[%c0_276, %c0_277, %c0_278] : memref<2x8x32xf32, #tpu.memory_space<vmem>>, vector<1x8x32xf32>
    %628 = vector.shape_cast %627 : vector<1x8x32xf32> to vector<8x32xf32>
    %629 = vector.shape_cast %626 : vector<8x32xf32> to vector<1x8x32xf32>
    tpu.vector_store %arg15[%c0_276, %c0_277, %c0_278], %629 {strides = array<i32>} : memref<2x8x32xf32, #tpu.memory_space<vmem>>, vector<1x8x32xf32>,
    %c0_279 = arith.constant 0 : index
    %c0_280 = arith.constant 0 : index
    %c0_281 = arith.constant 0 : index
    %630 = vector.load %arg16[%c0_279, %c0_280, %c0_281] : memref<2x8x32xf32, #tpu.memory_space<vmem>>, vector<1x8x32xf32>
    %631 = vector.shape_cast %630 : vector<1x8x32xf32> to vector<8x32xf32>
    %632 = vector.shape_cast %624 : vector<8x32xf32> to vector<1x8x32xf32>
    tpu.vector_store %arg16[%c0_279, %c0_280, %c0_281], %632 {strides = array<i32>} : memref<2x8x32xf32, #tpu.memory_space<vmem>>, vector<1x8x32xf32>,
    %c1_282 = arith.constant 1 : index
    %c0_283 = arith.constant 0 : index
    %c0_284 = arith.constant 0 : index
    %633 = vector.load %arg15[%c1_282, %c0_283, %c0_284] : memref<2x8x32xf32, #tpu.memory_space<vmem>>, vector<1x8x32xf32>
    %634 = vector.shape_cast %633 : vector<1x8x32xf32> to vector<8x32xf32>
    %c1_285 = arith.constant 1 : index
    %c0_286 = arith.constant 0 : index
    %c0_287 = arith.constant 0 : index
    %635 = vector.load %arg16[%c1_285, %c0_286, %c0_287] : memref<2x8x32xf32, #tpu.memory_space<vmem>>, vector<1x8x32xf32>
    %636 = vector.shape_cast %635 : vector<1x8x32xf32> to vector<8x32xf32>
    %cst_288 = arith.constant dense<0.000000e+00> : vector<8x128xf32>
    %637 = tpu.matmul %626, %16, %cst_288 {dimension_numbers = #tpu.dot_dimension_numbers<[1], [0], [0], [1], [0, 0, 1, 1], [], []>} : vector<8x32xf32>, vector<32x128xf32>, vector<8x128xf32> -> vector<8x128xf32>
    %cst_289 = arith.constant dense<0.000000e+00> : vector<8x128xf32>
    %638 = tpu.matmul %634, %14, %cst_289 {dimension_numbers = #tpu.dot_dimension_numbers<[1], [0], [0], [1], [0, 0, 1, 1], [], []>} : vector<8x32xf32>, vector<32x128xf32>, vector<8x128xf32> -> vector<8x128xf32>
    %639 = arith.addf %637, %638 : vector<8x128xf32>
    %640 = vector.shape_cast %18 : vector<128xf32> to vector<1x128xf32>
    %641 = vector.broadcast %640 : vector<1x128xf32> to vector<8x128xf32>
    %642 = arith.addf %639, %641 : vector<8x128xf32>
    %643 = vector.extract_strided_slice %642 {offsets = [0, 0], sizes = [8, 32], strides = [1, 1]} : vector<8x128xf32> to vector<8x32xf32>
    %644 = arith.negf %643 : vector<8x32xf32>
    %645 = math.exp %644 : vector<8x32xf32>
    %cst_290 = arith.constant 1.000000e+00 : f32
    %646 = vector.broadcast %cst_290 : f32 to vector<8x32xf32>
    %647 = arith.addf %646, %645 : vector<8x32xf32>
    %648 = arith.divf %646, %647 : vector<8x32xf32>
    %649 = vector.extract_strided_slice %642 {offsets = [0, 32], sizes = [8, 32], strides = [1, 1]} : vector<8x128xf32> to vector<8x32xf32>
    %650 = arith.negf %649 : vector<8x32xf32>
    %651 = math.exp %650 : vector<8x32xf32>
    %cst_291 = arith.constant 1.000000e+00 : f32
    %652 = vector.broadcast %cst_291 : f32 to vector<8x32xf32>
    %653 = arith.addf %652, %651 : vector<8x32xf32>
    %654 = arith.divf %652, %653 : vector<8x32xf32>
    %655 = vector.extract_strided_slice %642 {offsets = [0, 64], sizes = [8, 32], strides = [1, 1]} : vector<8x128xf32> to vector<8x32xf32>
    %656 = math.tanh %655 : vector<8x32xf32>
    %657 = vector.extract_strided_slice %642 {offsets = [0, 96], sizes = [8, 32], strides = [1, 1]} : vector<8x128xf32> to vector<8x32xf32>
    %658 = arith.negf %657 : vector<8x32xf32>
    %659 = math.exp %658 : vector<8x32xf32>
    %cst_292 = arith.constant 1.000000e+00 : f32
    %660 = vector.broadcast %cst_292 : f32 to vector<8x32xf32>
    %661 = arith.addf %660, %659 : vector<8x32xf32>
    %662 = arith.divf %660, %661 : vector<8x32xf32>
    %663 = arith.mulf %654, %636 : vector<8x32xf32>
    %664 = arith.mulf %648, %656 : vector<8x32xf32>
    %665 = arith.addf %663, %664 : vector<8x32xf32>
    %666 = math.tanh %665 : vector<8x32xf32>
    %667 = arith.mulf %662, %666 : vector<8x32xf32>
    %c1_293 = arith.constant 1 : index
    %c0_294 = arith.constant 0 : index
    %c0_295 = arith.constant 0 : index
    %668 = vector.load %arg15[%c1_293, %c0_294, %c0_295] : memref<2x8x32xf32, #tpu.memory_space<vmem>>, vector<1x8x32xf32>
    %669 = vector.shape_cast %668 : vector<1x8x32xf32> to vector<8x32xf32>
    %670 = vector.shape_cast %667 : vector<8x32xf32> to vector<1x8x32xf32>
    tpu.vector_store %arg15[%c1_293, %c0_294, %c0_295], %670 {strides = array<i32>} : memref<2x8x32xf32, #tpu.memory_space<vmem>>, vector<1x8x32xf32>,
    %c1_296 = arith.constant 1 : index
    %c0_297 = arith.constant 0 : index
    %c0_298 = arith.constant 0 : index
    %671 = vector.load %arg16[%c1_296, %c0_297, %c0_298] : memref<2x8x32xf32, #tpu.memory_space<vmem>>, vector<1x8x32xf32>
    %672 = vector.shape_cast %671 : vector<1x8x32xf32> to vector<8x32xf32>
    %673 = vector.shape_cast %665 : vector<8x32xf32> to vector<1x8x32xf32>
    tpu.vector_store %arg16[%c1_296, %c0_297, %c0_298], %673 {strides = array<i32>} : memref<2x8x32xf32, #tpu.memory_space<vmem>>, vector<1x8x32xf32>,
    %cst_299 = arith.constant dense<0.000000e+00> : vector<8x32xf32>
    %674 = tpu.matmul %667, %4, %cst_299 {dimension_numbers = #tpu.dot_dimension_numbers<[1], [0], [0], [1], [0, 0, 1, 1], [], []>} : vector<8x32xf32>, vector<32x32xf32>, vector<8x32xf32> -> vector<8x32xf32>
    %675 = vector.shape_cast %6 : vector<32xf32> to vector<1x32xf32>
    %676 = vector.broadcast %675 : vector<1x32xf32> to vector<8x32xf32>
    %677 = arith.addf %674, %676 : vector<8x32xf32>
    %678 = vector.shape_cast %677 : vector<8x32xf32> to vector<8x1x32xf32>
    %679 = vector.broadcast %678 : vector<8x1x32xf32> to vector<8x10x32xf32>
    %680 = arith.mulf %3, %679 : vector<8x10x32xf32>
    %cst_300 = arith.constant dense<0.000000e+00> : vector<8x10xf32>
    %681 = vector.multi_reduction <add>, %680, %cst_300 [2] : vector<8x10x32xf32> to vector<8x10xf32>
    %cst_301 = arith.constant dense<0xFF800000> : vector<8xf32>
    %682 = vector.multi_reduction <maximumf>, %681, %cst_301 [1] : vector<8x10xf32> to vector<8xf32>
    %683 = vector.shape_cast %682 : vector<8xf32> to vector<8x1xf32>
    %684 = vector.broadcast %683 : vector<8x1xf32> to vector<8x10xf32>
    %685 = arith.subf %681, %684 : vector<8x10xf32>
    %686 = math.exp %685 : vector<8x10xf32>
    %cst_302 = arith.constant dense<0.000000e+00> : vector<8xf32>
    %687 = vector.multi_reduction <add>, %686, %cst_302 [1] : vector<8x10xf32> to vector<8xf32>
    %688 = vector.shape_cast %687 : vector<8xf32> to vector<8x1xf32>
    %689 = tpu.reciprocal %688 : vector<8x1xf32> -> vector<8x1xf32>
    %690 = vector.broadcast %689 : vector<8x1xf32> to vector<8x10xf32>
    %691 = arith.mulf %686, %690 : vector<8x10xf32>
    %692 = vector.shape_cast %691 : vector<8x10xf32> to vector<8x10x1xf32>
    %693 = vector.broadcast %692 : vector<8x10x1xf32> to vector<8x10x32xf32>
    %694 = arith.mulf %693, %3 : vector<8x10x32xf32>
    %cst_303 = arith.constant dense<0.000000e+00> : vector<8x32xf32>
    %695 = vector.multi_reduction <add>, %694, %cst_303 [1] : vector<8x10x32xf32> to vector<8x32xf32>
    %cst_304 = arith.constant dense<0.000000e+00> : vector<8x32xf32>
    %696 = tpu.matmul %695, %7, %cst_304 {dimension_numbers = #tpu.dot_dimension_numbers<[1], [0], [0], [1], [0, 0, 1, 1], [], []>} : vector<8x32xf32>, vector<32x32xf32>, vector<8x32xf32> -> vector<8x32xf32>
    %cst_305 = arith.constant dense<0.000000e+00> : vector<8x32xf32>
    %697 = tpu.matmul %667, %8, %cst_305 {dimension_numbers = #tpu.dot_dimension_numbers<[1], [0], [0], [1], [0, 0, 1, 1], [], []>} : vector<8x32xf32>, vector<32x32xf32>, vector<8x32xf32> -> vector<8x32xf32>
    %698 = arith.addf %696, %697 : vector<8x32xf32>
    %699 = vector.shape_cast %10 : vector<32xf32> to vector<1x32xf32>
    %700 = vector.broadcast %699 : vector<1x32xf32> to vector<8x32xf32>
    %701 = arith.addf %698, %700 : vector<8x32xf32>
    %702 = math.tanh %701 : vector<8x32xf32>
    %c5_306 = arith.constant 5 : index
    %c0_307 = arith.constant 0 : index
    %c0_308 = arith.constant 0 : index
    %703 = vector.load %arg13[%c5_306, %c0_307, %c0_308] : memref<6x8x32xf32, #tpu.memory_space<vmem>>, vector<1x8x32xf32>
    %704 = vector.shape_cast %703 : vector<1x8x32xf32> to vector<8x32xf32>
    %705 = vector.shape_cast %702 : vector<8x32xf32> to vector<1x8x32xf32>
    tpu.vector_store %arg13[%c5_306, %c0_307, %c0_308], %705 {strides = array<i32>} : memref<6x8x32xf32, #tpu.memory_space<vmem>>, vector<1x8x32xf32>,
    %c5_309 = arith.constant 5 : index
    %c0_310 = arith.constant 0 : index
    %c0_311 = arith.constant 0 : index
    %706 = vector.load %arg14[%c5_309, %c0_310, %c0_311] : memref<6x8x10xf32, #tpu.memory_space<vmem>>, vector<1x8x10xf32>
    %707 = vector.shape_cast %706 : vector<1x8x10xf32> to vector<8x10xf32>
    %708 = vector.shape_cast %691 : vector<8x10xf32> to vector<1x8x10xf32>
    tpu.vector_store %arg14[%c5_309, %c0_310, %c0_311], %708 {strides = array<i32>} : memref<6x8x10xf32, #tpu.memory_space<vmem>>, vector<1x8x10xf32>,
    return
  }
  func.func @transform_0(%arg0: i32) -> (i32, i32, i32) {
    %c0_i32 = arith.constant 0 : i32
    %c0_i32_0 = arith.constant 0 : i32
    %c0_i32_1 = arith.constant 0 : i32
    return %arg0, %c0_i32, %c0_i32_0 : i32, i32, i32
  }
  func.func @transform_1(%arg0: i32) -> (i32, i32, i32) {
    %c0_i32 = arith.constant 0 : i32
    %c0_i32_0 = arith.constant 0 : i32
    %c0_i32_1 = arith.constant 0 : i32
    %c0_i32_2 = arith.constant 0 : i32
    return %c0_i32, %c0_i32_0, %c0_i32_1 : i32, i32, i32
  }
  func.func @transform_2(%arg0: i32) -> (i32, i32, i32) {
    %c0_i32 = arith.constant 0 : i32
    %c0_i32_0 = arith.constant 0 : i32
    %c0_i32_1 = arith.constant 0 : i32
    %c0_i32_2 = arith.constant 0 : i32
    return %c0_i32, %c0_i32_0, %c0_i32_1 : i32, i32, i32
  }
  func.func @transform_3(%arg0: i32) -> (i32, i32, i32) {
    %c0_i32 = arith.constant 0 : i32
    %c0_i32_0 = arith.constant 0 : i32
    %c0_i32_1 = arith.constant 0 : i32
    %c0_i32_2 = arith.constant 0 : i32
    return %c0_i32, %c0_i32_0, %c0_i32_1 : i32, i32, i32
  }
  func.func @transform_4(%arg0: i32) -> (i32, i32, i32) {
    %c0_i32 = arith.constant 0 : i32
    %c0_i32_0 = arith.constant 0 : i32
    %c0_i32_1 = arith.constant 0 : i32
    %c0_i32_2 = arith.constant 0 : i32
    return %c0_i32, %c0_i32_0, %c0_i32_1 : i32, i32, i32
  }
  func.func @transform_5(%arg0: i32) -> (i32, i32, i32) {
    %c0_i32 = arith.constant 0 : i32
    %c0_i32_0 = arith.constant 0 : i32
    %c0_i32_1 = arith.constant 0 : i32
    %c0_i32_2 = arith.constant 0 : i32
    return %c0_i32, %c0_i32_0, %c0_i32_1 : i32, i32, i32
  }
  func.func @transform_6(%arg0: i32) -> (i32, i32) {
    %c0_i32 = arith.constant 0 : i32
    %c0_i32_0 = arith.constant 0 : i32
    %c0_i32_1 = arith.constant 0 : i32
    return %c0_i32, %c0_i32_0 : i32, i32
  }
  func.func @transform_7(%arg0: i32) -> (i32, i32) {
    %c0_i32 = arith.constant 0 : i32
    %c0_i32_0 = arith.constant 0 : i32
    %c0_i32_1 = arith.constant 0 : i32
    return %c0_i32, %c0_i32_0 : i32, i32
  }
  func.func @transform_8(%arg0: i32) -> (i32, i32) {
    %c0_i32 = arith.constant 0 : i32
    %c0_i32_0 = arith.constant 0 : i32
    %c0_i32_1 = arith.constant 0 : i32
    return %c0_i32, %c0_i32_0 : i32, i32
  }
  func.func @transform_9(%arg0: i32) -> (i32, i32) {
    %c0_i32 = arith.constant 0 : i32
    %c0_i32_0 = arith.constant 0 : i32
    %c0_i32_1 = arith.constant 0 : i32
    return %c0_i32, %c0_i32_0 : i32, i32
  }
  func.func @transform_10(%arg0: i32) -> (i32, i32) {
    %c0_i32 = arith.constant 0 : i32
    %c0_i32_0 = arith.constant 0 : i32
    %c0_i32_1 = arith.constant 0 : i32
    return %c0_i32, %c0_i32_0 : i32, i32
  }
  func.func @transform_11(%arg0: i32) -> (i32, i32) {
    %c0_i32 = arith.constant 0 : i32
    %c0_i32_0 = arith.constant 0 : i32
    %c0_i32_1 = arith.constant 0 : i32
    return %c0_i32, %c0_i32_0 : i32, i32
  }
  func.func @transform_12(%arg0: i32) -> (i32, i32, i32) {
    %c0_i32 = arith.constant 0 : i32
    %c0_i32_0 = arith.constant 0 : i32
    %c0_i32_1 = arith.constant 0 : i32
    return %arg0, %c0_i32, %c0_i32_0 : i32, i32, i32
  }
  func.func @transform_13(%arg0: i32) -> (i32, i32, i32) {
    %c0_i32 = arith.constant 0 : i32
    %c0_i32_0 = arith.constant 0 : i32
    %c0_i32_1 = arith.constant 0 : i32
    return %arg0, %c0_i32, %c0_i32_0 : i32, i32, i32
  }
  func.func @transform_14(%arg0: i32) -> (i32, i32, i32) {
    %c0_i32 = arith.constant 0 : i32
    %c0_i32_0 = arith.constant 0 : i32
    %c0_i32_1 = arith.constant 0 : i32
    %c0_i32_2 = arith.constant 0 : i32
    return %c0_i32, %c0_i32_0, %c0_i32_1 : i32, i32, i32
  }
  func.func @transform_15(%arg0: i32) -> (i32, i32, i32) {
    %c0_i32 = arith.constant 0 : i32
    %c0_i32_0 = arith.constant 0 : i32
    %c0_i32_1 = arith.constant 0 : i32
    %c0_i32_2 = arith.constant 0 : i32
    return %c0_i32, %c0_i32_0, %c0_i32_1 : i32, i32, i32
  }
}

</mosaic_0001>

<bundles_post_ra>
// kernel: rnn_decoder_forward.1
= control target key start
LH: loop header
LB: loop body
LE: loop exit
PB: predicated region body
PF: predicated region fallthrough
CT: control target
= control target key end

     0   :  { %21 = vsyncpa [#allocation3], 0  ;;  %s13186_s0 = inlined_call_operand.vmem [shape: f32[6,8,128], index: 0, kind: input, shape index: {}]   ;;  %s13187_s1 = inlined_call_operand.vmem [shape: f32[2,8,32], index: 1, kind: input, shape index: {}]   ;;  %s13188_s2 = inlined_call_operand.vmem [shape: f32[2,8,32], index: 2, kind: input, shape index: {}]   ;;  %s13189_s3 = inlined_call_operand.vmem [shape: f32[8,10,32], index: 3, kind: input, shape index: {}]   ;;  %s13190_s4 = inlined_call_operand.vmem [shape: f32[2,32,128], index: 4, kind: input, shape index: {}]   ;;  %s13191_s5 = inlined_call_operand.vmem [shape: f32[2,32,128], index: 5, kind: input, shape index: {}]   ;;  %s13192_s6 = inlined_call_operand.vmem [shape: f32[2,128], index: 6, kind: input, shape index: {}]   ;;  %s13193_s7 = inlined_call_operand.vmem [shape: f32[32,32], index: 7, kind: input, shape index: {}]   ;;  %s13194_s8 = inlined_call_operand.vmem [shape: f32[1,32], index: 8, kind: input, shape index: {}]   ;;  %s13195_s9 = inlined_call_operand.vmem [shape: f32[32,32], index: 9, kind: input, shape index: {}]   ;;  %s13196_s10 = inlined_call_operand.vmem [shape: f32[32,32], index: 10, kind: input, shape index: {}]   ;;  %s13197_s11 = inlined_call_operand.vmem [shape: f32[1,32], index: 11, kind: input, shape index: {}]   ;;  %s13198_s12 = inlined_call_operand.hbm [shape: f32[6,8,32], index: 12, kind: output, shape index: {0}]   ;;  %s13199_s13 = inlined_call_operand.hbm [shape: f32[6,8,10], index: 13, kind: output, shape index: {1}]   ;;  %s13200_s14 = inlined_call_operand.hbm [shape: f32[2,8,32], index: 14, kind: output, shape index: {2}]   ;;  %s13201_s15 = inlined_call_operand.hbm [shape: f32[2,8,32], index: 15, kind: output, shape index: {3}]  }
   0x1   :  { %22 = vsyncpa [#allocation5], 0  ;;  %v9538_v0 = vld [vmem:[%s13191_s5 + $0x18] sm:$0xff]  ;;  %vm54_vm0 = vcmask 261120   ;;  %v13202_v1 = vmov 0.0   ;;  %v9544_v2 = vld [vmem:[%s13191_s5 + $0x10] sm:$0xff] }
   0x2   :  { %8434 = vmatprep.subr.mxu0 %v13202_v1  ;;  %vm9443_vm1 = vmmov 0   ;;  %v52_v3 = vld [vmem:[%s13187_s1] sm:$0xff]  ;;  %8445 = vmatprep.subr.mxu1 %v13202_v1 }
   0x3   :  { %8442 = vmatprep.mubr.msk.f32.mxu0 %vm9443_vm1, %v13202_v1  ;;  %8435 = vmatpush3.msra.mxu0 %v9538_v0  ;;  %55 = vst.msk [vmem:[#allocation6] sm:$0xff] %vm54_vm0, %v52_v3 }
   0x4   :  { %23 = vsyncpa [#allocation8], 0  ;;  %8436 = vmatprep.subr.mxu0 %v13202_v1  ;;  %v9558_v4 = vld [vmem:[%s13191_s5 + $0x8] sm:$0xff]  ;;  %8453 = vmatprep.mubr.msk.f32.mxu1 %vm9443_vm1, %v13202_v1  ;;  %v9567_v5 = vld [vmem:[%s13191_s5] sm:$0xff]  ;;  %s9444_s17 = smov 64   ;;  %s9445_s18 = smov 32  }
   0x5   :  { %8437 = vmatpush3.msra.mxu0 %v9544_v2  ;;  %v57_v7 = vld [vmem:[%s13188_s2] sm:$0xff]  ;;  %v8193_v24 = vld [vmem:[%s13191_s5 + $0x38] sm:$0xff]  ;;  %v8192_v25 = vld [vmem:[%s13191_s5 + $0x30] sm:$0xff]  ;;  %vm601_vm2 = vcmask 254976   ;;  %s9447_s16 = smov 96   ;;  %vm674_vm3 = vcmask 130112  }
   0x6   :  { %8438 = vmatprep.subr.mxu0 %v13202_v1  ;;  %59 = vst.msk [vmem:[#allocation7] sm:$0xff] %vm54_vm0, %v57_v7  ;;  %v108_v8 = vld [vmem:[%s13186_s0] sm:$0xff]  ;;  %v9598_v26 = vld [vmem:[%s13190_s4 + $0x38] sm:$0xff]  ;;  %8446 = vmatpush3.msra.mxu1 %v8193_v24  ;;  %v9604_v27 = vld [vmem:[%s13190_s4 + $0x30] sm:$0xff]  ;;  %vm739_vm4 = vcmask 1041409   ;;  %vm741_vm5 = vcmask 1042434  }
   0x7   :  { %8439 = vmatpush3.msra.mxu0 %v9558_v4  ;;  %8447 = vmatprep.subr.mxu1 %v13202_v1  ;;  %v8191_v28 = vld [vmem:[%s13191_s5 + $0x28] sm:$0xff]  ;;  %v8190_v31 = vld [vmem:[%s13191_s5 + $0x20] sm:$0xff]  ;;  %v9662_v58 = vld [vmem:[%s13196_s10 + $0x18] sm:$0xff]  ;;  %vm743_vm6 = vcmask 1043459   ;;  %vm745_vm7 = vcmask 1044484   ;;  %vm747_vm8 = vcmask 1045509  }
   0x8   :  { %8440 = vmatprep.subr.mxu0 %v13202_v1  ;;  %v9614_v29 = vld [vmem:[%s13190_s4 + $0x28] sm:$0xff]  ;;  %8448 = vmatpush3.msra.mxu1 %v8192_v25  ;;  %v9629_v32 = vld [vmem:[%s13190_s4 + $0x20] sm:$0xff]  ;;  %v80_v59 = vld [vmem:[%s13193_s7 + $0x18] sm:$0xff]  ;;  %vm749_vm9 = vcmask 1046534   ;;  %vm751_vm10 = vcmask 1047559   ;;  %vm754_vm11 = vcmask 80896  }
   0x9   :  { %8441 = vmatpush3.msra.mxu0 %v9567_v5  ;;  %v53_v30 = vld [vmem:[%s13187_s1 + $0x8] sm:$0xff]  ;;  %8449 = vmatprep.subr.mxu1 %v13202_v1  ;;  %v8202_v42 = vld [vmem:[%s13192_s6 + $0x1] ss:$0 sm:$0xff]  ;;  %v9670_v60 = vld [vmem:[%s13196_s10 + $0x10] sm:$0xff] }
   0xa   :  { %v106_v6 = vld [vmem:[#allocation6] sm:$0xff]  ;;  %8456 = vmatprep.subr.mxu0 %v13202_v1  ;;  %56 = vst.msk [vmem:[#allocation6 + $0x8] sm:$0xff] %vm54_vm0, %v53_v30  ;;  %8450 = vmatpush3.msra.mxu1 %v8191_v28  ;;  %v58_v35 = vld [vmem:[%s13188_s2 + $0x8] sm:$0xff]  ;;  %v79_v61 = vld [vmem:[%s13193_s7 + $0x10] sm:$0xff] }
   0xb   :  { %8443 = vmatmul.mubr.msk.f32.vlgmr.msra.gmra.mxu0 %vm54_vm0, %v106_v6  ;;  %8451 = vmatprep.subr.mxu1 %v13202_v1  ;;  %60 = vst.msk [vmem:[#allocation7 + $0x8] sm:$0xff] %vm54_vm0, %v58_v35  ;;  %v9681_v62 = vld [vmem:[%s13196_s10 + $0x8] sm:$0xff]  ;;  %v9692_v3 = vld [vmem:[%s13196_s10] sm:$0xff] }
   0xc   :  { %8464 = vmatprep.mubr.msk.f32.mxu0 %vm9443_vm1, %v13202_v1  ;;  %8457 = vmatpush3.msra.mxu0 %v9598_v26  ;;  %v78_v63 = vld [vmem:[%s13193_s7 + $0x8] sm:$0xff]  ;;  %v77_v6 = vld [vmem:[%s13193_s7] sm:$0xff] }
   0xd   :  { %v107_v13 = vld [vmem:[#allocation7] sm:$0xff]  ;;  %8458 = vmatprep.subr.mxu0 %v13202_v1  ;;  %8452 = vmatpush3.msra.mxu1 %v8190_v31  ;;  %v9756_v28 = vld [vmem:[%s13189_s3] sm:$0xff] }
   0xe   :  { %8459 = vmatpush3.msra.mxu0 %v9604_v27  ;;  %8467 = vmatprep.subr.mxu1 %v13202_v1 }
   0xf   :  { %8460 = vmatprep.subr.mxu0 %v13202_v1 }
  0x10   :  { %8461 = vmatpush3.msra.mxu0 %v9614_v29 }
  0x11   :  { %8462 = vmatprep.subr.mxu0 %v13202_v1  ;;  %v223_v34 = vld [vmem:[#allocation6 + $0x8] sm:$0xff] }
  0x12   :  { %8463 = vmatpush3.msra.mxu0 %v9629_v32  ;;  %8454 = vmatmul.mubr.msk.f32.vlgmr.msra.gmra.mxu1 %vm54_vm0, %v223_v34  ;;  %v225_v38 = vld [vmem:[#allocation7 + $0x8] sm:$0xff] }
  0x13   :  { %8478 = vmatprep.subr.mxu0 %v13202_v1  ;;  %8475 = vmatprep.mubr.msk.f32.mxu1 %vm9443_vm1, %v13202_v1 }
  0x14   :  { %8468 = vmatpush3.msra.mxu1 %v80_v59  ;;  %v9806_v59 = vld [vmem:[%s13189_s3 + $0x30] sm:$0xff] }
  0x15   :  { %8469 = vmatprep.subr.mxu1 %v13202_v1 }
  0x16   :  { %8470 = vmatpush3.msra.mxu1 %v79_v61 }
  0x17   :  { %8471 = vmatprep.subr.mxu1 %v13202_v1 }
  0x18   :  { %8472 = vmatpush3.msra.mxu1 %v78_v63 }
  0x19   :  { %8473 = vmatprep.subr.mxu1 %v13202_v1 }
  0x1a   :  { %8474 = vmatpush3.msra.mxu1 %v77_v6 }
  0x1b   :  { %8489 = vmatprep.subr.mxu1 %v13202_v1 }
  0xcb   :  { %v179_v9 = vpop.f32.mrf.mxu0 }
  0xcc   :  { %v183_v10 = vadd.f32 %v179_v9, %v108_v8 }
  0xcd   :  { %v8444_v11 = vpop.f32.mrf.mxu0 }
  0xce   :  { %8845 = vtanh.f32 %v183_v10  ;;  %v8199_v14 = vmul.f32 -1.442695, %v183_v10 }
  0xd0   :  { %8847 = vpow2.f32 %v8199_v14 }
  0xd2   :  { %v295_v39 = vpop.f32.mrf.mxu1 }
  0xd4   :  { %v8455_v40 = vpop.f32.mrf.mxu1 }
  0xdb   :  { %v8846_v12 = vpop.eup %8845 }
  0xdc   :  { %197 = vrot.lane.b32.xlu0 %v8846_v12, %s9444_s17 }
  0xdd   :  { %v8848_v15 = vpop.eup %8847 }
  0xde   :  { %v187_v16 = vadd.f32 1.0, %v8848_v15 }
  0xe0   :  { %192 = vrot.lane.b32.xlu0 %v107_v13, %s9445_s18  ;;  %8849 = vrcp.f32 %v187_v16  ;;  %v8204_v13 = vld [vmem:[%s13194_s8] ss:$0 sm:$0xff] }
  0xed   :  { %v8850_v17 = vpop.eup %8849 }
 0x14e   :  { %v198_v18 = vpop.permute.xlu0 %197 }
 0x14f   :  { %v200_v19 = vmul.f32 %v8850_v17, %v198_v18 }
 0x151   :  { %202 = vrot.lane.b32.xlu1 %v200_v19, %s9445_s18 }
 0x152   :  { %v193_v20 = vpop.permute.xlu0 %192 }
 0x153   :  { %v195_v21 = vmul.f32 %v8850_v17, %v193_v20 }
 0x1c3   :  { %v203_v22 = vpop.permute.xlu1 %202 }
 0x1c4   :  { %v9586_v23 = vadd.f32 %v203_v22, %v195_v21 }
 0x1c6   :  { %8851 = vtanh.f32 %v9586_v23 }
 0x1d3   :  { %v8852_v33 = vpop.eup %8851 }
 0x1d4   :  { %208 = vrot.lane.b32.xlu1 %v8852_v33, %s9444_s17 }
 0x246   :  { %v209_v36 = vpop.permute.xlu1 %208 }
 0x247   :  { %v211_v37 = vmul.f32 %v8850_v17, %v209_v36  ;;  %v9768_v36 = vld [vmem:[%s13189_s3 + $0x20] sm:$0xff] }
 0x249   :  { %213 = vrot.lane.b32.xlu0 %v211_v37, %s9445_s18 }
 0x24d   :  { %384 = vrot.lane.b32.xlu0 %v225_v38, %s9445_s18  ;;  %v9774_v38 = vld [vmem:[%s13189_s3 + $0x10] sm:$0xff] }
 0x2bb   :  { %v214_v41 = vpop.permute.xlu0 %213 }
 0x2bc   :  { %216 = vst.msk [vmem:[#allocation6] sm:$0xff] %vm54_vm0, %v214_v41  ;;  %8465 = vmatmul.mubr.msk.f32.vlgmr.msra.gmra.mxu0 %vm54_vm0, %v214_v41 }
 0x2bd   :  { %8486 = vmatprep.mubr.msk.f32.mxu0 %vm9443_vm1, %v13202_v1  ;;  %8479 = vmatpush3.msra.mxu0 %v9662_v58 }
 0x2be   :  { %8480 = vmatprep.subr.mxu0 %v13202_v1 }
 0x2bf   :  { %v385_v54 = vpop.permute.xlu0 %384  ;;  %8481 = vmatpush3.msra.mxu0 %v9670_v60 }
 0x2c0   :  { %8482 = vmatprep.subr.mxu0 %v13202_v1 }
 0x2c1   :  { %8483 = vmatpush3.msra.mxu0 %v9681_v62 }
 0x2c2   :  { %8484 = vmatprep.subr.mxu0 %v13202_v1 }
 0x2c3   :  { %8485 = vmatpush3.msra.mxu0 %v9692_v3  ;;  %v1467_v11 = vld [vmem:[#allocation6] sm:$0xff] }
 0x2c4   :  { %8500 = vmatprep.subr.mxu0 %v13202_v1 }
 0x37c   :  { %v367_v43 = vpop.f32.mrf.mxu0 }
 0x37d   :  { %v368_v44 = vadd.f32 %v367_v43, %v295_v39 }
 0x37e   :  { %v8466_v45 = vpop.f32.mrf.mxu0 }
 0x37f   :  { %v375_v46 = vadd.f32 %v8202_v42, %v368_v44  ;;  %v9782_v44 = vld [vmem:[%s13189_s3 + $0x18] sm:$0x3] }
 0x381   :  { %8853 = vtanh.f32 %v375_v46  ;;  %v8203_v48 = vmul.f32 -1.442695, %v375_v46 }
 0x383   :  { %8855 = vpow2.f32 %v8203_v48 }
 0x38e   :  { %v8854_v47 = vpop.eup %8853 }
 0x38f   :  { %389 = vrot.lane.b32.xlu1 %v8854_v47, %s9444_s17 }
 0x390   :  { %v8856_v49 = vpop.eup %8855 }
 0x391   :  { %v379_v50 = vadd.f32 1.0, %v8856_v49  ;;  %v9790_v49 = vld [vmem:[%s13189_s3 + $0x40] sm:$0xff] }
 0x392   :  { %13245 = vst [vmem:[#allocation14_spill] sm:$0xff] %v9790_v49 }
 0x393   :  { %8857 = vrcp.f32 %v379_v50 }
 0x3a0   :  { %v8858_v51 = vpop.eup %8857 }
 0x3a1   :  { %v387_v55 = vmul.f32 %v8858_v51, %v385_v54 }
 0x401   :  { %v390_v52 = vpop.permute.xlu1 %389 }
 0x402   :  { %v392_v53 = vmul.f32 %v8858_v51, %v390_v52 }
 0x404   :  { %394 = vrot.lane.b32.xlu1 %v392_v53, %s9445_s18 }
 0x476   :  { %v395_v56 = vpop.permute.xlu1 %394 }
 0x477   :  { %v9656_v57 = vadd.f32 %v395_v56, %v387_v55  ;;  %v9800_v55 = vld [vmem:[%s13189_s3 + $0x28] sm:$0x3] }
 0x479   :  { %8859 = vtanh.f32 %v9656_v57 }
 0x486   :  { %v8860_v7 = vpop.eup %8859 }
 0x487   :  { %400 = vrot.lane.b32.xlu0 %v8860_v7, %s9444_s17 }
 0x4f9   :  { %v401_v8 = vpop.permute.xlu0 %400 }
 0x4fa   :  { %v403_v9 = vmul.f32 %v8858_v51, %v401_v8  ;;  %v9815_v8 = vld [vmem:[%s13189_s3 + $0x48] sm:$0x3] }
 0x4fb   :  { %13246 = vst [vmem:[#allocation15_spill] sm:$0xff] %v9815_v8 }
 0x4fc   :  { %405 = vrot.lane.b32.xlu1 %v403_v9, %s9445_s18 }
 0x56e   :  { %v406_v10 = vpop.permute.xlu1 %405 }
 0x56f   :  { %408 = vst.msk [vmem:[#allocation6 + $0x8] sm:$0xff] %vm54_vm0, %v406_v10  ;;  %8476 = vmatmul.mubr.msk.f32.vlgmr.msra.gmra.mxu1 %vm54_vm0, %v406_v10  ;;  %8487 = vmatmul.mubr.msk.f32.vlgmr.msra.gmra.mxu0 %vm54_vm0, %v406_v10 }
 0x570   :  { %8501 = vmatpush3.msra.mxu0 %v9538_v0  ;;  %8508 = vmatprep.mubr.msk.f32.mxu0 %vm9443_vm1, %v13202_v1  ;;  %v9446_v0 = vmov 1966171168  }
 0x571   :  { %8502 = vmatprep.subr.mxu0 %v13202_v1  ;;  %8497 = vmatprep.mubr.msk.f32.mxu1 %vm9443_vm1, %v13202_v1 }
 0x572   :  { %8503 = vmatpush3.msra.mxu0 %v9544_v2  ;;  %v495_v2 = vunpack.c.l.s4 %v9446_v0 }
 0x573   :  { %8504 = vmatprep.subr.mxu0 %v13202_v1 }
 0x574   :  { %8505 = vmatpush3.msra.mxu0 %v9558_v4  ;;  %v497_v4 = vlaneseq }
 0x575   :  { %8506 = vmatprep.subr.mxu0 %v13202_v1 }
 0x576   :  { %8507 = vmatpush3.msra.mxu0 %v9567_v5  ;;  %v496_v5 = vunpack.c.0.s8 %v495_v2  ;;  %v9732_v12 = vshrl.u32 %v497_v4, 7 }
 0x577   :  { %8509 = vmatmul.mubr.msk.f32.vlgmr.msra.gmra.mxu0 %vm54_vm0, %v1467_v11  ;;  %8522 = vmatprep.subr.mxu0 %v13202_v1  ;;  %v9821_v11 = vld [vmem:[%s13189_s3 + $0x50] sm:$0xff] }
 0x578   :  { %8523 = vmatpush3.msra.mxu0 %v9598_v26  ;;  %8530 = vmatprep.mubr.msk.f32.mxu0 %vm9443_vm1, %v13202_v1  ;;  %v9738_v14 = vsub.s32 %v496_v5, %v9732_v12  ;;  %v9744_v22 = vsub.s32 0, %v9732_v12  ;;  %13247 = vst [vmem:[#allocation16_spill] sm:$0xff] %v9821_v11 }
 0x579   :  { %8524 = vmatprep.subr.mxu0 %v13202_v1 }
 0x57a   :  { %8525 = vmatpush3.msra.mxu0 %v9604_v27  ;;  %13243 = vst [vmem:[#allocation12_spill] sm:$0xff] %v9738_v14  ;;  %v9751_v27 = vld [vmem:[%s13189_s3 + $0x8] sm:$0x3] }
 0x57b   :  { %8526 = vmatprep.subr.mxu0 %v13202_v1 }
 0x57c   :  { %8527 = vmatpush3.msra.mxu0 %v9614_v29 }
 0x57d   :  { %8528 = vmatprep.subr.mxu0 %v13202_v1 }
 0x57e   :  { %8529 = vmatpush3.msra.mxu0 %v9629_v32 }
 0x57f   :  { %8544 = vmatprep.subr.mxu0 %v13202_v1 }
 0x62f   :  { %v488_v15 = vpop.f32.mrf.mxu1  ;;  %v9740_v16 = vpop.f32.mrf.mxu0 }
 0x630   :  { %13244 = vst [vmem:[#allocation13_spill] sm:$0xff] %v9740_v16  ;;  %v489_v17 = vadd.f32 %v8204_v13, %v488_v15 }
 0x631   :  { %v8477_v18 = vpop.f32.mrf.mxu1  ;;  %v8488_v19 = vpop.f32.mrf.mxu0 }
 0x632   :  { %v493_v20 = vcombine.high %v489_v17, %v489_v17  ;;  %v500_v21 = vrot.slane %v489_v17, %v9738_v14  ;;  %v9831_v18 = vld [vmem:[%s13189_s3 + $0x38] sm:$0x3]  ;;  %v9836_v19 = vld [vmem:[%s13189_s3 + $0x60] sm:$0xff] }
 0x633   :  { %13248 = vst [vmem:[#allocation17_spill] sm:$0xff] %v9831_v18  ;;  %13249 = vst [vmem:[#allocation18_spill] sm:$0xff] %v9836_v19 }
 0x634   :  { %v507_v24 = vrot.slane %v493_v20, %v9738_v14  ;;  %v508_v25 = vcombine.high %v500_v21, %v500_v21  ;;  %v516_v26 = vrot.slane %v500_v21, %v9738_v14 }
 0x636   :  { %v545_v29 = vrot.slane %v516_v26, %v9744_v22  ;;  %v538_v30 = vcombine.high %v516_v26, %v516_v26  ;;  %v530_v31 = vrot.slane %v508_v25, %v9738_v14  ;;  %v523_v33 = vrot.slane %v507_v24, %v9738_v14 }
 0x637   :  { %v9760_v32 = vpop.f32.mrf.mxu0  ;;  %v509_v39 = vcombine.high %v507_v24, %v507_v24 }
 0x638   :  { %v583_v34 = vmul.f32 %v545_v29, %v9751_v27  ;;  %v582_v35 = vmul.f32 %v545_v29, %v9756_v28  ;;  %v553_v37 = vrot.slane %v538_v30, %v9744_v22  ;;  %v549_v41 = vrot.slane %v530_v31, %v9744_v22  ;;  %v9846_v29 = vld [vmem:[%s13189_s3 + $0x58] sm:$0x3]  ;;  %v9851_v30 = vld [vmem:[%s13189_s3 + $0x70] sm:$0xff] }
 0x639   :  { %v8510_v40 = vpop.f32.mrf.mxu0  ;;  %v561_v45 = vrot.slane %v523_v33, %v9744_v22  ;;  %v540_v46 = vcombine.high %v530_v31, %v530_v31  ;;  %v537_v51 = vrot.slane %v509_v39, %v9738_v14  ;;  %v539_v10 = vcombine.high %v523_v33, %v523_v33  ;;  %13250 = vst [vmem:[#allocation19_spill] sm:$0xff] %v9846_v29 }
 0x63a   :  { %v602_v42 = vsel %vm601_vm2, %v583_v34, 0.0  ;;  %v598_v43 = vsel %vm54_vm0, %v582_v35, 0.0  ;;  %v586_v47 = vmul.f32 %v553_v37, %v9768_v36  ;;  %v584_v48 = vmul.f32 %v549_v41, %v9774_v38  ;;  %13251 = vst [vmem:[#allocation20_spill] sm:$0xff] %v9851_v30 }
 0x63b   :  { %603 = vadd.xlane.f32.xlu1 %v602_v42  ;;  %599 = vadd.xlane.f32.xlu0 %v598_v43  ;;  %v585_v50 = vmul.f32 %v549_v41, %v9782_v44  ;;  %v590_v54 = vmul.f32 %v561_v45, %v9790_v49  ;;  %v557_v56 = vrot.slane %v540_v46, %v9744_v22  ;;  %v9868_v42 = vld [vmem:[%s13189_s3 + $0x78] sm:$0x3] }
 0x63c   :  { %v611_v52 = vsel %vm54_vm0, %v586_v47, 0.0  ;;  %v605_v53 = vsel %vm54_vm0, %v584_v48, 0.0  ;;  %v587_v63 = vmul.f32 %v553_v37, %v9800_v55  ;;  %v565_v9 = vrot.slane %v537_v51, %v9744_v22  ;;  %v9860_v37 = vld [vmem:[%s13189_s3 + $0x68] sm:$0x3]  ;;  %13253 = vst [vmem:[#allocation22_spill] sm:$0xff] %v9868_v42 }
 0x63d   :  { %v608_v61 = vsel %vm601_vm2, %v585_v50, 0.0  ;;  %v623_v6 = vsel %vm54_vm0, %v590_v54, 0.0  ;;  %v588_v7 = vmul.f32 %v557_v56, %v9806_v59  ;;  %v591_v2 = vmul.f32 %v561_v45, %v9815_v8  ;;  %13252 = vst [vmem:[#allocation21_spill] sm:$0xff] %v9860_v37 }
 0x63e   :  { %v614_v0 = vsel %vm601_vm2, %v587_v63, 0.0  ;;  %v592_v13 = vmul.f32 %v565_v9, %v9821_v11  ;;  %v569_v15 = vrot.slane %v539_v10, %v9744_v22  ;;  %v541_v17 = vcombine.high %v537_v51, %v537_v51 }
 0x63f   :  { %612 = vadd.xlane.f32.xlu1 %v611_v52  ;;  %606 = vadd.xlane.f32.xlu0 %v605_v53  ;;  %v617_v5 = vsel %vm54_vm0, %v588_v7, 0.0  ;;  %v626_v20 = vsel %vm601_vm2, %v591_v2, 0.0  ;;  %v589_v24 = vmul.f32 %v557_v56, %v9831_v18  ;;  %v593_v34 = vmul.f32 %v565_v9, %v9846_v29 }
 0x640   :  { %v629_v21 = vsel %vm54_vm0, %v592_v13, 0.0  ;;  %v594_v25 = vmul.f32 %v569_v15, %v9836_v19  ;;  %v573_v26 = vrot.slane %v541_v17, %v9744_v22  ;;  %v595_v41 = vmul.f32 %v569_v15, %v9860_v37 }
 0x641   :  { %v620_v31 = vsel %vm601_vm2, %v589_v24, 0.0  ;;  %v632_v39 = vsel %vm601_vm2, %v593_v34, 0.0  ;;  %v664_v54 = vand.u32 127, %v497_v4 }
 0x642   :  { %v635_v33 = vsel %vm54_vm0, %v594_v25, 0.0  ;;  %v596_v35 = vmul.f32 %v573_v26, %v9851_v30  ;;  %v638_v43 = vsel %vm601_vm2, %v595_v41, 0.0  ;;  %v597_v45 = vmul.f32 %v573_v26, %v9868_v42 }
 0x643   :  { %609 = vadd.xlane.f32.xlu0 %v608_v61  ;;  %624 = vadd.xlane.f32.xlu1 %v623_v6  ;;  %v669_v63 = vadd.s32 4294967288, %v664_v54  ;;  %v9897_v7 = vsub.s32 %v664_v54, %v9732_v12 }
 0x644   :  { %v641_v40 = vsel %vm54_vm0, %v596_v35, 0.0  ;;  %v644_v46 = vsel %vm601_vm2, %v597_v45, 0.0 }
 0x645   :  { %v9900_v9 = vsub.s32 %v669_v63, %v9732_v12 }
 0x647   :  { %615 = vadd.xlane.f32.xlu0 %v614_v0  ;;  %618 = vadd.xlane.f32.xlu1 %v617_v5 }
 0x64b   :  { %627 = vadd.xlane.f32.xlu0 %v626_v20  ;;  %630 = vadd.xlane.f32.xlu1 %v629_v21 }
 0x64f   :  { %621 = vadd.xlane.f32.xlu0 %v620_v31  ;;  %636 = vadd.xlane.f32.xlu1 %v635_v33 }
 0x653   :  { %633 = vadd.xlane.f32.xlu0 %v632_v39  ;;  %642 = vadd.xlane.f32.xlu1 %v641_v40 }
 0x657   :  { %639 = vadd.xlane.f32.xlu0 %v638_v43 }
 0x65b   :  { %645 = vadd.xlane.f32.xlu0 %v644_v46 }
 0x671   :  { %218 = vrot.lane.b32.xlu0 %v9586_v23, %s9447_s16 }
 0x6c4   :  { %v9875_v47 = vpop.xlane.xlu1 %603  ;;  %v9877_v48 = vpop.xlane.xlu0 %599 }
 0x6c5   :  { %v673_v2 = vrot.slane %v9875_v47, %v9900_v9  ;;  %v668_v5 = vrot.slane %v9877_v48, %v9897_v7 }
 0x6c7   :  { %v675_v31 = vsel %vm674_vm3, %v673_v2, %v668_v5 }
 0x6c8   :  { %v9879_v50 = vpop.xlane.xlu1 %612  ;;  %v9881_v51 = vpop.xlane.xlu0 %606 }
 0x6c9   :  { %v679_v13 = vrot.slane %v9881_v51, %v9897_v7  ;;  %v688_v17 = vrot.slane %v9879_v50, %v9897_v7 }
 0x6cc   :  { %v9883_v52 = vpop.xlane.xlu0 %609  ;;  %v9885_v53 = vpop.xlane.xlu1 %624 }
 0x6cd   :  { %v683_v4 = vrot.slane %v9883_v52, %v9900_v9  ;;  %v706_v46 = vrot.slane %v9885_v53, %v9897_v7 }
 0x6cf   :  { %v684_v24 = vsel %vm674_vm3, %v683_v4, %v679_v13 }
 0x6d0   :  { %v9888_v56 = vpop.xlane.xlu0 %615  ;;  %v9890_v61 = vpop.xlane.xlu1 %618  ;;  %v740_v35 = vsel %vm739_vm4, %v684_v24, %v675_v31 }
 0x6d1   :  { %v692_v0 = vrot.slane %v9888_v56, %v9900_v9  ;;  %v697_v25 = vrot.slane %v9890_v61, %v9897_v7 }
 0x6d3   :  { %v693_v26 = vsel %vm674_vm3, %v692_v0, %v688_v17 }
 0x6d4   :  { %v9892_v23 = vpop.xlane.xlu0 %627  ;;  %v9894_v6 = vpop.xlane.xlu1 %630  ;;  %v742_v41 = vsel %vm741_vm5, %v693_v26, %v740_v35 }
 0x6d5   :  { %v710_v39 = vrot.slane %v9892_v23, %v9900_v9  ;;  %v715_v43 = vrot.slane %v9894_v6, %v9897_v7 }
 0x6d7   :  { %v711_v2 = vsel %vm674_vm3, %v710_v39, %v706_v46  ;;  %v9969_v46 = vsub.s32 1, %v9732_v12 }
 0x6d8   :  { %v9902_v10 = vpop.xlane.xlu0 %621  ;;  %v9918_v20 = vpop.xlane.xlu1 %636 }
 0x6d9   :  { %v701_v15 = vrot.slane %v9902_v10, %v9900_v9  ;;  %v724_v63 = vrot.slane %v9918_v20, %v9897_v7 }
 0x6db   :  { %v702_v33 = vsel %vm674_vm3, %v701_v15, %v697_v25  ;;  %v8209_v25 = vld [vmem:[%s13186_s0 + $0x8] sm:$0xff] }
 0x6dc   :  { %v9920_v21 = vpop.xlane.xlu0 %633  ;;  %v744_v54 = vsel %vm743_vm6, %v702_v33, %v742_v41  ;;  %v9945_v4 = vpop.xlane.xlu1 %642  ;;  %v1544_v39 = vadd.f32 %v8209_v25, %v9760_v32  ;;  %v9984_v25 = vsub.s32 4, %v9732_v12 }
 0x6dd   :  { %v719_v34 = vrot.slane %v9920_v21, %v9900_v9  ;;  %v733_v15 = vrot.slane %v9945_v4, %v9897_v7  ;;  %v746_v24 = vsel %vm745_vm7, %v711_v2, %v744_v54  ;;  %v9972_v54 = vsub.s32 2, %v9732_v12 }
 0x6de   :  { %8861 = vtanh.f32 %v1544_v39  ;;  %v9977_v2 = vsub.s32 3, %v9732_v12 }
 0x6df   :  { %v720_v0 = vsel %vm674_vm3, %v719_v34, %v715_v43 }
 0x6e0   :  { %v9933_v40 = vpop.xlane.xlu0 %639  ;;  %v748_v26 = vsel %vm747_vm8, %v720_v0, %v746_v24 }
 0x6e1   :  { %v728_v45 = vrot.slane %v9933_v40, %v9900_v9 }
 0x6e3   :  { %v729_v13 = vsel %vm674_vm3, %v728_v45, %v724_v63  ;;  %v9448_v45 = vmov 0  }
 0x6e4   :  { %v9949_v5 = vpop.xlane.xlu0 %645  ;;  %v750_v33 = vsel %vm749_vm9, %v729_v13, %v748_v26  ;;  %8844 = vset.pattern.permute.xlu0 %v9448_v45  ;;  %8843 = vset.pattern.permute.xlu1 %v9448_v45 }
 0x6e5   :  { %v737_v17 = vrot.slane %v9949_v5, %v9900_v9 }
 0x6e7   :  { %v738_v31 = vsel %vm674_vm3, %v737_v17, %v733_v15 }
 0x6e8   :  { %v219_v34 = vpop.permute.xlu0 %218  ;;  %v752_v35 = vsel %vm751_vm10, %v738_v31, %v750_v33 }
 0x6e9   :  { %221 = vst.msk [vmem:[#allocation7] sm:$0xff] %vm54_vm0, %v219_v34  ;;  %v755_v41 = vsel %vm754_vm11, %v752_v35, -inf }
 0x6ea   :  { %756 = vmax.xlane.f32.xlu1 %v755_v41 }
 0x6eb   :  { %v8862_v43 = vpop.eup %8861 }
 0x6fb   :  { %1558 = vrot.lane.b32.xlu1 %v8862_v43, %s9444_s17  ;;  %v9990_v43 = vsub.s32 5, %v9732_v12 }
 0x773   :  { %v757_v63 = vpop.xlane.xlu1 %756 }
 0x774   :  { %v762_v32 = vrot.slane %v757_v63, %v9744_v22  ;;  %v766_v0 = vrot.slane %v757_v63, %v9969_v46  ;;  %v770_v13 = vrot.slane %v757_v63, %v9972_v54  ;;  %v774_v26 = vrot.slane %v757_v63, %v9977_v2 }
 0x776   :  { %v799_v15 = vsub.f32 %v9877_v48, %v762_v32  ;;  %v801_v17 = vsub.f32 %v9881_v51, %v766_v0  ;;  %v800_v24 = vsub.f32 %v9875_v47, %v762_v32  ;;  %v804_v31 = vsub.f32 %v9888_v56, %v770_v13 }
 0x777   :  { %v802_v35 = vsub.f32 %v9883_v52, %v766_v0  ;;  %v778_v48 = vrot.slane %v757_v63, %v9984_v25  ;;  %v806_v47 = vsub.f32 %v9902_v10, %v774_v26  ;;  %v803_v45 = vsub.f32 %v9879_v50, %v770_v13 }
 0x778   :  { %v815_v33 = vmul.f32 1.442695, %v799_v15  ;;  %v819_v34 = vmul.f32 1.442695, %v801_v17  ;;  %v817_v41 = vmul.f32 1.442695, %v800_v24  ;;  %v782_v52 = vrot.slane %v757_v63, %v9990_v43 }
 0x779   :  { %v825_v51 = vmul.f32 1.442695, %v804_v31  ;;  %v821_v32 = vmul.f32 1.442695, %v802_v35  ;;  %v9996_v56 = vsub.s32 6, %v9732_v12  ;;  %v808_v0 = vsub.f32 %v9892_v23, %v778_v48 }
 0x77a   :  { %8863 = vpow2.f32 %v815_v33  ;;  %v829_v15 = vmul.f32 1.442695, %v806_v47  ;;  %v805_v17 = vsub.f32 %v9890_v61, %v774_v26  ;;  %v823_v24 = vmul.f32 1.442695, %v803_v45 }
 0x77b   :  { %8865 = vpow2.f32 %v819_v34  ;;  %v8211_v10 = vmul.f32 -1.442695, %v1544_v39  ;;  %v10002_v31 = vsub.s32 7, %v9732_v12  ;;  %v786_v50 = vrot.slane %v757_v63, %v9996_v56 }
 0x77c   :  { %8867 = vpow2.f32 %v817_v41  ;;  %v810_v13 = vsub.f32 %v9920_v21, %v782_v52  ;;  %v833_v33 = vmul.f32 1.442695, %v808_v0  ;;  %v807_v34 = vsub.f32 %v9885_v53, %v778_v48 }
 0x77d   :  { %8869 = vpow2.f32 %v825_v51  ;;  %v827_v23 = vmul.f32 1.442695, %v805_v17  ;;  %v790_v61 = vrot.slane %v757_v63, %v10002_v31  ;;  %v811_v39 = vsub.f32 %v9918_v20, %v786_v50 }
 0x77e   :  { %8871 = vpow2.f32 %v821_v32  ;;  %v837_v12 = vmul.f32 1.442695, %v810_v13  ;;  %v809_v21 = vsub.f32 %v9894_v6, %v782_v52  ;;  %v831_v41 = vmul.f32 1.442695, %v807_v34 }
 0x77f   :  { %8873 = vpow2.f32 %v829_v15  ;;  %v813_v48 = vsub.f32 %v9945_v4, %v790_v61  ;;  %v839_v63 = vmul.f32 1.442695, %v811_v39  ;;  %v812_v47 = vsub.f32 %v9933_v40, %v786_v50 }
 0x780   :  { %8875 = vpow2.f32 %v823_v24  ;;  %v835_v51 = vmul.f32 1.442695, %v809_v21  ;;  %v814_v4 = vsub.f32 %v9949_v5, %v790_v61  ;;  %v1468_v61 = vld [vmem:[#allocation7] sm:$0xff] }
 0x781   :  { %8877 = vpow2.f32 %v8211_v10  ;;  %v843_v45 = vmul.f32 1.442695, %v813_v48  ;;  %v841_v52 = vmul.f32 1.442695, %v812_v47 }
 0x782   :  { %8879 = vpow2.f32 %v833_v33  ;;  %v845_v17 = vmul.f32 1.442695, %v814_v4 }
 0x783   :  { %8881 = vpow2.f32 %v827_v23 }
 0x784   :  { %8883 = vpow2.f32 %v837_v12  ;;  %v1559_v12 = vpop.permute.xlu1 %1558 }
 0x785   :  { %8885 = vpow2.f32 %v831_v41 }
 0x786   :  { %8887 = vpow2.f32 %v839_v63 }
 0x787   :  { %v10007_v35 = vpop.eup %8863  ;;  %8889 = vpow2.f32 %v835_v51 }
 0x788   :  { %864 = vperm.xlu1 %8843, %v10007_v35   ;;  %v10012_v26 = vpop.eup %8865  ;;  %8891 = vpow2.f32 %v843_v45 }
 0x789   :  { %870 = vperm.xlu0 %8844, %v10012_v26   ;;  %v10016_v53 = vpop.eup %8867  ;;  %8893 = vpow2.f32 %v841_v52 }
 0x78a   :  { %v10020_v20 = vpop.eup %8869  ;;  %8895 = vpow2.f32 %v845_v17 }
 0x78b   :  { %v10024_v6 = vpop.eup %8871 }
 0x78c   :  { %867 = vperm.xlu1 %8843, %v10016_v53   ;;  %v10027_v32 = vpop.eup %8873 }
 0x78d   :  { %879 = vperm.xlu0 %8844, %v10020_v20   ;;  %v10031_v0 = vpop.eup %8875 }
 0x78e   :  { %v8878_v40 = vpop.eup %8877 }
 0x78f   :  { %v10034_v15 = vpop.eup %8879  ;;  %v1548_v10 = vadd.f32 1.0, %v8878_v40 }
 0x790   :  { %873 = vperm.xlu1 %8843, %v10024_v6   ;;  %v10037_v24 = vpop.eup %8881 }
 0x791   :  { %885 = vperm.xlu0 %8844, %v10027_v32   ;;  %v10040_v5 = vpop.eup %8883  ;;  %8897 = vrcp.f32 %v1548_v10 }
 0x792   :  { %v10043_v50 = vpop.eup %8885 }
 0x793   :  { %v10046_v13 = vpop.eup %8887 }
 0x794   :  { %876 = vperm.xlu1 %8843, %v10031_v0   ;;  %v10049_v33 = vpop.eup %8889 }
 0x795   :  { %891 = vperm.xlu0 %8844, %v10034_v15   ;;  %v10052_v34 = vpop.eup %8891 }
 0x796   :  { %v10055_v23 = vpop.eup %8893 }
 0x797   :  { %v10059_v39 = vpop.eup %8895 }
 0x798   :  { %882 = vperm.xlu1 %8843, %v10037_v24  }
 0x799   :  { %897 = vperm.xlu0 %8844, %v10040_v5  }
 0x79c   :  { %888 = vperm.xlu1 %8843, %v10043_v50  }
 0x79d   :  { %900 = vperm.xlu0 %8844, %v10046_v13  }
 0x79e   :  { %v10062_v21 = vpop.eup %8897 }
 0x79f   :  { %v1561_v41 = vmul.f32 %v10062_v21, %v1559_v12 }
 0x7a0   :  { %894 = vperm.xlu1 %8843, %v10049_v33  }
 0x7a1   :  { %906 = vperm.xlu0 %8844, %v10052_v34  }
 0x7a4   :  { %903 = vperm.xlu1 %8843, %v10055_v23  }
 0x7a5   :  { %1553 = vrot.lane.b32.xlu0 %v1468_v61, %s9445_s18 }
 0x7a8   :  { %909 = vperm.xlu1 %8843, %v10059_v39  }
 0x7ac   :  { %1563 = vrot.lane.b32.xlu1 %v1561_v41, %s9445_s18 }
 0x803   :  { %v865_v48 = vpop.permute.xlu1 %864 }
 0x804   :  { %v871_v63 = vpop.permute.xlu0 %870  ;;  %v914_v11 = vrot.slane %v865_v48, %v9897_v7 }
 0x805   :  { %v923_v12 = vrot.slane %v871_v63, %v9897_v7 }
 0x807   :  { %v868_v47 = vpop.permute.xlu1 %867 }
 0x808   :  { %v880_v51 = vpop.permute.xlu0 %879  ;;  %v918_v41 = vrot.slane %v868_v47, %v9900_v9 }
 0x809   :  { %v936_v19 = vrot.slane %v880_v51, %v9900_v9 }
 0x80b   :  { %v874_v45 = vpop.permute.xlu1 %873 }
 0x80c   :  { %v886_v4 = vpop.permute.xlu0 %885  ;;  %v927_v14 = vrot.slane %v874_v45, %v9900_v9 }
 0x80d   :  { %v945_v49 = vrot.slane %v886_v4, %v9900_v9 }
 0x80e   :  { %v928_v45 = vsel %vm674_vm3, %v927_v14, %v923_v12 }
 0x80f   :  { %v877_v52 = vpop.permute.xlu1 %876 }
 0x810   :  { %v892_v40 = vpop.permute.xlu0 %891  ;;  %v932_v16 = vrot.slane %v877_v52, %v9897_v7 }
 0x811   :  { %v954_v8 = vrot.slane %v892_v40, %v9900_v9 }
 0x812   :  { %v937_v63 = vsel %vm674_vm3, %v936_v19, %v932_v16 }
 0x813   :  { %v883_v17 = vpop.permute.xlu1 %882 }
 0x814   :  { %v898_v10 = vpop.permute.xlu0 %897  ;;  %v941_v37 = vrot.slane %v883_v17, %v9897_v7  ;;  %v919_v17 = vsel %vm674_vm3, %v918_v41, %v914_v11 }
 0x815   :  { %v963_v51 = vrot.slane %v898_v10, %v9900_v9  ;;  %v983_v48 = vsel %vm739_vm4, %v928_v45, %v919_v17 }
 0x817   :  { %v889_v61 = vpop.permute.xlu1 %888 }
 0x818   :  { %v901_v1 = vpop.permute.xlu0 %900  ;;  %v950_v29 = vrot.slane %v889_v61, %v9897_v7  ;;  %v946_v61 = vsel %vm674_vm3, %v945_v49, %v941_v37 }
 0x819   :  { %v968_v4 = vrot.slane %v901_v1, %v9897_v7 }
 0x81a   :  { %v955_v14 = vsel %vm674_vm3, %v954_v8, %v950_v29 }
 0x81b   :  { %v895_v42 = vpop.permute.xlu1 %894 }
 0x81c   :  { %v907_v30 = vpop.permute.xlu0 %906  ;;  %v959_v52 = vrot.slane %v895_v42, %v9897_v7  ;;  %v984_v42 = vsel %vm741_vm5, %v937_v63, %v983_v48 }
 0x81d   :  { %v985_v16 = vsel %vm743_vm6, %v946_v61, %v984_v42  ;;  %v977_v49 = vrot.slane %v907_v30, %v9897_v7 }
 0x81e   :  { %v964_v40 = vsel %vm674_vm3, %v963_v51, %v959_v52  ;;  %v986_v12 = vsel %vm745_vm7, %v955_v14, %v985_v16 }
 0x81f   :  { %v904_v47 = vpop.permute.xlu1 %903  ;;  %v987_v1 = vsel %vm747_vm8, %v964_v40, %v986_v12 }
 0x820   :  { %v972_v18 = vrot.slane %v904_v47, %v9900_v9  ;;  %v1554_v19 = vpop.permute.xlu0 %1553 }
 0x821   :  { %v1556_v8 = vmul.f32 %v10062_v21, %v1554_v19 }
 0x822   :  { %v973_v10 = vsel %vm674_vm3, %v972_v18, %v968_v4 }
 0x823   :  { %v910_v11 = vpop.permute.xlu1 %909  ;;  %v988_v41 = vsel %vm749_vm9, %v973_v10, %v987_v1 }
 0x824   :  { %v981_v37 = vrot.slane %v910_v11, %v9900_v9 }
 0x826   :  { %v982_v29 = vsel %vm674_vm3, %v981_v37, %v977_v49 }
 0x827   :  { %v1564_v45 = vpop.permute.xlu1 %1563  ;;  %v989_v52 = vsel %vm751_vm10, %v982_v29, %v988_v41 }
 0x828   :  { %v10098_v63 = vadd.f32 %v1564_v45, %v1556_v8  ;;  %v991_v18 = vsel %vm754_vm11, %v989_v52, 0.0 }
 0x829   :  { %992 = vadd.xlane.f32.xlu0 %v991_v18 }
 0x82a   :  { %8899 = vtanh.f32 %v10098_v63 }
 0x837   :  { %v8900_v30 = vpop.eup %8899 }
 0x838   :  { %1569 = vrot.lane.b32.xlu1 %v8900_v30, %s9444_s17 }
 0x8aa   :  { %v1570_v19 = vpop.permute.xlu1 %1569 }
 0x8ab   :  { %v1572_v11 = vmul.f32 %v10062_v21, %v1570_v19 }
 0x8b2   :  { %v993_v47 = vpop.xlane.xlu0 %992 }
 0x8b3   :  { %8901 = vrcp.f32 %v993_v47 }
 0x8c0   :  { %v8902_v17 = vpop.eup %8901 }
 0x8c1   :  { %v1011_v51 = vrot.slane %v8902_v17, %v9977_v2  ;;  %v999_v61 = vrot.slane %v8902_v17, %v9744_v22  ;;  %v1027_v14 = vrot.slane %v8902_v17, %v10002_v31  ;;  %v1003_v16 = vrot.slane %v8902_v17, %v9969_v46 }
 0x8c2   :  { %v1015_v21 = vrot.slane %v8902_v17, %v9984_v25 }
 0x8c3   :  { %v1043_v48 = vmul.f32 %v10027_v32, %v1011_v51  ;;  %v1036_v4 = vmul.f32 %v10007_v35, %v999_v61  ;;  %v1050_v42 = vmul.f32 %v10052_v34, %v1027_v14  ;;  %v1037_v40 = vmul.f32 %v10016_v53, %v999_v61 }
 0x8c4   :  { %v1038_v10 = vmul.f32 %v10012_v26, %v1003_v16  ;;  %v1039_v35 = vmul.f32 %v10024_v6, %v1003_v16  ;;  %v1007_v32 = vrot.slane %v8902_v17, %v9972_v54  ;;  %v1042_v49 = vmul.f32 %v10037_v24, %v1011_v51 }
 0x8c5   :  { %1089 = vperm.xlu0 %8844, %v1043_v48   ;;  %1054 = vperm.xlu1 %8843, %v1036_v4   ;;  %v1044_v26 = vmul.f32 %v10043_v50, %v1015_v21  ;;  %v1045_v37 = vmul.f32 %v10034_v15, %v1015_v21  ;;  %v1019_v6 = vrot.slane %v8902_v17, %v9990_v43  ;;  %v10134_v15 = vld [vmem:[%s13195_s9 + $0x18] sm:$0xff] }
 0x8c6   :  { %v1040_v34 = vmul.f32 %v10031_v0, %v1007_v32  ;;  %v1041_v53 = vmul.f32 %v10020_v20, %v1007_v32  ;;  %v1023_v20 = vrot.slane %v8902_v17, %v9996_v56  ;;  %v1051_v50 = vmul.f32 %v10059_v39, %v1027_v14  ;;  %8490 = vmatpush3.msra.mxu1 %v10134_v15 }
 0x8c7   :  { %v1046_v12 = vmul.f32 %v10049_v33, %v1019_v6  ;;  %v1047_v0 = vmul.f32 %v10040_v5, %v1019_v6  ;;  %v10139_v5 = vld [vmem:[%s13195_s9 + $0x10] sm:$0xff]  ;;  %v10146_v33 = vld [vmem:[%s13195_s9 + $0x8] sm:$0xff] }
 0x8c8   :  { %v1048_v24 = vmul.f32 %v10046_v13, %v1023_v20  ;;  %v1049_v1 = vmul.f32 %v10055_v23, %v1023_v20  ;;  %v13254_v13 = vmov 0.0  }
 0x8c9   :  { %1124 = vperm.xlu0 %8844, %v1050_v42   ;;  %1059 = vperm.xlu1 %8843, %v1037_v40   ;;  %v13255_v40 = vld [vmem:[#allocation17_spill] sm:$0xff] }
 0x8ca   :  { %8491 = vmatprep.subr.mxu1 %v13254_v13 }
 0x8cb   :  { %8492 = vmatpush3.msra.mxu1 %v10139_v5 }
 0x8cc   :  { %8493 = vmatprep.subr.mxu1 %v13254_v13 }
 0x8cd   :  { %1064 = vperm.xlu1 %8843, %v1038_v10   ;;  %1574 = vrot.lane.b32.xlu0 %v1572_v11, %s9445_s18  ;;  %v13256_v11 = vld [vmem:[#allocation15_spill] sm:$0xff] }
 0x8ce   :  { %8494 = vmatpush3.msra.mxu1 %v10146_v33 }
 0x8cf   :  { %8495 = vmatprep.subr.mxu1 %v13254_v13 }
 0x8d1   :  { %1069 = vperm.xlu1 %8843, %v1039_v35   ;;  %v13257_v35 = vld [vmem:[#allocation14_spill] sm:$0xff] }
 0x8d5   :  { %1074 = vperm.xlu1 %8843, %v1040_v34  }
 0x8d9   :  { %1079 = vperm.xlu1 %8843, %v1041_v53  }
 0x8dd   :  { %1084 = vperm.xlu1 %8843, %v1042_v49  }
 0x8e1   :  { %1094 = vperm.xlu1 %8843, %v1044_v26  }
 0x8e5   :  { %1099 = vperm.xlu1 %8843, %v1045_v37  }
 0x8e9   :  { %1104 = vperm.xlu1 %8843, %v1046_v12  }
 0x8ed   :  { %1109 = vperm.xlu1 %8843, %v1047_v0  }
 0x8f1   :  { %1114 = vperm.xlu1 %8843, %v1048_v24   ;;  %v13258_v24 = vld [vmem:[#allocation16_spill] sm:$0xff] }
 0x8f5   :  { %1119 = vperm.xlu1 %8843, %v1049_v1  }
 0x8f9   :  { %1129 = vperm.xlu1 %8843, %v1051_v50  }
 0x8fd   :  { %410 = vrot.lane.b32.xlu1 %v9656_v57, %s9447_s16  ;;  %v10153_v57 = vld [vmem:[%s13195_s9] sm:$0xff] }
 0x8fe   :  { %8496 = vmatpush3.msra.mxu1 %v10153_v57 }
 0x8ff   :  { %8511 = vmatprep.subr.mxu1 %v13254_v13 }
 0x940   :  { %v10159_v23 = vpop.permute.xlu0 %1089  ;;  %v10161_v39 = vpop.permute.xlu1 %1054 }
 0x941   :  { %v1139_v16 = vmul.f32 %v10159_v23, %v13255_v40  ;;  %v1420_v50 = vrot.slane %v10159_v23, %v9900_v9 }
 0x943   :  { %v1176_v21 = vsel %vm601_vm2, %v1139_v16, 0.0 }
 0x944   :  { %v10163_v8 = vpop.permute.xlu0 %1124  ;;  %v10165_v29 = vpop.permute.xlu1 %1059 }
 0x945   :  { %v1133_v30 = vmul.f32 %v10165_v29, %v9751_v27  ;;  %v1452_v23 = vrot.slane %v10163_v8, %v9897_v7 }
 0x947   :  { %v1149_v17 = vsel %vm601_vm2, %v1133_v30, 0.0 }
 0x948   :  { %v1575_v41 = vpop.permute.xlu0 %1574  ;;  %v1065_v45 = vpop.permute.xlu1 %1064 }
 0x949   :  { %1577 = vst.msk [vmem:[#allocation6] sm:$0xff] %vm54_vm0, %v1575_v41  ;;  %8531 = vmatmul.mubr.msk.f32.vlgmr.msra.gmra.mxu0 %vm54_vm0, %v1575_v41  ;;  %v1134_v51 = vmul.f32 %v1065_v45, %v9774_v38  ;;  %v13259_v41 = vld [vmem:[#allocation20_spill] sm:$0xff] }
 0x94a   :  { %8545 = vmatpush3.msra.mxu0 %v9662_v58  ;;  %8552 = vmatprep.mubr.msk.f32.mxu0 %vm9443_vm1, %v13254_v13  ;;  %v1146_v30 = vmul.f32 %v10163_v8, %v13259_v41 }
 0x94b   :  { %8546 = vmatprep.subr.mxu0 %v13254_v13 }
 0x94c   :  { %v1070_v52 = vpop.permute.xlu1 %1069  ;;  %8547 = vmatpush3.msra.mxu0 %v9670_v60  ;;  %v1132_v60 = vmul.f32 %v10161_v39, %v9756_v28  ;;  %v1157_v28 = vsel %vm54_vm0, %v1134_v51, 0.0  ;;  %v1211_v40 = vsel %vm54_vm0, %v1146_v30, 0.0 }
 0x94d   :  { %8548 = vmatprep.subr.mxu0 %v13254_v13  ;;  %v1402_v6 = vrot.slane %v1070_v52, %v9900_v9 }
 0x94e   :  { %8549 = vmatpush3.msra.mxu0 %v9681_v62  ;;  %v1135_v62 = vmul.f32 %v1070_v52, %v9782_v44  ;;  %v1393_v52 = vrot.slane %v10165_v29, %v9900_v9 }
 0x94f   :  { %8550 = vmatprep.subr.mxu0 %v13254_v13 }
 0x950   :  { %v10177_v18 = vpop.permute.xlu1 %1074  ;;  %8551 = vmatpush3.msra.mxu0 %v9692_v3  ;;  %v1148_v3 = vsel %vm54_vm0, %v1132_v60, 0.0  ;;  %v1158_v4 = vsel %vm601_vm2, %v1135_v62, 0.0  ;;  %v1398_v60 = vrot.slane %v1065_v45, %v9897_v7 }
 0x951   :  { %8566 = vmatprep.subr.mxu0 %v13254_v13  ;;  %v1150_v48 = vadd.f32 %v1149_v17, %v1148_v3  ;;  %v1159_v44 = vadd.f32 %v1158_v4, %v1157_v28  ;;  %v1136_v42 = vmul.f32 %v10177_v18, %v9768_v36 }
 0x952   :  { %v1403_v28 = vsel %vm674_vm3, %v1402_v6, %v1398_v60 }
 0x953   :  { %v1151_v19 = vrot.slane %v1150_v48, 4  ;;  %v1160_v34 = vrot.slane %v1159_v44, 4  ;;  %v1166_v53 = vsel %vm54_vm0, %v1136_v42, 0.0 }
 0x954   :  { %v10181_v58 = vpop.permute.xlu1 %1079 }
 0x955   :  { %v1137_v27 = vmul.f32 %v10181_v58, %v9800_v55  ;;  %v1152_v26 = vadd.f32 %v1151_v19, %v1150_v48  ;;  %v1161_v62 = vadd.f32 %v1160_v34, %v1159_v44  ;;  %v13260_v48 = vld [vmem:[#allocation19_spill] sm:$0xff]  ;;  %v1411_v45 = vrot.slane %v10181_v58, %v9900_v9 }
 0x956   :  { %v1407_v58 = vrot.slane %v10177_v18, %v9897_v7 }
 0x957   :  { %v1167_v55 = vsel %vm601_vm2, %v1137_v27, 0.0  ;;  %v1153_v51 = vrot.slane %v1152_v26, 2  ;;  %v1389_v27 = vrot.slane %v10161_v39, %v9897_v7  ;;  %v1162_v16 = vrot.slane %v1161_v62, 2 }
 0x958   :  { %v10187_v47 = vpop.permute.xlu1 %1084  ;;  %v1168_v37 = vadd.f32 %v1167_v55, %v1166_v53  ;;  %v1412_v53 = vsel %vm674_vm3, %v1411_v45, %v1407_v58  ;;  %v13263_v45 = vld [vmem:[#allocation22_spill] sm:$0xff] }
 0x959   :  { %v1138_v14 = vmul.f32 %v10187_v47, %v9806_v59  ;;  %v1416_v39 = vrot.slane %v10187_v47, %v9897_v7  ;;  %v10239_v8 = vadd.f32 %v1153_v51, %v1152_v26  ;;  %v1163_v6 = vadd.f32 %v1162_v16, %v1161_v62 }
 0x95a   :  { %v1169_v3 = vrot.slane %v1168_v37, 4 }
 0x95b   :  { %v1175_v59 = vsel %vm54_vm0, %v1138_v14, 0.0 }
 0x95c   :  { %v10193_v61 = vpop.permute.xlu1 %1094  ;;  %v1177_v12 = vadd.f32 %v1176_v21, %v1175_v59  ;;  %v1170_v55 = vadd.f32 %v1169_v3, %v1168_v37  ;;  %v13261_v21 = vld [vmem:[#allocation18_spill] sm:$0xff] }
 0x95d   :  { %v1140_v32 = vmul.f32 %v10193_v61, %v13257_v35  ;;  %v1425_v18 = vrot.slane %v10193_v61, %v9897_v7 }
 0x95e   :  { %v1178_v14 = vrot.slane %v1177_v12, 4 }
 0x95f   :  { %v1184_v0 = vsel %vm54_vm0, %v1140_v32, 0.0 }
 0x960   :  { %v10203_v38 = vpop.permute.xlu1 %1099  ;;  %v1179_v32 = vadd.f32 %v1178_v14, %v1177_v12  ;;  %v1171_v12 = vrot.slane %v1170_v55, 2 }
 0x961   :  { %v1141_v10 = vmul.f32 %v10203_v38, %v13256_v11  ;;  %v1429_v59 = vrot.slane %v10203_v38, %v9900_v9  ;;  %v13262_v38 = vld [vmem:[#allocation21_spill] sm:$0xff] }
 0x962   :  { %v1180_v60 = vrot.slane %v1179_v32, 2 }
 0x963   :  { %v1185_v36 = vsel %vm601_vm2, %v1141_v10, 0.0  ;;  %v1394_v10 = vsel %vm674_vm3, %v1393_v52, %v1389_v27 }
 0x964   :  { %v1105_v49 = vpop.permute.xlu1 %1104  ;;  %v1186_v20 = vadd.f32 %v1185_v36, %v1184_v0  ;;  %v1458_v35 = vsel %vm739_vm4, %v1403_v28, %v1394_v10  ;;  %v1421_v0 = vsel %vm674_vm3, %v1420_v50, %v1416_v39  ;;  %v1172_v28 = vadd.f32 %v1171_v12, %v1170_v55 }
 0x965   :  { %v1142_v1 = vmul.f32 %v1105_v49, %v13258_v24  ;;  %v1181_v16 = vadd.f32 %v1180_v60, %v1179_v32  ;;  %v1155_v32 = vrot.slane %v10239_v8, 1 }
 0x966   :  { %v1187_v44 = vrot.slane %v1186_v20, 4 }
 0x967   :  { %v1193_v42 = vsel %vm54_vm0, %v1142_v1, 0.0  ;;  %v1434_v1 = vrot.slane %v1105_v49, %v9897_v7 }
 0x968   :  { %v1110_v17 = vpop.permute.xlu1 %1109  ;;  %v1188_v47 = vadd.f32 %v1187_v44, %v1186_v20  ;;  %v1459_v20 = vsel %vm741_vm5, %v1412_v53, %v1458_v35 }
 0x969   :  { %v1143_v4 = vmul.f32 %v1110_v17, %v13260_v48  ;;  %v1438_v36 = vrot.slane %v1110_v17, %v9900_v9  ;;  %v1430_v17 = vsel %vm674_vm3, %v1429_v59, %v1425_v18  ;;  %v1460_v49 = vsel %vm743_vm6, %v1421_v0, %v1459_v20 }
 0x96a   :  { %v1189_v50 = vrot.slane %v1188_v47, 2  ;;  %v1461_v14 = vsel %vm745_vm7, %v1430_v17, %v1460_v49 }
 0x96b   :  { %v1194_v29 = vsel %vm601_vm2, %v1143_v4, 0.0  ;;  %v1439_v51 = vsel %vm674_vm3, %v1438_v36, %v1434_v1 }
 0x96c   :  { %v1195_v19 = vadd.f32 %v1194_v29, %v1193_v42  ;;  %v1115_v11 = vpop.permute.xlu1 %1114  ;;  %v1164_v29 = vrot.slane %v1163_v6, 1  ;;  %v1462_v39 = vsel %vm747_vm8, %v1439_v51, %v1461_v14  ;;  %v9159_v14 = vld [vmem:[%s13191_s5 + $0x28] sm:$0xff] }
 0x96d   :  { %v1144_v26 = vmul.f32 %v1115_v11, %v13261_v21  ;;  %v1443_v62 = vrot.slane %v1115_v11, %v9897_v7  ;;  %v1190_v11 = vadd.f32 %v1189_v50, %v1188_v47  ;;  %v1173_v21 = vrot.slane %v1172_v28, 1 }
 0x96e   :  { %v1196_v34 = vrot.slane %v1195_v19, 4  ;;  %v1182_v47 = vrot.slane %v1181_v16, 1 }
 0x96f   :  { %v1202_v61 = vsel %vm54_vm0, %v1144_v26, 0.0  ;;  %v1191_v18 = vrot.slane %v1190_v11, 1  ;;  %v1174_v1 = vadd.f32 %v1173_v21, %v1172_v28  ;;  %v9158_v28 = vld [vmem:[%s13191_s5 + $0x30] sm:$0xff] }
 0x970   :  { %v1197_v37 = vadd.f32 %v1196_v34, %v1195_v19  ;;  %v1120_v24 = vpop.permute.xlu1 %1119 }
 0x971   :  { %v1145_v41 = vmul.f32 %v1120_v24, %v13262_v38  ;;  %v1447_v30 = vrot.slane %v1120_v24, %v9900_v9  ;;  %v1165_v24 = vadd.f32 %v1164_v29, %v1163_v6  ;;  %v1183_v38 = vadd.f32 %v1182_v47, %v1181_v16  ;;  %v9162_v29 = vld [vmem:[%s13193_s7 + $0x10] sm:$0xff]  ;;  %v9163_v16 = vld [vmem:[%s13193_s7 + $0x8] sm:$0xff] }
 0x972   :  { %v1198_v3 = vrot.slane %v1197_v37, 2  ;;  %v1192_v20 = vadd.f32 %v1191_v18, %v1190_v11 }
 0x973   :  { %v1203_v52 = vsel %vm601_vm2, %v1145_v41, 0.0  ;;  %v1448_v4 = vsel %vm674_vm3, %v1447_v30, %v1443_v62 }
 0x974   :  { %v1204_v48 = vadd.f32 %v1203_v52, %v1202_v61  ;;  %v1130_v27 = vpop.permute.xlu1 %1129  ;;  %v1463_v10 = vsel %vm749_vm9, %v1448_v4, %v1462_v39  ;;  %v1199_v59 = vadd.f32 %v1198_v3, %v1197_v37  ;;  %v9164_v39 = vld [vmem:[%s13193_s7] sm:$0xff] }
 0x975   :  { %v1147_v44 = vmul.f32 %v1130_v27, %v13263_v45  ;;  %v1456_v42 = vrot.slane %v1130_v27, %v9900_v9  ;;  %v9157_v27 = vld [vmem:[%s13191_s5 + $0x38] sm:$0xff]  ;;  %v9160_v45 = vld [vmem:[%s13191_s5 + $0x20] sm:$0xff] }
 0x976   :  { %v1205_v19 = vrot.slane %v1204_v48, 4  ;;  %v1200_v12 = vrot.slane %v1199_v59, 1 }
 0x977   :  { %v1212_v58 = vsel %vm601_vm2, %v1147_v44, 0.0  ;;  %v1457_v35 = vsel %vm674_vm3, %v1456_v42, %v1452_v23  ;;  %v1583_v44 = vld [vmem:[#allocation6 + $0x8] sm:$0xff]  ;;  %v9161_v42 = vld [vmem:[%s13193_s7 + $0x18] sm:$0xff] }
 0x978   :  { %v1206_v55 = vadd.f32 %v1205_v19, %v1204_v48  ;;  %v1213_v34 = vadd.f32 %v1212_v58, %v1211_v40  ;;  %v1464_v53 = vsel %vm751_vm10, %v1457_v35, %v1463_v10  ;;  %v411_v36 = vpop.permute.xlu1 %410  ;;  %v1156_v40 = vadd.f32 %v1155_v32, %v10239_v8  ;;  %v8208_v10 = vld [vmem:[%s13197_s11] ss:$0 sm:$0xff]  ;;  %v13264_v35 = vld [vmem:[#allocation13_spill] sm:$0xff]  ;;  %v9165_v32 = vld [vmem:[%s13192_s6 + $0x1] ss:$0 sm:$0xff] }
 0x979   :  { %1466 = vst.msk [vmem:[#allocation4] sm:$0xff] %vm754_vm11, %v1464_v53  ;;  %v1201_v17 = vadd.f32 %v1200_v12, %v1199_v59 }
 0x97a   :  { %413 = vst.msk [vmem:[#allocation7 + $0x8] sm:$0xff] %vm54_vm0, %v411_v36  ;;  %v1207_v26 = vrot.slane %v1206_v55, 2  ;;  %v1214_v0 = vrot.slane %v1213_v34, 4  ;;  %v1298_v60 = vsel %vm739_vm4, %v1165_v24, %v1156_v40 }
 0x97b   :  { %v1299_v6 = vsel %vm741_vm5, %v1174_v1, %v1298_v60 }
 0x97c   :  { %v1208_v23 = vadd.f32 %v1207_v26, %v1206_v55  ;;  %v1215_v37 = vadd.f32 %v1214_v0, %v1213_v34  ;;  %v1300_v52 = vsel %vm743_vm6, %v1183_v38, %v1299_v6  ;;  %v9168_v6 = vld [vmem:[%s13191_s5 + $0x8] sm:$0xff] }
 0x97d   :  { %v1301_v49 = vsel %vm745_vm7, %v1192_v20, %v1300_v52  ;;  %v9172_v52 = vld [vmem:[%s13190_s4 + $0x28] sm:$0xff] }
 0x97e   :  { %v1209_v41 = vrot.slane %v1208_v23, 1  ;;  %v1216_v30 = vrot.slane %v1215_v37, 2  ;;  %v1302_v3 = vsel %vm747_vm8, %v1201_v17, %v1301_v49 }
 0x980   :  { %v1217_v62 = vadd.f32 %v1216_v30, %v1215_v37  ;;  %v1210_v51 = vadd.f32 %v1209_v41, %v1208_v23 }
 0x981   :  { %v1584_v50 = vld [vmem:[#allocation7 + $0x8] sm:$0xff] }
 0x982   :  { %1739 = vrot.lane.b32.xlu1 %v1584_v50, %s9445_s18  ;;  %v1218_v61 = vrot.slane %v1217_v62, 1  ;;  %v1303_v48 = vsel %vm749_vm9, %v1210_v51, %v1302_v3  ;;  %v9166_v50 = vld [vmem:[%s13191_s5 + $0x18] sm:$0xff]  ;;  %v9167_v51 = vld [vmem:[%s13191_s5 + $0x10] sm:$0xff]  ;;  %v9174_v3 = vld [vmem:[%s13194_s8] ss:$0 sm:$0xff] }
 0x984   :  { %v1219_v8 = vadd.f32 %v1218_v61, %v1217_v62  ;;  %v2799_v61 = vld [vmem:[#allocation6] sm:$0xff] }
 0x986   :  { %v1304_v4 = vsel %vm751_vm10, %v1219_v8, %v1303_v48 }
 0x987   :  { %8498 = vmatmul.mubr.msk.f32.vlgmr.msra.gmra.mxu1 %vm54_vm0, %v1304_v4 }
 0x988   :  { %8512 = vmatpush3.msra.mxu1 %v9157_v27  ;;  %8519 = vmatprep.mubr.msk.f32.mxu1 %vm9443_vm1, %v13254_v13 }
 0x989   :  { %8513 = vmatprep.subr.mxu1 %v13254_v13 }
 0x98a   :  { %8514 = vmatpush3.msra.mxu1 %v9158_v28 }
 0x98b   :  { %8515 = vmatprep.subr.mxu1 %v13254_v13 }
 0x98c   :  { %8516 = vmatpush3.msra.mxu1 %v9159_v14  ;;  %v13266_v14 = vld [vmem:[#allocation12_spill] sm:$0xff] }
 0x98d   :  { %8517 = vmatprep.subr.mxu1 %v13254_v13 }
 0x98e   :  { %8518 = vmatpush3.msra.mxu1 %v9160_v45 }
 0x98f   :  { %8520 = vmatmul.mubr.msk.f32.vlgmr.msra.gmra.mxu1 %vm54_vm0, %v1583_v44  ;;  %8533 = vmatprep.subr.mxu1 %v13254_v13 }
 0x990   :  { %8534 = vmatpush3.msra.mxu1 %v9161_v42  ;;  %8541 = vmatprep.mubr.msk.f32.mxu1 %vm9443_vm1, %v13254_v13 }
 0x991   :  { %8535 = vmatprep.subr.mxu1 %v13254_v13 }
 0x992   :  { %8536 = vmatpush3.msra.mxu1 %v9162_v29 }
 0x993   :  { %8537 = vmatprep.subr.mxu1 %v13254_v13 }
 0x994   :  { %8538 = vmatpush3.msra.mxu1 %v9163_v16 }
 0x995   :  { %8539 = vmatprep.subr.mxu1 %v13254_v13 }
 0x996   :  { %8540 = vmatpush3.msra.mxu1 %v9164_v39 }
 0x997   :  { %8555 = vmatprep.subr.mxu1 %v13254_v13 }
 0x9f4   :  { %v1740_v40 = vpop.permute.xlu1 %1739 }
 0xa09   :  { %v1726_v19 = vpop.f32.mrf.mxu0 }
 0xa0b   :  { %v8532_v11 = vpop.f32.mrf.mxu0 }
 0xa47   :  { %v1373_v58 = vpop.f32.mrf.mxu1 }
 0xa48   :  { %v1374_v59 = vadd.f32 %v1373_v58, %v13264_v35  ;;  %v10403_v58 = vld [vmem:[%s13189_s3 + $0x8] sm:$0x3] }
 0xa49   :  { %v8499_v55 = vpop.f32.mrf.mxu1 }
 0xa4a   :  { %v1383_v34 = vadd.f32 %v8208_v10, %v1374_v59  ;;  %v10409_v59 = vld [vmem:[%s13189_s3] sm:$0xff] }
 0xa4c   :  { %8903 = vtanh.f32 %v1383_v34 }
 0xa4f   :  { %v1654_v53 = vpop.f32.mrf.mxu1 }
 0xa50   :  { %v1727_v36 = vadd.f32 %v1726_v19, %v1654_v53 }
 0xa51   :  { %v8521_v21 = vpop.f32.mrf.mxu1 }
 0xa52   :  { %v1730_v47 = vadd.f32 %v9165_v32, %v1727_v36 }
 0xa54   :  { %8905 = vtanh.f32 %v1730_v47  ;;  %v8214_v18 = vmul.f32 -1.442695, %v1730_v47 }
 0xa56   :  { %8907 = vpow2.f32 %v8214_v18  ;;  %v10420_v18 = vld [vmem:[%s13189_s3 + $0x20] sm:$0xff] }
 0xa59   :  { %v8904_v26 = vpop.eup %8903 }
 0xa5a   :  { %1385 = vst.msk [vmem:[#allocation2] sm:$0xff] %vm54_vm0, %v8904_v26 }
 0xa61   :  { %v8906_v0 = vpop.eup %8905 }
 0xa62   :  { %1744 = vrot.lane.b32.xlu0 %v8906_v0, %s9444_s17 }
 0xa63   :  { %v8908_v24 = vpop.eup %8907 }
 0xa64   :  { %v1734_v12 = vadd.f32 1.0, %v8908_v24 }
 0xa66   :  { %8909 = vrcp.f32 %v1734_v12  ;;  %v10426_v12 = vld [vmem:[%s13189_s3 + $0x10] sm:$0xff] }
 0xa73   :  { %v8910_v23 = vpop.eup %8909 }
 0xa74   :  { %v1742_v38 = vmul.f32 %v8910_v23, %v1740_v40 }
 0xad4   :  { %v1745_v37 = vpop.permute.xlu0 %1744 }
 0xad5   :  { %v1747_v1 = vmul.f32 %v8910_v23, %v1745_v37  ;;  %v10432_v37 = vld [vmem:[%s13189_s3 + $0x18] sm:$0x3] }
 0xad7   :  { %1749 = vrot.lane.b32.xlu0 %v1747_v1, %s9445_s18 }
 0xb49   :  { %v1750_v41 = vpop.permute.xlu0 %1749 }
 0xb4a   :  { %v10332_v30 = vadd.f32 %v1750_v41, %v1742_v38 }
 0xb4c   :  { %8911 = vtanh.f32 %v10332_v30 }
 0xb59   :  { %v8912_v20 = vpop.eup %8911 }
 0xb5a   :  { %1755 = vrot.lane.b32.xlu1 %v8912_v20, %s9444_s17  ;;  %v10441_v20 = vld [vmem:[%s13189_s3 + $0x40] sm:$0xff] }
 0xbcc   :  { %v1756_v60 = vpop.permute.xlu1 %1755 }
 0xbcd   :  { %v1758_v17 = vmul.f32 %v8910_v23, %v1756_v60 }
 0xbcf   :  { %1760 = vrot.lane.b32.xlu0 %v1758_v17, %s9445_s18 }
 0xc41   :  { %v1761_v62 = vpop.permute.xlu0 %1760 }
 0xc42   :  { %1763 = vst.msk [vmem:[#allocation6 + $0x8] sm:$0xff] %vm54_vm0, %v1761_v62  ;;  %8542 = vmatmul.mubr.msk.f32.vlgmr.msra.gmra.mxu1 %vm54_vm0, %v1761_v62  ;;  %8553 = vmatmul.mubr.msk.f32.vlgmr.msra.gmra.mxu0 %vm54_vm0, %v1761_v62 }
 0xc43   :  { %8567 = vmatpush3.msra.mxu0 %v9166_v50  ;;  %8574 = vmatprep.mubr.msk.f32.mxu0 %vm9443_vm1, %v13254_v13  ;;  %v10449_v50 = vld [vmem:[%s13189_s3 + $0x28] sm:$0x3] }
 0xc44   :  { %8568 = vmatprep.subr.mxu0 %v13254_v13  ;;  %8556 = vmatpush3.msra.mxu1 %v10134_v15  ;;  %v9169_v15 = vld [vmem:[%s13191_s5] sm:$0xff] }
 0xc45   :  { %8569 = vmatpush3.msra.mxu0 %v9167_v51  ;;  %8557 = vmatprep.subr.mxu1 %v13254_v13 }
 0xc46   :  { %8570 = vmatprep.subr.mxu0 %v13254_v13  ;;  %8558 = vmatpush3.msra.mxu1 %v10139_v5  ;;  %v9170_v5 = vld [vmem:[%s13190_s4 + $0x38] sm:$0xff] }
 0xc47   :  { %8571 = vmatpush3.msra.mxu0 %v9168_v6  ;;  %8559 = vmatprep.subr.mxu1 %v13254_v13 }
 0xc48   :  { %8572 = vmatprep.subr.mxu0 %v13254_v13  ;;  %8560 = vmatpush3.msra.mxu1 %v10146_v33  ;;  %v9171_v33 = vld [vmem:[%s13190_s4 + $0x30] sm:$0xff] }
 0xc49   :  { %8573 = vmatpush3.msra.mxu0 %v9169_v15  ;;  %8561 = vmatprep.subr.mxu1 %v13254_v13  ;;  %v10456_v15 = vld [vmem:[%s13189_s3 + $0x30] sm:$0xff] }
 0xc4a   :  { %8575 = vmatmul.mubr.msk.f32.vlgmr.msra.gmra.mxu0 %vm54_vm0, %v2799_v61  ;;  %8588 = vmatprep.subr.mxu0 %v13254_v13 }
 0xc4b   :  { %8589 = vmatpush3.msra.mxu0 %v9170_v5  ;;  %8596 = vmatprep.mubr.msk.f32.mxu0 %vm9443_vm1, %v13254_v13 }
 0xc4c   :  { %8590 = vmatprep.subr.mxu0 %v13254_v13  ;;  %8562 = vmatpush3.msra.mxu1 %v10153_v57  ;;  %v9173_v57 = vld [vmem:[%s13190_s4 + $0x20] sm:$0xff] }
 0xc4d   :  { %8591 = vmatpush3.msra.mxu0 %v9171_v33  ;;  %8563 = vmatprep.mubr.msk.f32.mxu1 %vm9443_vm1, %v13254_v13 }
 0xc4e   :  { %8592 = vmatprep.subr.mxu0 %v13254_v13  ;;  %8577 = vmatprep.subr.mxu1 %v13254_v13 }
 0xc4f   :  { %8593 = vmatpush3.msra.mxu0 %v9172_v52 }
 0xc50   :  { %8594 = vmatprep.subr.mxu0 %v13254_v13 }
 0xc51   :  { %8595 = vmatpush3.msra.mxu0 %v9173_v57  ;;  %v10464_v57 = vld [vmem:[%s13189_s3 + $0x48] sm:$0x3] }
 0xc52   :  { %8610 = vmatprep.subr.mxu0 %v13254_v13 }
 0xd02   :  { %v1837_v49 = vpop.f32.mrf.mxu1  ;;  %v10387_v8 = vpop.f32.mrf.mxu0 }
 0xd03   :  { %13265 = vst [vmem:[#allocation17_spill] sm:$0xff] %v10387_v8  ;;  %v1838_v48 = vadd.f32 %v9174_v3, %v1837_v49 }
 0xd04   :  { %v8543_v4 = vpop.f32.mrf.mxu1  ;;  %v8554_v27 = vpop.f32.mrf.mxu0 }
 0xd05   :  { %v1842_v28 = vcombine.high %v1838_v48, %v1838_v48  ;;  %v1849_v45 = vrot.slane %v1838_v48, %v13266_v14  ;;  %v10471_v48 = vld [vmem:[%s13189_s3 + $0x50] sm:$0xff] }
 0xd06   :  { %13267 = vst [vmem:[#allocation15_spill] sm:$0xff] %v10471_v48 }
 0xd07   :  { %v1856_v44 = vrot.slane %v1842_v28, %v13266_v14  ;;  %v1857_v42 = vcombine.high %v1849_v45, %v1849_v45  ;;  %v1865_v29 = vrot.slane %v1849_v45, %v13266_v14 }
 0xd09   :  { %v1894_v16 = vrot.slane %v1865_v29, %v9744_v22  ;;  %v1887_v39 = vcombine.high %v1865_v29, %v1865_v29  ;;  %v1879_v19 = vrot.slane %v1857_v42, %v13266_v14  ;;  %v1872_v10 = vrot.slane %v1856_v44, %v13266_v14  ;;  %v10480_v42 = vld [vmem:[%s13189_s3 + $0x38] sm:$0x3] }
 0xd0a   :  { %v10397_v11 = vpop.f32.mrf.mxu0  ;;  %v1858_v53 = vcombine.high %v1856_v44, %v1856_v44 }
 0xd0b   :  { %v1932_v35 = vmul.f32 %v10403_v58, %v1894_v16  ;;  %v1931_v55 = vmul.f32 %v10409_v59, %v1894_v16  ;;  %v1902_v34 = vrot.slane %v1887_v39, %v9744_v22  ;;  %v1898_v21 = vrot.slane %v1879_v19, %v9744_v22  ;;  %v10486_v16 = vld [vmem:[%s13189_s3 + $0x60] sm:$0xff] }
 0xd0c   :  { %v8576_v36 = vpop.f32.mrf.mxu0  ;;  %v1910_v26 = vrot.slane %v1872_v10, %v9744_v22  ;;  %v1889_v0 = vcombine.high %v1879_v19, %v1879_v19  ;;  %v1886_v40 = vrot.slane %v1858_v53, %v13266_v14  ;;  %v1888_v33 = vcombine.high %v1872_v10, %v1872_v10  ;;  %13268 = vst [vmem:[#allocation14_spill] sm:$0xff] %v10486_v16  ;;  %v10501_v53 = vld [vmem:[%s13189_s3 + $0x70] sm:$0xff] }
 0xd0d   :  { %v1950_v32 = vsel %vm601_vm2, %v1932_v35, 0.0  ;;  %v1947_v47 = vsel %vm54_vm0, %v1931_v55, 0.0  ;;  %v1935_v24 = vmul.f32 %v10420_v18, %v1902_v34  ;;  %v1933_v23 = vmul.f32 %v10426_v12, %v1898_v21  ;;  %v10495_v55 = vld [vmem:[%s13189_s3 + $0x58] sm:$0x3]  ;;  %13270 = vst [vmem:[#allocation20_spill] sm:$0xff] %v10501_v53 }
 0xd0e   :  { %1951 = vadd.xlane.f32.xlu0 %v1950_v32  ;;  %1948 = vadd.xlane.f32.xlu1 %v1947_v47  ;;  %v1934_v1 = vmul.f32 %v10432_v37, %v1898_v21  ;;  %v1939_v60 = vmul.f32 %v10441_v20, %v1910_v26  ;;  %v1906_v17 = vrot.slane %v1889_v0, %v9744_v22  ;;  %v10509_v47 = vld [vmem:[%s13189_s3 + $0x68] sm:$0x3] }
 0xd0f   :  { %v1959_v38 = vsel %vm54_vm0, %v1935_v24, 0.0  ;;  %v1953_v41 = vsel %vm54_vm0, %v1933_v23, 0.0  ;;  %v1936_v51 = vmul.f32 %v10449_v50, %v1902_v34  ;;  %v1914_v5 = vrot.slane %v1886_v40, %v9744_v22  ;;  %13269 = vst [vmem:[#allocation16_spill] sm:$0xff] %v10495_v55  ;;  %v10516_v24 = vld [vmem:[%s13189_s3 + $0x78] sm:$0x3] }
 0xd10   :  { %v1956_v62 = vsel %vm601_vm2, %v1934_v1, 0.0  ;;  %v1971_v6 = vsel %vm54_vm0, %v1939_v60, 0.0  ;;  %v1937_v61 = vmul.f32 %v10456_v15, %v1906_v17  ;;  %v1940_v49 = vmul.f32 %v10464_v57, %v1910_v26 }
 0xd11   :  { %v1962_v52 = vsel %vm601_vm2, %v1936_v51, 0.0  ;;  %v1941_v4 = vmul.f32 %v10471_v48, %v1914_v5  ;;  %v1918_v27 = vrot.slane %v1888_v33, %v9744_v22  ;;  %v1890_v28 = vcombine.high %v1886_v40, %v1886_v40 }
 0xd12   :  { %1960 = vadd.xlane.f32.xlu1 %v1959_v38  ;;  %1954 = vadd.xlane.f32.xlu0 %v1953_v41  ;;  %v1965_v3 = vsel %vm54_vm0, %v1937_v61, 0.0  ;;  %v1974_v45 = vsel %vm601_vm2, %v1940_v49, 0.0  ;;  %v1938_v29 = vmul.f32 %v10480_v42, %v1906_v17  ;;  %v1942_v34 = vmul.f32 %v10495_v55, %v1914_v5 }
 0xd13   :  { %v1977_v44 = vsel %vm54_vm0, %v1941_v4, 0.0  ;;  %v1943_v39 = vmul.f32 %v10486_v16, %v1918_v27  ;;  %v1922_v19 = vrot.slane %v1890_v28, %v9744_v22  ;;  %v1944_v26 = vmul.f32 %v10509_v47, %v1918_v27 }
 0xd14   :  { %v1968_v10 = vsel %vm601_vm2, %v1938_v29, 0.0  ;;  %v1980_v21 = vsel %vm601_vm2, %v1942_v34, 0.0 }
 0xd15   :  { %v1983_v35 = vsel %vm54_vm0, %v1943_v39, 0.0  ;;  %v1945_v36 = vmul.f32 %v10501_v53, %v1922_v19  ;;  %v1986_v0 = vsel %vm601_vm2, %v1944_v26, 0.0  ;;  %v1946_v23 = vmul.f32 %v10516_v24, %v1922_v19 }
 0xd16   :  { %1957 = vadd.xlane.f32.xlu0 %v1956_v62  ;;  %1972 = vadd.xlane.f32.xlu1 %v1971_v6 }
 0xd17   :  { %v1989_v32 = vsel %vm54_vm0, %v1945_v36, 0.0  ;;  %v1992_v1 = vsel %vm601_vm2, %v1946_v23, 0.0 }
 0xd1a   :  { %1963 = vadd.xlane.f32.xlu0 %v1962_v52  ;;  %1966 = vadd.xlane.f32.xlu1 %v1965_v3 }
 0xd1e   :  { %1975 = vadd.xlane.f32.xlu0 %v1974_v45  ;;  %1978 = vadd.xlane.f32.xlu1 %v1977_v44 }
 0xd22   :  { %1969 = vadd.xlane.f32.xlu0 %v1968_v10  ;;  %1984 = vadd.xlane.f32.xlu1 %v1983_v35 }
 0xd26   :  { %1981 = vadd.xlane.f32.xlu0 %v1980_v21  ;;  %1990 = vadd.xlane.f32.xlu1 %v1989_v32 }
 0xd2a   :  { %1987 = vadd.xlane.f32.xlu0 %v1986_v0 }
 0xd2e   :  { %1993 = vadd.xlane.f32.xlu0 %v1992_v1 }
 0xd44   :  { %1579 = vrot.lane.b32.xlu0 %v10098_v63, %s9447_s16 }
 0xd97   :  { %v10522_v40 = vpop.xlane.xlu0 %1951  ;;  %v1949_v38 = vpop.xlane.xlu1 %1948 }
 0xd98   :  { %v2018_v49 = vrot.slane %v10522_v40, %v9900_v9  ;;  %v2014_v3 = vrot.slane %v1949_v38, %v9897_v7 }
 0xd9a   :  { %v2019_v10 = vsel %vm674_vm3, %v2018_v49, %v2014_v3 }
 0xd9b   :  { %v10524_v41 = vpop.xlane.xlu1 %1960  ;;  %v10526_v60 = vpop.xlane.xlu0 %1954 }
 0xd9c   :  { %v2023_v4 = vrot.slane %v10526_v60, %v9897_v7  ;;  %v2032_v28 = vrot.slane %v10524_v41, %v9897_v7 }
 0xd9f   :  { %v1958_v17 = vpop.xlane.xlu0 %1957  ;;  %v10528_v62 = vpop.xlane.xlu1 %1972 }
 0xda0   :  { %v2027_v63 = vrot.slane %v1958_v17, %v9900_v9  ;;  %v2050_v1 = vrot.slane %v10528_v62, %v9897_v7 }
 0xda2   :  { %v2028_v29 = vsel %vm674_vm3, %v2027_v63, %v2023_v4 }
 0xda3   :  { %v10530_v51 = vpop.xlane.xlu0 %1963  ;;  %v10532_v6 = vpop.xlane.xlu1 %1966  ;;  %v2083_v36 = vsel %vm739_vm4, %v2028_v29, %v2019_v10  ;;  %v8218_v10 = vld [vmem:[%s13186_s0 + $0x10] sm:$0xff] }
 0xda4   :  { %v2036_v52 = vrot.slane %v10530_v51, %v9900_v9  ;;  %v2041_v39 = vrot.slane %v10532_v6, %v9897_v7 }
 0xda6   :  { %v2037_v19 = vsel %vm674_vm3, %v2036_v52, %v2032_v28 }
 0xda7   :  { %v10534_v61 = vpop.xlane.xlu0 %1975  ;;  %v10536_v5 = vpop.xlane.xlu1 %1978  ;;  %v2084_v26 = vsel %vm741_vm5, %v2037_v19, %v2083_v36 }
 0xda8   :  { %v2054_v21 = vrot.slane %v10534_v61, %v9900_v9  ;;  %v2059_v0 = vrot.slane %v10536_v5, %v9897_v7 }
 0xdaa   :  { %v2055_v4 = vsel %vm674_vm3, %v2054_v21, %v2050_v1 }
 0xdab   :  { %v10538_v33 = vpop.xlane.xlu0 %1969  ;;  %v10552_v45 = vpop.xlane.xlu1 %1984 }
 0xdac   :  { %v2045_v27 = vrot.slane %v10538_v33, %v9900_v9  ;;  %v2068_v52 = vrot.slane %v10552_v45, %v9897_v7 }
 0xdae   :  { %v2046_v35 = vsel %vm674_vm3, %v2045_v27, %v2041_v39 }
 0xdaf   :  { %v10554_v44 = vpop.xlane.xlu0 %1981  ;;  %v2085_v63 = vsel %vm743_vm6, %v2046_v35, %v2084_v26  ;;  %v10579_v49 = vpop.xlane.xlu1 %1990 }
 0xdb0   :  { %v2063_v34 = vrot.slane %v10554_v44, %v9900_v9  ;;  %v2077_v29 = vrot.slane %v10579_v49, %v9897_v7  ;;  %v2086_v19 = vsel %vm745_vm7, %v2055_v4, %v2085_v63 }
 0xdb2   :  { %v2064_v3 = vsel %vm674_vm3, %v2063_v34, %v2059_v0  ;;  %v2876_v0 = vadd.f32 %v8218_v10, %v10397_v11 }
 0xdb3   :  { %v10567_v32 = vpop.xlane.xlu0 %1987  ;;  %v2087_v35 = vsel %vm747_vm8, %v2064_v3, %v2086_v19 }
 0xdb4   :  { %v2072_v23 = vrot.slane %v10567_v32, %v9900_v9  ;;  %8913 = vtanh.f32 %v2876_v0 }
 0xdb6   :  { %v2073_v28 = vsel %vm674_vm3, %v2072_v23, %v2068_v52 }
 0xdb7   :  { %v10583_v27 = vpop.xlane.xlu0 %1993  ;;  %v2088_v36 = vsel %vm749_vm9, %v2073_v28, %v2087_v35 }
 0xdb8   :  { %v2081_v39 = vrot.slane %v10583_v27, %v9900_v9 }
 0xdba   :  { %v2082_v34 = vsel %vm674_vm3, %v2081_v39, %v2077_v29 }
 0xdbb   :  { %v1580_v21 = vpop.permute.xlu0 %1579  ;;  %v2089_v26 = vsel %vm751_vm10, %v2082_v34, %v2088_v36 }
 0xdbc   :  { %1582 = vst.msk [vmem:[#allocation7] sm:$0xff] %vm54_vm0, %v1580_v21  ;;  %v2091_v23 = vsel %vm754_vm11, %v2089_v26, -inf }
 0xdbd   :  { %2092 = vmax.xlane.f32.xlu1 %v2091_v23 }
 0xdc1   :  { %v8914_v1 = vpop.eup %8913 }
 0xdce   :  { %2890 = vrot.lane.b32.xlu1 %v8914_v1, %s9444_s17 }
 0xe46   :  { %v2093_v63 = vpop.xlane.xlu1 %2092 }
 0xe47   :  { %v2098_v52 = vrot.slane %v2093_v63, %v9744_v22  ;;  %v2102_v3 = vrot.slane %v2093_v63, %v9969_v46  ;;  %v2106_v28 = vrot.slane %v2093_v63, %v9972_v54  ;;  %v2110_v19 = vrot.slane %v2093_v63, %v9977_v2 }
 0xe48   :  { %v2114_v21 = vrot.slane %v2093_v63, %v9984_v25  ;;  %v2118_v23 = vrot.slane %v2093_v63, %v9990_v43 }
 0xe49   :  { %v2135_v4 = vsub.f32 %v1949_v38, %v2098_v52  ;;  %v2138_v29 = vsub.f32 %v1958_v17, %v2102_v3  ;;  %v2136_v11 = vsub.f32 %v10522_v40, %v2098_v52  ;;  %v2140_v10 = vsub.f32 %v10530_v51, %v2106_v28 }
 0xe4a   :  { %v2137_v34 = vsub.f32 %v10526_v60, %v2102_v3  ;;  %v2142_v26 = vsub.f32 %v10538_v33, %v2110_v19  ;;  %v2139_v17 = vsub.f32 %v10524_v41, %v2106_v28  ;;  %v2144_v1 = vsub.f32 %v10534_v61, %v2114_v21 }
 0xe4b   :  { %v2151_v39 = vmul.f32 1.442695, %v2135_v4  ;;  %v2157_v35 = vmul.f32 1.442695, %v2138_v29  ;;  %v2153_v36 = vmul.f32 1.442695, %v2136_v11  ;;  %v2141_v60 = vsub.f32 %v10532_v6, %v2110_v19 }
 0xe4c   :  { %v2161_v38 = vmul.f32 1.442695, %v2140_v10  ;;  %v2155_v40 = vmul.f32 1.442695, %v2137_v34  ;;  %v2165_v51 = vmul.f32 1.442695, %v2142_v26  ;;  %v2122_v4 = vrot.slane %v2093_v63, %v9996_v56 }
 0xe4d   :  { %8915 = vpow2.f32 %v2151_v39  ;;  %v2159_v52 = vmul.f32 1.442695, %v2139_v17  ;;  %v8220_v3 = vmul.f32 -1.442695, %v2876_v0  ;;  %v2146_v33 = vsub.f32 %v10554_v44, %v2118_v23 }
 0xe4e   :  { %8917 = vpow2.f32 %v2157_v35  ;;  %v2169_v29 = vmul.f32 1.442695, %v2144_v1  ;;  %v2143_v41 = vsub.f32 %v10528_v62, %v2114_v21  ;;  %v2163_v28 = vmul.f32 1.442695, %v2141_v60 }
 0xe4f   :  { %8919 = vpow2.f32 %v2153_v36  ;;  %v2126_v6 = vrot.slane %v2093_v63, %v10002_v31  ;;  %v2147_v61 = vsub.f32 %v10552_v45, %v2122_v4  ;;  %v2173_v0 = vmul.f32 1.442695, %v2146_v33  ;;  %v2800_v33 = vld [vmem:[#allocation7] sm:$0xff] }
 0xe50   :  { %8921 = vpow2.f32 %v2161_v38  ;;  %v2145_v44 = vsub.f32 %v10536_v5, %v2118_v23  ;;  %v2167_v19 = vmul.f32 1.442695, %v2143_v41  ;;  %v2148_v45 = vsub.f32 %v10567_v32, %v2122_v4  ;;  %v2891_v41 = vpop.permute.xlu1 %2890 }
 0xe51   :  { %8923 = vpow2.f32 %v2155_v40  ;;  %v2149_v10 = vsub.f32 %v10579_v49, %v2126_v6  ;;  %v2175_v63 = vmul.f32 1.442695, %v2147_v61  ;;  %v2150_v49 = vsub.f32 %v10583_v27, %v2126_v6 }
 0xe52   :  { %8925 = vpow2.f32 %v2165_v51  ;;  %v2171_v34 = vmul.f32 1.442695, %v2145_v44  ;;  %v2177_v26 = vmul.f32 1.442695, %v2148_v45 }
 0xe53   :  { %8927 = vpow2.f32 %v2159_v52  ;;  %v2179_v5 = vmul.f32 1.442695, %v2149_v10  ;;  %v2181_v40 = vmul.f32 1.442695, %v2150_v49 }
 0xe54   :  { %8929 = vpow2.f32 %v8220_v3 }
 0xe55   :  { %8931 = vpow2.f32 %v2169_v29 }
 0xe56   :  { %8933 = vpow2.f32 %v2163_v28 }
 0xe57   :  { %8935 = vpow2.f32 %v2173_v0 }
 0xe58   :  { %8937 = vpow2.f32 %v2167_v19 }
 0xe59   :  { %8939 = vpow2.f32 %v2175_v63 }
 0xe5a   :  { %v10618_v11 = vpop.eup %8915  ;;  %8941 = vpow2.f32 %v2171_v34 }
 0xe5b   :  { %2200 = vperm.xlu1 %8843, %v10618_v11   ;;  %v10623_v39 = vpop.eup %8917  ;;  %8943 = vpow2.f32 %v2179_v5 }
 0xe5c   :  { %v10626_v62 = vpop.eup %8919  ;;  %2209 = vperm.xlu0 %8844, %v10623_v39   ;;  %8945 = vpow2.f32 %v2177_v26 }
 0xe5d   :  { %v10631_v35 = vpop.eup %8921  ;;  %8947 = vpow2.f32 %v2181_v40 }
 0xe5e   :  { %v10634_v36 = vpop.eup %8923 }
 0xe5f   :  { %2203 = vperm.xlu1 %8843, %v10626_v62   ;;  %v10638_v21 = vpop.eup %8925 }
 0xe60   :  { %2215 = vperm.xlu0 %8844, %v10631_v35   ;;  %v10641_v38 = vpop.eup %8927 }
 0xe61   :  { %v8930_v32 = vpop.eup %8929 }
 0xe62   :  { %v10645_v17 = vpop.eup %8931  ;;  %v2880_v1 = vadd.f32 1.0, %v8930_v32 }
 0xe63   :  { %2206 = vperm.xlu1 %8843, %v10634_v36   ;;  %v10647_v23 = vpop.eup %8933 }
 0xe64   :  { %2221 = vperm.xlu0 %8844, %v10638_v21   ;;  %v10651_v27 = vpop.eup %8935  ;;  %8949 = vrcp.f32 %v2880_v1 }
 0xe65   :  { %v10653_v51 = vpop.eup %8937 }
 0xe66   :  { %v10657_v60 = vpop.eup %8939 }
 0xe67   :  { %2212 = vperm.xlu1 %8843, %v10641_v38   ;;  %v10659_v52 = vpop.eup %8941 }
 0xe68   :  { %2227 = vperm.xlu0 %8844, %v10645_v17   ;;  %v10663_v3 = vpop.eup %8943 }
 0xe69   :  { %v10665_v4 = vpop.eup %8945 }
 0xe6a   :  { %v10669_v29 = vpop.eup %8947 }
 0xe6b   :  { %2218 = vperm.xlu1 %8843, %v10647_v23  }
 0xe6c   :  { %2233 = vperm.xlu0 %8844, %v10651_v27  }
 0xe6f   :  { %2224 = vperm.xlu1 %8843, %v10653_v51  }
 0xe70   :  { %2236 = vperm.xlu0 %8844, %v10657_v60  }
 0xe71   :  { %v10673_v28 = vpop.eup %8949 }
 0xe72   :  { %v2893_v6 = vmul.f32 %v10673_v28, %v2891_v41 }
 0xe73   :  { %2230 = vperm.xlu1 %8843, %v10659_v52  }
 0xe74   :  { %2242 = vperm.xlu0 %8844, %v10663_v3  }
 0xe77   :  { %2239 = vperm.xlu1 %8843, %v10665_v4  }
 0xe78   :  { %2885 = vrot.lane.b32.xlu0 %v2800_v33, %s9445_s18 }
 0xe7b   :  { %2245 = vperm.xlu1 %8843, %v10669_v29  }
 0xe7f   :  { %2895 = vrot.lane.b32.xlu1 %v2893_v6, %s9445_s18 }
 0xed6   :  { %v2201_v61 = vpop.permute.xlu1 %2200 }
 0xed7   :  { %v2210_v0 = vpop.permute.xlu0 %2209  ;;  %v2250_v53 = vrot.slane %v2201_v61, %v9897_v7 }
 0xed8   :  { %v2263_v41 = vrot.slane %v2210_v0, %v9900_v9 }
 0xeda   :  { %v2204_v44 = vpop.permute.xlu1 %2203 }
 0xedb   :  { %v2216_v19 = vpop.permute.xlu0 %2215  ;;  %v2254_v6 = vrot.slane %v2204_v44, %v9900_v9 }
 0xedc   :  { %v2272_v8 = vrot.slane %v2216_v19, %v9900_v9 }
 0xede   :  { %v2207_v10 = vpop.permute.xlu1 %2206 }
 0xedf   :  { %v2222_v63 = vpop.permute.xlu0 %2221  ;;  %v2259_v32 = vrot.slane %v2207_v10, %v9897_v7 }
 0xee0   :  { %v2281_v16 = vrot.slane %v2222_v63, %v9900_v9 }
 0xee1   :  { %v2264_v10 = vsel %vm674_vm3, %v2263_v41, %v2259_v32 }
 0xee2   :  { %v2213_v45 = vpop.permute.xlu1 %2212 }
 0xee3   :  { %v2228_v34 = vpop.permute.xlu0 %2227  ;;  %v2268_v1 = vrot.slane %v2213_v45, %v9897_v7 }
 0xee4   :  { %v2290_v48 = vrot.slane %v2228_v34, %v9900_v9 }
 0xee5   :  { %v2273_v0 = vsel %vm674_vm3, %v2272_v8, %v2268_v1 }
 0xee6   :  { %v2219_v5 = vpop.permute.xlu1 %2218 }
 0xee7   :  { %v2234_v49 = vpop.permute.xlu0 %2233  ;;  %v2277_v14 = vrot.slane %v2219_v5, %v9897_v7  ;;  %v2255_v5 = vsel %vm674_vm3, %v2254_v6, %v2250_v53 }
 0xee8   :  { %v2299_v19 = vrot.slane %v2234_v49, %v9900_v9  ;;  %v2319_v63 = vsel %vm739_vm4, %v2264_v10, %v2255_v5 }
 0xeea   :  { %v2225_v26 = vpop.permute.xlu1 %2224 }
 0xeeb   :  { %v2237_v40 = vpop.permute.xlu0 %2236  ;;  %v2286_v13 = vrot.slane %v2225_v26, %v9897_v7  ;;  %v2282_v26 = vsel %vm674_vm3, %v2281_v16, %v2277_v14 }
 0xeec   :  { %v2304_v32 = vrot.slane %v2237_v40, %v9897_v7 }
 0xeed   :  { %v2291_v41 = vsel %vm674_vm3, %v2290_v48, %v2286_v13 }
 0xeee   :  { %v2231_v33 = vpop.permute.xlu1 %2230 }
 0xeef   :  { %v2243_v55 = vpop.permute.xlu0 %2242  ;;  %v2295_v45 = vrot.slane %v2231_v33, %v9897_v7  ;;  %v2320_v33 = vsel %vm741_vm5, %v2273_v0, %v2319_v63 }
 0xef0   :  { %v2321_v8 = vsel %vm743_vm6, %v2282_v26, %v2320_v33  ;;  %v2313_v14 = vrot.slane %v2243_v55, %v9897_v7 }
 0xef1   :  { %v2300_v34 = vsel %vm674_vm3, %v2299_v19, %v2295_v45  ;;  %v2322_v6 = vsel %vm745_vm7, %v2291_v41, %v2321_v8 }
 0xef2   :  { %v2240_v44 = vpop.permute.xlu1 %2239  ;;  %v2323_v40 = vsel %vm747_vm8, %v2300_v34, %v2322_v6 }
 0xef3   :  { %v2308_v61 = vrot.slane %v2240_v44, %v9900_v9  ;;  %v2886_v1 = vpop.permute.xlu0 %2885 }
 0xef4   :  { %v2888_v13 = vmul.f32 %v10673_v28, %v2886_v1 }
 0xef5   :  { %v2309_v49 = vsel %vm674_vm3, %v2308_v61, %v2304_v32 }
 0xef6   :  { %v2246_v53 = vpop.permute.xlu1 %2245  ;;  %v2324_v10 = vsel %vm749_vm9, %v2309_v49, %v2323_v40 }
 0xef7   :  { %v2317_v16 = vrot.slane %v2246_v53, %v9900_v9 }
 0xef9   :  { %v2318_v48 = vsel %vm674_vm3, %v2317_v16, %v2313_v14 }
 0xefa   :  { %v2896_v45 = vpop.permute.xlu1 %2895  ;;  %v2325_v0 = vsel %vm751_vm10, %v2318_v48, %v2324_v10 }
 0xefb   :  { %v10709_v44 = vadd.f32 %v2896_v45, %v2888_v13  ;;  %v2327_v5 = vsel %vm754_vm11, %v2325_v0, 0.0 }
 0xefc   :  { %2328 = vadd.xlane.f32.xlu0 %v2327_v5 }
 0xefd   :  { %8951 = vtanh.f32 %v10709_v44 }
 0xf0a   :  { %v8952_v55 = vpop.eup %8951 }
 0xf0b   :  { %2901 = vrot.lane.b32.xlu1 %v8952_v55, %s9444_s17 }
 0xf7d   :  { %v2902_v40 = vpop.permute.xlu1 %2901 }
 0xf85   :  { %v2329_v19 = vpop.xlane.xlu0 %2328 }
 0xf86   :  { %8953 = vrcp.f32 %v2329_v19 }
 0xf93   :  { %v8954_v26 = vpop.eup %8953 }
 0xf94   :  { %v2347_v61 = vrot.slane %v8954_v26, %v9977_v2  ;;  %v2335_v63 = vrot.slane %v8954_v26, %v9744_v22  ;;  %v2359_v33 = vrot.slane %v8954_v26, %v9996_v56  ;;  %v2363_v1 = vrot.slane %v8954_v26, %v10002_v31 }
 0xf95   :  { %v2339_v53 = vrot.slane %v8954_v26, %v9969_v46  ;;  %v2343_v14 = vrot.slane %v8954_v26, %v9972_v54  ;;  %v2355_v6 = vrot.slane %v8954_v26, %v9990_v43 }
 0xf96   :  { %v2378_v32 = vmul.f32 %v10647_v23, %v2347_v61  ;;  %v2372_v41 = vmul.f32 %v10618_v11, %v2335_v63  ;;  %v2385_v34 = vmul.f32 %v10665_v4, %v2359_v33  ;;  %v2373_v8 = vmul.f32 %v10626_v62, %v2335_v63 }
 0xf97   :  { %v2387_v49 = vmul.f32 %v10669_v29, %v2363_v1  ;;  %v2374_v23 = vmul.f32 %v10634_v36, %v2339_v53  ;;  %v2375_v11 = vmul.f32 %v10623_v39, %v2339_v53  ;;  %v2376_v62 = vmul.f32 %v10641_v38, %v2343_v14 }
 0xf98   :  { %2420 = vperm.xlu0 %8844, %v2378_v32   ;;  %2390 = vperm.xlu1 %8843, %v2372_v41   ;;  %v2377_v4 = vmul.f32 %v10631_v35, %v2343_v14  ;;  %v2379_v29 = vmul.f32 %v10638_v21, %v2347_v61  ;;  %v2351_v36 = vrot.slane %v8954_v26, %v9984_v25 }
 0xf99   :  { %v2383_v38 = vmul.f32 %v10651_v27, %v2355_v6  ;;  %v2384_v35 = vmul.f32 %v10657_v60, %v2359_v33  ;;  %v2386_v21 = vmul.f32 %v10663_v3, %v2363_v1 }
 0xf9a   :  { %v2380_v16 = vmul.f32 %v10653_v51, %v2351_v36  ;;  %v2381_v39 = vmul.f32 %v10645_v17, %v2351_v36  ;;  %v2904_v51 = vmul.f32 %v10673_v28, %v2902_v40 }
 0xf9c   :  { %2455 = vperm.xlu0 %8844, %v2385_v34   ;;  %2395 = vperm.xlu1 %8843, %v2373_v8  }
 0xfa0   :  { %2465 = vperm.xlu0 %8844, %v2387_v49   ;;  %2400 = vperm.xlu1 %8843, %v2374_v23  }
 0xfa4   :  { %1765 = vrot.lane.b32.xlu0 %v10332_v30, %s9447_s16  ;;  %2405 = vperm.xlu1 %8843, %v2375_v11   ;;  %v2382_v30 = vmul.f32 %v10659_v52, %v2355_v6 }
 0xfa8   :  { %2410 = vperm.xlu1 %8843, %v2376_v62  }
 0xfac   :  { %2415 = vperm.xlu1 %8843, %v2377_v4  }
 0xfb0   :  { %2425 = vperm.xlu1 %8843, %v2379_v29  }
 0xfb4   :  { %2430 = vperm.xlu1 %8843, %v2380_v16  }
 0xfb8   :  { %2435 = vperm.xlu1 %8843, %v2381_v39  }
 0xfbc   :  { %2440 = vperm.xlu1 %8843, %v2382_v30  }
 0xfc0   :  { %2445 = vperm.xlu1 %8843, %v2383_v38  }
 0xfc4   :  { %2450 = vperm.xlu1 %8843, %v2384_v35  }
 0xfc8   :  { %2460 = vperm.xlu1 %8843, %v2386_v21  }
 0xfcc   :  { %2906 = vrot.lane.b32.xlu1 %v2904_v51, %s9445_s18 }
0x1013   :  { %v10742_v17 = vpop.permute.xlu0 %2420  ;;  %v2391_v13 = vpop.permute.xlu1 %2390 }
0x1014   :  { %v2468_v5 = vmul.f32 %v10409_v59, %v2391_v13  ;;  %v2474_v1 = vmul.f32 %v10456_v15, %v10742_v17  ;;  %v2747_v30 = vrot.slane %v10742_v17, %v9897_v7  ;;  %v2720_v38 = vrot.slane %v2391_v13, %v9897_v7 }
0x1016   :  { %v2484_v32 = vsel %vm54_vm0, %v2468_v5, 0.0  ;;  %v2511_v62 = vsel %vm54_vm0, %v2474_v1, 0.0 }
0x1017   :  { %v10744_v48 = vpop.permute.xlu0 %2455  ;;  %v2396_v52 = vpop.permute.xlu1 %2395 }
0x1018   :  { %v2469_v28 = vmul.f32 %v10403_v58, %v2396_v52  ;;  %v2481_v15 = vmul.f32 %v10509_v47, %v10744_v48  ;;  %v2724_v39 = vrot.slane %v2396_v52, %v9900_v9  ;;  %v2778_v47 = vrot.slane %v10744_v48, %v9900_v9 }
0x101a   :  { %v2485_v61 = vsel %vm601_vm2, %v2469_v28, 0.0  ;;  %v2725_v13 = vsel %vm674_vm3, %v2724_v39, %v2720_v38 }
0x101b   :  { %v10746_v10 = vpop.permute.xlu0 %2465  ;;  %v10748_v27 = vpop.permute.xlu1 %2400  ;;  %v2486_v58 = vadd.f32 %v2485_v61, %v2484_v32 }
0x101c   :  { %v2470_v26 = vmul.f32 %v10426_v12, %v10748_v27  ;;  %v2483_v35 = vmul.f32 %v10516_v24, %v10746_v10  ;;  %v2729_v24 = vrot.slane %v10748_v27, %v9897_v7 }
0x101d   :  { %v2487_v53 = vrot.slane %v2486_v58, 4 }
0x101e   :  { %v2548_v48 = vsel %vm601_vm2, %v2483_v35, 0.0 }
0x101f   :  { %v1766_v60 = vpop.permute.xlu0 %1765  ;;  %v10750_v45 = vpop.permute.xlu1 %2405 }
0x1020   :  { %1768 = vst.msk [vmem:[#allocation7 + $0x8] sm:$0xff] %vm54_vm0, %v1766_v60  ;;  %v2471_v0 = vmul.f32 %v10432_v37, %v10750_v45  ;;  %v2493_v37 = vsel %vm54_vm0, %v2470_v26, 0.0  ;;  %v2733_v51 = vrot.slane %v10750_v45, %v9900_v9  ;;  %v2539_v60 = vsel %vm601_vm2, %v2481_v15, 0.0 }
0x1021   :  { %v2787_v45 = vrot.slane %v10746_v10, %v9900_v9 }
0x1022   :  { %v2494_v63 = vsel %vm601_vm2, %v2471_v0, 0.0 }
0x1023   :  { %v10753_v3 = vpop.permute.xlu1 %2410  ;;  %v2495_v33 = vadd.f32 %v2494_v63, %v2493_v37  ;;  %v13272_v37 = vld [vmem:[#allocation16_spill] sm:$0xff] }
0x1024   :  { %v2472_v12 = vmul.f32 %v10420_v18, %v10753_v3  ;;  %v2488_v18 = vadd.f32 %v2487_v53, %v2486_v58  ;;  %v2738_v61 = vrot.slane %v10753_v3, %v9897_v7  ;;  %v2734_v58 = vsel %vm674_vm3, %v2733_v51, %v2729_v24 }
0x1025   :  { %v2496_v49 = vrot.slane %v2495_v33, 4 }
0x1026   :  { %v2502_v14 = vsel %vm54_vm0, %v2472_v12, 0.0  ;;  %v2489_v40 = vrot.slane %v2488_v18, 2 }
0x1027   :  { %v2416_v55 = vpop.permute.xlu1 %2415  ;;  %v2916_v19 = vld [vmem:[#allocation7 + $0x8] sm:$0xff]  ;;  %v2497_v36 = vadd.f32 %v2496_v49, %v2495_v33  ;;  %v2789_v49 = vsel %vm739_vm4, %v2734_v58, %v2725_v13 }
0x1028   :  { %3071 = vrot.lane.b32.xlu0 %v2916_v19, %s9445_s18  ;;  %v2473_v59 = vmul.f32 %v10449_v50, %v2416_v55  ;;  %v2742_v17 = vrot.slane %v2416_v55, %v9900_v9  ;;  %v13271_v19 = vld [vmem:[#allocation15_spill] sm:$0xff]  ;;  %v10811_v32 = vadd.f32 %v2489_v40, %v2488_v18 }
0x1029   :  { %v2498_v28 = vrot.slane %v2497_v36, 2 }
0x102a   :  { %v2503_v23 = vsel %vm601_vm2, %v2473_v59, 0.0 }
0x102b   :  { %v10765_v41 = vpop.permute.xlu1 %2425  ;;  %v2504_v4 = vadd.f32 %v2503_v23, %v2502_v14  ;;  %v2499_v59 = vadd.f32 %v2498_v28, %v2497_v36  ;;  %v13274_v28 = vld [vmem:[#allocation20_spill] sm:$0xff] }
0x102c   :  { %v2475_v34 = vmul.f32 %v10480_v42, %v10765_v41  ;;  %v2751_v55 = vrot.slane %v10765_v41, %v9900_v9 }
0x102d   :  { %v2505_v52 = vrot.slane %v2504_v4, 4 }
0x102e   :  { %v2512_v11 = vsel %vm601_vm2, %v2475_v34, 0.0  ;;  %v2743_v34 = vsel %vm674_vm3, %v2742_v17, %v2738_v61  ;;  %v2752_v23 = vsel %vm674_vm3, %v2751_v55, %v2747_v30 }
0x102f   :  { %v10773_v8 = vpop.permute.xlu1 %2430  ;;  %v2513_v16 = vadd.f32 %v2512_v11, %v2511_v62  ;;  %v2506_v27 = vadd.f32 %v2505_v52, %v2504_v4  ;;  %v2790_v15 = vsel %vm741_vm5, %v2743_v34, %v2789_v49  ;;  %v2491_v34 = vrot.slane %v10811_v32, 1 }
0x1030   :  { %v2476_v50 = vmul.f32 %v10441_v20, %v10773_v8  ;;  %v2756_v11 = vrot.slane %v10773_v8, %v9897_v7  ;;  %v2791_v38 = vsel %vm743_vm6, %v2752_v23, %v2790_v15 }
0x1031   :  { %v2514_v0 = vrot.slane %v2513_v16, 4  ;;  %v2507_v62 = vrot.slane %v2506_v27, 2 }
0x1032   :  { %v2520_v6 = vsel %vm54_vm0, %v2476_v50, 0.0 }
0x1033   :  { %v2436_v42 = vpop.permute.xlu1 %2435  ;;  %v2515_v12 = vadd.f32 %v2514_v0, %v2513_v16  ;;  %v2508_v51 = vadd.f32 %v2507_v62, %v2506_v27 }
0x1034   :  { %v2477_v29 = vmul.f32 %v10464_v57, %v2436_v42  ;;  %v2760_v10 = vrot.slane %v2436_v42, %v9900_v9  ;;  %v13273_v42 = vld [vmem:[#allocation14_spill] sm:$0xff] }
0x1035   :  { %v2516_v36 = vrot.slane %v2515_v12, 2 }
0x1036   :  { %v2521_v20 = vsel %vm601_vm2, %v2477_v29, 0.0  ;;  %v2761_v16 = vsel %vm674_vm3, %v2760_v10, %v2756_v11  ;;  %v9192_v11 = vld [vmem:[%s13196_s10 + $0x10] sm:$0xff] }
0x1037   :  { %v2522_v57 = vadd.f32 %v2521_v20, %v2520_v6  ;;  %v2441_v21 = vpop.permute.xlu1 %2440  ;;  %v2500_v6 = vrot.slane %v2499_v59, 1  ;;  %v2792_v52 = vsel %vm745_vm7, %v2761_v16, %v2791_v38  ;;  %v2517_v13 = vadd.f32 %v2516_v36, %v2515_v12  ;;  %v9194_v16 = vld [vmem:[%s13196_s10] sm:$0xff] }
0x1038   :  { %v2478_v26 = vmul.f32 %v13271_v19, %v2441_v21  ;;  %v2765_v18 = vrot.slane %v2441_v21, %v9897_v7 }
0x1039   :  { %v2523_v5 = vrot.slane %v2522_v57, 4  ;;  %v2518_v12 = vrot.slane %v2517_v13, 1 }
0x103a   :  { %v2529_v3 = vsel %vm54_vm0, %v2478_v26, 0.0 }
0x103b   :  { %v2446_v63 = vpop.permute.xlu1 %2445  ;;  %v2524_v1 = vadd.f32 %v2523_v5, %v2522_v57  ;;  %v2519_v62 = vadd.f32 %v2518_v12, %v2517_v13  ;;  %v9201_v13 = vld [vmem:[%s13193_s7 + $0x8] sm:$0xff] }
0x103c   :  { %v2479_v33 = vmul.f32 %v13272_v37, %v2446_v63  ;;  %v2769_v41 = vrot.slane %v2446_v63, %v9900_v9 }
0x103d   :  { %v2525_v20 = vrot.slane %v2524_v1, 2 }
0x103e   :  { %v2530_v53 = vsel %vm601_vm2, %v2479_v33, 0.0  ;;  %v2770_v30 = vsel %vm674_vm3, %v2769_v41, %v2765_v18  ;;  %v2509_v33 = vrot.slane %v2508_v51, 1 }
0x103f   :  { %v2531_v50 = vadd.f32 %v2530_v53, %v2529_v3  ;;  %v2451_v14 = vpop.permute.xlu1 %2450  ;;  %v2793_v5 = vsel %vm747_vm8, %v2770_v30, %v2792_v52  ;;  %v2526_v26 = vadd.f32 %v2525_v20, %v2524_v1  ;;  %v2501_v53 = vadd.f32 %v2500_v6, %v2499_v59  ;;  %v9193_v59 = vld [vmem:[%s13196_s10 + $0x8] sm:$0xff]  ;;  %v9198_v52 = vld [vmem:[%s13191_s5 + $0x20] sm:$0xff] }
0x1040   :  { %v2480_v4 = vmul.f32 %v13273_v42, %v2451_v14  ;;  %v2774_v29 = vrot.slane %v2451_v14, %v9897_v7  ;;  %v2492_v14 = vadd.f32 %v2491_v34, %v10811_v32 }
0x1041   :  { %v2532_v39 = vrot.slane %v2531_v50, 4  ;;  %v2527_v3 = vrot.slane %v2526_v26, 1 }
0x1042   :  { %v2538_v8 = vsel %vm54_vm0, %v2480_v4, 0.0  ;;  %v2779_v21 = vsel %vm674_vm3, %v2778_v47, %v2774_v29  ;;  %v2634_v29 = vsel %vm739_vm4, %v2501_v53, %v2492_v14 }
0x1043   :  { %v2533_v35 = vadd.f32 %v2532_v39, %v2531_v50  ;;  %v2540_v57 = vadd.f32 %v2539_v60, %v2538_v8  ;;  %v2461_v40 = vpop.permute.xlu1 %2460  ;;  %v2794_v61 = vsel %vm749_vm9, %v2779_v21, %v2793_v5  ;;  %v2510_v50 = vadd.f32 %v2509_v33, %v2508_v51  ;;  %v9195_v21 = vld [vmem:[%s13191_s5 + $0x38] sm:$0xff]  ;;  %v9197_v51 = vld [vmem:[%s13191_s5 + $0x28] sm:$0xff]  ;;  %v9204_v33 = vld [vmem:[%s13192_s6 + $0x1] ss:$0 sm:$0xff] }
0x1044   :  { %v2482_v17 = vmul.f32 %v13274_v28, %v2461_v40  ;;  %v2783_v0 = vrot.slane %v2461_v40, %v9897_v7  ;;  %v2528_v4 = vadd.f32 %v2527_v3, %v2526_v26  ;;  %v9196_v40 = vld [vmem:[%s13191_s5 + $0x30] sm:$0xff]  ;;  %v2915_v28 = vld [vmem:[#allocation6 + $0x8] sm:$0xff] }
0x1045   :  { %v2534_v24 = vrot.slane %v2533_v35, 2  ;;  %v2541_v19 = vrot.slane %v2540_v57, 4  ;;  %v2635_v39 = vsel %vm741_vm5, %v2510_v50, %v2634_v29  ;;  %v9206_v29 = vld [vmem:[%s13195_s9 + $0x18] sm:$0xff] }
0x1046   :  { %v2547_v60 = vsel %vm54_vm0, %v2482_v17, 0.0  ;;  %v2788_v47 = vsel %vm674_vm3, %v2787_v45, %v2783_v0  ;;  %v9191_v45 = vld [vmem:[%s13196_s10 + $0x18] sm:$0xff]  ;;  %v2636_v20 = vsel %vm743_vm6, %v2519_v62, %v2635_v39  ;;  %v9200_v0 = vld [vmem:[%s13193_s7 + $0x10] sm:$0xff]  ;;  %v9211_v39 = vld [vmem:[%s13191_s5] sm:$0xff] }
0x1047   :  { %v2535_v55 = vadd.f32 %v2534_v24, %v2533_v35  ;;  %v2542_v63 = vadd.f32 %v2541_v19, %v2540_v57  ;;  %v2549_v58 = vadd.f32 %v2548_v48, %v2547_v60  ;;  %v2795_v27 = vsel %vm751_vm10, %v2788_v47, %v2794_v61  ;;  %v2907_v37 = vpop.permute.xlu1 %2906  ;;  %v9199_v17 = vld [vmem:[%s13193_s7 + $0x18] sm:$0xff]  ;;  %v9202_v24 = vld [vmem:[%s13193_s7] sm:$0xff]  ;;  %v13276_v61 = vld [vmem:[#allocation17_spill] sm:$0xff] }
0x1048   :  { %2798 = vst.msk [vmem:[#allocation4 + $0x8] sm:$0xff] %vm754_vm11, %v2795_v27  ;;  %8597 = vmatmul.mubr.msk.f32.vlgmr.msra.gmra.mxu0 %vm54_vm0, %v2907_v37  ;;  %v13275_v48 = vmov 0.0   ;;  %v2637_v30 = vsel %vm745_vm7, %v2528_v4, %v2636_v20  ;;  %v9205_v4 = vld [vmem:[%s13191_s5 + $0x18] sm:$0xff] }
0x1049   :  { %2909 = vst.msk [vmem:[#allocation6] sm:$0xff] %vm54_vm0, %v2907_v37  ;;  %v2543_v10 = vrot.slane %v2542_v63, 2  ;;  %v2550_v1 = vrot.slane %v2549_v58, 4  ;;  %8611 = vmatpush3.msra.mxu0 %v9191_v45  ;;  %8618 = vmatprep.mubr.msk.f32.mxu0 %vm9443_vm1, %v13275_v48  ;;  %v2536_v41 = vrot.slane %v2535_v55, 1  ;;  %v9212_v20 = vld [vmem:[%s13190_s4 + $0x38] sm:$0xff] }
0x104a   :  { %8612 = vmatprep.subr.mxu0 %v13275_v48 }
0x104b   :  { %v2544_v49 = vadd.f32 %v2543_v10, %v2542_v63  ;;  %v2551_v23 = vadd.f32 %v2550_v1, %v2549_v58  ;;  %8613 = vmatpush3.msra.mxu0 %v9192_v11  ;;  %v2537_v15 = vadd.f32 %v2536_v41, %v2535_v55  ;;  %v9203_v55 = vld [vmem:[%s13197_s11] ss:$0 sm:$0xff] }
0x104c   :  { %8614 = vmatprep.subr.mxu0 %v13275_v48 }
0x104d   :  { %v2545_v18 = vrot.slane %v2544_v49, 1  ;;  %v2552_v42 = vrot.slane %v2551_v23, 2  ;;  %8615 = vmatpush3.msra.mxu0 %v9193_v59  ;;  %v2638_v38 = vsel %vm747_vm8, %v2537_v15, %v2637_v30  ;;  %v9207_v15 = vld [vmem:[%s13191_s5 + $0x10] sm:$0xff]  ;;  %v9213_v30 = vld [vmem:[%s13195_s9] sm:$0xff] }
0x104e   :  { %8616 = vmatprep.subr.mxu0 %v13275_v48 }
0x104f   :  { %v2553_v36 = vadd.f32 %v2552_v42, %v2551_v23  ;;  %8617 = vmatpush3.msra.mxu0 %v9194_v16  ;;  %v2546_v32 = vadd.f32 %v2545_v18, %v2544_v49  ;;  %v9209_v16 = vld [vmem:[%s13191_s5 + $0x8] sm:$0xff] }
0x1050   :  { %8632 = vmatprep.subr.mxu0 %v13275_v48 }
0x1051   :  { %v2554_v6 = vrot.slane %v2553_v36, 1  ;;  %v2639_v35 = vsel %vm749_vm9, %v2546_v32, %v2638_v38  ;;  %v9210_v32 = vld [vmem:[%s13195_s9 + $0x8] sm:$0xff] }
0x1052   :  { %v9215_v38 = vld [vmem:[%s13190_s4 + $0x28] sm:$0xff] }
0x1053   :  { %v2555_v8 = vadd.f32 %v2554_v6, %v2553_v36  ;;  %v9208_v36 = vld [vmem:[%s13195_s9 + $0x10] sm:$0xff]  ;;  %v4131_v6 = vld [vmem:[#allocation6] sm:$0xff] }
0x1055   :  { %v2640_v57 = vsel %vm751_vm10, %v2555_v8, %v2639_v35  ;;  %v9214_v8 = vld [vmem:[%s13190_s4 + $0x30] sm:$0xff]  ;;  %v9216_v35 = vld [vmem:[%s13190_s4 + $0x20] sm:$0xff] }
0x1056   :  { %8564 = vmatmul.mubr.msk.f32.vlgmr.msra.gmra.mxu1 %vm54_vm0, %v2640_v57 }
0x1057   :  { %8578 = vmatpush3.msra.mxu1 %v9195_v21  ;;  %8585 = vmatprep.mubr.msk.f32.mxu1 %vm9443_vm1, %v13275_v48 }
0x1058   :  { %8579 = vmatprep.subr.mxu1 %v13275_v48 }
0x1059   :  { %8580 = vmatpush3.msra.mxu1 %v9196_v40  ;;  %v9217_v40 = vld [vmem:[%s13194_s8] ss:$0 sm:$0xff] }
0x105a   :  { %8581 = vmatprep.subr.mxu1 %v13275_v48 }
0x105b   :  { %8582 = vmatpush3.msra.mxu1 %v9197_v51 }
0x105c   :  { %8583 = vmatprep.subr.mxu1 %v13275_v48 }
0x105d   :  { %8584 = vmatpush3.msra.mxu1 %v9198_v52 }
0x105e   :  { %8586 = vmatmul.mubr.msk.f32.vlgmr.msra.gmra.mxu1 %vm54_vm0, %v2915_v28  ;;  %8599 = vmatprep.subr.mxu1 %v13275_v48 }
0x105f   :  { %8600 = vmatpush3.msra.mxu1 %v9199_v17  ;;  %8607 = vmatprep.mubr.msk.f32.mxu1 %vm9443_vm1, %v13275_v48 }
0x1060   :  { %8601 = vmatprep.subr.mxu1 %v13275_v48 }
0x1061   :  { %8602 = vmatpush3.msra.mxu1 %v9200_v0  ;;  %v13278_v0 = vld [vmem:[#allocation12_spill] sm:$0xff] }
0x1062   :  { %8603 = vmatprep.subr.mxu1 %v13275_v48 }
0x1063   :  { %8604 = vmatpush3.msra.mxu1 %v9201_v13 }
0x1064   :  { %8605 = vmatprep.subr.mxu1 %v13275_v48 }
0x1065   :  { %8606 = vmatpush3.msra.mxu1 %v9202_v24 }
0x1066   :  { %8621 = vmatprep.subr.mxu1 %v13275_v48 }
0x109a   :  { %v3072_v23 = vpop.permute.xlu0 %3071 }
0x1108   :  { %v3058_v5 = vpop.f32.mrf.mxu0 }
0x110a   :  { %v8598_v19 = vpop.f32.mrf.mxu0 }
0x1116   :  { %v2709_v26 = vpop.f32.mrf.mxu1 }
0x1117   :  { %v2710_v60 = vadd.f32 %v2709_v26, %v13276_v61 }
0x1118   :  { %v8565_v47 = vpop.f32.mrf.mxu1 }
0x1119   :  { %v2713_v63 = vadd.f32 %v9203_v55, %v2710_v60 }
0x111b   :  { %8955 = vtanh.f32 %v2713_v63 }
0x111e   :  { %v2986_v58 = vpop.f32.mrf.mxu1 }
0x111f   :  { %v3059_v27 = vadd.f32 %v3058_v5, %v2986_v58 }
0x1120   :  { %v8587_v37 = vpop.f32.mrf.mxu1 }
0x1121   :  { %v3062_v34 = vadd.f32 %v9204_v33, %v3059_v27  ;;  %v11000_v37 = vld [vmem:[%s13189_s3 + $0x8] sm:$0x3] }
0x1123   :  { %8957 = vtanh.f32 %v3062_v34  ;;  %v8223_v1 = vmul.f32 -1.442695, %v3062_v34  ;;  %v11006_v34 = vld [vmem:[%s13189_s3] sm:$0xff] }
0x1125   :  { %8959 = vpow2.f32 %v8223_v1 }
0x1128   :  { %v8956_v12 = vpop.eup %8955 }
0x1129   :  { %2716 = vst.msk [vmem:[#allocation2 + $0x8] sm:$0xff] %vm54_vm0, %v8956_v12 }
0x1130   :  { %v8958_v10 = vpop.eup %8957 }
0x1131   :  { %3076 = vrot.lane.b32.xlu1 %v8958_v10, %s9444_s17 }
0x1132   :  { %v8960_v45 = vpop.eup %8959 }
0x1133   :  { %v3066_v3 = vadd.f32 1.0, %v8960_v45 }
0x1135   :  { %8961 = vrcp.f32 %v3066_v3 }
0x1142   :  { %v8962_v53 = vpop.eup %8961 }
0x1143   :  { %v3074_v11 = vmul.f32 %v8962_v53, %v3072_v23  ;;  %v11021_v23 = vld [vmem:[%s13189_s3 + $0x10] sm:$0xff] }
0x11a3   :  { %v3077_v41 = vpop.permute.xlu1 %3076 }
0x11a4   :  { %v3079_v49 = vmul.f32 %v8962_v53, %v3077_v41  ;;  %v11015_v41 = vld [vmem:[%s13189_s3 + $0x20] sm:$0xff] }
0x11a6   :  { %3081 = vrot.lane.b32.xlu1 %v3079_v49, %s9445_s18 }
0x1218   :  { %v3082_v50 = vpop.permute.xlu1 %3081 }
0x1219   :  { %v10919_v14 = vadd.f32 %v3082_v50, %v3074_v11  ;;  %v11027_v50 = vld [vmem:[%s13189_s3 + $0x18] sm:$0x3] }
0x121b   :  { %8963 = vtanh.f32 %v10919_v14 }
0x1228   :  { %v8964_v62 = vpop.eup %8963 }
0x1229   :  { %3087 = vrot.lane.b32.xlu0 %v8964_v62, %s9444_s17 }
0x129b   :  { %v3088_v18 = vpop.permute.xlu0 %3087 }
0x129c   :  { %v3090_v42 = vmul.f32 %v8962_v53, %v3088_v18 }
0x129e   :  { %3092 = vrot.lane.b32.xlu1 %v3090_v42, %s9445_s18 }
0x1310   :  { %v3093_v59 = vpop.permute.xlu1 %3092 }
0x1311   :  { %3095 = vst.msk [vmem:[#allocation6 + $0x8] sm:$0xff] %vm54_vm0, %v3093_v59  ;;  %8608 = vmatmul.mubr.msk.f32.vlgmr.msra.gmra.mxu1 %vm54_vm0, %v3093_v59  ;;  %8619 = vmatmul.mubr.msk.f32.vlgmr.msra.gmra.mxu0 %vm54_vm0, %v3093_v59 }
0x1312   :  { %8633 = vmatpush3.msra.mxu0 %v9205_v4  ;;  %8640 = vmatprep.mubr.msk.f32.mxu0 %vm9443_vm1, %v13275_v48  ;;  %v11036_v4 = vld [vmem:[%s13189_s3 + $0x40] sm:$0xff] }
0x1313   :  { %8634 = vmatprep.subr.mxu0 %v13275_v48  ;;  %8622 = vmatpush3.msra.mxu1 %v9206_v29 }
0x1314   :  { %8635 = vmatpush3.msra.mxu0 %v9207_v15  ;;  %8623 = vmatprep.subr.mxu1 %v13275_v48 }
0x1315   :  { %8636 = vmatprep.subr.mxu0 %v13275_v48  ;;  %8624 = vmatpush3.msra.mxu1 %v9208_v36 }
0x1316   :  { %8637 = vmatpush3.msra.mxu0 %v9209_v16  ;;  %8625 = vmatprep.subr.mxu1 %v13275_v48  ;;  %v11044_v16 = vld [vmem:[%s13189_s3 + $0x28] sm:$0x3] }
0x1317   :  { %8638 = vmatprep.subr.mxu0 %v13275_v48  ;;  %8626 = vmatpush3.msra.mxu1 %v9210_v32 }
0x1318   :  { %8639 = vmatpush3.msra.mxu0 %v9211_v39  ;;  %8627 = vmatprep.subr.mxu1 %v13275_v48 }
0x1319   :  { %8641 = vmatmul.mubr.msk.f32.vlgmr.msra.gmra.mxu0 %vm54_vm0, %v4131_v6  ;;  %8654 = vmatprep.subr.mxu0 %v13275_v48  ;;  %v11051_v6 = vld [vmem:[%s13189_s3 + $0x30] sm:$0xff] }
0x131a   :  { %8655 = vmatpush3.msra.mxu0 %v9212_v20  ;;  %8662 = vmatprep.mubr.msk.f32.mxu0 %vm9443_vm1, %v13275_v48 }
0x131b   :  { %8656 = vmatprep.subr.mxu0 %v13275_v48  ;;  %8628 = vmatpush3.msra.mxu1 %v9213_v30 }
0x131c   :  { %8657 = vmatpush3.msra.mxu0 %v9214_v8  ;;  %8629 = vmatprep.mubr.msk.f32.mxu1 %vm9443_vm1, %v13275_v48 }
0x131d   :  { %8658 = vmatprep.subr.mxu0 %v13275_v48  ;;  %8643 = vmatprep.subr.mxu1 %v13275_v48 }
0x131e   :  { %8659 = vmatpush3.msra.mxu0 %v9215_v38 }
0x131f   :  { %8660 = vmatprep.subr.mxu0 %v13275_v48 }
0x1320   :  { %8661 = vmatpush3.msra.mxu0 %v9216_v35  ;;  %v11059_v35 = vld [vmem:[%s13189_s3 + $0x48] sm:$0x3] }
0x1321   :  { %8676 = vmatprep.subr.mxu0 %v13275_v48 }
0x13d1   :  { %v3169_v57 = vpop.f32.mrf.mxu1  ;;  %v10982_v21 = vpop.f32.mrf.mxu0 }
0x13d2   :  { %13277 = vst [vmem:[#allocation19_spill] sm:$0xff] %v10982_v21  ;;  %v3170_v51 = vadd.f32 %v9217_v40, %v3169_v57 }
0x13d3   :  { %v8609_v52 = vpop.f32.mrf.mxu1  ;;  %v8620_v28 = vpop.f32.mrf.mxu0 }
0x13d4   :  { %v3174_v17 = vcombine.high %v3170_v51, %v3170_v51  ;;  %v3181_v13 = vrot.slane %v3170_v51, %v13278_v0  ;;  %v11066_v51 = vld [vmem:[%s13189_s3 + $0x50] sm:$0xff] }
0x13d5   :  { %13279 = vst [vmem:[#allocation18_spill] sm:$0xff] %v11066_v51 }
0x13d6   :  { %v3188_v24 = vrot.slane %v3174_v17, %v13278_v0  ;;  %v3189_v5 = vcombine.high %v3181_v13, %v3181_v13  ;;  %v3197_v19 = vrot.slane %v3181_v13, %v13278_v0 }
0x13d8   :  { %v3204_v26 = vrot.slane %v3188_v24, %v13278_v0  ;;  %v3211_v61 = vrot.slane %v3189_v5, %v13278_v0  ;;  %v3219_v60 = vcombine.high %v3197_v19, %v3197_v19  ;;  %v3226_v55 = vrot.slane %v3197_v19, %v9744_v22  ;;  %v11075_v5 = vld [vmem:[%s13189_s3 + $0x38] sm:$0x3] }
0x13d9   :  { %v10992_v47 = vpop.f32.mrf.mxu0  ;;  %v3190_v10 = vcombine.high %v3188_v24, %v3188_v24 }
0x13da   :  { %v3234_v63 = vrot.slane %v3219_v60, %v9744_v22  ;;  %v3230_v58 = vrot.slane %v3211_v61, %v9744_v22  ;;  %v3264_v33 = vmul.f32 %v11000_v37, %v3226_v55  ;;  %v3263_v12 = vmul.f32 %v11006_v34, %v3226_v55 }
0x13db   :  { %v8642_v27 = vpop.f32.mrf.mxu0  ;;  %v3242_v1 = vrot.slane %v3204_v26, %v9744_v22  ;;  %v3221_v45 = vcombine.high %v3211_v61, %v3211_v61  ;;  %v3218_v18 = vrot.slane %v3190_v10, %v13278_v0  ;;  %v3220_v8 = vcombine.high %v3204_v26, %v3204_v26  ;;  %v11081_v26 = vld [vmem:[%s13189_s3 + $0x60] sm:$0xff] }
0x13dc   :  { %v3282_v3 = vsel %vm601_vm2, %v3264_v33, 0.0  ;;  %v3279_v53 = vsel %vm54_vm0, %v3263_v12, 0.0  ;;  %v3267_v49 = vmul.f32 %v11015_v41, %v3234_v63  ;;  %v3265_v11 = vmul.f32 %v11021_v23, %v3230_v58  ;;  %13280 = vst [vmem:[#allocation21_spill] sm:$0xff] %v11081_v26  ;;  %v11096_v33 = vld [vmem:[%s13189_s3 + $0x70] sm:$0xff] }
0x13dd   :  { %3283 = vadd.xlane.f32.xlu1 %v3282_v3  ;;  %3280 = vadd.xlane.f32.xlu0 %v3279_v53  ;;  %v3266_v62 = vmul.f32 %v11027_v50, %v3230_v58  ;;  %v3271_v29 = vmul.f32 %v11036_v4, %v3242_v1  ;;  %v3238_v15 = vrot.slane %v3221_v45, %v9744_v22  ;;  %v11090_v58 = vld [vmem:[%s13189_s3 + $0x58] sm:$0x3]  ;;  %v11104_v45 = vld [vmem:[%s13189_s3 + $0x68] sm:$0x3] }
0x13de   :  { %v3291_v42 = vsel %vm54_vm0, %v3267_v49, 0.0  ;;  %v3285_v59 = vsel %vm54_vm0, %v3265_v11, 0.0  ;;  %v3268_v32 = vmul.f32 %v11044_v16, %v3234_v63  ;;  %v3246_v30 = vrot.slane %v3218_v18, %v9744_v22  ;;  %13281 = vst [vmem:[#allocation22_spill] sm:$0xff] %v11090_v58  ;;  %13282 = vst [vmem:[#allocation13_spill] sm:$0xff] %v11096_v33  ;;  %v11111_v49 = vld [vmem:[%s13189_s3 + $0x78] sm:$0x3] }
0x13df   :  { %v3288_v36 = vsel %vm601_vm2, %v3266_v62, 0.0  ;;  %v3303_v39 = vsel %vm54_vm0, %v3271_v29, 0.0  ;;  %v3269_v20 = vmul.f32 %v11051_v6, %v3238_v15  ;;  %v3272_v57 = vmul.f32 %v11059_v35, %v3242_v1 }
0x13e0   :  { %v3294_v38 = vsel %vm601_vm2, %v3268_v32, 0.0  ;;  %v3273_v52 = vmul.f32 %v11066_v51, %v3246_v30  ;;  %v3250_v28 = vrot.slane %v3220_v8, %v9744_v22  ;;  %v3222_v17 = vcombine.high %v3218_v18, %v3218_v18  ;;  %v8227_v18 = vld [vmem:[%s13186_s0 + $0x18] sm:$0xff] }
0x13e1   :  { %3292 = vadd.xlane.f32.xlu1 %v3291_v42  ;;  %3286 = vadd.xlane.f32.xlu0 %v3285_v59  ;;  %v3297_v40 = vsel %vm54_vm0, %v3269_v20, 0.0  ;;  %v3306_v13 = vsel %vm601_vm2, %v3272_v57, 0.0  ;;  %v3270_v19 = vmul.f32 %v11075_v5, %v3238_v15  ;;  %v3274_v27 = vmul.f32 %v11090_v58, %v3246_v30 }
0x13e2   :  { %v3309_v24 = vsel %vm54_vm0, %v3273_v52, 0.0  ;;  %v3275_v61 = vmul.f32 %v11081_v26, %v3250_v28  ;;  %v3254_v60 = vrot.slane %v3222_v17, %v9744_v22  ;;  %v3276_v3 = vmul.f32 %v11104_v45, %v3250_v28 }
0x13e3   :  { %v3300_v55 = vsel %vm601_vm2, %v3270_v19, 0.0  ;;  %v3312_v10 = vsel %vm601_vm2, %v3274_v27, 0.0  ;;  %v11119_v42 = vadd.f32 %v8227_v18, %v10992_v47 }
0x13e4   :  { %v3315_v63 = vsel %vm54_vm0, %v3275_v61, 0.0  ;;  %v3277_v12 = vmul.f32 %v11096_v33, %v3254_v60  ;;  %v3318_v53 = vsel %vm601_vm2, %v3276_v3, 0.0  ;;  %v3278_v11 = vmul.f32 %v11111_v49, %v3254_v60 }
0x13e5   :  { %3289 = vadd.xlane.f32.xlu0 %v3288_v36  ;;  %3304 = vadd.xlane.f32.xlu1 %v3303_v39  ;;  %8965 = vtanh.f32 %v11119_v42 }
0x13e6   :  { %v3321_v1 = vsel %vm54_vm0, %v3277_v12, 0.0  ;;  %v3324_v62 = vsel %vm601_vm2, %v3278_v11, 0.0 }
0x13e9   :  { %3295 = vadd.xlane.f32.xlu0 %v3294_v38  ;;  %3298 = vadd.xlane.f32.xlu1 %v3297_v40 }
0x13ed   :  { %3307 = vadd.xlane.f32.xlu0 %v3306_v13  ;;  %3310 = vadd.xlane.f32.xlu1 %v3309_v24 }
0x13f1   :  { %3301 = vadd.xlane.f32.xlu0 %v3300_v55  ;;  %3316 = vadd.xlane.f32.xlu1 %v3315_v63 }
0x13f2   :  { %v8966_v59 = vpop.eup %8965 }
0x13f5   :  { %3313 = vadd.xlane.f32.xlu0 %v3312_v10  ;;  %3322 = vadd.xlane.f32.xlu1 %v3321_v1 }
0x13f9   :  { %3319 = vadd.xlane.f32.xlu0 %v3318_v53 }
0x13fd   :  { %3325 = vadd.xlane.f32.xlu0 %v3324_v62 }
0x1413   :  { %2911 = vrot.lane.b32.xlu0 %v10709_v44, %s9447_s16 }
0x1417   :  { %4222 = vrot.lane.b32.xlu0 %v8966_v59, %s9444_s17 }
0x1466   :  { %v11125_v29 = vpop.xlane.xlu1 %3283  ;;  %v3281_v15 = vpop.xlane.xlu0 %3280 }
0x1467   :  { %v3350_v52 = vrot.slane %v11125_v29, %v9900_v9  ;;  %v3346_v28 = vrot.slane %v3281_v15, %v9897_v7 }
0x1469   :  { %v3351_v27 = vsel %vm674_vm3, %v3350_v52, %v3346_v28 }
0x146a   :  { %v11127_v36 = vpop.xlane.xlu1 %3292  ;;  %v3287_v32 = vpop.xlane.xlu0 %3286 }
0x146b   :  { %v3355_v17 = vrot.slane %v3287_v32, %v9897_v7  ;;  %v3364_v24 = vrot.slane %v11127_v36, %v9897_v7 }
0x146e   :  { %v11129_v39 = vpop.xlane.xlu0 %3289  ;;  %v11131_v20 = vpop.xlane.xlu1 %3304 }
0x146f   :  { %v3359_v57 = vrot.slane %v11129_v39, %v9900_v9  ;;  %v3382_v59 = vrot.slane %v11131_v20, %v9897_v7 }
0x1471   :  { %v3360_v60 = vsel %vm674_vm3, %v3359_v57, %v3355_v17 }
0x1472   :  { %v11133_v47 = vpop.xlane.xlu0 %3295  ;;  %v11135_v30 = vpop.xlane.xlu1 %3298  ;;  %v3415_v1 = vsel %vm739_vm4, %v3360_v60, %v3351_v27 }
0x1473   :  { %v3368_v40 = vrot.slane %v11133_v47, %v9900_v9  ;;  %v3373_v55 = vrot.slane %v11135_v30, %v9897_v7 }
0x1475   :  { %v3369_v63 = vsel %vm674_vm3, %v3368_v40, %v3364_v24 }
0x1476   :  { %v11137_v8 = vpop.xlane.xlu0 %3307  ;;  %v11139_v44 = vpop.xlane.xlu1 %3310  ;;  %v3416_v11 = vsel %vm741_vm5, %v3369_v63, %v3415_v1 }
0x1477   :  { %v3386_v3 = vrot.slane %v11137_v8, %v9900_v9  ;;  %v3391_v62 = vrot.slane %v11139_v44, %v9897_v7 }
0x1479   :  { %v3387_v17 = vsel %vm674_vm3, %v3386_v3, %v3382_v59 }
0x147a   :  { %v11141_v38 = vpop.xlane.xlu0 %3301  ;;  %v11155_v19 = vpop.xlane.xlu1 %3316 }
0x147b   :  { %v3377_v13 = vrot.slane %v11141_v38, %v9900_v9  ;;  %v3400_v40 = vrot.slane %v11155_v19, %v9897_v7 }
0x147d   :  { %v3378_v12 = vsel %vm674_vm3, %v3377_v13, %v3373_v55 }
0x147e   :  { %v11157_v61 = vpop.xlane.xlu0 %3313  ;;  %v3417_v57 = vsel %vm743_vm6, %v3378_v12, %v3416_v11  ;;  %v11182_v52 = vpop.xlane.xlu1 %3322 }
0x147f   :  { %v3395_v10 = vrot.slane %v11157_v61, %v9900_v9  ;;  %v3409_v60 = vrot.slane %v11182_v52, %v9897_v7  ;;  %v3418_v63 = vsel %vm745_vm7, %v3387_v17, %v3417_v57 }
0x1481   :  { %v3396_v28 = vsel %vm674_vm3, %v3395_v10, %v3391_v62 }
0x1482   :  { %v11170_v53 = vpop.xlane.xlu0 %3319  ;;  %v3419_v27 = vsel %vm747_vm8, %v3396_v28, %v3418_v63 }
0x1483   :  { %v3404_v18 = vrot.slane %v11170_v53, %v9900_v9 }
0x1485   :  { %v3405_v24 = vsel %vm674_vm3, %v3404_v18, %v3400_v40 }
0x1486   :  { %v11186_v13 = vpop.xlane.xlu0 %3325  ;;  %v3420_v10 = vsel %vm749_vm9, %v3405_v24, %v3419_v27 }
0x1487   :  { %v3413_v55 = vrot.slane %v11186_v13, %v9900_v9 }
0x1489   :  { %v3414_v12 = vsel %vm674_vm3, %v3413_v55, %v3409_v60 }
0x148a   :  { %v2912_v1 = vpop.permute.xlu0 %2911  ;;  %v3421_v3 = vsel %vm751_vm10, %v3414_v12, %v3420_v10 }
0x148b   :  { %2914 = vst.msk [vmem:[#allocation7] sm:$0xff] %vm54_vm0, %v2912_v1  ;;  %v3423_v11 = vsel %vm754_vm11, %v3421_v3, -inf }
0x148c   :  { %3424 = vmax.xlane.f32.xlu1 %v3423_v11 }
0x1515   :  { %v3425_v62 = vpop.xlane.xlu1 %3424 }
0x1516   :  { %v3430_v18 = vrot.slane %v3425_v62, %v9744_v22  ;;  %v3434_v59 = vrot.slane %v3425_v62, %v9969_v46  ;;  %v3438_v57 = vrot.slane %v3425_v62, %v9972_v54  ;;  %v3442_v24 = vrot.slane %v3425_v62, %v9977_v2 }
0x1517   :  { %v3446_v10 = vrot.slane %v3425_v62, %v9984_v25 }
0x1518   :  { %v3467_v40 = vsub.f32 %v3281_v15, %v3430_v18  ;;  %v3469_v28 = vsub.f32 %v3287_v32, %v3434_v59  ;;  %v3468_v17 = vsub.f32 %v11125_v29, %v3430_v18  ;;  %v3471_v60 = vsub.f32 %v11127_v36, %v3438_v57 }
0x1519   :  { %v3470_v27 = vsub.f32 %v11129_v39, %v3434_v59  ;;  %v3473_v1 = vsub.f32 %v11135_v30, %v3442_v24  ;;  %v8229_v15 = vmul.f32 -1.442695, %v11119_v42  ;;  %v3472_v29 = vsub.f32 %v11133_v47, %v3438_v57 }
0x151a   :  { %v3483_v55 = vmul.f32 1.442695, %v3467_v40  ;;  %v3487_v63 = vmul.f32 1.442695, %v3469_v28  ;;  %v3485_v12 = vmul.f32 1.442695, %v3468_v17  ;;  %v3450_v36 = vrot.slane %v3425_v62, %v9990_v43 }
0x151b   :  { %v3491_v3 = vmul.f32 1.442695, %v3471_v60  ;;  %v3489_v32 = vmul.f32 1.442695, %v3470_v27  ;;  %v3475_v11 = vsub.f32 %v11131_v20, %v3446_v10  ;;  %v3495_v39 = vmul.f32 1.442695, %v3473_v1 }
0x151c   :  { %8967 = vpow2.f32 %v3483_v55  ;;  %v3474_v18 = vsub.f32 %v11141_v38, %v3442_v24  ;;  %v3493_v59 = vmul.f32 1.442695, %v3472_v29  ;;  %v3454_v30 = vrot.slane %v3425_v62, %v9996_v56 }
0x151d   :  { %8969 = vpow2.f32 %v3487_v63  ;;  %v3477_v40 = vsub.f32 %v11139_v44, %v3450_v36  ;;  %v3499_v42 = vmul.f32 1.442695, %v3475_v11  ;;  %v3476_v47 = vsub.f32 %v11137_v8, %v3446_v10 }
0x151e   :  { %8971 = vpow2.f32 %v3485_v12  ;;  %v3497_v57 = vmul.f32 1.442695, %v3474_v18  ;;  %v3458_v20 = vrot.slane %v3425_v62, %v10002_v31  ;;  %v3480_v17 = vsub.f32 %v11170_v53, %v3454_v30 }
0x151f   :  { %8973 = vpow2.f32 %v3491_v3  ;;  %v3503_v38 = vmul.f32 1.442695, %v3477_v40  ;;  %v3478_v44 = vsub.f32 %v11157_v61, %v3450_v36  ;;  %v3501_v60 = vmul.f32 1.442695, %v3476_v47 }
0x1520   :  { %8975 = vpow2.f32 %v8229_v15  ;;  %v3482_v55 = vsub.f32 %v11186_v13, %v3458_v20  ;;  %v3509_v62 = vmul.f32 1.442695, %v3480_v17  ;;  %v3479_v27 = vsub.f32 %v11155_v19, %v3454_v30  ;;  %v4223_v30 = vpop.permute.xlu0 %4222 }
0x1521   :  { %8977 = vpow2.f32 %v3489_v32  ;;  %v3505_v12 = vmul.f32 1.442695, %v3478_v44  ;;  %v3481_v3 = vsub.f32 %v11182_v52, %v3458_v20  ;;  %v4132_v20 = vld [vmem:[#allocation7] sm:$0xff] }
0x1522   :  { %8979 = vpow2.f32 %v3495_v39  ;;  %v3513_v10 = vmul.f32 1.442695, %v3482_v55  ;;  %v3507_v15 = vmul.f32 1.442695, %v3479_v27 }
0x1523   :  { %8981 = vpow2.f32 %v3493_v59  ;;  %v3511_v32 = vmul.f32 1.442695, %v3481_v3 }
0x1524   :  { %8983 = vpow2.f32 %v3499_v42 }
0x1525   :  { %8985 = vpow2.f32 %v3497_v57 }
0x1526   :  { %8987 = vpow2.f32 %v3503_v38 }
0x1527   :  { %8989 = vpow2.f32 %v3501_v60 }
0x1528   :  { %8991 = vpow2.f32 %v3509_v62 }
0x1529   :  { %v11217_v28 = vpop.eup %8967  ;;  %8993 = vpow2.f32 %v3505_v12 }
0x152a   :  { %3532 = vperm.xlu1 %8843, %v11217_v28   ;;  %v11222_v24 = vpop.eup %8969  ;;  %8995 = vpow2.f32 %v3513_v10 }
0x152b   :  { %3538 = vperm.xlu0 %8844, %v11222_v24   ;;  %v11226_v8 = vpop.eup %8971 }
0x152c   :  { %v11230_v53 = vpop.eup %8973 }
0x152d   :  { %v8976_v63 = vpop.eup %8975 }
0x152e   :  { %3535 = vperm.xlu1 %8843, %v11226_v8   ;;  %v11234_v61 = vpop.eup %8977  ;;  %v4212_v1 = vadd.f32 1.0, %v8976_v63 }
0x152f   :  { %3544 = vperm.xlu0 %8844, %v11230_v53   ;;  %v11237_v13 = vpop.eup %8979 }
0x1530   :  { %v11241_v19 = vpop.eup %8981  ;;  %8997 = vrcp.f32 %v4212_v1 }
0x1531   :  { %v11244_v29 = vpop.eup %8983  ;;  %8999 = vpow2.f32 %v3507_v15 }
0x1532   :  { %3541 = vperm.xlu1 %8843, %v11234_v61   ;;  %v11247_v36 = vpop.eup %8985  ;;  %9001 = vpow2.f32 %v3511_v32 }
0x1533   :  { %3550 = vperm.xlu0 %8844, %v11237_v13   ;;  %v11250_v52 = vpop.eup %8987 }
0x1534   :  { %v11253_v11 = vpop.eup %8989 }
0x1535   :  { %v11256_v39 = vpop.eup %8991 }
0x1536   :  { %3547 = vperm.xlu1 %8843, %v11241_v19   ;;  %v11259_v18 = vpop.eup %8993 }
0x1537   :  { %3556 = vperm.xlu0 %8844, %v11244_v29   ;;  %v11262_v59 = vpop.eup %8995 }
0x153a   :  { %3553 = vperm.xlu1 %8843, %v11247_v36  }
0x153b   :  { %3562 = vperm.xlu0 %8844, %v11250_v52  }
0x153d   :  { %v11264_v40 = vpop.eup %8997 }
0x153e   :  { %3559 = vperm.xlu1 %8843, %v11253_v11   ;;  %v11267_v42 = vpop.eup %8999  ;;  %v4225_v47 = vmul.f32 %v11264_v40, %v4223_v30 }
0x153f   :  { %3571 = vperm.xlu0 %8844, %v11256_v39   ;;  %v11272_v57 = vpop.eup %9001 }
0x1542   :  { %3565 = vperm.xlu1 %8843, %v11259_v18  }
0x1543   :  { %3577 = vperm.xlu0 %8844, %v11262_v59  }
0x1546   :  { %3568 = vperm.xlu1 %8843, %v11267_v42  }
0x1547   :  { %4227 = vrot.lane.b32.xlu0 %v4225_v47, %s9445_s18 }
0x154a   :  { %3574 = vperm.xlu1 %8843, %v11272_v57  }
0x154e   :  { %4217 = vrot.lane.b32.xlu1 %v4132_v20, %s9445_s18 }
0x15a5   :  { %v3533_v17 = vpop.permute.xlu1 %3532 }
0x15a6   :  { %v3539_v38 = vpop.permute.xlu0 %3538  ;;  %v3582_v33 = vrot.slane %v3533_v17, %v9897_v7 }
0x15a7   :  { %v3591_v47 = vrot.slane %v3539_v38, %v9897_v7 }
0x15a9   :  { %v3536_v44 = vpop.permute.xlu1 %3535 }
0x15aa   :  { %v3545_v60 = vpop.permute.xlu0 %3544  ;;  %v3586_v20 = vrot.slane %v3536_v44, %v9900_v9 }
0x15ab   :  { %v3600_v21 = vrot.slane %v3545_v60, %v9897_v7 }
0x15ac   :  { %v3587_v44 = vsel %vm674_vm3, %v3586_v20, %v3582_v33 }
0x15ad   :  { %v3542_v55 = vpop.permute.xlu1 %3541 }
0x15ae   :  { %v3551_v62 = vpop.permute.xlu0 %3550  ;;  %v3595_v3 = vrot.slane %v3542_v55, %v9900_v9 }
0x15af   :  { %v3609_v55 = vrot.slane %v3551_v62, %v9897_v7 }
0x15b0   :  { %v3596_v26 = vsel %vm674_vm3, %v3595_v3, %v3591_v47 }
0x15b1   :  { %v3548_v63 = vpop.permute.xlu1 %3547  ;;  %v3651_v17 = vsel %vm739_vm4, %v3596_v26, %v3587_v44 }
0x15b2   :  { %v3557_v27 = vpop.permute.xlu0 %3556  ;;  %v3604_v15 = vrot.slane %v3548_v63, %v9900_v9 }
0x15b3   :  { %v3618_v38 = vrot.slane %v3557_v27, %v9897_v7 }
0x15b4   :  { %v3605_v58 = vsel %vm674_vm3, %v3604_v15, %v3600_v21 }
0x15b5   :  { %v3554_v12 = vpop.permute.xlu1 %3553  ;;  %v3652_v21 = vsel %vm741_vm5, %v3605_v58, %v3651_v17 }
0x15b6   :  { %v3563_v10 = vpop.permute.xlu0 %3562  ;;  %v3613_v0 = vrot.slane %v3554_v12, %v9900_v9 }
0x15b7   :  { %v3627_v60 = vrot.slane %v3563_v10, %v9897_v7 }
0x15b8   :  { %v3614_v12 = vsel %vm674_vm3, %v3613_v0, %v3609_v55 }
0x15b9   :  { %v3560_v1 = vpop.permute.xlu1 %3559  ;;  %v3653_v15 = vsel %vm743_vm6, %v3614_v12, %v3652_v21 }
0x15ba   :  { %v3572_v32 = vpop.permute.xlu0 %3571  ;;  %v3622_v48 = vrot.slane %v3560_v1, %v9900_v9 }
0x15bb   :  { %v3640_v62 = vrot.slane %v3572_v32, %v9900_v9 }
0x15bc   :  { %v3623_v3 = vsel %vm674_vm3, %v3622_v48, %v3618_v38 }
0x15bd   :  { %v3566_v30 = vpop.permute.xlu1 %3565  ;;  %v3654_v10 = vsel %vm745_vm7, %v3623_v3, %v3653_v15 }
0x15be   :  { %v3631_v63 = vrot.slane %v3566_v30, %v9900_v9  ;;  %v3578_v30 = vpop.permute.xlu0 %3577 }
0x15c0   :  { %v3632_v27 = vsel %vm674_vm3, %v3631_v63, %v3627_v60 }
0x15c1   :  { %v3569_v51 = vpop.permute.xlu1 %3568  ;;  %v3655_v48 = vsel %vm747_vm8, %v3632_v27, %v3654_v10 }
0x15c2   :  { %v3636_v1 = vrot.slane %v3569_v51, %v9897_v7  ;;  %v3649_v51 = vrot.slane %v3578_v30, %v9900_v9  ;;  %v4228_v38 = vpop.permute.xlu0 %4227 }
0x15c4   :  { %v3641_v33 = vsel %vm674_vm3, %v3640_v62, %v3636_v1 }
0x15c5   :  { %v3575_v0 = vpop.permute.xlu1 %3574  ;;  %v3656_v47 = vsel %vm749_vm9, %v3641_v33, %v3655_v48 }
0x15c6   :  { %v3645_v26 = vrot.slane %v3575_v0, %v9897_v7 }
0x15c8   :  { %v3650_v32 = vsel %vm674_vm3, %v3649_v51, %v3645_v26 }
0x15c9   :  { %v4218_v58 = vpop.permute.xlu1 %4217  ;;  %v3657_v20 = vsel %vm751_vm10, %v3650_v32, %v3656_v47 }
0x15ca   :  { %v4220_v55 = vmul.f32 %v11264_v40, %v4218_v58  ;;  %v3659_v63 = vsel %vm754_vm11, %v3657_v20, 0.0 }
0x15cb   :  { %3660 = vadd.xlane.f32.xlu1 %v3659_v63 }
0x15cc   :  { %v11309_v44 = vadd.f32 %v4228_v38, %v4220_v55 }
0x15ce   :  { %9003 = vtanh.f32 %v11309_v44 }
0x15db   :  { %v9004_v12 = vpop.eup %9003 }
0x15dc   :  { %4233 = vrot.lane.b32.xlu0 %v9004_v12, %s9444_s17 }
0x164e   :  { %v4234_v32 = vpop.permute.xlu0 %4233 }
0x1654   :  { %v3661_v60 = vpop.xlane.xlu1 %3660 }
0x1655   :  { %9005 = vrcp.f32 %v3661_v60 }
0x1662   :  { %v9006_v1 = vpop.eup %9005 }
0x1663   :  { %v3683_v17 = vrot.slane %v9006_v1, %v9984_v25  ;;  %v3667_v3 = vrot.slane %v9006_v1, %v9744_v22  ;;  %v3691_v21 = vrot.slane %v9006_v1, %v9996_v56  ;;  %v3695_v33 = vrot.slane %v9006_v1, %v10002_v31 }
0x1664   :  { %v3671_v0 = vrot.slane %v9006_v1, %v9969_v46  ;;  %v3675_v51 = vrot.slane %v9006_v1, %v9972_v54  ;;  %v3679_v26 = vrot.slane %v9006_v1, %v9977_v2  ;;  %v3687_v48 = vrot.slane %v9006_v1, %v9990_v43 }
0x1665   :  { %v3712_v62 = vmul.f32 %v11244_v29, %v3683_v17  ;;  %v3704_v30 = vmul.f32 %v11217_v28, %v3667_v3  ;;  %v3717_v27 = vmul.f32 %v11256_v39, %v3691_v21  ;;  %v3705_v15 = vmul.f32 %v11226_v8, %v3667_v3 }
0x1666   :  { %v3719_v10 = vmul.f32 %v11262_v59, %v3695_v33  ;;  %v3706_v29 = vmul.f32 %v11222_v24, %v3671_v0  ;;  %v3707_v28 = vmul.f32 %v11234_v61, %v3671_v0  ;;  %v3708_v8 = vmul.f32 %v11230_v53, %v3675_v51 }
0x1667   :  { %3762 = vperm.xlu1 %8843, %v3712_v62   ;;  %3722 = vperm.xlu0 %8844, %v3704_v30   ;;  %v3709_v39 = vmul.f32 %v11241_v19, %v3675_v51  ;;  %v3710_v24 = vmul.f32 %v11237_v13, %v3679_v26  ;;  %v3711_v59 = vmul.f32 %v11247_v36, %v3679_v26 }
0x1668   :  { %v3713_v61 = vmul.f32 %v11253_v11, %v3683_v17  ;;  %v3715_v53 = vmul.f32 %v11259_v18, %v3687_v48  ;;  %v3716_v19 = vmul.f32 %v11267_v42, %v3691_v21  ;;  %v3718_v13 = vmul.f32 %v11272_v57, %v3695_v33 }
0x1669   :  { %v4236_v36 = vmul.f32 %v11264_v40, %v4234_v32 }
0x166b   :  { %3787 = vperm.xlu1 %8843, %v3717_v27   ;;  %3727 = vperm.xlu0 %8844, %v3705_v15  }
0x166f   :  { %3797 = vperm.xlu1 %8843, %v3719_v10   ;;  %3732 = vperm.xlu0 %8844, %v3706_v29  }
0x1673   :  { %3097 = vrot.lane.b32.xlu1 %v10919_v14, %s9447_s16  ;;  %3737 = vperm.xlu0 %8844, %v3707_v28   ;;  %v3714_v14 = vmul.f32 %v11250_v52, %v3687_v48 }
0x1677   :  { %3742 = vperm.xlu0 %8844, %v3708_v8  }
0x167b   :  { %3747 = vperm.xlu0 %8844, %v3709_v39  }
0x167f   :  { %3752 = vperm.xlu0 %8844, %v3710_v24  }
0x1683   :  { %3757 = vperm.xlu0 %8844, %v3711_v59  }
0x1687   :  { %3767 = vperm.xlu0 %8844, %v3713_v61  }
0x168b   :  { %3772 = vperm.xlu0 %8844, %v3714_v14  }
0x168f   :  { %3777 = vperm.xlu0 %8844, %v3715_v53  }
0x1693   :  { %3782 = vperm.xlu0 %8844, %v3716_v19  }
0x1697   :  { %3792 = vperm.xlu0 %8844, %v3718_v13  }
0x169b   :  { %4238 = vrot.lane.b32.xlu0 %v4236_v36, %s9445_s18 }
0x16e2   :  { %v11341_v11 = vpop.permute.xlu1 %3762  ;;  %v3723_v47 = vpop.permute.xlu0 %3722 }
0x16e3   :  { %v3800_v1 = vmul.f32 %v11006_v34, %v3723_v47  ;;  %v3808_v29 = vmul.f32 %v11036_v4, %v11341_v11  ;;  %v4052_v61 = vrot.slane %v3723_v47, %v9897_v7 }
0x16e5   :  { %v3852_v4 = vsel %vm54_vm0, %v3808_v29, 0.0 }
0x16e6   :  { %v11343_v58 = vpop.permute.xlu1 %3787  ;;  %v3728_v52 = vpop.permute.xlu0 %3727 }
0x16e7   :  { %v3801_v12 = vmul.f32 %v11000_v37, %v3728_v52  ;;  %v3816_v37 = vsel %vm54_vm0, %v3800_v1, 0.0  ;;  %v4110_v32 = vrot.slane %v11343_v58, %v9900_v9 }
0x16e9   :  { %v3817_v62 = vsel %vm601_vm2, %v3801_v12, 0.0 }
0x16ea   :  { %v11345_v20 = vpop.permute.xlu1 %3797  ;;  %v11347_v18 = vpop.permute.xlu0 %3732 }
0x16eb   :  { %v3802_v60 = vmul.f32 %v11021_v23, %v11347_v18  ;;  %v3818_v23 = vadd.f32 %v3817_v62, %v3816_v37  ;;  %v3815_v53 = vmul.f32 %v11111_v49, %v11345_v20 }
0x16ed   :  { %v3825_v30 = vsel %vm54_vm0, %v3802_v60, 0.0  ;;  %v3819_v51 = vrot.slane %v3818_v23, 4  ;;  %v13283_v60 = vld [vmem:[#allocation18_spill] sm:$0xff] }
0x16ee   :  { %v3098_v42 = vpop.permute.xlu1 %3097  ;;  %v11349_v55 = vpop.permute.xlu0 %3737 }
0x16ef   :  { %3100 = vst.msk [vmem:[#allocation7 + $0x8] sm:$0xff] %vm54_vm0, %v3098_v42  ;;  %v3803_v40 = vmul.f32 %v11027_v50, %v11349_v55  ;;  %v3820_v14 = vadd.f32 %v3819_v51, %v3818_v23  ;;  %v4065_v36 = vrot.slane %v11349_v55, %v9900_v9  ;;  %v4119_v55 = vrot.slane %v11345_v20, %v9900_v9 }
0x16f1   :  { %v3826_v17 = vsel %vm601_vm2, %v3803_v40, 0.0 }
0x16f2   :  { %v3743_v57 = vpop.permute.xlu0 %3742  ;;  %v3827_v21 = vadd.f32 %v3826_v17, %v3825_v30  ;;  %v3880_v17 = vsel %vm601_vm2, %v3815_v53, 0.0 }
0x16f3   :  { %v3804_v27 = vmul.f32 %v11015_v41, %v3743_v57  ;;  %v4070_v12 = vrot.slane %v3743_v57, %v9897_v7 }
0x16f4   :  { %v3828_v10 = vrot.slane %v3827_v21, 4 }
0x16f6   :  { %v3748_v63 = vpop.permute.xlu0 %3747  ;;  %v4248_v38 = vld [vmem:[#allocation7 + $0x8] sm:$0xff]  ;;  %v3829_v24 = vadd.f32 %v3828_v10, %v3827_v21 }
0x16f7   :  { %4403 = vrot.lane.b32.xlu1 %v4248_v38, %s9445_s18  ;;  %v3805_v50 = vmul.f32 %v11044_v16, %v3748_v63  ;;  %v3834_v16 = vsel %vm54_vm0, %v3804_v27, 0.0  ;;  %v4074_v47 = vrot.slane %v3748_v63, %v9900_v9  ;;  %v4061_v38 = vrot.slane %v11347_v18, %v9897_v7  ;;  %v13284_v18 = vld [vmem:[#allocation22_spill] sm:$0xff] }
0x16f8   :  { %v3830_v40 = vrot.slane %v3829_v24, 2 }
0x16f9   :  { %v3835_v33 = vsel %vm601_vm2, %v3805_v50, 0.0  ;;  %v4066_v30 = vsel %vm674_vm3, %v4065_v36, %v4061_v38  ;;  %v4075_v50 = vsel %vm674_vm3, %v4074_v47, %v4070_v12 }
0x16fa   :  { %v11360_v3 = vpop.permute.xlu0 %3752  ;;  %v3836_v8 = vadd.f32 %v3835_v33, %v3834_v16  ;;  %v3831_v57 = vadd.f32 %v3830_v40, %v3829_v24  ;;  %v13286_v40 = vld [vmem:[#allocation13_spill] sm:$0xff] }
0x16fb   :  { %v3806_v34 = vmul.f32 %v11051_v6, %v11360_v3  ;;  %v3813_v6 = vmul.f32 %v11104_v45, %v11343_v58  ;;  %v4088_v45 = vrot.slane %v11341_v11, %v9897_v7  ;;  %v3821_v58 = vrot.slane %v3820_v14, 2 }
0x16fc   :  { %v3837_v19 = vrot.slane %v3836_v8, 4  ;;  %v4079_v27 = vrot.slane %v11360_v3, %v9897_v7 }
0x16fd   :  { %v3843_v39 = vsel %vm54_vm0, %v3806_v34, 0.0  ;;  %v3822_v29 = vadd.f32 %v3821_v58, %v3820_v14 }
0x16fe   :  { %v3758_v15 = vpop.permute.xlu0 %3757  ;;  %v3838_v63 = vadd.f32 %v3837_v19, %v3836_v8 }
0x16ff   :  { %v3807_v0 = vmul.f32 %v11075_v5, %v3758_v15  ;;  %v4056_v5 = vrot.slane %v3728_v52, %v9900_v9  ;;  %v3871_v52 = vsel %vm601_vm2, %v3813_v6, 0.0  ;;  %v4083_v21 = vrot.slane %v3758_v15, %v9900_v9 }
0x1700   :  { %v3839_v15 = vrot.slane %v3838_v63, 2 }
0x1701   :  { %v3844_v28 = vsel %vm601_vm2, %v3807_v0, 0.0  ;;  %v4057_v42 = vsel %vm674_vm3, %v4056_v5, %v4052_v61  ;;  %v4084_v8 = vsel %vm674_vm3, %v4083_v21, %v4079_v27 }
0x1702   :  { %v3768_v41 = vpop.permute.xlu0 %3767  ;;  %v3845_v59 = vadd.f32 %v3844_v28, %v3843_v39  ;;  %v4121_v16 = vsel %vm739_vm4, %v4066_v30, %v4057_v42  ;;  %v13285_v39 = vld [vmem:[#allocation21_spill] sm:$0xff]  ;;  %v3840_v47 = vadd.f32 %v3839_v15, %v3838_v63  ;;  %v9235_v15 = vld [vmem:[%s13196_s10 + $0x10] sm:$0xff] }
0x1703   :  { %v3809_v26 = vmul.f32 %v11059_v35, %v3768_v41  ;;  %v4092_v33 = vrot.slane %v3768_v41, %v9900_v9  ;;  %v4122_v6 = vsel %vm741_vm5, %v4075_v50, %v4121_v16 }
0x1704   :  { %v3846_v49 = vrot.slane %v3845_v59, 4  ;;  %v4123_v53 = vsel %vm743_vm6, %v4084_v8, %v4122_v6 }
0x1705   :  { %v3853_v48 = vsel %vm601_vm2, %v3809_v26, 0.0  ;;  %v4093_v24 = vsel %vm674_vm3, %v4092_v33, %v4088_v45 }
0x1706   :  { %v3854_v13 = vadd.f32 %v3853_v48, %v3852_v4  ;;  %v3773_v35 = vpop.permute.xlu0 %3772  ;;  %v3847_v23 = vadd.f32 %v3846_v49, %v3845_v59  ;;  %v3832_v4 = vrot.slane %v3831_v57, 1  ;;  %v4124_v42 = vsel %vm745_vm7, %v4093_v24, %v4123_v53  ;;  %v9237_v24 = vld [vmem:[%s13196_s10] sm:$0xff] }
0x1707   :  { %v3810_v1 = vmul.f32 %v13283_v60, %v3773_v35  ;;  %v4097_v3 = vrot.slane %v3773_v35, %v9897_v7 }
0x1708   :  { %v3855_v11 = vrot.slane %v3854_v13, 4  ;;  %v3848_v5 = vrot.slane %v3847_v23, 2 }
0x1709   :  { %v3861_v20 = vsel %vm54_vm0, %v3810_v1, 0.0 }
0x170a   :  { %v3778_v62 = vpop.permute.xlu0 %3777  ;;  %v3856_v34 = vadd.f32 %v3855_v11, %v3854_v13  ;;  %v3849_v38 = vadd.f32 %v3848_v5, %v3847_v23 }
0x170b   :  { %v3811_v37 = vmul.f32 %v13284_v18, %v3778_v62  ;;  %v4101_v10 = vrot.slane %v3778_v62, %v9900_v9  ;;  %v3841_v18 = vrot.slane %v3840_v47, 1 }
0x170c   :  { %v3857_v61 = vrot.slane %v3856_v34, 2  ;;  %v3850_v27 = vrot.slane %v3849_v38, 1 }
0x170d   :  { %v3862_v0 = vsel %vm601_vm2, %v3811_v37, 0.0  ;;  %v4102_v48 = vsel %vm674_vm3, %v4101_v10, %v4097_v3  ;;  %v3823_v37 = vrot.slane %v3822_v29, 1 }
0x170e   :  { %v3863_v28 = vadd.f32 %v3862_v0, %v3861_v20  ;;  %v3783_v51 = vpop.permute.xlu0 %3782  ;;  %v4125_v11 = vsel %vm747_vm8, %v4102_v48, %v4124_v42  ;;  %v3858_v1 = vadd.f32 %v3857_v61, %v3856_v34  ;;  %v3833_v20 = vadd.f32 %v3832_v4, %v3831_v57  ;;  %v9241_v42 = vld [vmem:[%s13191_s5 + $0x20] sm:$0xff] }
0x170f   :  { %v3812_v26 = vmul.f32 %v13285_v39, %v3783_v51  ;;  %v4106_v41 = vrot.slane %v3783_v51, %v9897_v7  ;;  %v3824_v51 = vadd.f32 %v3823_v37, %v3822_v29  ;;  %v3851_v8 = vadd.f32 %v3850_v27, %v3849_v38  ;;  %v9244_v38 = vld [vmem:[%s13193_s7 + $0x8] sm:$0xff] }
0x1710   :  { %v3864_v59 = vrot.slane %v3863_v28, 4  ;;  %v3859_v34 = vrot.slane %v3858_v1, 1 }
0x1711   :  { %v3870_v14 = vsel %vm54_vm0, %v3812_v26, 0.0  ;;  %v4111_v35 = vsel %vm674_vm3, %v4110_v32, %v4106_v41  ;;  %v9236_v26 = vld [vmem:[%s13196_s10 + $0x8] sm:$0xff]  ;;  %v3966_v41 = vsel %vm739_vm4, %v3833_v20, %v3824_v51 }
0x1712   :  { %v3865_v19 = vadd.f32 %v3864_v59, %v3863_v28  ;;  %v3872_v13 = vadd.f32 %v3871_v52, %v3870_v14  ;;  %v3793_v36 = vpop.permute.xlu0 %3792  ;;  %v4126_v58 = vsel %vm749_vm9, %v4111_v35, %v4125_v11  ;;  %v3842_v28 = vadd.f32 %v3841_v18, %v3840_v47  ;;  %v9238_v35 = vld [vmem:[%s13191_s5 + $0x38] sm:$0xff]  ;;  %v9240_v47 = vld [vmem:[%s13191_s5 + $0x28] sm:$0xff]  ;;  %v9247_v18 = vld [vmem:[%s13192_s6 + $0x1] ss:$0 sm:$0xff] }
0x1713   :  { %v3814_v49 = vmul.f32 %v13286_v40, %v3793_v36  ;;  %v4115_v45 = vrot.slane %v3793_v36, %v9897_v7  ;;  %v3860_v57 = vadd.f32 %v3859_v34, %v3858_v1  ;;  %v9239_v36 = vld [vmem:[%s13191_s5 + $0x30] sm:$0xff]  ;;  %v4247_v40 = vld [vmem:[#allocation6 + $0x8] sm:$0xff] }
0x1714   :  { %v3866_v12 = vrot.slane %v3865_v19, 2  ;;  %v3873_v60 = vrot.slane %v3872_v13, 4  ;;  %v3967_v59 = vsel %vm741_vm5, %v3842_v28, %v3966_v41  ;;  %v9249_v41 = vld [vmem:[%s13195_s9 + $0x18] sm:$0xff] }
0x1715   :  { %v3879_v52 = vsel %vm54_vm0, %v3814_v49, 0.0  ;;  %v4120_v32 = vsel %vm674_vm3, %v4119_v55, %v4115_v45  ;;  %v9234_v55 = vld [vmem:[%s13196_s10 + $0x18] sm:$0xff]  ;;  %v3968_v61 = vsel %vm743_vm6, %v3851_v8, %v3967_v59  ;;  %v9243_v45 = vld [vmem:[%s13193_s7 + $0x10] sm:$0xff]  ;;  %v9254_v59 = vld [vmem:[%s13191_s5] sm:$0xff] }
0x1716   :  { %v3867_v62 = vadd.f32 %v3866_v12, %v3865_v19  ;;  %v3874_v63 = vadd.f32 %v3873_v60, %v3872_v13  ;;  %v3881_v30 = vadd.f32 %v3880_v17, %v3879_v52  ;;  %v4127_v50 = vsel %vm751_vm10, %v4120_v32, %v4126_v58  ;;  %v4239_v21 = vpop.permute.xlu0 %4238  ;;  %v9242_v49 = vld [vmem:[%s13193_s7 + $0x18] sm:$0xff]  ;;  %v9245_v12 = vld [vmem:[%s13193_s7] sm:$0xff] }
0x1717   :  { %4130 = vst.msk [vmem:[#allocation4 + $0x10] sm:$0xff] %vm754_vm11, %v4127_v50  ;;  %8663 = vmatmul.mubr.msk.f32.vlgmr.msra.gmra.mxu0 %vm54_vm0, %v4239_v21  ;;  %v13287_v17 = vmov 0.0   ;;  %v3969_v48 = vsel %vm745_vm7, %v3860_v57, %v3968_v61  ;;  %v13288_v58 = vld [vmem:[#allocation19_spill] sm:$0xff] }
0x1718   :  { %4241 = vst.msk [vmem:[#allocation6] sm:$0xff] %vm54_vm0, %v4239_v21  ;;  %v3875_v23 = vrot.slane %v3874_v63, 2  ;;  %v3882_v33 = vrot.slane %v3881_v30, 4  ;;  %8677 = vmatpush3.msra.mxu0 %v9234_v55  ;;  %8684 = vmatprep.mubr.msk.f32.mxu0 %vm9443_vm1, %v13287_v17  ;;  %v3868_v0 = vrot.slane %v3867_v62, 1  ;;  %v9248_v57 = vld [vmem:[%s13191_s5 + $0x18] sm:$0xff] }
0x1719   :  { %8678 = vmatprep.subr.mxu0 %v13287_v17  ;;  %v9255_v61 = vld [vmem:[%s13190_s4 + $0x38] sm:$0xff] }
0x171a   :  { %v3876_v10 = vadd.f32 %v3875_v23, %v3874_v63  ;;  %v3883_v16 = vadd.f32 %v3882_v33, %v3881_v30  ;;  %8679 = vmatpush3.msra.mxu0 %v9235_v15  ;;  %v3869_v6 = vadd.f32 %v3868_v0, %v3867_v62  ;;  %v9246_v62 = vld [vmem:[%s13197_s11] ss:$0 sm:$0xff] }
0x171b   :  { %8680 = vmatprep.subr.mxu0 %v13287_v17 }
0x171c   :  { %v3877_v3 = vrot.slane %v3876_v10, 1  ;;  %v3884_v39 = vrot.slane %v3883_v16, 2  ;;  %8681 = vmatpush3.msra.mxu0 %v9236_v26  ;;  %v3970_v53 = vsel %vm747_vm8, %v3869_v6, %v3969_v48  ;;  %v9250_v6 = vld [vmem:[%s13191_s5 + $0x10] sm:$0xff]  ;;  %v9256_v48 = vld [vmem:[%s13195_s9] sm:$0xff] }
0x171d   :  { %8682 = vmatprep.subr.mxu0 %v13287_v17 }
0x171e   :  { %v3885_v5 = vadd.f32 %v3884_v39, %v3883_v16  ;;  %8683 = vmatpush3.msra.mxu0 %v9237_v24  ;;  %v3878_v29 = vadd.f32 %v3877_v3, %v3876_v10  ;;  %v9252_v24 = vld [vmem:[%s13191_s5 + $0x8] sm:$0xff] }
0x171f   :  { %8698 = vmatprep.subr.mxu0 %v13287_v17 }
0x1720   :  { %v3886_v4 = vrot.slane %v3885_v5, 1  ;;  %v3971_v19 = vsel %vm749_vm9, %v3878_v29, %v3970_v53  ;;  %v9253_v29 = vld [vmem:[%s13195_s9 + $0x8] sm:$0xff] }
0x1721   :  { %v9258_v53 = vld [vmem:[%s13190_s4 + $0x28] sm:$0xff] }
0x1722   :  { %v3887_v14 = vadd.f32 %v3886_v4, %v3885_v5  ;;  %v9251_v5 = vld [vmem:[%s13195_s9 + $0x10] sm:$0xff]  ;;  %v5463_v4 = vld [vmem:[#allocation6] sm:$0xff] }
0x1724   :  { %v3972_v13 = vsel %vm751_vm10, %v3887_v14, %v3971_v19  ;;  %v9257_v14 = vld [vmem:[%s13190_s4 + $0x30] sm:$0xff]  ;;  %v9259_v19 = vld [vmem:[%s13190_s4 + $0x20] sm:$0xff] }
0x1725   :  { %8630 = vmatmul.mubr.msk.f32.vlgmr.msra.gmra.mxu1 %vm54_vm0, %v3972_v13 }
0x1726   :  { %8644 = vmatpush3.msra.mxu1 %v9238_v35  ;;  %8651 = vmatprep.mubr.msk.f32.mxu1 %vm9443_vm1, %v13287_v17 }
0x1727   :  { %8645 = vmatprep.subr.mxu1 %v13287_v17 }
0x1728   :  { %8646 = vmatpush3.msra.mxu1 %v9239_v36  ;;  %v9260_v36 = vld [vmem:[%s13194_s8] ss:$0 sm:$0xff] }
0x1729   :  { %8647 = vmatprep.subr.mxu1 %v13287_v17 }
0x172a   :  { %8648 = vmatpush3.msra.mxu1 %v9240_v47 }
0x172b   :  { %8649 = vmatprep.subr.mxu1 %v13287_v17 }
0x172c   :  { %8650 = vmatpush3.msra.mxu1 %v9241_v42 }
0x172d   :  { %8652 = vmatmul.mubr.msk.f32.vlgmr.msra.gmra.mxu1 %vm54_vm0, %v4247_v40  ;;  %8665 = vmatprep.subr.mxu1 %v13287_v17 }
0x172e   :  { %8666 = vmatpush3.msra.mxu1 %v9242_v49  ;;  %8673 = vmatprep.mubr.msk.f32.mxu1 %vm9443_vm1, %v13287_v17 }
0x172f   :  { %8667 = vmatprep.subr.mxu1 %v13287_v17 }
0x1730   :  { %8668 = vmatpush3.msra.mxu1 %v9243_v45  ;;  %v13290_v45 = vld [vmem:[#allocation12_spill] sm:$0xff] }
0x1731   :  { %8669 = vmatprep.subr.mxu1 %v13287_v17 }
0x1732   :  { %8670 = vmatpush3.msra.mxu1 %v9244_v38 }
0x1733   :  { %8671 = vmatprep.subr.mxu1 %v13287_v17 }
0x1734   :  { %8672 = vmatpush3.msra.mxu1 %v9245_v12 }
0x1735   :  { %8687 = vmatprep.subr.mxu1 %v13287_v17 }
0x1769   :  { %v4404_v16 = vpop.permute.xlu1 %4403 }
0x17d7   :  { %v4390_v11 = vpop.f32.mrf.mxu0 }
0x17d9   :  { %v8664_v60 = vpop.f32.mrf.mxu0 }
0x17e5   :  { %v4041_v1 = vpop.f32.mrf.mxu1 }
0x17e6   :  { %v4042_v52 = vadd.f32 %v4041_v1, %v13288_v58 }
0x17e7   :  { %v8631_v32 = vpop.f32.mrf.mxu1 }
0x17e8   :  { %v4045_v63 = vadd.f32 %v9246_v62, %v4042_v52 }
0x17ea   :  { %9007 = vtanh.f32 %v4045_v63 }
0x17ed   :  { %v4318_v30 = vpop.f32.mrf.mxu1 }
0x17ee   :  { %v4391_v50 = vadd.f32 %v4390_v11, %v4318_v30 }
0x17ef   :  { %v8653_v21 = vpop.f32.mrf.mxu1 }
0x17f0   :  { %v4394_v37 = vadd.f32 %v9247_v18, %v4391_v50  ;;  %v11587_v21 = vld [vmem:[%s13189_s3 + $0x8] sm:$0x3] }
0x17f2   :  { %9009 = vtanh.f32 %v4394_v37  ;;  %v8232_v33 = vmul.f32 -1.442695, %v4394_v37  ;;  %v11593_v37 = vld [vmem:[%s13189_s3] sm:$0xff] }
0x17f4   :  { %9011 = vpow2.f32 %v8232_v33 }
0x17f7   :  { %v9008_v27 = vpop.eup %9007 }
0x17f8   :  { %4048 = vst.msk [vmem:[#allocation2 + $0x10] sm:$0xff] %vm54_vm0, %v9008_v27 }
0x17ff   :  { %v9010_v23 = vpop.eup %9009 }
0x1800   :  { %4408 = vrot.lane.b32.xlu0 %v9010_v23, %s9444_s17 }
0x1801   :  { %v9012_v55 = vpop.eup %9011 }
0x1802   :  { %v4398_v34 = vadd.f32 1.0, %v9012_v55 }
0x1804   :  { %9013 = vrcp.f32 %v4398_v34 }
0x1811   :  { %v9014_v20 = vpop.eup %9013 }
0x1812   :  { %v4406_v15 = vmul.f32 %v9014_v20, %v4404_v16  ;;  %v11608_v16 = vld [vmem:[%s13189_s3 + $0x10] sm:$0xff] }
0x1872   :  { %v4409_v0 = vpop.permute.xlu0 %4408 }
0x1873   :  { %v4411_v10 = vmul.f32 %v9014_v20, %v4409_v0  ;;  %v11602_v0 = vld [vmem:[%s13189_s3 + $0x20] sm:$0xff] }
0x1875   :  { %4413 = vrot.lane.b32.xlu0 %v4411_v10, %s9445_s18 }
0x18e7   :  { %v4414_v28 = vpop.permute.xlu0 %4413 }
0x18e8   :  { %v11506_v51 = vadd.f32 %v4414_v28, %v4406_v15  ;;  %v11614_v28 = vld [vmem:[%s13189_s3 + $0x18] sm:$0x3] }
0x18ea   :  { %9015 = vtanh.f32 %v11506_v51 }
0x18f7   :  { %v9016_v8 = vpop.eup %9015 }
0x18f8   :  { %4419 = vrot.lane.b32.xlu1 %v9016_v8, %s9444_s17 }
0x196a   :  { %v4420_v3 = vpop.permute.xlu1 %4419 }
0x196b   :  { %v4422_v39 = vmul.f32 %v9014_v20, %v4420_v3 }
0x196d   :  { %4424 = vrot.lane.b32.xlu0 %v4422_v39, %s9445_s18 }
0x19df   :  { %v4425_v26 = vpop.permute.xlu0 %4424 }
0x19e0   :  { %4427 = vst.msk [vmem:[#allocation6 + $0x8] sm:$0xff] %vm54_vm0, %v4425_v26  ;;  %8674 = vmatmul.mubr.msk.f32.vlgmr.msra.gmra.mxu1 %vm54_vm0, %v4425_v26  ;;  %8685 = vmatmul.mubr.msk.f32.vlgmr.msra.gmra.mxu0 %vm54_vm0, %v4425_v26 }
0x19e1   :  { %8699 = vmatpush3.msra.mxu0 %v9248_v57  ;;  %8706 = vmatprep.mubr.msk.f32.mxu0 %vm9443_vm1, %v13287_v17  ;;  %v11623_v57 = vld [vmem:[%s13189_s3 + $0x40] sm:$0xff] }
0x19e2   :  { %8700 = vmatprep.subr.mxu0 %v13287_v17  ;;  %8688 = vmatpush3.msra.mxu1 %v9249_v41 }
0x19e3   :  { %8701 = vmatpush3.msra.mxu0 %v9250_v6  ;;  %8689 = vmatprep.subr.mxu1 %v13287_v17 }
0x19e4   :  { %8702 = vmatprep.subr.mxu0 %v13287_v17  ;;  %8690 = vmatpush3.msra.mxu1 %v9251_v5 }
0x19e5   :  { %8703 = vmatpush3.msra.mxu0 %v9252_v24  ;;  %8691 = vmatprep.subr.mxu1 %v13287_v17  ;;  %v11631_v24 = vld [vmem:[%s13189_s3 + $0x28] sm:$0x3] }
0x19e6   :  { %8704 = vmatprep.subr.mxu0 %v13287_v17  ;;  %8692 = vmatpush3.msra.mxu1 %v9253_v29 }
0x19e7   :  { %8705 = vmatpush3.msra.mxu0 %v9254_v59  ;;  %8693 = vmatprep.subr.mxu1 %v13287_v17 }
0x19e8   :  { %8707 = vmatmul.mubr.msk.f32.vlgmr.msra.gmra.mxu0 %vm54_vm0, %v5463_v4  ;;  %8720 = vmatprep.subr.mxu0 %v13287_v17  ;;  %v11638_v4 = vld [vmem:[%s13189_s3 + $0x30] sm:$0xff] }
0x19e9   :  { %8721 = vmatpush3.msra.mxu0 %v9255_v61  ;;  %8728 = vmatprep.mubr.msk.f32.mxu0 %vm9443_vm1, %v13287_v17 }
0x19ea   :  { %8722 = vmatprep.subr.mxu0 %v13287_v17  ;;  %8694 = vmatpush3.msra.mxu1 %v9256_v48 }
0x19eb   :  { %8723 = vmatpush3.msra.mxu0 %v9257_v14  ;;  %8695 = vmatprep.mubr.msk.f32.mxu1 %vm9443_vm1, %v13287_v17 }
0x19ec   :  { %8724 = vmatprep.subr.mxu0 %v13287_v17  ;;  %8709 = vmatprep.subr.mxu1 %v13287_v17 }
0x19ed   :  { %8725 = vmatpush3.msra.mxu0 %v9258_v53 }
0x19ee   :  { %8726 = vmatprep.subr.mxu0 %v13287_v17 }
0x19ef   :  { %8727 = vmatpush3.msra.mxu0 %v9259_v19  ;;  %v11646_v19 = vld [vmem:[%s13189_s3 + $0x48] sm:$0x3] }
0x19f0   :  { %8742 = vmatprep.subr.mxu0 %v13287_v17 }
0x1aa0   :  { %v4501_v13 = vpop.f32.mrf.mxu1  ;;  %v11569_v35 = vpop.f32.mrf.mxu0 }
0x1aa1   :  { %13289 = vst [vmem:[#allocation15_spill] sm:$0xff] %v11569_v35  ;;  %v4502_v47 = vadd.f32 %v9260_v36, %v4501_v13 }
0x1aa2   :  { %v8675_v42 = vpop.f32.mrf.mxu1  ;;  %v8686_v40 = vpop.f32.mrf.mxu0 }
0x1aa3   :  { %v4506_v49 = vcombine.high %v4502_v47, %v4502_v47  ;;  %v4513_v38 = vrot.slane %v4502_v47, %v13290_v45  ;;  %v11653_v47 = vld [vmem:[%s13189_s3 + $0x50] sm:$0xff] }
0x1aa4   :  { %13291 = vst [vmem:[#allocation16_spill] sm:$0xff] %v11653_v47 }
0x1aa5   :  { %v4520_v12 = vrot.slane %v4506_v49, %v13290_v45  ;;  %v4521_v11 = vcombine.high %v4513_v38, %v4513_v38  ;;  %v4529_v60 = vrot.slane %v4513_v38, %v13290_v45 }
0x1aa7   :  { %v4536_v1 = vrot.slane %v4520_v12, %v13290_v45  ;;  %v4543_v58 = vrot.slane %v4521_v11, %v13290_v45  ;;  %v4551_v52 = vcombine.high %v4529_v60, %v4529_v60  ;;  %v4558_v62 = vrot.slane %v4529_v60, %v9744_v22  ;;  %v11662_v11 = vld [vmem:[%s13189_s3 + $0x38] sm:$0x3] }
0x1aa8   :  { %v11579_v32 = vpop.f32.mrf.mxu0  ;;  %v4522_v23 = vcombine.high %v4520_v12, %v4520_v12 }
0x1aa9   :  { %v4566_v63 = vrot.slane %v4551_v52, %v9744_v22  ;;  %v4562_v30 = vrot.slane %v4543_v58, %v9744_v22  ;;  %v4596_v18 = vmul.f32 %v11587_v21, %v4558_v62  ;;  %v4595_v27 = vmul.f32 %v11593_v37, %v4558_v62 }
0x1aaa   :  { %v8708_v50 = vpop.f32.mrf.mxu0  ;;  %v4574_v33 = vrot.slane %v4536_v1, %v9744_v22  ;;  %v4553_v55 = vcombine.high %v4543_v58, %v4543_v58  ;;  %v4550_v3 = vrot.slane %v4522_v23, %v13290_v45  ;;  %v4552_v14 = vcombine.high %v4536_v1, %v4536_v1  ;;  %v11668_v1 = vld [vmem:[%s13189_s3 + $0x60] sm:$0xff] }
0x1aab   :  { %v4614_v34 = vsel %vm601_vm2, %v4596_v18, 0.0  ;;  %v4611_v20 = vsel %vm54_vm0, %v4595_v27, 0.0  ;;  %v4599_v10 = vmul.f32 %v11602_v0, %v4566_v63  ;;  %v4597_v15 = vmul.f32 %v11608_v16, %v4562_v30  ;;  %13292 = vst [vmem:[#allocation14_spill] sm:$0xff] %v11668_v1  ;;  %v11683_v18 = vld [vmem:[%s13189_s3 + $0x70] sm:$0xff] }
0x1aac   :  { %4615 = vadd.xlane.f32.xlu0 %v4614_v34  ;;  %4612 = vadd.xlane.f32.xlu1 %v4611_v20  ;;  %v4598_v8 = vmul.f32 %v11614_v28, %v4562_v30  ;;  %v4603_v41 = vmul.f32 %v11623_v57, %v4574_v33  ;;  %v4570_v6 = vrot.slane %v4553_v55, %v9744_v22  ;;  %v11677_v30 = vld [vmem:[%s13189_s3 + $0x58] sm:$0x3]  ;;  %v11691_v55 = vld [vmem:[%s13189_s3 + $0x68] sm:$0x3] }
0x1aad   :  { %v4623_v39 = vsel %vm54_vm0, %v4599_v10, 0.0  ;;  %v4617_v26 = vsel %vm54_vm0, %v4597_v15, 0.0  ;;  %v4600_v29 = vmul.f32 %v11631_v24, %v4566_v63  ;;  %v4578_v48 = vrot.slane %v4550_v3, %v9744_v22  ;;  %13293 = vst [vmem:[#allocation20_spill] sm:$0xff] %v11677_v30  ;;  %13294 = vst [vmem:[#allocation17_spill] sm:$0xff] %v11683_v18  ;;  %v11698_v10 = vld [vmem:[%s13189_s3 + $0x78] sm:$0x3] }
0x1aae   :  { %v4620_v5 = vsel %vm601_vm2, %v4598_v8, 0.0  ;;  %v4635_v59 = vsel %vm54_vm0, %v4603_v41, 0.0  ;;  %v4601_v61 = vmul.f32 %v11638_v4, %v4570_v6  ;;  %v4604_v13 = vmul.f32 %v11646_v19, %v4574_v33 }
0x1aaf   :  { %v4626_v53 = vsel %vm601_vm2, %v4600_v29, 0.0  ;;  %v4605_v42 = vmul.f32 %v11653_v47, %v4578_v48  ;;  %v4582_v40 = vrot.slane %v4552_v14, %v9744_v22  ;;  %v4554_v49 = vcombine.high %v4550_v3, %v4550_v3 }
0x1ab0   :  { %4624 = vadd.xlane.f32.xlu1 %v4623_v39  ;;  %4618 = vadd.xlane.f32.xlu0 %v4617_v26  ;;  %v4629_v36 = vsel %vm54_vm0, %v4601_v61, 0.0  ;;  %v4638_v38 = vsel %vm601_vm2, %v4604_v13, 0.0  ;;  %v4602_v60 = vmul.f32 %v11662_v11, %v4570_v6  ;;  %v4606_v50 = vmul.f32 %v11677_v30, %v4578_v48 }
0x1ab1   :  { %v4641_v12 = vsel %vm54_vm0, %v4605_v42, 0.0  ;;  %v4607_v58 = vmul.f32 %v11668_v1, %v4582_v40  ;;  %v4586_v52 = vrot.slane %v4554_v49, %v9744_v22  ;;  %v4608_v34 = vmul.f32 %v11691_v55, %v4582_v40 }
0x1ab2   :  { %v4632_v62 = vsel %vm601_vm2, %v4602_v60, 0.0  ;;  %v4644_v23 = vsel %vm601_vm2, %v4606_v50, 0.0 }
0x1ab3   :  { %v4647_v63 = vsel %vm54_vm0, %v4607_v58, 0.0  ;;  %v4609_v27 = vmul.f32 %v11683_v18, %v4586_v52  ;;  %v4650_v20 = vsel %vm601_vm2, %v4608_v34, 0.0  ;;  %v4610_v15 = vmul.f32 %v11698_v10, %v4586_v52 }
0x1ab4   :  { %4621 = vadd.xlane.f32.xlu0 %v4620_v5  ;;  %4636 = vadd.xlane.f32.xlu1 %v4635_v59 }
0x1ab5   :  { %v4653_v33 = vsel %vm54_vm0, %v4609_v27, 0.0  ;;  %v4656_v8 = vsel %vm601_vm2, %v4610_v15, 0.0 }
0x1ab8   :  { %4627 = vadd.xlane.f32.xlu0 %v4626_v53  ;;  %4630 = vadd.xlane.f32.xlu1 %v4629_v36 }
0x1abc   :  { %4639 = vadd.xlane.f32.xlu0 %v4638_v38  ;;  %4642 = vadd.xlane.f32.xlu1 %v4641_v12 }
0x1ac0   :  { %4633 = vadd.xlane.f32.xlu0 %v4632_v62  ;;  %4648 = vadd.xlane.f32.xlu1 %v4647_v63 }
0x1ac4   :  { %4645 = vadd.xlane.f32.xlu0 %v4644_v23  ;;  %4654 = vadd.xlane.f32.xlu1 %v4653_v33 }
0x1ac8   :  { %4651 = vadd.xlane.f32.xlu0 %v4650_v20 }
0x1acc   :  { %4657 = vadd.xlane.f32.xlu0 %v4656_v8 }
0x1ae2   :  { %4243 = vrot.lane.b32.xlu0 %v11309_v44, %s9447_s16 }
0x1b35   :  { %v11704_v3 = vpop.xlane.xlu0 %4615  ;;  %v4613_v39 = vpop.xlane.xlu1 %4612 }
0x1b36   :  { %v4682_v13 = vrot.slane %v11704_v3, %v9900_v9  ;;  %v4678_v36 = vrot.slane %v4613_v39, %v9897_v7 }
0x1b38   :  { %v4683_v62 = vsel %vm674_vm3, %v4682_v13, %v4678_v36 }
0x1b39   :  { %v11706_v26 = vpop.xlane.xlu1 %4624  ;;  %v11708_v41 = vpop.xlane.xlu0 %4618 }
0x1b3a   :  { %v4687_v42 = vrot.slane %v11708_v41, %v9897_v7  ;;  %v4696_v49 = vrot.slane %v11706_v26, %v9897_v7 }
0x1b3d   :  { %v4622_v6 = vpop.xlane.xlu0 %4621  ;;  %v11710_v5 = vpop.xlane.xlu1 %4636 }
0x1b3e   :  { %v4691_v44 = vrot.slane %v4622_v6, %v9900_v9  ;;  %v4714_v8 = vrot.slane %v11710_v5, %v9897_v7 }
0x1b40   :  { %v4692_v60 = vsel %vm674_vm3, %v4691_v44, %v4687_v42 }
0x1b41   :  { %v11712_v29 = vpop.xlane.xlu0 %4627  ;;  %v11714_v59 = vpop.xlane.xlu1 %4630  ;;  %v4747_v27 = vsel %vm739_vm4, %v4692_v60, %v4683_v62  ;;  %v8236_v62 = vld [vmem:[%s13186_s0 + $0x20] sm:$0xff] }
0x1b42   :  { %v4700_v53 = vrot.slane %v11712_v29, %v9900_v9  ;;  %v4705_v58 = vrot.slane %v11714_v59, %v9897_v7 }
0x1b44   :  { %v4701_v52 = vsel %vm674_vm3, %v4700_v53, %v4696_v49 }
0x1b45   :  { %v11716_v61 = vpop.xlane.xlu0 %4639  ;;  %v11718_v48 = vpop.xlane.xlu1 %4642  ;;  %v4748_v34 = vsel %vm741_vm5, %v4701_v52, %v4747_v27 }
0x1b46   :  { %v4718_v23 = vrot.slane %v11716_v61, %v9900_v9  ;;  %v4723_v20 = vrot.slane %v11718_v48, %v9897_v7 }
0x1b48   :  { %v4719_v42 = vsel %vm674_vm3, %v4718_v23, %v4714_v8 }
0x1b49   :  { %v11720_v14 = vpop.xlane.xlu0 %4633  ;;  %v11734_v38 = vpop.xlane.xlu1 %4648 }
0x1b4a   :  { %v4709_v40 = vrot.slane %v11720_v14, %v9900_v9  ;;  %v4732_v53 = vrot.slane %v11734_v38, %v9897_v7 }
0x1b4c   :  { %v4710_v63 = vsel %vm674_vm3, %v4709_v40, %v4705_v58 }
0x1b4d   :  { %v11736_v12 = vpop.xlane.xlu0 %4645  ;;  %v4749_v44 = vsel %vm743_vm6, %v4710_v63, %v4748_v34  ;;  %v11761_v13 = vpop.xlane.xlu1 %4654 }
0x1b4e   :  { %v4727_v50 = vrot.slane %v11736_v12, %v9900_v9  ;;  %v4741_v60 = vrot.slane %v11761_v13, %v9897_v7  ;;  %v4750_v52 = vsel %vm745_vm7, %v4719_v42, %v4749_v44 }
0x1b50   :  { %v4728_v36 = vsel %vm674_vm3, %v4727_v50, %v4723_v20  ;;  %v5540_v20 = vadd.f32 %v8236_v62, %v11579_v32 }
0x1b51   :  { %v11749_v33 = vpop.xlane.xlu0 %4651  ;;  %v4751_v63 = vsel %vm747_vm8, %v4728_v36, %v4750_v52 }
0x1b52   :  { %v4736_v15 = vrot.slane %v11749_v33, %v9900_v9  ;;  %9017 = vtanh.f32 %v5540_v20 }
0x1b54   :  { %v4737_v49 = vsel %vm674_vm3, %v4736_v15, %v4732_v53 }
0x1b55   :  { %v11765_v40 = vpop.xlane.xlu0 %4657  ;;  %v4752_v27 = vsel %vm749_vm9, %v4737_v49, %v4751_v63 }
0x1b56   :  { %v4745_v58 = vrot.slane %v11765_v40, %v9900_v9 }
0x1b58   :  { %v4746_v50 = vsel %vm674_vm3, %v4745_v58, %v4741_v60 }
0x1b59   :  { %v4244_v23 = vpop.permute.xlu0 %4243  ;;  %v4753_v34 = vsel %vm751_vm10, %v4746_v50, %v4752_v27 }
0x1b5a   :  { %4246 = vst.msk [vmem:[#allocation7] sm:$0xff] %vm54_vm0, %v4244_v23  ;;  %v4755_v15 = vsel %vm754_vm11, %v4753_v34, -inf }
0x1b5b   :  { %4756 = vmax.xlane.f32.xlu1 %v4755_v15 }
0x1b5f   :  { %v9018_v8 = vpop.eup %9017 }
0x1b6c   :  { %5554 = vrot.lane.b32.xlu1 %v9018_v8, %s9444_s17 }
0x1be4   :  { %v4757_v44 = vpop.xlane.xlu1 %4756 }
0x1be5   :  { %v4762_v53 = vrot.slane %v4757_v44, %v9744_v22  ;;  %v4766_v36 = vrot.slane %v4757_v44, %v9969_v46  ;;  %v4770_v49 = vrot.slane %v4757_v44, %v9972_v54  ;;  %v4774_v52 = vrot.slane %v4757_v44, %v9977_v2 }
0x1be6   :  { %v4778_v23 = vrot.slane %v4757_v44, %v9984_v25  ;;  %v4782_v15 = vrot.slane %v4757_v44, %v9990_v43 }
0x1be7   :  { %v4799_v42 = vsub.f32 %v4613_v39, %v4762_v53  ;;  %v4802_v60 = vsub.f32 %v4622_v6, %v4766_v36  ;;  %v4800_v32 = vsub.f32 %v11704_v3, %v4762_v53  ;;  %v4804_v62 = vsub.f32 %v11712_v29, %v4770_v49 }
0x1be8   :  { %v4801_v50 = vsub.f32 %v11708_v41, %v4766_v36  ;;  %v4806_v34 = vsub.f32 %v11720_v14, %v4774_v52  ;;  %v4803_v6 = vsub.f32 %v11706_v26, %v4770_v49  ;;  %v4808_v8 = vsub.f32 %v11716_v61, %v4778_v23 }
0x1be9   :  { %v4815_v58 = vmul.f32 1.442695, %v4799_v42  ;;  %v4821_v63 = vmul.f32 1.442695, %v4802_v60  ;;  %v4817_v27 = vmul.f32 1.442695, %v4800_v32  ;;  %v4805_v41 = vsub.f32 %v11714_v59, %v4774_v52 }
0x1bea   :  { %v4825_v39 = vmul.f32 1.442695, %v4804_v62  ;;  %v4819_v3 = vmul.f32 1.442695, %v4801_v50  ;;  %v4829_v29 = vmul.f32 1.442695, %v4806_v34  ;;  %v4786_v42 = vrot.slane %v4757_v44, %v9996_v56 }
0x1beb   :  { %9019 = vpow2.f32 %v4815_v58  ;;  %v4823_v53 = vmul.f32 1.442695, %v4803_v6  ;;  %v8238_v36 = vmul.f32 -1.442695, %v5540_v20  ;;  %v4810_v14 = vsub.f32 %v11736_v12, %v4782_v15 }
0x1bec   :  { %9021 = vpow2.f32 %v4821_v63  ;;  %v4833_v60 = vmul.f32 1.442695, %v4808_v8  ;;  %v4807_v26 = vsub.f32 %v11710_v5, %v4778_v23  ;;  %v4827_v49 = vmul.f32 1.442695, %v4805_v41 }
0x1bed   :  { %9023 = vpow2.f32 %v4817_v27  ;;  %v4790_v59 = vrot.slane %v4757_v44, %v10002_v31  ;;  %v4811_v61 = vsub.f32 %v11734_v38, %v4786_v42  ;;  %v4837_v20 = vmul.f32 1.442695, %v4810_v14  ;;  %v5464_v14 = vld [vmem:[#allocation7] sm:$0xff] }
0x1bee   :  { %9025 = vpow2.f32 %v4825_v39  ;;  %v4809_v12 = vsub.f32 %v11718_v48, %v4782_v15  ;;  %v4831_v52 = vmul.f32 1.442695, %v4807_v26  ;;  %v4812_v38 = vsub.f32 %v11749_v33, %v4786_v42  ;;  %v5555_v26 = vpop.permute.xlu1 %5554 }
0x1bef   :  { %9027 = vpow2.f32 %v4819_v3  ;;  %v4813_v62 = vsub.f32 %v11761_v13, %v4790_v59  ;;  %v4839_v44 = vmul.f32 1.442695, %v4811_v61  ;;  %v4814_v13 = vsub.f32 %v11765_v40, %v4790_v59 }
0x1bf0   :  { %9029 = vpow2.f32 %v4829_v29  ;;  %v4835_v50 = vmul.f32 1.442695, %v4809_v12  ;;  %v4841_v34 = vmul.f32 1.442695, %v4812_v38 }
0x1bf1   :  { %9031 = vpow2.f32 %v4823_v53  ;;  %v4843_v48 = vmul.f32 1.442695, %v4813_v62  ;;  %v4845_v3 = vmul.f32 1.442695, %v4814_v13 }
0x1bf2   :  { %9033 = vpow2.f32 %v8238_v36 }
0x1bf3   :  { %9035 = vpow2.f32 %v4833_v60 }
0x1bf4   :  { %9037 = vpow2.f32 %v4827_v49 }
0x1bf5   :  { %9039 = vpow2.f32 %v4837_v20 }
0x1bf6   :  { %9041 = vpow2.f32 %v4831_v52 }
0x1bf7   :  { %9043 = vpow2.f32 %v4839_v44 }
0x1bf8   :  { %v11800_v32 = vpop.eup %9019  ;;  %9045 = vpow2.f32 %v4835_v50 }
0x1bf9   :  { %4864 = vperm.xlu1 %8843, %v11800_v32   ;;  %v11805_v58 = vpop.eup %9021  ;;  %9047 = vpow2.f32 %v4843_v48 }
0x1bfa   :  { %v11808_v5 = vpop.eup %9023  ;;  %4873 = vperm.xlu0 %8844, %v11805_v58   ;;  %9049 = vpow2.f32 %v4841_v34 }
0x1bfb   :  { %v11813_v63 = vpop.eup %9025  ;;  %9051 = vpow2.f32 %v4845_v3 }
0x1bfc   :  { %v11816_v27 = vpop.eup %9027 }
0x1bfd   :  { %4867 = vperm.xlu1 %8843, %v11808_v5   ;;  %v11820_v23 = vpop.eup %9029 }
0x1bfe   :  { %4879 = vperm.xlu0 %8844, %v11813_v63   ;;  %v11823_v39 = vpop.eup %9031 }
0x1bff   :  { %v9034_v33 = vpop.eup %9033 }
0x1c00   :  { %v11827_v6 = vpop.eup %9035  ;;  %v5544_v8 = vadd.f32 1.0, %v9034_v33 }
0x1c01   :  { %4870 = vperm.xlu1 %8843, %v11816_v27   ;;  %v11829_v15 = vpop.eup %9037 }
0x1c02   :  { %4885 = vperm.xlu0 %8844, %v11820_v23   ;;  %v11833_v40 = vpop.eup %9039  ;;  %9053 = vrcp.f32 %v5544_v8 }
0x1c03   :  { %v11835_v29 = vpop.eup %9041 }
0x1c04   :  { %v11839_v41 = vpop.eup %9043 }
0x1c05   :  { %4876 = vperm.xlu1 %8843, %v11823_v39   ;;  %v11841_v53 = vpop.eup %9045 }
0x1c06   :  { %4891 = vperm.xlu0 %8844, %v11827_v6   ;;  %v11845_v36 = vpop.eup %9047 }
0x1c07   :  { %v11847_v42 = vpop.eup %9049 }
0x1c08   :  { %v11851_v60 = vpop.eup %9051 }
0x1c09   :  { %4882 = vperm.xlu1 %8843, %v11829_v15  }
0x1c0a   :  { %4897 = vperm.xlu0 %8844, %v11833_v40  }
0x1c0d   :  { %4888 = vperm.xlu1 %8843, %v11835_v29  }
0x1c0e   :  { %4900 = vperm.xlu0 %8844, %v11839_v41  }
0x1c0f   :  { %v11855_v49 = vpop.eup %9053 }
0x1c10   :  { %v5557_v59 = vmul.f32 %v11855_v49, %v5555_v26 }
0x1c11   :  { %4894 = vperm.xlu1 %8843, %v11841_v53  }
0x1c12   :  { %4906 = vperm.xlu0 %8844, %v11845_v36  }
0x1c15   :  { %4903 = vperm.xlu1 %8843, %v11847_v42  }
0x1c16   :  { %5549 = vrot.lane.b32.xlu0 %v5464_v14, %s9445_s18 }
0x1c19   :  { %4909 = vperm.xlu1 %8843, %v11851_v60  }
0x1c1d   :  { %5559 = vrot.lane.b32.xlu1 %v5557_v59, %s9445_s18 }
0x1c74   :  { %v4865_v61 = vpop.permute.xlu1 %4864 }
0x1c75   :  { %v4874_v20 = vpop.permute.xlu0 %4873  ;;  %v4914_v18 = vrot.slane %v4865_v61, %v9897_v7 }
0x1c76   :  { %v4927_v26 = vrot.slane %v4874_v20, %v9900_v9 }
0x1c78   :  { %v4868_v12 = vpop.permute.xlu1 %4867 }
0x1c79   :  { %v4880_v52 = vpop.permute.xlu0 %4879  ;;  %v4918_v59 = vrot.slane %v4868_v12, %v9900_v9 }
0x1c7a   :  { %v4936_v35 = vrot.slane %v4880_v52, %v9900_v9 }
0x1c7c   :  { %v4871_v62 = vpop.permute.xlu1 %4870 }
0x1c7d   :  { %v4886_v44 = vpop.permute.xlu0 %4885  ;;  %v4923_v33 = vrot.slane %v4871_v62, %v9897_v7 }
0x1c7e   :  { %v4945_v1 = vrot.slane %v4886_v44, %v9900_v9 }
0x1c7f   :  { %v4928_v62 = vsel %vm674_vm3, %v4927_v26, %v4923_v33 }
0x1c80   :  { %v4877_v38 = vpop.permute.xlu1 %4876 }
0x1c81   :  { %v4892_v50 = vpop.permute.xlu0 %4891  ;;  %v4932_v8 = vrot.slane %v4877_v38, %v9897_v7 }
0x1c82   :  { %v4954_v47 = vrot.slane %v4892_v50, %v9900_v9 }
0x1c83   :  { %v4937_v20 = vsel %vm674_vm3, %v4936_v35, %v4932_v8 }
0x1c84   :  { %v4883_v48 = vpop.permute.xlu1 %4882 }
0x1c85   :  { %v4898_v13 = vpop.permute.xlu0 %4897  ;;  %v4941_v45 = vrot.slane %v4883_v48, %v9897_v7  ;;  %v4919_v48 = vsel %vm674_vm3, %v4918_v59, %v4914_v18 }
0x1c86   :  { %v4963_v52 = vrot.slane %v4898_v13, %v9900_v9  ;;  %v4983_v44 = vsel %vm739_vm4, %v4928_v62, %v4919_v48 }
0x1c88   :  { %v4889_v34 = vpop.permute.xlu1 %4888 }
0x1c89   :  { %v4901_v3 = vpop.permute.xlu0 %4900  ;;  %v4950_v17 = vrot.slane %v4889_v34, %v9897_v7  ;;  %v4946_v34 = vsel %vm674_vm3, %v4945_v1, %v4941_v45 }
0x1c8a   :  { %v4968_v33 = vrot.slane %v4901_v3, %v9897_v7 }
0x1c8b   :  { %v4955_v26 = vsel %vm674_vm3, %v4954_v47, %v4950_v17 }
0x1c8c   :  { %v4895_v14 = vpop.permute.xlu1 %4894 }
0x1c8d   :  { %v4907_v30 = vpop.permute.xlu0 %4906  ;;  %v4959_v38 = vrot.slane %v4895_v14, %v9897_v7  ;;  %v4984_v14 = vsel %vm741_vm5, %v4937_v20, %v4983_v44 }
0x1c8e   :  { %v4985_v35 = vsel %vm743_vm6, %v4946_v34, %v4984_v14  ;;  %v4977_v1 = vrot.slane %v4907_v30, %v9897_v7 }
0x1c8f   :  { %v4964_v50 = vsel %vm674_vm3, %v4963_v52, %v4959_v38  ;;  %v4986_v45 = vsel %vm745_vm7, %v4955_v26, %v4985_v35 }
0x1c90   :  { %v4904_v12 = vpop.permute.xlu1 %4903  ;;  %v4987_v3 = vsel %vm747_vm8, %v4964_v50, %v4986_v45 }
0x1c91   :  { %v4972_v61 = vrot.slane %v4904_v12, %v9900_v9  ;;  %v5550_v8 = vpop.permute.xlu0 %5549 }
0x1c92   :  { %v5552_v17 = vmul.f32 %v11855_v49, %v5550_v8 }
0x1c93   :  { %v4973_v18 = vsel %vm674_vm3, %v4972_v61, %v4968_v33 }
0x1c94   :  { %v4910_v13 = vpop.permute.xlu1 %4909  ;;  %v4988_v62 = vsel %vm749_vm9, %v4973_v18, %v4987_v3 }
0x1c95   :  { %v4981_v59 = vrot.slane %v4910_v13, %v9900_v9 }
0x1c97   :  { %v4982_v47 = vsel %vm674_vm3, %v4981_v59, %v4977_v1 }
0x1c98   :  { %v5560_v38 = vpop.permute.xlu1 %5559  ;;  %v4989_v20 = vsel %vm751_vm10, %v4982_v47, %v4988_v62 }
0x1c99   :  { %v11891_v12 = vadd.f32 %v5560_v38, %v5552_v17  ;;  %v4991_v48 = vsel %vm754_vm11, %v4989_v20, 0.0 }
0x1c9a   :  { %4992 = vadd.xlane.f32.xlu0 %v4991_v48 }
0x1c9b   :  { %9055 = vtanh.f32 %v11891_v12 }
0x1ca8   :  { %v9056_v30 = vpop.eup %9055 }
0x1ca9   :  { %5565 = vrot.lane.b32.xlu1 %v9056_v30, %s9444_s17 }
0x1d1b   :  { %v5566_v3 = vpop.permute.xlu1 %5565 }
0x1d23   :  { %v4993_v52 = vpop.xlane.xlu0 %4992 }
0x1d24   :  { %9057 = vrcp.f32 %v4993_v52 }
0x1d31   :  { %v9058_v34 = vpop.eup %9057 }
0x1d32   :  { %v5011_v61 = vrot.slane %v9058_v34, %v9977_v2  ;;  %v4999_v44 = vrot.slane %v9058_v34, %v9744_v22  ;;  %v5023_v14 = vrot.slane %v9058_v34, %v9996_v56  ;;  %v5027_v8 = vrot.slane %v9058_v34, %v10002_v31 }
0x1d33   :  { %v5003_v18 = vrot.slane %v9058_v34, %v9969_v46  ;;  %v5007_v45 = vrot.slane %v9058_v34, %v9972_v54  ;;  %v5019_v59 = vrot.slane %v9058_v34, %v9990_v43 }
0x1d34   :  { %v5042_v33 = vmul.f32 %v11829_v15, %v5011_v61  ;;  %v5036_v26 = vmul.f32 %v11800_v32, %v4999_v44  ;;  %v5049_v50 = vmul.f32 %v11847_v42, %v5023_v14  ;;  %v5037_v35 = vmul.f32 %v11808_v5, %v4999_v44 }
0x1d35   :  { %v5051_v13 = vmul.f32 %v11851_v60, %v5027_v8  ;;  %v5038_v15 = vmul.f32 %v11816_v27, %v5003_v18  ;;  %v5039_v32 = vmul.f32 %v11805_v58, %v5003_v18  ;;  %v5040_v5 = vmul.f32 %v11823_v39, %v5007_v45 }
0x1d36   :  { %5084 = vperm.xlu0 %8844, %v5042_v33   ;;  %5054 = vperm.xlu1 %8843, %v5036_v26   ;;  %v5041_v42 = vmul.f32 %v11813_v63, %v5007_v45  ;;  %v5043_v60 = vmul.f32 %v11820_v23, %v5011_v61  ;;  %v5015_v27 = vrot.slane %v9058_v34, %v9984_v25 }
0x1d37   :  { %v5047_v39 = vmul.f32 %v11833_v40, %v5019_v59  ;;  %v5048_v63 = vmul.f32 %v11839_v41, %v5023_v14  ;;  %v5050_v23 = vmul.f32 %v11845_v36, %v5027_v8 }
0x1d38   :  { %v5044_v1 = vmul.f32 %v11835_v29, %v5015_v27  ;;  %v5045_v58 = vmul.f32 %v11827_v6, %v5015_v27  ;;  %v5568_v29 = vmul.f32 %v11855_v49, %v5566_v3 }
0x1d3a   :  { %5119 = vperm.xlu0 %8844, %v5049_v50   ;;  %5059 = vperm.xlu1 %8843, %v5037_v35  }
0x1d3e   :  { %5129 = vperm.xlu0 %8844, %v5051_v13   ;;  %5064 = vperm.xlu1 %8843, %v5038_v15  }
0x1d42   :  { %4429 = vrot.lane.b32.xlu0 %v11506_v51, %s9447_s16  ;;  %5069 = vperm.xlu1 %8843, %v5039_v32   ;;  %v5046_v51 = vmul.f32 %v11841_v53, %v5019_v59 }
0x1d46   :  { %5074 = vperm.xlu1 %8843, %v5040_v5  }
0x1d4a   :  { %5079 = vperm.xlu1 %8843, %v5041_v42  }
0x1d4e   :  { %5089 = vperm.xlu1 %8843, %v5043_v60  }
0x1d52   :  { %5094 = vperm.xlu1 %8843, %v5044_v1  }
0x1d56   :  { %5099 = vperm.xlu1 %8843, %v5045_v58  }
0x1d5a   :  { %5104 = vperm.xlu1 %8843, %v5046_v51  }
0x1d5e   :  { %5109 = vperm.xlu1 %8843, %v5047_v39  }
0x1d62   :  { %5114 = vperm.xlu1 %8843, %v5048_v63  }
0x1d66   :  { %5124 = vperm.xlu1 %8843, %v5050_v23  }
0x1d6a   :  { %5570 = vrot.lane.b32.xlu1 %v5568_v29, %s9445_s18 }
0x1db1   :  { %v11924_v6 = vpop.permute.xlu0 %5084  ;;  %v5055_v17 = vpop.permute.xlu1 %5054 }
0x1db2   :  { %v5132_v48 = vmul.f32 %v11593_v37, %v5055_v17  ;;  %v5138_v8 = vmul.f32 %v11638_v4, %v11924_v6  ;;  %v5411_v51 = vrot.slane %v11924_v6, %v9897_v7  ;;  %v5384_v39 = vrot.slane %v5055_v17, %v9897_v7 }
0x1db4   :  { %v5148_v33 = vsel %vm54_vm0, %v5132_v48, 0.0  ;;  %v5175_v5 = vsel %vm54_vm0, %v5138_v8, 0.0 }
0x1db5   :  { %v11926_v47 = vpop.permute.xlu0 %5119  ;;  %v5060_v53 = vpop.permute.xlu1 %5059 }
0x1db6   :  { %v5133_v49 = vmul.f32 %v11587_v21, %v5060_v53  ;;  %v5145_v4 = vmul.f32 %v11691_v55, %v11926_v47  ;;  %v5388_v58 = vrot.slane %v5060_v53, %v9900_v9  ;;  %v5442_v55 = vrot.slane %v11926_v47, %v9900_v9 }
0x1db8   :  { %v5149_v61 = vsel %vm601_vm2, %v5133_v49, 0.0  ;;  %v5389_v17 = vsel %vm674_vm3, %v5388_v58, %v5384_v39 }
0x1db9   :  { %v11928_v62 = vpop.permute.xlu0 %5129  ;;  %v11930_v40 = vpop.permute.xlu1 %5064  ;;  %v5150_v21 = vadd.f32 %v5149_v61, %v5148_v33 }
0x1dba   :  { %v5134_v34 = vmul.f32 %v11608_v16, %v11930_v40  ;;  %v5147_v63 = vmul.f32 %v11698_v10, %v11928_v62  ;;  %v5393_v10 = vrot.slane %v11930_v40, %v9897_v7 }
0x1dbb   :  { %v5151_v18 = vrot.slane %v5150_v21, 4 }
0x1dbc   :  { %v5212_v47 = vsel %vm601_vm2, %v5147_v63, 0.0 }
0x1dbd   :  { %v4430_v41 = vpop.permute.xlu0 %4429  ;;  %v11932_v38 = vpop.permute.xlu1 %5069 }
0x1dbe   :  { %4432 = vst.msk [vmem:[#allocation7 + $0x8] sm:$0xff] %vm54_vm0, %v4430_v41  ;;  %v5135_v20 = vmul.f32 %v11614_v28, %v11932_v38  ;;  %v5157_v28 = vsel %vm54_vm0, %v5134_v34, 0.0  ;;  %v5397_v29 = vrot.slane %v11932_v38, %v9900_v9  ;;  %v5203_v41 = vsel %vm601_vm2, %v5145_v4, 0.0 }
0x1dbf   :  { %v5451_v38 = vrot.slane %v11928_v62, %v9900_v9 }
0x1dc0   :  { %v5158_v44 = vsel %vm601_vm2, %v5135_v20, 0.0 }
0x1dc1   :  { %v11935_v36 = vpop.permute.xlu1 %5074  ;;  %v5159_v14 = vadd.f32 %v5158_v44, %v5157_v28  ;;  %v13296_v28 = vld [vmem:[#allocation20_spill] sm:$0xff] }
0x1dc2   :  { %v5136_v16 = vmul.f32 %v11602_v0, %v11935_v36  ;;  %v5152_v0 = vadd.f32 %v5151_v18, %v5150_v21  ;;  %v5402_v61 = vrot.slane %v11935_v36, %v9897_v7  ;;  %v5398_v21 = vsel %vm674_vm3, %v5397_v29, %v5393_v10 }
0x1dc3   :  { %v5160_v13 = vrot.slane %v5159_v14, 4 }
0x1dc4   :  { %v5166_v45 = vsel %vm54_vm0, %v5136_v16, 0.0  ;;  %v5153_v3 = vrot.slane %v5152_v0, 2 }
0x1dc5   :  { %v5080_v30 = vpop.permute.xlu1 %5079  ;;  %v5580_v52 = vld [vmem:[#allocation7 + $0x8] sm:$0xff]  ;;  %v5161_v27 = vadd.f32 %v5160_v13, %v5159_v14  ;;  %v5453_v13 = vsel %vm739_vm4, %v5398_v21, %v5389_v17 }
0x1dc6   :  { %5735 = vrot.lane.b32.xlu0 %v5580_v52, %s9445_s18  ;;  %v5137_v37 = vmul.f32 %v11631_v24, %v5080_v30  ;;  %v5406_v6 = vrot.slane %v5080_v30, %v9900_v9  ;;  %v13295_v52 = vld [vmem:[#allocation16_spill] sm:$0xff]  ;;  %v11993_v33 = vadd.f32 %v5153_v3, %v5152_v0 }
0x1dc7   :  { %v5162_v49 = vrot.slane %v5161_v27, 2 }
0x1dc8   :  { %v5167_v15 = vsel %vm601_vm2, %v5137_v37, 0.0 }
0x1dc9   :  { %v11947_v26 = vpop.permute.xlu1 %5089  ;;  %v5168_v42 = vadd.f32 %v5167_v15, %v5166_v45  ;;  %v5163_v37 = vadd.f32 %v5162_v49, %v5161_v27  ;;  %v13298_v49 = vld [vmem:[#allocation17_spill] sm:$0xff] }
0x1dca   :  { %v5139_v50 = vmul.f32 %v11662_v11, %v11947_v26  ;;  %v5415_v30 = vrot.slane %v11947_v26, %v9900_v9 }
0x1dcb   :  { %v5169_v53 = vrot.slane %v5168_v42, 4 }
0x1dcc   :  { %v5176_v32 = vsel %vm601_vm2, %v5139_v50, 0.0  ;;  %v5407_v50 = vsel %vm674_vm3, %v5406_v6, %v5402_v61  ;;  %v5416_v15 = vsel %vm674_vm3, %v5415_v30, %v5411_v51 }
0x1dcd   :  { %v11955_v35 = vpop.permute.xlu1 %5094  ;;  %v5177_v1 = vadd.f32 %v5176_v32, %v5175_v5  ;;  %v5170_v40 = vadd.f32 %v5169_v53, %v5168_v42  ;;  %v5454_v4 = vsel %vm741_vm5, %v5407_v50, %v5453_v13  ;;  %v5155_v50 = vrot.slane %v11993_v33, 1 }
0x1dce   :  { %v5140_v24 = vmul.f32 %v11623_v57, %v11955_v35  ;;  %v5420_v32 = vrot.slane %v11955_v35, %v9897_v7  ;;  %v5455_v39 = vsel %vm743_vm6, %v5416_v15, %v5454_v4 }
0x1dcf   :  { %v5178_v20 = vrot.slane %v5177_v1, 4  ;;  %v5171_v5 = vrot.slane %v5170_v40, 2 }
0x1dd0   :  { %v5184_v59 = vsel %vm54_vm0, %v5140_v24, 0.0 }
0x1dd1   :  { %v5100_v11 = vpop.permute.xlu1 %5099  ;;  %v5179_v16 = vadd.f32 %v5178_v20, %v5177_v1  ;;  %v5172_v29 = vadd.f32 %v5171_v5, %v5170_v40 }
0x1dd2   :  { %v5141_v60 = vmul.f32 %v11646_v19, %v5100_v11  ;;  %v5424_v62 = vrot.slane %v5100_v11, %v9900_v9  ;;  %v13297_v11 = vld [vmem:[#allocation14_spill] sm:$0xff] }
0x1dd3   :  { %v5180_v27 = vrot.slane %v5179_v16, 2 }
0x1dd4   :  { %v5185_v57 = vsel %vm601_vm2, %v5141_v60, 0.0  ;;  %v5425_v1 = vsel %vm674_vm3, %v5424_v62, %v5420_v32  ;;  %v9278_v32 = vld [vmem:[%s13196_s10 + $0x10] sm:$0xff] }
0x1dd5   :  { %v5186_v19 = vadd.f32 %v5185_v57, %v5184_v59  ;;  %v5105_v23 = vpop.permute.xlu1 %5104  ;;  %v5164_v59 = vrot.slane %v5163_v37, 1  ;;  %v5456_v53 = vsel %vm745_vm7, %v5425_v1, %v5455_v39  ;;  %v5181_v17 = vadd.f32 %v5180_v27, %v5179_v16  ;;  %v9280_v1 = vld [vmem:[%s13196_s10] sm:$0xff] }
0x1dd6   :  { %v5142_v34 = vmul.f32 %v13295_v52, %v5105_v23  ;;  %v5429_v0 = vrot.slane %v5105_v23, %v9897_v7 }
0x1dd7   :  { %v5187_v48 = vrot.slane %v5186_v19, 4  ;;  %v5182_v16 = vrot.slane %v5181_v17, 1 }
0x1dd8   :  { %v5193_v36 = vsel %vm54_vm0, %v5142_v34, 0.0 }
0x1dd9   :  { %v5110_v44 = vpop.permute.xlu1 %5109  ;;  %v5188_v8 = vadd.f32 %v5187_v48, %v5186_v19  ;;  %v5183_v5 = vadd.f32 %v5182_v16, %v5181_v17  ;;  %v9287_v17 = vld [vmem:[%s13193_s7 + $0x8] sm:$0xff] }
0x1dda   :  { %v5143_v14 = vmul.f32 %v13296_v28, %v5110_v44  ;;  %v5433_v26 = vrot.slane %v5110_v44, %v9900_v9 }
0x1ddb   :  { %v5189_v57 = vrot.slane %v5188_v8, 2 }
0x1ddc   :  { %v5194_v18 = vsel %vm601_vm2, %v5143_v14, 0.0  ;;  %v5434_v51 = vsel %vm674_vm3, %v5433_v26, %v5429_v0  ;;  %v5173_v14 = vrot.slane %v5172_v29, 1 }
0x1ddd   :  { %v5195_v24 = vadd.f32 %v5194_v18, %v5193_v36  ;;  %v5115_v45 = vpop.permute.xlu1 %5114  ;;  %v5457_v48 = vsel %vm747_vm8, %v5434_v51, %v5456_v53  ;;  %v5190_v34 = vadd.f32 %v5189_v57, %v5188_v8  ;;  %v5165_v18 = vadd.f32 %v5164_v59, %v5163_v37  ;;  %v9279_v37 = vld [vmem:[%s13196_s10 + $0x8] sm:$0xff]  ;;  %v9284_v53 = vld [vmem:[%s13191_s5 + $0x20] sm:$0xff] }
0x1dde   :  { %v5144_v42 = vmul.f32 %v13297_v11, %v5115_v45  ;;  %v5438_v60 = vrot.slane %v5115_v45, %v9897_v7  ;;  %v5156_v45 = vadd.f32 %v5155_v50, %v11993_v33 }
0x1ddf   :  { %v5196_v58 = vrot.slane %v5195_v24, 4  ;;  %v5191_v36 = vrot.slane %v5190_v34, 1 }
0x1de0   :  { %v5202_v35 = vsel %vm54_vm0, %v5144_v42, 0.0  ;;  %v5443_v23 = vsel %vm674_vm3, %v5442_v55, %v5438_v60  ;;  %v5298_v60 = vsel %vm739_vm4, %v5165_v18, %v5156_v45 }
0x1de1   :  { %v5197_v63 = vadd.f32 %v5196_v58, %v5195_v24  ;;  %v5204_v19 = vadd.f32 %v5203_v41, %v5202_v35  ;;  %v5125_v3 = vpop.permute.xlu1 %5124  ;;  %v5458_v61 = vsel %vm749_vm9, %v5443_v23, %v5457_v48  ;;  %v5174_v24 = vadd.f32 %v5173_v14, %v5172_v29  ;;  %v9281_v23 = vld [vmem:[%s13191_s5 + $0x38] sm:$0xff]  ;;  %v9283_v29 = vld [vmem:[%s13191_s5 + $0x28] sm:$0xff]  ;;  %v9290_v14 = vld [vmem:[%s13192_s6 + $0x1] ss:$0 sm:$0xff] }
0x1de2   :  { %v5146_v6 = vmul.f32 %v13298_v49, %v5125_v3  ;;  %v5447_v20 = vrot.slane %v5125_v3, %v9897_v7  ;;  %v5192_v42 = vadd.f32 %v5191_v36, %v5190_v34  ;;  %v9282_v3 = vld [vmem:[%s13191_s5 + $0x30] sm:$0xff]  ;;  %v5579_v49 = vld [vmem:[#allocation6 + $0x8] sm:$0xff] }
0x1de3   :  { %v5198_v10 = vrot.slane %v5197_v63, 2  ;;  %v5205_v52 = vrot.slane %v5204_v19, 4  ;;  %v5299_v58 = vsel %vm741_vm5, %v5174_v24, %v5298_v60  ;;  %v9292_v60 = vld [vmem:[%s13195_s9 + $0x18] sm:$0xff] }
0x1de4   :  { %v5211_v41 = vsel %vm54_vm0, %v5146_v6, 0.0  ;;  %v5452_v55 = vsel %vm674_vm3, %v5451_v38, %v5447_v20  ;;  %v9277_v38 = vld [vmem:[%s13196_s10 + $0x18] sm:$0xff]  ;;  %v5300_v57 = vsel %vm743_vm6, %v5183_v5, %v5299_v58  ;;  %v9286_v20 = vld [vmem:[%s13193_s7 + $0x10] sm:$0xff]  ;;  %v9297_v58 = vld [vmem:[%s13191_s5] sm:$0xff] }
0x1de5   :  { %v5199_v30 = vadd.f32 %v5198_v10, %v5197_v63  ;;  %v5206_v44 = vadd.f32 %v5205_v52, %v5204_v19  ;;  %v5213_v21 = vadd.f32 %v5212_v47, %v5211_v41  ;;  %v5459_v40 = vsel %vm751_vm10, %v5452_v55, %v5458_v61  ;;  %v5571_v28 = vpop.permute.xlu1 %5570  ;;  %v9285_v6 = vld [vmem:[%s13193_s7 + $0x18] sm:$0xff]  ;;  %v9288_v10 = vld [vmem:[%s13193_s7] sm:$0xff] }
0x1de6   :  { %5462 = vst.msk [vmem:[#allocation4 + $0x18] sm:$0xff] %vm754_vm11, %v5459_v40  ;;  %8729 = vmatmul.mubr.msk.f32.vlgmr.msra.gmra.mxu0 %vm54_vm0, %v5571_v28  ;;  %v13299_v47 = vmov 0.0   ;;  %v5301_v51 = vsel %vm745_vm7, %v5192_v42, %v5300_v57  ;;  %v13300_v61 = vld [vmem:[#allocation15_spill] sm:$0xff] }
0x1de7   :  { %5573 = vst.msk [vmem:[#allocation6] sm:$0xff] %vm54_vm0, %v5571_v28  ;;  %v5207_v62 = vrot.slane %v5206_v44, 2  ;;  %v5214_v8 = vrot.slane %v5213_v21, 4  ;;  %8743 = vmatpush3.msra.mxu0 %v9277_v38  ;;  %8750 = vmatprep.mubr.msk.f32.mxu0 %vm9443_vm1, %v13299_v47  ;;  %v5200_v26 = vrot.slane %v5199_v30, 1  ;;  %v9291_v42 = vld [vmem:[%s13191_s5 + $0x18] sm:$0xff] }
0x1de8   :  { %8744 = vmatprep.subr.mxu0 %v13299_v47  ;;  %v9298_v57 = vld [vmem:[%s13190_s4 + $0x38] sm:$0xff] }
0x1de9   :  { %v5208_v13 = vadd.f32 %v5207_v62, %v5206_v44  ;;  %v5215_v15 = vadd.f32 %v5214_v8, %v5213_v21  ;;  %8745 = vmatpush3.msra.mxu0 %v9278_v32  ;;  %v5201_v4 = vadd.f32 %v5200_v26, %v5199_v30  ;;  %v9289_v30 = vld [vmem:[%s13197_s11] ss:$0 sm:$0xff] }
0x1dea   :  { %8746 = vmatprep.subr.mxu0 %v13299_v47 }
0x1deb   :  { %v5209_v0 = vrot.slane %v5208_v13, 1  ;;  %v5216_v11 = vrot.slane %v5215_v15, 2  ;;  %8747 = vmatpush3.msra.mxu0 %v9279_v37  ;;  %v5302_v39 = vsel %vm747_vm8, %v5201_v4, %v5301_v51  ;;  %v9293_v4 = vld [vmem:[%s13191_s5 + $0x10] sm:$0xff]  ;;  %v9299_v51 = vld [vmem:[%s13195_s9] sm:$0xff] }
0x1dec   :  { %8748 = vmatprep.subr.mxu0 %v13299_v47 }
0x1ded   :  { %v5217_v27 = vadd.f32 %v5216_v11, %v5215_v15  ;;  %8749 = vmatpush3.msra.mxu0 %v9280_v1  ;;  %v5210_v33 = vadd.f32 %v5209_v0, %v5208_v13  ;;  %v9295_v1 = vld [vmem:[%s13191_s5 + $0x8] sm:$0xff] }
0x1dee   :  { %8764 = vmatprep.subr.mxu0 %v13299_v47 }
0x1def   :  { %v5218_v59 = vrot.slane %v5217_v27, 1  ;;  %v5303_v63 = vsel %vm749_vm9, %v5210_v33, %v5302_v39  ;;  %v9296_v33 = vld [vmem:[%s13195_s9 + $0x8] sm:$0xff] }
0x1df0   :  { %v9301_v39 = vld [vmem:[%s13190_s4 + $0x28] sm:$0xff] }
0x1df1   :  { %v5219_v35 = vadd.f32 %v5218_v59, %v5217_v27  ;;  %v9294_v27 = vld [vmem:[%s13195_s9 + $0x10] sm:$0xff]  ;;  %v6795_v59 = vld [vmem:[#allocation6] sm:$0xff] }
0x1df3   :  { %v5304_v19 = vsel %vm751_vm10, %v5219_v35, %v5303_v63  ;;  %v9300_v35 = vld [vmem:[%s13190_s4 + $0x30] sm:$0xff]  ;;  %v9302_v63 = vld [vmem:[%s13190_s4 + $0x20] sm:$0xff] }
0x1df4   :  { %8696 = vmatmul.mubr.msk.f32.vlgmr.msra.gmra.mxu1 %vm54_vm0, %v5304_v19 }
0x1df5   :  { %8710 = vmatpush3.msra.mxu1 %v9281_v23  ;;  %8717 = vmatprep.mubr.msk.f32.mxu1 %vm9443_vm1, %v13299_v47 }
0x1df6   :  { %8711 = vmatprep.subr.mxu1 %v13299_v47 }
0x1df7   :  { %8712 = vmatpush3.msra.mxu1 %v9282_v3  ;;  %v9303_v3 = vld [vmem:[%s13194_s8] ss:$0 sm:$0xff] }
0x1df8   :  { %8713 = vmatprep.subr.mxu1 %v13299_v47 }
0x1df9   :  { %8714 = vmatpush3.msra.mxu1 %v9283_v29 }
0x1dfa   :  { %8715 = vmatprep.subr.mxu1 %v13299_v47 }
0x1dfb   :  { %8716 = vmatpush3.msra.mxu1 %v9284_v53 }
0x1dfc   :  { %8718 = vmatmul.mubr.msk.f32.vlgmr.msra.gmra.mxu1 %vm54_vm0, %v5579_v49  ;;  %8731 = vmatprep.subr.mxu1 %v13299_v47 }
0x1dfd   :  { %8732 = vmatpush3.msra.mxu1 %v9285_v6  ;;  %8739 = vmatprep.mubr.msk.f32.mxu1 %vm9443_vm1, %v13299_v47 }
0x1dfe   :  { %8733 = vmatprep.subr.mxu1 %v13299_v47 }
0x1dff   :  { %8734 = vmatpush3.msra.mxu1 %v9286_v20  ;;  %v13302_v20 = vld [vmem:[#allocation12_spill] sm:$0xff] }
0x1e00   :  { %8735 = vmatprep.subr.mxu1 %v13299_v47 }
0x1e01   :  { %8736 = vmatpush3.msra.mxu1 %v9287_v17 }
0x1e02   :  { %8737 = vmatprep.subr.mxu1 %v13299_v47 }
0x1e03   :  { %8738 = vmatpush3.msra.mxu1 %v9288_v10 }
0x1e04   :  { %8753 = vmatprep.subr.mxu1 %v13299_v47 }
0x1e38   :  { %v5736_v15 = vpop.permute.xlu0 %5735 }
0x1ea6   :  { %v5722_v48 = vpop.f32.mrf.mxu0 }
0x1ea8   :  { %v8730_v52 = vpop.f32.mrf.mxu0 }
0x1eb4   :  { %v5373_v34 = vpop.f32.mrf.mxu1 }
0x1eb5   :  { %v5374_v41 = vadd.f32 %v5373_v34, %v13300_v61 }
0x1eb6   :  { %v8697_v55 = vpop.f32.mrf.mxu1 }
0x1eb7   :  { %v5377_v44 = vadd.f32 %v9289_v30, %v5374_v41 }
0x1eb9   :  { %9059 = vtanh.f32 %v5377_v44 }
0x1ebc   :  { %v5650_v21 = vpop.f32.mrf.mxu1 }
0x1ebd   :  { %v5723_v40 = vadd.f32 %v5722_v48, %v5650_v21 }
0x1ebe   :  { %v8719_v28 = vpop.f32.mrf.mxu1 }
0x1ebf   :  { %v5726_v50 = vadd.f32 %v9290_v14, %v5723_v40  ;;  %v12182_v28 = vld [vmem:[%s13189_s3 + $0x8] sm:$0x3] }
0x1ec1   :  { %9061 = vtanh.f32 %v5726_v50  ;;  %v8241_v8 = vmul.f32 -1.442695, %v5726_v50  ;;  %v12188_v50 = vld [vmem:[%s13189_s3] sm:$0xff] }
0x1ec3   :  { %9063 = vpow2.f32 %v8241_v8 }
0x1ec6   :  { %v9060_v16 = vpop.eup %9059 }
0x1ec7   :  { %5380 = vst.msk [vmem:[#allocation2 + $0x18] sm:$0xff] %vm54_vm0, %v9060_v16 }
0x1ece   :  { %v9062_v62 = vpop.eup %9061 }
0x1ecf   :  { %5740 = vrot.lane.b32.xlu1 %v9062_v62, %s9444_s17 }
0x1ed0   :  { %v9064_v38 = vpop.eup %9063 }
0x1ed1   :  { %v5730_v36 = vadd.f32 1.0, %v9064_v38 }
0x1ed3   :  { %9065 = vrcp.f32 %v5730_v36 }
0x1ee0   :  { %v9066_v18 = vpop.eup %9065 }
0x1ee1   :  { %v5738_v32 = vmul.f32 %v9066_v18, %v5736_v15  ;;  %v12203_v15 = vld [vmem:[%s13189_s3 + $0x10] sm:$0xff] }
0x1f41   :  { %v5741_v26 = vpop.permute.xlu1 %5740 }
0x1f42   :  { %v5743_v13 = vmul.f32 %v9066_v18, %v5741_v26  ;;  %v12197_v26 = vld [vmem:[%s13189_s3 + $0x20] sm:$0xff] }
0x1f44   :  { %5745 = vrot.lane.b32.xlu1 %v5743_v13, %s9445_s18 }
0x1fb6   :  { %v5746_v24 = vpop.permute.xlu1 %5745 }
0x1fb7   :  { %v12101_v45 = vadd.f32 %v5746_v24, %v5738_v32  ;;  %v12209_v24 = vld [vmem:[%s13189_s3 + $0x18] sm:$0x3] }
0x1fb9   :  { %9067 = vtanh.f32 %v12101_v45 }
0x1fc6   :  { %v9068_v5 = vpop.eup %9067 }
0x1fc7   :  { %5751 = vrot.lane.b32.xlu0 %v9068_v5, %s9444_s17 }
0x2039   :  { %v5752_v0 = vpop.permute.xlu0 %5751 }
0x203a   :  { %v5754_v11 = vmul.f32 %v9066_v18, %v5752_v0 }
0x203c   :  { %5756 = vrot.lane.b32.xlu1 %v5754_v11, %s9445_s18 }
0x20ae   :  { %v5757_v37 = vpop.permute.xlu1 %5756 }
0x20af   :  { %5759 = vst.msk [vmem:[#allocation6 + $0x8] sm:$0xff] %vm54_vm0, %v5757_v37  ;;  %8740 = vmatmul.mubr.msk.f32.vlgmr.msra.gmra.mxu1 %vm54_vm0, %v5757_v37  ;;  %8751 = vmatmul.mubr.msk.f32.vlgmr.msra.gmra.mxu0 %vm54_vm0, %v5757_v37 }
0x20b0   :  { %8765 = vmatpush3.msra.mxu0 %v9291_v42  ;;  %8772 = vmatprep.mubr.msk.f32.mxu0 %vm9443_vm1, %v13299_v47  ;;  %v12218_v42 = vld [vmem:[%s13189_s3 + $0x40] sm:$0xff] }
0x20b1   :  { %8766 = vmatprep.subr.mxu0 %v13299_v47  ;;  %8754 = vmatpush3.msra.mxu1 %v9292_v60 }
0x20b2   :  { %8767 = vmatpush3.msra.mxu0 %v9293_v4  ;;  %8755 = vmatprep.subr.mxu1 %v13299_v47 }
0x20b3   :  { %8768 = vmatprep.subr.mxu0 %v13299_v47  ;;  %8756 = vmatpush3.msra.mxu1 %v9294_v27 }
0x20b4   :  { %8769 = vmatpush3.msra.mxu0 %v9295_v1  ;;  %8757 = vmatprep.subr.mxu1 %v13299_v47  ;;  %v12226_v1 = vld [vmem:[%s13189_s3 + $0x28] sm:$0x3] }
0x20b5   :  { %8770 = vmatprep.subr.mxu0 %v13299_v47  ;;  %8758 = vmatpush3.msra.mxu1 %v9296_v33 }
0x20b6   :  { %8771 = vmatpush3.msra.mxu0 %v9297_v58  ;;  %8759 = vmatprep.subr.mxu1 %v13299_v47 }
0x20b7   :  { %8773 = vmatmul.mubr.msk.f32.vlgmr.msra.gmra.mxu0 %vm54_vm0, %v6795_v59  ;;  %8786 = vmatprep.subr.mxu0 %v13299_v47  ;;  %v12233_v59 = vld [vmem:[%s13189_s3 + $0x30] sm:$0xff] }
0x20b8   :  { %8787 = vmatpush3.msra.mxu0 %v9298_v57  ;;  %8794 = vmatprep.mubr.msk.f32.mxu0 %vm9443_vm1, %v13299_v47 }
0x20b9   :  { %8788 = vmatprep.subr.mxu0 %v13299_v47  ;;  %8760 = vmatpush3.msra.mxu1 %v9299_v51 }
0x20ba   :  { %8789 = vmatpush3.msra.mxu0 %v9300_v35  ;;  %8761 = vmatprep.mubr.msk.f32.mxu1 %vm9443_vm1, %v13299_v47 }
0x20bb   :  { %8790 = vmatprep.subr.mxu0 %v13299_v47  ;;  %8775 = vmatprep.subr.mxu1 %v13299_v47 }
0x20bc   :  { %8791 = vmatpush3.msra.mxu0 %v9301_v39 }
0x20bd   :  { %8792 = vmatprep.subr.mxu0 %v13299_v47 }
0x20be   :  { %8793 = vmatpush3.msra.mxu0 %v9302_v63  ;;  %v12241_v63 = vld [vmem:[%s13189_s3 + $0x48] sm:$0x3] }
0x20bf   :  { %8808 = vmatprep.subr.mxu0 %v13299_v47 }
0x216f   :  { %v5833_v19 = vpop.f32.mrf.mxu1  ;;  %v12164_v23 = vpop.f32.mrf.mxu0 }
0x2170   :  { %13301 = vst [vmem:[#allocation18_spill] sm:$0xff] %v12164_v23  ;;  %v5834_v29 = vadd.f32 %v9303_v3, %v5833_v19 }
0x2171   :  { %v8741_v53 = vpop.f32.mrf.mxu1  ;;  %v8752_v49 = vpop.f32.mrf.mxu0 }
0x2172   :  { %v5838_v6 = vcombine.high %v5834_v29, %v5834_v29  ;;  %v5845_v17 = vrot.slane %v5834_v29, %v13302_v20  ;;  %v12248_v29 = vld [vmem:[%s13189_s3 + $0x50] sm:$0xff] }
0x2173   :  { %13303 = vst [vmem:[#allocation22_spill] sm:$0xff] %v12248_v29 }
0x2174   :  { %v5852_v10 = vrot.slane %v5838_v6, %v13302_v20  ;;  %v5853_v48 = vcombine.high %v5845_v17, %v5845_v17  ;;  %v5861_v52 = vrot.slane %v5845_v17, %v13302_v20 }
0x2176   :  { %v5868_v34 = vrot.slane %v5852_v10, %v13302_v20  ;;  %v5875_v61 = vrot.slane %v5853_v48, %v13302_v20  ;;  %v5883_v41 = vcombine.high %v5861_v52, %v5861_v52  ;;  %v5890_v30 = vrot.slane %v5861_v52, %v9744_v22  ;;  %v12257_v48 = vld [vmem:[%s13189_s3 + $0x38] sm:$0x3] }
0x2177   :  { %v12174_v55 = vpop.f32.mrf.mxu0  ;;  %v5854_v62 = vcombine.high %v5852_v10, %v5852_v10 }
0x2178   :  { %v5898_v44 = vrot.slane %v5883_v41, %v9744_v22  ;;  %v5894_v21 = vrot.slane %v5875_v61, %v9744_v22  ;;  %v5928_v14 = vmul.f32 %v12182_v28, %v5890_v30  ;;  %v5927_v16 = vmul.f32 %v12188_v50, %v5890_v30 }
0x2179   :  { %v8774_v40 = vpop.f32.mrf.mxu0  ;;  %v5906_v8 = vrot.slane %v5868_v34, %v9744_v22  ;;  %v5885_v38 = vcombine.high %v5875_v61, %v5875_v61  ;;  %v5882_v0 = vrot.slane %v5854_v62, %v13302_v20  ;;  %v5884_v35 = vcombine.high %v5868_v34, %v5868_v34  ;;  %v12263_v34 = vld [vmem:[%s13189_s3 + $0x60] sm:$0xff] }
0x217a   :  { %v5946_v36 = vsel %vm601_vm2, %v5928_v14, 0.0  ;;  %v5943_v18 = vsel %vm54_vm0, %v5927_v16, 0.0  ;;  %v5931_v13 = vmul.f32 %v12197_v26, %v5898_v44  ;;  %v5929_v32 = vmul.f32 %v12203_v15, %v5894_v21  ;;  %13304 = vst [vmem:[#allocation21_spill] sm:$0xff] %v12263_v34  ;;  %v12278_v14 = vld [vmem:[%s13189_s3 + $0x70] sm:$0xff] }
0x217b   :  { %5947 = vadd.xlane.f32.xlu1 %v5946_v36  ;;  %5944 = vadd.xlane.f32.xlu0 %v5943_v18  ;;  %v5930_v5 = vmul.f32 %v12209_v24, %v5894_v21  ;;  %v5935_v60 = vmul.f32 %v12218_v42, %v5906_v8  ;;  %v5902_v4 = vrot.slane %v5885_v38, %v9744_v22  ;;  %v12272_v21 = vld [vmem:[%s13189_s3 + $0x58] sm:$0x3]  ;;  %v12286_v38 = vld [vmem:[%s13189_s3 + $0x68] sm:$0x3] }
0x217c   :  { %v5955_v11 = vsel %vm54_vm0, %v5931_v13, 0.0  ;;  %v5949_v37 = vsel %vm54_vm0, %v5929_v32, 0.0  ;;  %v5932_v33 = vmul.f32 %v12226_v1, %v5898_v44  ;;  %v5910_v51 = vrot.slane %v5882_v0, %v9744_v22  ;;  %13305 = vst [vmem:[#allocation13_spill] sm:$0xff] %v12272_v21  ;;  %13306 = vst [vmem:[#allocation19_spill] sm:$0xff] %v12278_v14  ;;  %v12293_v13 = vld [vmem:[%s13189_s3 + $0x78] sm:$0x3] }
0x217d   :  { %v5952_v27 = vsel %vm601_vm2, %v5930_v5, 0.0  ;;  %v5967_v58 = vsel %vm54_vm0, %v5935_v60, 0.0  ;;  %v5933_v57 = vmul.f32 %v12233_v59, %v5902_v4  ;;  %v5936_v19 = vmul.f32 %v12241_v63, %v5906_v8 }
0x217e   :  { %v5958_v39 = vsel %vm601_vm2, %v5932_v33, 0.0  ;;  %v5937_v53 = vmul.f32 %v12248_v29, %v5910_v51  ;;  %v5914_v49 = vrot.slane %v5884_v35, %v9744_v22  ;;  %v5886_v6 = vcombine.high %v5882_v0, %v5882_v0  ;;  %v8245_v0 = vld [vmem:[%s13186_s0 + $0x28] sm:$0xff] }
0x217f   :  { %5956 = vadd.xlane.f32.xlu1 %v5955_v11  ;;  %5950 = vadd.xlane.f32.xlu0 %v5949_v37  ;;  %v5961_v3 = vsel %vm54_vm0, %v5933_v57, 0.0  ;;  %v5970_v17 = vsel %vm601_vm2, %v5936_v19, 0.0  ;;  %v5934_v52 = vmul.f32 %v12257_v48, %v5902_v4  ;;  %v5938_v40 = vmul.f32 %v12272_v21, %v5910_v51 }
0x2180   :  { %v5973_v10 = vsel %vm54_vm0, %v5937_v53, 0.0  ;;  %v5939_v61 = vmul.f32 %v12263_v34, %v5914_v49  ;;  %v5918_v41 = vrot.slane %v5886_v6, %v9744_v22  ;;  %v5940_v36 = vmul.f32 %v12286_v38, %v5914_v49 }
0x2181   :  { %v5964_v30 = vsel %vm601_vm2, %v5934_v52, 0.0  ;;  %v5976_v62 = vsel %vm601_vm2, %v5938_v40, 0.0  ;;  %v12301_v11 = vadd.f32 %v8245_v0, %v12174_v55 }
0x2182   :  { %v5979_v44 = vsel %vm54_vm0, %v5939_v61, 0.0  ;;  %v5941_v16 = vmul.f32 %v12278_v14, %v5918_v41  ;;  %v5982_v18 = vsel %vm601_vm2, %v5940_v36, 0.0  ;;  %v5942_v32 = vmul.f32 %v12293_v13, %v5918_v41 }
0x2183   :  { %5953 = vadd.xlane.f32.xlu0 %v5952_v27  ;;  %5968 = vadd.xlane.f32.xlu1 %v5967_v58  ;;  %9069 = vtanh.f32 %v12301_v11 }
0x2184   :  { %v5985_v8 = vsel %vm54_vm0, %v5941_v16, 0.0  ;;  %v5988_v5 = vsel %vm601_vm2, %v5942_v32, 0.0 }
0x2187   :  { %5959 = vadd.xlane.f32.xlu0 %v5958_v39  ;;  %5962 = vadd.xlane.f32.xlu1 %v5961_v3 }
0x218b   :  { %5971 = vadd.xlane.f32.xlu0 %v5970_v17  ;;  %5974 = vadd.xlane.f32.xlu1 %v5973_v10 }
0x218f   :  { %5965 = vadd.xlane.f32.xlu0 %v5964_v30  ;;  %5980 = vadd.xlane.f32.xlu1 %v5979_v44 }
0x2190   :  { %v9070_v37 = vpop.eup %9069 }
0x2193   :  { %5977 = vadd.xlane.f32.xlu0 %v5976_v62  ;;  %5986 = vadd.xlane.f32.xlu1 %v5985_v8 }
0x2197   :  { %5983 = vadd.xlane.f32.xlu0 %v5982_v18 }
0x219b   :  { %5989 = vadd.xlane.f32.xlu0 %v5988_v5 }
0x21b1   :  { %5575 = vrot.lane.b32.xlu0 %v11891_v12, %s9447_s16 }
0x21b5   :  { %6886 = vrot.lane.b32.xlu0 %v9070_v37, %s9444_s17 }
0x2204   :  { %v12307_v60 = vpop.xlane.xlu1 %5947  ;;  %v5945_v4 = vpop.xlane.xlu0 %5944 }
0x2205   :  { %v6014_v53 = vrot.slane %v12307_v60, %v9900_v9  ;;  %v6010_v49 = vrot.slane %v5945_v4, %v9897_v7 }
0x2207   :  { %v6015_v40 = vsel %vm674_vm3, %v6014_v53, %v6010_v49 }
0x2208   :  { %v12309_v27 = vpop.xlane.xlu1 %5956  ;;  %v5951_v33 = vpop.xlane.xlu0 %5950 }
0x2209   :  { %v6019_v6 = vrot.slane %v5951_v33, %v9897_v7  ;;  %v6028_v10 = vrot.slane %v12309_v27, %v9897_v7 }
0x220c   :  { %v12311_v58 = vpop.xlane.xlu0 %5953  ;;  %v12313_v57 = vpop.xlane.xlu1 %5968 }
0x220d   :  { %v6023_v19 = vrot.slane %v12311_v58, %v9900_v9  ;;  %v6046_v37 = vrot.slane %v12313_v57, %v9897_v7 }
0x220f   :  { %v6024_v41 = vsel %vm674_vm3, %v6023_v19, %v6019_v6 }
0x2210   :  { %v12315_v55 = vpop.xlane.xlu0 %5959  ;;  %v12317_v51 = vpop.xlane.xlu1 %5962  ;;  %v6079_v8 = vsel %vm739_vm4, %v6024_v41, %v6015_v40 }
0x2211   :  { %v6032_v3 = vrot.slane %v12315_v55, %v9900_v9  ;;  %v6037_v30 = vrot.slane %v12317_v51, %v9897_v7 }
0x2213   :  { %v6033_v44 = vsel %vm674_vm3, %v6032_v3, %v6028_v10 }
0x2214   :  { %v12319_v35 = vpop.xlane.xlu0 %5971  ;;  %v12321_v12 = vpop.xlane.xlu1 %5974  ;;  %v6080_v32 = vsel %vm741_vm5, %v6033_v44, %v6079_v8 }
0x2215   :  { %v6050_v36 = vrot.slane %v12319_v35, %v9900_v9  ;;  %v6055_v5 = vrot.slane %v12321_v12, %v9897_v7 }
0x2217   :  { %v6051_v6 = vsel %vm674_vm3, %v6050_v36, %v6046_v37 }
0x2218   :  { %v12323_v39 = vpop.xlane.xlu0 %5965  ;;  %v12337_v52 = vpop.xlane.xlu1 %5980 }
0x2219   :  { %v6041_v17 = vrot.slane %v12323_v39, %v9900_v9  ;;  %v6064_v3 = vrot.slane %v12337_v52, %v9897_v7 }
0x221b   :  { %v6042_v16 = vsel %vm674_vm3, %v6041_v17, %v6037_v30 }
0x221c   :  { %v12339_v61 = vpop.xlane.xlu0 %5977  ;;  %v6081_v19 = vsel %vm743_vm6, %v6042_v16, %v6080_v32  ;;  %v12364_v53 = vpop.xlane.xlu1 %5986 }
0x221d   :  { %v6059_v62 = vrot.slane %v12339_v61, %v9900_v9  ;;  %v6073_v41 = vrot.slane %v12364_v53, %v9897_v7  ;;  %v6082_v44 = vsel %vm745_vm7, %v6051_v6, %v6081_v19 }
0x221f   :  { %v6060_v49 = vsel %vm674_vm3, %v6059_v62, %v6055_v5 }
0x2220   :  { %v12352_v18 = vpop.xlane.xlu0 %5983  ;;  %v6083_v40 = vsel %vm747_vm8, %v6060_v49, %v6082_v44 }
0x2221   :  { %v6068_v0 = vrot.slane %v12352_v18, %v9900_v9 }
0x2223   :  { %v6069_v10 = vsel %vm674_vm3, %v6068_v0, %v6064_v3 }
0x2224   :  { %v12368_v17 = vpop.xlane.xlu0 %5989  ;;  %v6084_v62 = vsel %vm749_vm9, %v6069_v10, %v6083_v40 }
0x2225   :  { %v6077_v30 = vrot.slane %v12368_v17, %v9900_v9 }
0x2227   :  { %v6078_v16 = vsel %vm674_vm3, %v6077_v30, %v6073_v41 }
0x2228   :  { %v5576_v8 = vpop.permute.xlu0 %5575  ;;  %v6085_v36 = vsel %vm751_vm10, %v6078_v16, %v6084_v62 }
0x2229   :  { %5578 = vst.msk [vmem:[#allocation7] sm:$0xff] %vm54_vm0, %v5576_v8  ;;  %v6087_v32 = vsel %vm754_vm11, %v6085_v36, -inf }
0x222a   :  { %6088 = vmax.xlane.f32.xlu1 %v6087_v32 }
0x22b3   :  { %v6089_v5 = vpop.xlane.xlu1 %6088 }
0x22b4   :  { %v6094_v0 = vrot.slane %v6089_v5, %v9744_v22  ;;  %v6098_v37 = vrot.slane %v6089_v5, %v9969_v46  ;;  %v6102_v19 = vrot.slane %v6089_v5, %v9972_v54  ;;  %v6106_v10 = vrot.slane %v6089_v5, %v9977_v2 }
0x22b5   :  { %v6110_v62 = vrot.slane %v6089_v5, %v9984_v25 }
0x22b6   :  { %v6131_v3 = vsub.f32 %v5945_v4, %v6094_v0  ;;  %v6133_v49 = vsub.f32 %v5951_v33, %v6098_v37  ;;  %v6132_v6 = vsub.f32 %v12307_v60, %v6094_v0  ;;  %v6135_v41 = vsub.f32 %v12309_v27, %v6102_v19 }
0x22b7   :  { %v6134_v40 = vsub.f32 %v12311_v58, %v6098_v37  ;;  %v6137_v8 = vsub.f32 %v12317_v51, %v6106_v10  ;;  %v8247_v4 = vmul.f32 -1.442695, %v12301_v11  ;;  %v6136_v60 = vsub.f32 %v12315_v55, %v6102_v19 }
0x22b8   :  { %v6147_v30 = vmul.f32 1.442695, %v6131_v3  ;;  %v6151_v44 = vmul.f32 1.442695, %v6133_v49  ;;  %v6149_v16 = vmul.f32 1.442695, %v6132_v6  ;;  %v6114_v27 = vrot.slane %v6089_v5, %v9990_v43 }
0x22b9   :  { %v6155_v36 = vmul.f32 1.442695, %v6135_v41  ;;  %v6153_v33 = vmul.f32 1.442695, %v6134_v40  ;;  %v6139_v32 = vsub.f32 %v12313_v57, %v6110_v62  ;;  %v6159_v58 = vmul.f32 1.442695, %v6137_v8 }
0x22ba   :  { %9071 = vpow2.f32 %v6147_v30  ;;  %v6138_v0 = vsub.f32 %v12323_v39, %v6106_v10  ;;  %v6157_v37 = vmul.f32 1.442695, %v6136_v60  ;;  %v6118_v51 = vrot.slane %v6089_v5, %v9996_v56 }
0x22bb   :  { %9073 = vpow2.f32 %v6151_v44  ;;  %v6141_v3 = vsub.f32 %v12321_v12, %v6114_v27  ;;  %v6163_v11 = vmul.f32 1.442695, %v6139_v32  ;;  %v6140_v55 = vsub.f32 %v12319_v35, %v6110_v62 }
0x22bc   :  { %9075 = vpow2.f32 %v6149_v16  ;;  %v6161_v19 = vmul.f32 1.442695, %v6138_v0  ;;  %v6122_v57 = vrot.slane %v6089_v5, %v10002_v31  ;;  %v6144_v6 = vsub.f32 %v12352_v18, %v6118_v51 }
0x22bd   :  { %9077 = vpow2.f32 %v6155_v36  ;;  %v6167_v39 = vmul.f32 1.442695, %v6141_v3  ;;  %v6142_v12 = vsub.f32 %v12339_v61, %v6114_v27  ;;  %v6165_v41 = vmul.f32 1.442695, %v6140_v55 }
0x22be   :  { %9079 = vpow2.f32 %v8247_v4  ;;  %v6146_v30 = vsub.f32 %v12368_v17, %v6122_v57  ;;  %v6173_v5 = vmul.f32 1.442695, %v6144_v6  ;;  %v6143_v40 = vsub.f32 %v12337_v52, %v6118_v51  ;;  %v6887_v51 = vpop.permute.xlu0 %6886 }
0x22bf   :  { %9081 = vpow2.f32 %v6153_v33  ;;  %v6169_v16 = vmul.f32 1.442695, %v6142_v12  ;;  %v6145_v36 = vsub.f32 %v12364_v53, %v6122_v57  ;;  %v6796_v57 = vld [vmem:[#allocation7] sm:$0xff] }
0x22c0   :  { %9083 = vpow2.f32 %v6159_v58  ;;  %v6177_v62 = vmul.f32 1.442695, %v6146_v30  ;;  %v6171_v4 = vmul.f32 1.442695, %v6143_v40 }
0x22c1   :  { %9085 = vpow2.f32 %v6157_v37  ;;  %v6175_v33 = vmul.f32 1.442695, %v6145_v36 }
0x22c2   :  { %9087 = vpow2.f32 %v6163_v11 }
0x22c3   :  { %9089 = vpow2.f32 %v6161_v19 }
0x22c4   :  { %9091 = vpow2.f32 %v6167_v39 }
0x22c5   :  { %9093 = vpow2.f32 %v6165_v41 }
0x22c6   :  { %9095 = vpow2.f32 %v6173_v5 }
0x22c7   :  { %v12399_v49 = vpop.eup %9071  ;;  %9097 = vpow2.f32 %v6169_v16 }
0x22c8   :  { %6196 = vperm.xlu1 %8843, %v12399_v49   ;;  %v12404_v10 = vpop.eup %9073  ;;  %9099 = vpow2.f32 %v6177_v62 }
0x22c9   :  { %6202 = vperm.xlu0 %8844, %v12404_v10   ;;  %v12408_v35 = vpop.eup %9075 }
0x22ca   :  { %v12412_v18 = vpop.eup %9077 }
0x22cb   :  { %v9080_v44 = vpop.eup %9079 }
0x22cc   :  { %6199 = vperm.xlu1 %8843, %v12408_v35   ;;  %v12416_v61 = vpop.eup %9081  ;;  %v6876_v8 = vadd.f32 1.0, %v9080_v44 }
0x22cd   :  { %6208 = vperm.xlu0 %8844, %v12412_v18   ;;  %v12419_v17 = vpop.eup %9083 }
0x22ce   :  { %v12423_v52 = vpop.eup %9085  ;;  %9101 = vrcp.f32 %v6876_v8 }
0x22cf   :  { %v12426_v60 = vpop.eup %9087  ;;  %9103 = vpow2.f32 %v6171_v4 }
0x22d0   :  { %6205 = vperm.xlu1 %8843, %v12416_v61   ;;  %v12429_v27 = vpop.eup %9089  ;;  %9105 = vpow2.f32 %v6175_v33 }
0x22d1   :  { %6214 = vperm.xlu0 %8844, %v12419_v17   ;;  %v12432_v53 = vpop.eup %9091 }
0x22d2   :  { %v12435_v32 = vpop.eup %9093 }
0x22d3   :  { %v12438_v58 = vpop.eup %9095 }
0x22d4   :  { %6211 = vperm.xlu1 %8843, %v12423_v52   ;;  %v12441_v0 = vpop.eup %9097 }
0x22d5   :  { %6220 = vperm.xlu0 %8844, %v12426_v60   ;;  %v12444_v37 = vpop.eup %9099 }
0x22d8   :  { %6217 = vperm.xlu1 %8843, %v12429_v27  }
0x22d9   :  { %6226 = vperm.xlu0 %8844, %v12432_v53  }
0x22db   :  { %v12446_v3 = vpop.eup %9101 }
0x22dc   :  { %6223 = vperm.xlu1 %8843, %v12435_v32   ;;  %v12449_v11 = vpop.eup %9103  ;;  %v6889_v55 = vmul.f32 %v12446_v3, %v6887_v51 }
0x22dd   :  { %6235 = vperm.xlu0 %8844, %v12438_v58   ;;  %v12454_v19 = vpop.eup %9105 }
0x22e0   :  { %6229 = vperm.xlu1 %8843, %v12441_v0  }
0x22e1   :  { %6241 = vperm.xlu0 %8844, %v12444_v37  }
0x22e4   :  { %6232 = vperm.xlu1 %8843, %v12449_v11  }
0x22e5   :  { %6891 = vrot.lane.b32.xlu0 %v6889_v55, %s9445_s18 }
0x22e8   :  { %6238 = vperm.xlu1 %8843, %v12454_v19  }
0x22ec   :  { %6881 = vrot.lane.b32.xlu1 %v6796_v57, %s9445_s18 }
0x2343   :  { %v6197_v6 = vpop.permute.xlu1 %6196 }
0x2344   :  { %v6203_v39 = vpop.permute.xlu0 %6202  ;;  %v6246_v14 = vrot.slane %v6197_v6, %v9897_v7 }
0x2345   :  { %v6255_v55 = vrot.slane %v6203_v39, %v9897_v7 }
0x2347   :  { %v6200_v12 = vpop.permute.xlu1 %6199 }
0x2348   :  { %v6209_v41 = vpop.permute.xlu0 %6208  ;;  %v6250_v57 = vrot.slane %v6200_v12, %v9900_v9 }
0x2349   :  { %v6264_v23 = vrot.slane %v6209_v41, %v9897_v7 }
0x234a   :  { %v6251_v12 = vsel %vm674_vm3, %v6250_v57, %v6246_v14 }
0x234b   :  { %v6206_v30 = vpop.permute.xlu1 %6205 }
0x234c   :  { %v6215_v5 = vpop.permute.xlu0 %6214  ;;  %v6259_v36 = vrot.slane %v6206_v30, %v9900_v9 }
0x234d   :  { %v6273_v30 = vrot.slane %v6215_v5, %v9897_v7 }
0x234e   :  { %v6260_v34 = vsel %vm674_vm3, %v6259_v36, %v6255_v55 }
0x234f   :  { %v6212_v44 = vpop.permute.xlu1 %6211  ;;  %v6315_v6 = vsel %vm739_vm4, %v6260_v34, %v6251_v12 }
0x2350   :  { %v6221_v40 = vpop.permute.xlu0 %6220  ;;  %v6268_v4 = vrot.slane %v6212_v44, %v9900_v9 }
0x2351   :  { %v6282_v39 = vrot.slane %v6221_v40, %v9897_v7 }
0x2352   :  { %v6269_v21 = vsel %vm674_vm3, %v6268_v4, %v6264_v23 }
0x2353   :  { %v6218_v16 = vpop.permute.xlu1 %6217  ;;  %v6316_v23 = vsel %vm741_vm5, %v6269_v21, %v6315_v6 }
0x2354   :  { %v6227_v62 = vpop.permute.xlu0 %6226  ;;  %v6277_v20 = vrot.slane %v6218_v16, %v9900_v9 }
0x2355   :  { %v6291_v41 = vrot.slane %v6227_v62, %v9897_v7 }
0x2356   :  { %v6278_v16 = vsel %vm674_vm3, %v6277_v20, %v6273_v30 }
0x2357   :  { %v6224_v8 = vpop.permute.xlu1 %6223  ;;  %v6317_v4 = vsel %vm743_vm6, %v6278_v16, %v6316_v23 }
0x2358   :  { %v6236_v33 = vpop.permute.xlu0 %6235  ;;  %v6286_v47 = vrot.slane %v6224_v8, %v9900_v9 }
0x2359   :  { %v6304_v5 = vrot.slane %v6236_v33, %v9900_v9 }
0x235a   :  { %v6287_v36 = vsel %vm674_vm3, %v6286_v47, %v6282_v39 }
0x235b   :  { %v6230_v51 = vpop.permute.xlu1 %6229  ;;  %v6318_v62 = vsel %vm745_vm7, %v6287_v36, %v6317_v4 }
0x235c   :  { %v6295_v44 = vrot.slane %v6230_v51, %v9900_v9  ;;  %v6242_v51 = vpop.permute.xlu0 %6241 }
0x235e   :  { %v6296_v40 = vsel %vm674_vm3, %v6295_v44, %v6291_v41 }
0x235f   :  { %v6233_v29 = vpop.permute.xlu1 %6232  ;;  %v6319_v47 = vsel %vm747_vm8, %v6296_v40, %v6318_v62 }
0x2360   :  { %v6300_v8 = vrot.slane %v6233_v29, %v9897_v7  ;;  %v6313_v29 = vrot.slane %v6242_v51, %v9900_v9  ;;  %v6892_v39 = vpop.permute.xlu0 %6891 }
0x2362   :  { %v6305_v14 = vsel %vm674_vm3, %v6304_v5, %v6300_v8 }
0x2363   :  { %v6239_v20 = vpop.permute.xlu1 %6238  ;;  %v6320_v55 = vsel %vm749_vm9, %v6305_v14, %v6319_v47 }
0x2364   :  { %v6309_v34 = vrot.slane %v6239_v20, %v9897_v7 }
0x2366   :  { %v6314_v33 = vsel %vm674_vm3, %v6313_v29, %v6309_v34 }
0x2367   :  { %v6882_v21 = vpop.permute.xlu1 %6881  ;;  %v6321_v57 = vsel %vm751_vm10, %v6314_v33, %v6320_v55 }
0x2368   :  { %v6884_v30 = vmul.f32 %v12446_v3, %v6882_v21  ;;  %v6323_v44 = vsel %vm754_vm11, %v6321_v57, 0.0 }
0x2369   :  { %6324 = vadd.xlane.f32.xlu1 %v6323_v44 }
0x236a   :  { %v12491_v12 = vadd.f32 %v6892_v39, %v6884_v30 }
0x236c   :  { %9107 = vtanh.f32 %v12491_v12 }
0x2379   :  { %v9108_v16 = vpop.eup %9107 }
0x237a   :  { %6897 = vrot.lane.b32.xlu0 %v9108_v16, %s9444_s17 }
0x23ec   :  { %v6898_v33 = vpop.permute.xlu0 %6897 }
0x23f2   :  { %v6325_v41 = vpop.xlane.xlu1 %6324 }
0x23f3   :  { %9109 = vrcp.f32 %v6325_v41 }
0x2400   :  { %v9110_v8 = vpop.eup %9109 }
0x2401   :  { %v6347_v6 = vrot.slane %v9110_v8, %v9984_v25  ;;  %v6331_v36 = vrot.slane %v9110_v8, %v9744_v22  ;;  %v6355_v23 = vrot.slane %v9110_v8, %v9996_v56  ;;  %v6359_v14 = vrot.slane %v9110_v8, %v10002_v31 }
0x2402   :  { %v6335_v20 = vrot.slane %v9110_v8, %v9969_v46  ;;  %v6339_v29 = vrot.slane %v9110_v8, %v9972_v54  ;;  %v6343_v34 = vrot.slane %v9110_v8, %v9977_v2  ;;  %v6351_v47 = vrot.slane %v9110_v8, %v9990_v43 }
0x2403   :  { %v6376_v5 = vmul.f32 %v12426_v60, %v6347_v6  ;;  %v6368_v51 = vmul.f32 %v12399_v49, %v6331_v36  ;;  %v6381_v40 = vmul.f32 %v12438_v58, %v6355_v23  ;;  %v6369_v4 = vmul.f32 %v12408_v35, %v6331_v36 }
0x2404   :  { %v6383_v62 = vmul.f32 %v12444_v37, %v6359_v14  ;;  %v6370_v60 = vmul.f32 %v12404_v10, %v6335_v20  ;;  %v6371_v49 = vmul.f32 %v12416_v61, %v6335_v20  ;;  %v6372_v35 = vmul.f32 %v12412_v18, %v6339_v29 }
0x2405   :  { %6426 = vperm.xlu1 %8843, %v6376_v5   ;;  %6386 = vperm.xlu0 %8844, %v6368_v51   ;;  %v6373_v58 = vmul.f32 %v12423_v52, %v6339_v29  ;;  %v6374_v10 = vmul.f32 %v12419_v17, %v6343_v34  ;;  %v6375_v37 = vmul.f32 %v12429_v27, %v6343_v34 }
0x2406   :  { %v6377_v61 = vmul.f32 %v12435_v32, %v6347_v6  ;;  %v6379_v18 = vmul.f32 %v12441_v0, %v6351_v47  ;;  %v6380_v52 = vmul.f32 %v12449_v11, %v6355_v23  ;;  %v6382_v17 = vmul.f32 %v12454_v19, %v6359_v14 }
0x2407   :  { %v6900_v27 = vmul.f32 %v12446_v3, %v6898_v33 }
0x2409   :  { %6451 = vperm.xlu1 %8843, %v6381_v40   ;;  %6391 = vperm.xlu0 %8844, %v6369_v4  }
0x240d   :  { %6461 = vperm.xlu1 %8843, %v6383_v62   ;;  %6396 = vperm.xlu0 %8844, %v6370_v60  }
0x2411   :  { %5761 = vrot.lane.b32.xlu1 %v12101_v45, %s9447_s16  ;;  %6401 = vperm.xlu0 %8844, %v6371_v49   ;;  %v6378_v45 = vmul.f32 %v12432_v53, %v6351_v47 }
0x2415   :  { %6406 = vperm.xlu0 %8844, %v6372_v35  }
0x2419   :  { %6411 = vperm.xlu0 %8844, %v6373_v58  }
0x241d   :  { %6416 = vperm.xlu0 %8844, %v6374_v10  }
0x2421   :  { %6421 = vperm.xlu0 %8844, %v6375_v37  }
0x2425   :  { %6431 = vperm.xlu0 %8844, %v6377_v61  }
0x2429   :  { %6436 = vperm.xlu0 %8844, %v6378_v45  }
0x242d   :  { %6441 = vperm.xlu0 %8844, %v6379_v18  }
0x2431   :  { %6446 = vperm.xlu0 %8844, %v6380_v52  }
0x2435   :  { %6456 = vperm.xlu0 %8844, %v6382_v17  }
0x2439   :  { %6902 = vrot.lane.b32.xlu0 %v6900_v27, %s9445_s18 }
0x2480   :  { %v12523_v32 = vpop.permute.xlu1 %6426  ;;  %v6387_v55 = vpop.permute.xlu0 %6386 }
0x2481   :  { %v6464_v8 = vmul.f32 %v12188_v50, %v6387_v55  ;;  %v6472_v60 = vmul.f32 %v12218_v42, %v12523_v32  ;;  %v6716_v61 = vrot.slane %v6387_v55, %v9897_v7 }
0x2483   :  { %v6516_v42 = vsel %vm54_vm0, %v6472_v60, 0.0 }
0x2484   :  { %v12525_v21 = vpop.permute.xlu1 %6451  ;;  %v6392_v53 = vpop.permute.xlu0 %6391 }
0x2485   :  { %v6465_v16 = vmul.f32 %v12182_v28, %v6392_v53  ;;  %v6480_v28 = vsel %vm54_vm0, %v6464_v8, 0.0  ;;  %v6774_v33 = vrot.slane %v12525_v21, %v9900_v9 }
0x2487   :  { %v6481_v5 = vsel %vm601_vm2, %v6465_v16, 0.0 }
0x2488   :  { %v12527_v57 = vpop.permute.xlu1 %6461  ;;  %v12529_v0 = vpop.permute.xlu0 %6396 }
0x2489   :  { %v6466_v41 = vmul.f32 %v12203_v15, %v12529_v0  ;;  %v6482_v15 = vadd.f32 %v6481_v5, %v6480_v28  ;;  %v6479_v18 = vmul.f32 %v12293_v13, %v12527_v57 }
0x248b   :  { %v6489_v51 = vsel %vm54_vm0, %v6466_v41, 0.0  ;;  %v6483_v29 = vrot.slane %v6482_v15, 4  ;;  %v13307_v41 = vld [vmem:[#allocation22_spill] sm:$0xff] }
0x248c   :  { %v5762_v11 = vpop.permute.xlu1 %5761  ;;  %v12531_v30 = vpop.permute.xlu0 %6401 }
0x248d   :  { %5764 = vst.msk [vmem:[#allocation7 + $0x8] sm:$0xff] %vm54_vm0, %v5762_v11  ;;  %v6467_v3 = vmul.f32 %v12209_v24, %v12531_v30  ;;  %v6484_v45 = vadd.f32 %v6483_v29, %v6482_v15  ;;  %v6729_v27 = vrot.slane %v12531_v30, %v9900_v9  ;;  %v6783_v30 = vrot.slane %v12527_v57, %v9900_v9 }
0x248f   :  { %v6490_v6 = vsel %vm601_vm2, %v6467_v3, 0.0 }
0x2490   :  { %v6407_v19 = vpop.permute.xlu0 %6406  ;;  %v6491_v23 = vadd.f32 %v6490_v6, %v6489_v51  ;;  %v6544_v6 = vsel %vm601_vm2, %v6479_v18, 0.0 }
0x2491   :  { %v6468_v40 = vmul.f32 %v12197_v26, %v6407_v19  ;;  %v6734_v16 = vrot.slane %v6407_v19, %v9897_v7 }
0x2492   :  { %v6492_v62 = vrot.slane %v6491_v23, 4 }
0x2494   :  { %v6412_v44 = vpop.permute.xlu0 %6411  ;;  %v6912_v39 = vld [vmem:[#allocation7 + $0x8] sm:$0xff]  ;;  %v6493_v10 = vadd.f32 %v6492_v62, %v6491_v23 }
0x2495   :  { %7067 = vrot.lane.b32.xlu1 %v6912_v39, %s9445_s18  ;;  %v6469_v24 = vmul.f32 %v12226_v1, %v6412_v44  ;;  %v6498_v1 = vsel %vm54_vm0, %v6468_v40, 0.0  ;;  %v6738_v55 = vrot.slane %v6412_v44, %v9900_v9  ;;  %v6725_v39 = vrot.slane %v12529_v0, %v9897_v7  ;;  %v13308_v0 = vld [vmem:[#allocation13_spill] sm:$0xff] }
0x2496   :  { %v6494_v3 = vrot.slane %v6493_v10, 2 }
0x2497   :  { %v6499_v14 = vsel %vm601_vm2, %v6469_v24, 0.0  ;;  %v6730_v51 = vsel %vm674_vm3, %v6729_v27, %v6725_v39  ;;  %v6739_v24 = vsel %vm674_vm3, %v6738_v55, %v6734_v16 }
0x2498   :  { %v12542_v36 = vpop.permute.xlu0 %6416  ;;  %v6500_v35 = vadd.f32 %v6499_v14, %v6498_v1  ;;  %v6495_v19 = vadd.f32 %v6494_v3, %v6493_v10  ;;  %v13310_v3 = vld [vmem:[#allocation19_spill] sm:$0xff] }
0x2499   :  { %v6470_v50 = vmul.f32 %v12233_v59, %v12542_v36  ;;  %v6477_v59 = vmul.f32 %v12286_v38, %v12525_v21  ;;  %v6752_v38 = vrot.slane %v12523_v32, %v9897_v7  ;;  %v6485_v21 = vrot.slane %v6484_v45, 2 }
0x249a   :  { %v6501_v52 = vrot.slane %v6500_v35, 4  ;;  %v6743_v40 = vrot.slane %v12542_v36, %v9897_v7 }
0x249b   :  { %v6507_v58 = vsel %vm54_vm0, %v6470_v50, 0.0  ;;  %v6486_v60 = vadd.f32 %v6485_v21, %v6484_v45 }
0x249c   :  { %v6422_v4 = vpop.permute.xlu0 %6421  ;;  %v6502_v44 = vadd.f32 %v6501_v52, %v6500_v35 }
0x249d   :  { %v6471_v20 = vmul.f32 %v12257_v48, %v6422_v4  ;;  %v6720_v48 = vrot.slane %v6392_v53, %v9900_v9  ;;  %v6535_v53 = vsel %vm601_vm2, %v6477_v59, 0.0  ;;  %v6747_v23 = vrot.slane %v6422_v4, %v9900_v9 }
0x249e   :  { %v6503_v4 = vrot.slane %v6502_v44, 2 }
0x249f   :  { %v6508_v49 = vsel %vm601_vm2, %v6471_v20, 0.0  ;;  %v6721_v11 = vsel %vm674_vm3, %v6720_v48, %v6716_v61  ;;  %v6748_v35 = vsel %vm674_vm3, %v6747_v23, %v6743_v40 }
0x24a0   :  { %v6432_v26 = vpop.permute.xlu0 %6431  ;;  %v6509_v37 = vadd.f32 %v6508_v49, %v6507_v58  ;;  %v6785_v1 = vsel %vm739_vm4, %v6730_v51, %v6721_v11  ;;  %v13309_v58 = vld [vmem:[#allocation21_spill] sm:$0xff]  ;;  %v6504_v55 = vadd.f32 %v6503_v4, %v6502_v44  ;;  %v9321_v4 = vld [vmem:[%s13196_s10 + $0x10] sm:$0xff] }
0x24a1   :  { %v6473_v34 = vmul.f32 %v12241_v63, %v6432_v26  ;;  %v6756_v14 = vrot.slane %v6432_v26, %v9900_v9  ;;  %v6786_v59 = vsel %vm741_vm5, %v6739_v24, %v6785_v1 }
0x24a2   :  { %v6510_v13 = vrot.slane %v6509_v37, 4  ;;  %v6787_v18 = vsel %vm743_vm6, %v6748_v35, %v6786_v59 }
0x24a3   :  { %v6517_v47 = vsel %vm601_vm2, %v6473_v34, 0.0  ;;  %v6757_v10 = vsel %vm674_vm3, %v6756_v14, %v6752_v38 }
0x24a4   :  { %v6518_v17 = vadd.f32 %v6517_v47, %v6516_v42  ;;  %v6437_v63 = vpop.permute.xlu0 %6436  ;;  %v6511_v15 = vadd.f32 %v6510_v13, %v6509_v37  ;;  %v6496_v42 = vrot.slane %v6495_v19, 1  ;;  %v6788_v11 = vsel %vm745_vm7, %v6757_v10, %v6787_v18  ;;  %v9323_v10 = vld [vmem:[%s13196_s10] sm:$0xff] }
0x24a5   :  { %v6474_v8 = vmul.f32 %v13307_v41, %v6437_v63  ;;  %v6761_v36 = vrot.slane %v6437_v63, %v9897_v7 }
0x24a6   :  { %v6519_v32 = vrot.slane %v6518_v17, 4  ;;  %v6512_v48 = vrot.slane %v6511_v15, 2 }
0x24a7   :  { %v6525_v57 = vsel %vm54_vm0, %v6474_v8, 0.0 }
0x24a8   :  { %v6442_v5 = vpop.permute.xlu0 %6441  ;;  %v6520_v50 = vadd.f32 %v6519_v32, %v6518_v17  ;;  %v6513_v39 = vadd.f32 %v6512_v48, %v6511_v15 }
0x24a9   :  { %v6475_v28 = vmul.f32 %v13308_v0, %v6442_v5  ;;  %v6765_v62 = vrot.slane %v6442_v5, %v9900_v9  ;;  %v6505_v0 = vrot.slane %v6504_v55, 1 }
0x24aa   :  { %v6521_v61 = vrot.slane %v6520_v50, 2  ;;  %v6514_v40 = vrot.slane %v6513_v39, 1 }
0x24ab   :  { %v6526_v20 = vsel %vm601_vm2, %v6475_v28, 0.0  ;;  %v6766_v47 = vsel %vm674_vm3, %v6765_v62, %v6761_v36  ;;  %v6487_v28 = vrot.slane %v6486_v60, 1 }
0x24ac   :  { %v6527_v49 = vadd.f32 %v6526_v20, %v6525_v57  ;;  %v6447_v29 = vpop.permute.xlu0 %6446  ;;  %v6789_v32 = vsel %vm747_vm8, %v6766_v47, %v6788_v11  ;;  %v6522_v8 = vadd.f32 %v6521_v61, %v6520_v50  ;;  %v6497_v57 = vadd.f32 %v6496_v42, %v6495_v19  ;;  %v9327_v11 = vld [vmem:[%s13191_s5 + $0x20] sm:$0xff] }
0x24ad   :  { %v6476_v34 = vmul.f32 %v13309_v58, %v6447_v29  ;;  %v6770_v26 = vrot.slane %v6447_v29, %v9897_v7  ;;  %v6488_v29 = vadd.f32 %v6487_v28, %v6486_v60  ;;  %v6515_v35 = vadd.f32 %v6514_v40, %v6513_v39  ;;  %v9330_v39 = vld [vmem:[%s13193_s7 + $0x8] sm:$0xff] }
0x24ae   :  { %v6528_v37 = vrot.slane %v6527_v49, 4  ;;  %v6523_v50 = vrot.slane %v6522_v8, 1 }
0x24af   :  { %v6534_v45 = vsel %vm54_vm0, %v6476_v34, 0.0  ;;  %v6775_v63 = vsel %vm674_vm3, %v6774_v33, %v6770_v26  ;;  %v9322_v34 = vld [vmem:[%s13196_s10 + $0x8] sm:$0xff]  ;;  %v6630_v26 = vsel %vm739_vm4, %v6497_v57, %v6488_v29 }
0x24b0   :  { %v6529_v52 = vadd.f32 %v6528_v37, %v6527_v49  ;;  %v6536_v17 = vadd.f32 %v6535_v53, %v6534_v45  ;;  %v6457_v27 = vpop.permute.xlu0 %6456  ;;  %v6790_v21 = vsel %vm749_vm9, %v6775_v63, %v6789_v32  ;;  %v6506_v49 = vadd.f32 %v6505_v0, %v6504_v55  ;;  %v9324_v63 = vld [vmem:[%s13191_s5 + $0x38] sm:$0xff]  ;;  %v9326_v55 = vld [vmem:[%s13191_s5 + $0x28] sm:$0xff]  ;;  %v9333_v0 = vld [vmem:[%s13192_s6 + $0x1] ss:$0 sm:$0xff] }
0x24b1   :  { %v6478_v13 = vmul.f32 %v13310_v3, %v6457_v27  ;;  %v6779_v38 = vrot.slane %v6457_v27, %v9897_v7  ;;  %v6524_v19 = vadd.f32 %v6523_v50, %v6522_v8  ;;  %v9325_v27 = vld [vmem:[%s13191_s5 + $0x30] sm:$0xff]  ;;  %v6911_v3 = vld [vmem:[#allocation6 + $0x8] sm:$0xff] }
0x24b2   :  { %v6530_v16 = vrot.slane %v6529_v52, 2  ;;  %v6537_v41 = vrot.slane %v6536_v17, 4  ;;  %v6631_v60 = vsel %vm741_vm5, %v6506_v49, %v6630_v26  ;;  %v9335_v26 = vld [vmem:[%s13195_s9 + $0x10] sm:$0xff] }
0x24b3   :  { %v6543_v53 = vsel %vm54_vm0, %v6478_v13, 0.0  ;;  %v6784_v33 = vsel %vm674_vm3, %v6783_v30, %v6779_v38  ;;  %v9320_v30 = vld [vmem:[%s13196_s10 + $0x18] sm:$0xff]  ;;  %v6632_v61 = vsel %vm743_vm6, %v6515_v35, %v6631_v60  ;;  %v9329_v38 = vld [vmem:[%s13193_s7 + $0x10] sm:$0xff] }
0x24b4   :  { %v6531_v5 = vadd.f32 %v6530_v16, %v6529_v52  ;;  %v6538_v44 = vadd.f32 %v6537_v41, %v6536_v17  ;;  %v6545_v51 = vadd.f32 %v6544_v6, %v6543_v53  ;;  %v6791_v24 = vsel %vm751_vm10, %v6784_v33, %v6790_v21  ;;  %v6903_v23 = vpop.permute.xlu0 %6902  ;;  %v9328_v13 = vld [vmem:[%s13193_s7 + $0x18] sm:$0xff]  ;;  %v9331_v16 = vld [vmem:[%s13193_s7] sm:$0xff]  ;;  %v13312_v21 = vld [vmem:[#allocation18_spill] sm:$0xff] }
0x24b5   :  { %6794 = vst.msk [vmem:[#allocation4 + $0x20] sm:$0xff] %vm754_vm11, %v6791_v24  ;;  %8795 = vmatmul.mubr.msk.f32.vlgmr.msra.gmra.mxu0 %vm54_vm0, %v6903_v23  ;;  %v13311_v6 = vmov 0.0   ;;  %v6633_v47 = vsel %vm745_vm7, %v6524_v19, %v6632_v61  ;;  %v9334_v19 = vld [vmem:[%s13195_s9 + $0x18] sm:$0xff] }
0x24b6   :  { %6905 = vst.msk [vmem:[#allocation6] sm:$0xff] %vm54_vm0, %v6903_v23  ;;  %v6539_v15 = vrot.slane %v6538_v44, 2  ;;  %v6546_v14 = vrot.slane %v6545_v51, 4  ;;  %8809 = vmatpush3.msra.mxu0 %v9320_v30  ;;  %8816 = vmatprep.mubr.msk.f32.mxu0 %vm9443_vm1, %v13311_v6  ;;  %v6532_v20 = vrot.slane %v6531_v5, 1 }
0x24b7   :  { %8810 = vmatprep.subr.mxu0 %v13311_v6 }
0x24b8   :  { %v6540_v62 = vadd.f32 %v6539_v15, %v6538_v44  ;;  %v6547_v1 = vadd.f32 %v6546_v14, %v6545_v51  ;;  %8811 = vmatpush3.msra.mxu0 %v9321_v4  ;;  %v6533_v59 = vadd.f32 %v6532_v20, %v6531_v5  ;;  %v9332_v5 = vld [vmem:[%s13197_s11] ss:$0 sm:$0xff] }
0x24b9   :  { %8812 = vmatprep.subr.mxu0 %v13311_v6 }
0x24ba   :  { %v6541_v36 = vrot.slane %v6540_v62, 1  ;;  %v6548_v58 = vrot.slane %v6547_v1, 2  ;;  %8813 = vmatpush3.msra.mxu0 %v9322_v34  ;;  %v6634_v18 = vsel %vm747_vm8, %v6533_v59, %v6633_v47  ;;  %v9336_v59 = vld [vmem:[%s13195_s9 + $0x8] sm:$0xff] }
0x24bb   :  { %8814 = vmatprep.subr.mxu0 %v13311_v6 }
0x24bc   :  { %v6549_v48 = vadd.f32 %v6548_v58, %v6547_v1  ;;  %8815 = vmatpush3.msra.mxu0 %v9323_v10  ;;  %v6542_v37 = vadd.f32 %v6541_v36, %v6540_v62 }
0x24be   :  { %v6550_v42 = vrot.slane %v6549_v48, 1  ;;  %v6635_v52 = vsel %vm749_vm9, %v6542_v37, %v6634_v18  ;;  %v9338_v37 = vld [vmem:[%s13194_s8] ss:$0 sm:$0xff] }
0x24bf   :  { %v13314_v18 = vld [vmem:[#allocation12_spill] sm:$0xff] }
0x24c0   :  { %v6551_v45 = vadd.f32 %v6550_v42, %v6549_v48  ;;  %v9337_v48 = vld [vmem:[%s13195_s9] sm:$0xff] }
0x24c2   :  { %v6636_v17 = vsel %vm751_vm10, %v6551_v45, %v6635_v52 }
0x24c3   :  { %8762 = vmatmul.mubr.msk.f32.vlgmr.msra.gmra.mxu1 %vm54_vm0, %v6636_v17 }
0x24c4   :  { %8776 = vmatpush3.msra.mxu1 %v9324_v63  ;;  %8783 = vmatprep.mubr.msk.f32.mxu1 %vm9443_vm1, %v13311_v6 }
0x24c5   :  { %8777 = vmatprep.subr.mxu1 %v13311_v6 }
0x24c6   :  { %8778 = vmatpush3.msra.mxu1 %v9325_v27 }
0x24c7   :  { %8779 = vmatprep.subr.mxu1 %v13311_v6 }
0x24c8   :  { %8780 = vmatpush3.msra.mxu1 %v9326_v55 }
0x24c9   :  { %8781 = vmatprep.subr.mxu1 %v13311_v6 }
0x24ca   :  { %8782 = vmatpush3.msra.mxu1 %v9327_v11 }
0x24cb   :  { %8784 = vmatmul.mubr.msk.f32.vlgmr.msra.gmra.mxu1 %vm54_vm0, %v6911_v3  ;;  %8797 = vmatprep.subr.mxu1 %v13311_v6 }
0x24cc   :  { %8798 = vmatpush3.msra.mxu1 %v9328_v13  ;;  %8805 = vmatprep.mubr.msk.f32.mxu1 %vm9443_vm1, %v13311_v6 }
0x24cd   :  { %8799 = vmatprep.subr.mxu1 %v13311_v6 }
0x24ce   :  { %8800 = vmatpush3.msra.mxu1 %v9329_v38 }
0x24cf   :  { %8801 = vmatprep.subr.mxu1 %v13311_v6 }
0x24d0   :  { %8802 = vmatpush3.msra.mxu1 %v9330_v39  ;;  %v12728_v39 = vld [vmem:[%s13189_s3 + $0x8] sm:$0x3] }
0x24d1   :  { %8803 = vmatprep.subr.mxu1 %v13311_v6 }
0x24d2   :  { %8804 = vmatpush3.msra.mxu1 %v9331_v16 }
0x24d3   :  { %8819 = vmatprep.subr.mxu1 %v13311_v6 }
0x2507   :  { %v7068_v1 = vpop.permute.xlu1 %7067 }
0x2575   :  { %v7054_v32 = vpop.f32.mrf.mxu0 }
0x2577   :  { %v8796_v41 = vpop.f32.mrf.mxu0 }
0x2583   :  { %v6705_v8 = vpop.f32.mrf.mxu1 }
0x2584   :  { %v6706_v53 = vadd.f32 %v6705_v8, %v13312_v21 }
0x2585   :  { %v8763_v33 = vpop.f32.mrf.mxu1 }
0x2586   :  { %v6709_v44 = vadd.f32 %v9332_v5, %v6706_v53 }
0x2588   :  { %9111 = vtanh.f32 %v6709_v44  ;;  %v12743_v44 = vld [vmem:[%s13189_s3 + $0x20] sm:$0xff] }
0x258b   :  { %v6982_v51 = vpop.f32.mrf.mxu1 }
0x258c   :  { %v7055_v24 = vadd.f32 %v7054_v32, %v6982_v51  ;;  %v12734_v32 = vld [vmem:[%s13189_s3] sm:$0xff] }
0x258d   :  { %v8785_v23 = vpop.f32.mrf.mxu1 }
0x258e   :  { %v7058_v28 = vadd.f32 %v9333_v0, %v7055_v24  ;;  %v12749_v24 = vld [vmem:[%s13189_s3 + $0x10] sm:$0xff]  ;;  %v12755_v0 = vld [vmem:[%s13189_s3 + $0x18] sm:$0x3] }
0x2590   :  { %9113 = vtanh.f32 %v7058_v28  ;;  %v8250_v14 = vmul.f32 -1.442695, %v7058_v28 }
0x2592   :  { %9115 = vpow2.f32 %v8250_v14 }
0x2595   :  { %v9112_v40 = vpop.eup %9111 }
0x2596   :  { %6712 = vst.msk [vmem:[#allocation2 + $0x20] sm:$0xff] %vm54_vm0, %v9112_v40 }
0x259d   :  { %v9114_v15 = vpop.eup %9113 }
0x259e   :  { %7072 = vrot.lane.b32.xlu0 %v9114_v15, %s9444_s17 }
0x259f   :  { %v9116_v30 = vpop.eup %9115 }
0x25a0   :  { %v7062_v50 = vadd.f32 1.0, %v9116_v30  ;;  %v12764_v30 = vld [vmem:[%s13189_s3 + $0x40] sm:$0xff] }
0x25a2   :  { %9117 = vrcp.f32 %v7062_v50 }
0x25af   :  { %v9118_v57 = vpop.eup %9117 }
0x25b0   :  { %v7070_v4 = vmul.f32 %v9118_v57, %v7068_v1 }
0x2610   :  { %v7073_v20 = vpop.permute.xlu0 %7072 }
0x2611   :  { %v7075_v62 = vmul.f32 %v9118_v57, %v7073_v20  ;;  %v12771_v20 = vld [vmem:[%s13189_s3 + $0x28] sm:$0x3] }
0x2613   :  { %7077 = vrot.lane.b32.xlu0 %v7075_v62, %s9445_s18 }
0x2685   :  { %v7078_v49 = vpop.permute.xlu0 %7077 }
0x2686   :  { %v12687_v29 = vadd.f32 %v7078_v49, %v7070_v4 }
0x2688   :  { %9119 = vtanh.f32 %v12687_v29 }
0x2695   :  { %v9120_v35 = vpop.eup %9119 }
0x2696   :  { %7083 = vrot.lane.b32.xlu1 %v9120_v35, %s9444_s17  ;;  %v12779_v35 = vld [vmem:[%s13189_s3 + $0x30] sm:$0xff] }
0x2708   :  { %v7084_v36 = vpop.permute.xlu1 %7083 }
0x2709   :  { %v7086_v58 = vmul.f32 %v9118_v57, %v7084_v36 }
0x270b   :  { %7088 = vrot.lane.b32.xlu0 %v7086_v58, %s9445_s18 }
0x277d   :  { %v7089_v34 = vpop.permute.xlu0 %7088 }
0x277e   :  { %7091 = vst.msk [vmem:[#allocation6 + $0x8] sm:$0xff] %vm54_vm0, %v7089_v34  ;;  %8806 = vmatmul.mubr.msk.f32.vlgmr.msra.gmra.mxu1 %vm54_vm0, %v7089_v34  ;;  %8817 = vmatmul.mubr.msk.f32.vlgmr.msra.gmra.mxu0 %vm54_vm0, %v7089_v34 }
0x277f   :  { %8820 = vmatpush3.msra.mxu1 %v9334_v19  ;;  %8827 = vmatprep.mubr.msk.f32.mxu1 %vm9443_vm1, %v13311_v6  ;;  %v12787_v19 = vld [vmem:[%s13189_s3 + $0x48] sm:$0x3] }
0x2780   :  { %8821 = vmatprep.subr.mxu1 %v13311_v6 }
0x2781   :  { %8822 = vmatpush3.msra.mxu1 %v9335_v26 }
0x2782   :  { %8823 = vmatprep.subr.mxu1 %v13311_v6 }
0x2783   :  { %8824 = vmatpush3.msra.mxu1 %v9336_v59 }
0x2784   :  { %8825 = vmatprep.subr.mxu1 %v13311_v6 }
0x2785   :  { %8826 = vmatpush3.msra.mxu1 %v9337_v48  ;;  %v12794_v48 = vld [vmem:[%s13189_s3 + $0x50] sm:$0xff] }
0x283e   :  { %v7165_v10 = vpop.f32.mrf.mxu1  ;;  %v12712_v60 = vpop.f32.mrf.mxu0 }
0x283f   :  { %13313 = vst [vmem:[#allocation16_spill] sm:$0xff] %v12712_v60  ;;  %v7166_v42 = vadd.f32 %v9338_v37, %v7165_v10 }
0x2840   :  { %v8807_v61 = vpop.f32.mrf.mxu1  ;;  %v8818_v47 = vpop.f32.mrf.mxu0 }
0x2841   :  { %v7170_v45 = vcombine.high %v7166_v42, %v7166_v42  ;;  %v7177_v52 = vrot.slane %v7166_v42, %v13314_v18  ;;  %v12801_v61 = vld [vmem:[%s13189_s3 + $0x38] sm:$0x3] }
0x2843   :  { %v7184_v6 = vrot.slane %v7170_v45, %v13314_v18  ;;  %v7185_v17 = vcombine.high %v7177_v52, %v7177_v52  ;;  %v7193_v63 = vrot.slane %v7177_v52, %v13314_v18  ;;  %v12809_v52 = vld [vmem:[%s13189_s3 + $0x60] sm:$0xff] }
0x2844   :  { %13315 = vst [vmem:[#allocation20_spill] sm:$0xff] %v12809_v52 }
0x2845   :  { %v7200_v27 = vrot.slane %v7184_v6, %v13314_v18  ;;  %v7207_v55 = vrot.slane %v7185_v17, %v13314_v18  ;;  %v7215_v11 = vcombine.high %v7193_v63, %v7193_v63  ;;  %v7222_v3 = vrot.slane %v7193_v63, %v9744_v22 }
0x2846   :  { %v7186_v8 = vcombine.high %v7184_v6, %v7184_v6 }
0x2847   :  { %v7230_v13 = vrot.slane %v7215_v11, %v9744_v22  ;;  %v7226_v38 = vrot.slane %v7207_v55, %v9744_v22  ;;  %v7260_v16 = vmul.f32 %v12728_v39, %v7222_v3  ;;  %v7259_v41 = vmul.f32 %v12734_v32, %v7222_v3  ;;  %v12824_v3 = vld [vmem:[%s13189_s3 + $0x70] sm:$0xff] }
0x2848   :  { %v7238_v21 = vrot.slane %v7200_v27, %v9744_v22  ;;  %v7217_v53 = vcombine.high %v7207_v55, %v7207_v55  ;;  %v7214_v40 = vrot.slane %v7186_v8, %v13314_v18  ;;  %v7216_v1 = vcombine.high %v7200_v27, %v7200_v27  ;;  %v12818_v55 = vld [vmem:[%s13189_s3 + $0x58] sm:$0x3] }
0x2849   :  { %v7278_v33 = vsel %vm601_vm2, %v7260_v16, 0.0  ;;  %v7275_v5 = vsel %vm54_vm0, %v7259_v41, 0.0  ;;  %v7263_v51 = vmul.f32 %v12743_v44, %v7230_v13  ;;  %v7261_v23 = vmul.f32 %v12749_v24, %v7226_v38  ;;  %13316 = vst [vmem:[#allocation14_spill] sm:$0xff] %v12818_v55  ;;  %v12832_v41 = vld [vmem:[%s13189_s3 + $0x68] sm:$0x3] }
0x284a   :  { %7279 = vadd.xlane.f32.xlu0 %v7278_v33  ;;  %7276 = vadd.xlane.f32.xlu1 %v7275_v5  ;;  %v7262_v28 = vmul.f32 %v12755_v0, %v7226_v38  ;;  %v7267_v50 = vmul.f32 %v12764_v30, %v7238_v21  ;;  %v7234_v57 = vrot.slane %v7217_v53, %v9744_v22  ;;  %v12839_v53 = vld [vmem:[%s13189_s3 + $0x78] sm:$0x3]  ;;  %s9449_s3 = smov [#allocation4]  }
0x284b   :  { %v7287_v15 = vsel %vm54_vm0, %v7263_v51, 0.0  ;;  %v7281_v14 = vsel %vm54_vm0, %v7261_v23, 0.0  ;;  %v7264_v62 = vmul.f32 %v12771_v20, %v7230_v13  ;;  %v7242_v58 = vrot.slane %v7214_v40, %v9744_v22  ;;  %13317 = vst [vmem:[#allocation17_spill] sm:$0xff] %v12832_v41  ;;  %13318 = vst [vmem:[#allocation15_spill] sm:$0xff] %v12839_v53 }
0x284c   :  { %v7284_v4 = vsel %vm601_vm2, %v7262_v28, 0.0  ;;  %v7299_v49 = vsel %vm54_vm0, %v7267_v50, 0.0  ;;  %v7265_v36 = vmul.f32 %v12779_v35, %v7234_v57  ;;  %v7268_v26 = vmul.f32 %v12787_v19, %v7238_v21 }
0x284d   :  { %v7290_v34 = vsel %vm601_vm2, %v7264_v62, 0.0  ;;  %v7269_v10 = vmul.f32 %v12794_v48, %v7242_v58  ;;  %v7246_v37 = vrot.slane %v7216_v1, %v9744_v22  ;;  %v7218_v42 = vcombine.high %v7214_v40, %v7214_v40 }
0x284e   :  { %7288 = vadd.xlane.f32.xlu1 %v7287_v15  ;;  %7282 = vadd.xlane.f32.xlu0 %v7281_v14  ;;  %v7293_v59 = vsel %vm54_vm0, %v7265_v36, 0.0  ;;  %v7266_v47 = vmul.f32 %v12801_v61, %v7234_v57  ;;  %v7302_v45 = vsel %vm601_vm2, %v7268_v26, 0.0  ;;  %v7270_v11 = vmul.f32 %v12818_v55, %v7242_v58 }
0x284f   :  { %v7305_v18 = vsel %vm54_vm0, %v7269_v10, 0.0  ;;  %v7271_v6 = vmul.f32 %v12809_v52, %v7246_v37  ;;  %v7250_v17 = vrot.slane %v7218_v42, %v9744_v22  ;;  %v7272_v8 = vmul.f32 %v12832_v41, %v7246_v37 }
0x2850   :  { %v7296_v63 = vsel %vm601_vm2, %v7266_v47, 0.0  ;;  %v7308_v38 = vsel %vm601_vm2, %v7270_v11, 0.0 }
0x2851   :  { %v7311_v27 = vsel %vm54_vm0, %v7271_v6, 0.0  ;;  %v7273_v13 = vmul.f32 %v12824_v3, %v7250_v17  ;;  %v7314_v21 = vsel %vm601_vm2, %v7272_v8, 0.0  ;;  %v7274_v33 = vmul.f32 %v12839_v53, %v7250_v17 }
0x2852   :  { %7285 = vadd.xlane.f32.xlu0 %v7284_v4  ;;  %7300 = vadd.xlane.f32.xlu1 %v7299_v49 }
0x2853   :  { %v7317_v16 = vsel %vm54_vm0, %v7273_v13, 0.0  ;;  %v7320_v5 = vsel %vm601_vm2, %v7274_v33, 0.0 }
0x2856   :  { %7291 = vadd.xlane.f32.xlu0 %v7290_v34  ;;  %7294 = vadd.xlane.f32.xlu1 %v7293_v59 }
0x285a   :  { %7303 = vadd.xlane.f32.xlu0 %v7302_v45  ;;  %7306 = vadd.xlane.f32.xlu1 %v7305_v18 }
0x285e   :  { %7297 = vadd.xlane.f32.xlu0 %v7296_v63  ;;  %7312 = vadd.xlane.f32.xlu1 %v7311_v27 }
0x2862   :  { %7309 = vadd.xlane.f32.xlu0 %v7308_v38  ;;  %7318 = vadd.xlane.f32.xlu1 %v7317_v16 }
0x2866   :  { %7315 = vadd.xlane.f32.xlu0 %v7314_v21 }
0x286a   :  { %7321 = vadd.xlane.f32.xlu0 %v7320_v5 }
0x28d3   :  { %v7280_v51 = vpop.xlane.xlu0 %7279  ;;  %v7277_v23 = vpop.xlane.xlu1 %7276 }
0x28d4   :  { %v7346_v58 = vrot.slane %v7280_v51, %v9900_v9  ;;  %v7342_v34 = vrot.slane %v7277_v23, %v9897_v7 }
0x28d6   :  { %v7347_v6 = vsel %vm674_vm3, %v7346_v58, %v7342_v34 }
0x28d7   :  { %v7289_v28 = vpop.xlane.xlu1 %7288  ;;  %v12843_v40 = vpop.xlane.xlu0 %7282 }
0x28d8   :  { %v7351_v26 = vrot.slane %v12843_v40, %v9897_v7  ;;  %v7360_v10 = vrot.slane %v7289_v28, %v9897_v7 }
0x28db   :  { %v12845_v15 = vpop.xlane.xlu0 %7285  ;;  %v12847_v14 = vpop.xlane.xlu1 %7300 }
0x28dc   :  { %v7355_v49 = vrot.slane %v12845_v15, %v9900_v9  ;;  %v7378_v21 = vrot.slane %v12847_v14, %v9897_v7 }
0x28de   :  { %v7356_v47 = vsel %vm674_vm3, %v7355_v49, %v7351_v26 }
0x28df   :  { %v12849_v50 = vpop.xlane.xlu0 %7291  ;;  %v12851_v57 = vpop.xlane.xlu1 %7294  ;;  %v7411_v27 = vsel %vm739_vm4, %v7356_v47, %v7347_v6 }
0x28e0   :  { %v7364_v36 = vrot.slane %v12849_v50, %v9900_v9  ;;  %v7369_v45 = vrot.slane %v12851_v57, %v9897_v7 }
0x28e2   :  { %v7365_v18 = vsel %vm674_vm3, %v7364_v36, %v7360_v10 }
0x28e3   :  { %v12853_v62 = vpop.xlane.xlu0 %7303  ;;  %v12855_v1 = vpop.xlane.xlu1 %7306  ;;  %v7412_v38 = vsel %vm741_vm5, %v7365_v18, %v7411_v27 }
0x28e4   :  { %v7382_v11 = vrot.slane %v12853_v62, %v9900_v9  ;;  %v7387_v16 = vrot.slane %v12855_v1, %v9897_v7 }
0x28e6   :  { %v7383_v58 = vsel %vm674_vm3, %v7382_v11, %v7378_v21 }
0x28e7   :  { %v12857_v4 = vpop.xlane.xlu0 %7297  ;;  %v12870_v37 = vpop.xlane.xlu1 %7312 }
0x28e8   :  { %v7373_v59 = vrot.slane %v12857_v4, %v9900_v9  ;;  %v7396_v5 = vrot.slane %v12870_v37, %v9897_v7 }
0x28ea   :  { %v7374_v17 = vsel %vm674_vm3, %v7373_v59, %v7369_v45 }
0x28eb   :  { %v12872_v42 = vpop.xlane.xlu0 %7309  ;;  %v7413_v33 = vsel %vm743_vm6, %v7374_v17, %v7412_v38  ;;  %v12897_v49 = vpop.xlane.xlu1 %7318 }
0x28ec   :  { %v7391_v63 = vrot.slane %v12872_v42, %v9900_v9  ;;  %v7405_v59 = vrot.slane %v12897_v49, %v9897_v7  ;;  %v7414_v47 = vsel %vm745_vm7, %v7383_v58, %v7413_v33 }
0x28ee   :  { %v7392_v36 = vsel %vm674_vm3, %v7391_v63, %v7387_v16 }
0x28ef   :  { %v12885_v13 = vpop.xlane.xlu0 %7315  ;;  %v7415_v45 = vsel %vm747_vm8, %v7392_v36, %v7414_v47 }
0x28f0   :  { %v7400_v8 = vrot.slane %v12885_v13, %v9900_v9 }
0x28f2   :  { %v7401_v34 = vsel %vm674_vm3, %v7400_v8, %v7396_v5 }
0x28f3   :  { %v12902_v26 = vpop.xlane.xlu0 %7321  ;;  %v7416_v6 = vsel %vm749_vm9, %v7401_v34, %v7415_v45 }
0x28f4   :  { %v7409_v10 = vrot.slane %v12902_v26, %v9900_v9 }
0x28f6   :  { %v7410_v18 = vsel %vm674_vm3, %v7409_v10, %v7405_v59 }
0x28f7   :  { %v7417_v17 = vsel %vm751_vm10, %v7410_v18, %v7416_v6 }
0x28f8   :  { %v7419_v63 = vsel %vm754_vm11, %v7417_v17, -inf }
0x28f9   :  { %7420 = vmax.xlane.f32.xlu1 %v7419_v63 }
0x2982   :  { %v7421_v27 = vpop.xlane.xlu1 %7420 }
0x2983   :  { %v7426_v11 = vrot.slane %v7421_v27, %v9744_v22  ;;  %v7434_v38 = vrot.slane %v7421_v27, %v9972_v54  ;;  %v7430_v16 = vrot.slane %v7421_v27, %v9969_v46  ;;  %v7438_v33 = vrot.slane %v7421_v27, %v9977_v2 }
0x2984   :  { %v7442_v59 = vrot.slane %v7421_v27, %v9984_v25  ;;  %v7450_v17 = vrot.slane %v7421_v27, %v9996_v56 }
0x2985   :  { %v7463_v8 = vsub.f32 %v7277_v23, %v7426_v11  ;;  %v7464_v21 = vsub.f32 %v7280_v51, %v7426_v11  ;;  %v7467_v5 = vsub.f32 %v7289_v28, %v7434_v38  ;;  %v7465_v36 = vsub.f32 %v12843_v40, %v7430_v16 }
0x2986   :  { %v7469_v10 = vsub.f32 %v12851_v57, %v7438_v33  ;;  %v7466_v45 = vsub.f32 %v12845_v15, %v7430_v16  ;;  %v7446_v23 = vrot.slane %v7421_v27, %v9990_v43  ;;  %v7471_v51 = vsub.f32 %v12847_v14, %v7442_v59 }
0x2987   :  { %v7479_v58 = vmul.f32 1.442695, %v7463_v8  ;;  %v7481_v34 = vmul.f32 1.442695, %v7464_v21  ;;  %v7487_v47 = vmul.f32 1.442695, %v7467_v5  ;;  %v7468_v40 = vsub.f32 %v12849_v50, %v7434_v38 }
0x2988   :  { %v7483_v18 = vmul.f32 1.442695, %v7465_v36  ;;  %v7491_v28 = vmul.f32 1.442695, %v7469_v10  ;;  %v7485_v6 = vmul.f32 1.442695, %v7466_v45  ;;  %v7473_v57 = vsub.f32 %v12855_v1, %v7446_v23 }
0x2989   :  { %9121 = vpow2.f32 %v7479_v58  ;;  %v7495_v63 = vmul.f32 1.442695, %v7471_v51  ;;  %v7470_v15 = vsub.f32 %v12857_v4, %v7438_v33  ;;  %v7489_v11 = vmul.f32 1.442695, %v7468_v40 }
0x298a   :  { %9123 = vpow2.f32 %v7481_v34  ;;  %v7454_v16 = vrot.slane %v7421_v27, %v10002_v31  ;;  %v7475_v14 = vsub.f32 %v12870_v37, %v7450_v17  ;;  %v7499_v8 = vmul.f32 1.442695, %v7473_v57 }
0x298b   :  { %9125 = vpow2.f32 %v7487_v47  ;;  %v7472_v50 = vsub.f32 %v12853_v62, %v7442_v59  ;;  %v7493_v38 = vmul.f32 1.442695, %v7470_v15  ;;  %v7474_v37 = vsub.f32 %v12872_v42, %v7446_v23 }
0x298c   :  { %9127 = vpow2.f32 %v7483_v18  ;;  %v7477_v1 = vsub.f32 %v12897_v49, %v7454_v16  ;;  %v7503_v4 = vmul.f32 1.442695, %v7475_v14  ;;  %v7476_v49 = vsub.f32 %v12885_v13, %v7450_v17 }
0x298d   :  { %9129 = vpow2.f32 %v7491_v28  ;;  %v7497_v33 = vmul.f32 1.442695, %v7472_v50  ;;  %v7501_v34 = vmul.f32 1.442695, %v7474_v37  ;;  %v7478_v10 = vsub.f32 %v12902_v26, %v7454_v16 }
0x298e   :  { %9131 = vpow2.f32 %v7485_v6  ;;  %v7507_v62 = vmul.f32 1.442695, %v7477_v1  ;;  %v7505_v47 = vmul.f32 1.442695, %v7476_v49 }
0x298f   :  { %9133 = vpow2.f32 %v7495_v63  ;;  %v7509_v18 = vmul.f32 1.442695, %v7478_v10 }
0x2990   :  { %9135 = vpow2.f32 %v7489_v11 }
0x2991   :  { %9137 = vpow2.f32 %v7499_v8 }
0x2992   :  { %9139 = vpow2.f32 %v7493_v38 }
0x2993   :  { %9141 = vpow2.f32 %v7503_v4 }
0x2994   :  { %9143 = vpow2.f32 %v7497_v33 }
0x2995   :  { %9145 = vpow2.f32 %v7507_v62 }
0x2996   :  { %v12930_v21 = vpop.eup %9121  ;;  %9147 = vpow2.f32 %v7501_v34 }
0x2997   :  { %v12933_v5 = vpop.eup %9123  ;;  %7528 = vperm.xlu0 %8844, %v12930_v21   ;;  %9149 = vpow2.f32 %v7505_v47 }
0x2998   :  { %7531 = vperm.xlu1 %8843, %v12933_v5   ;;  %v12938_v27 = vpop.eup %9125  ;;  %9151 = vpow2.f32 %v7509_v18 }
0x2999   :  { %v12941_v36 = vpop.eup %9127 }
0x299a   :  { %v12945_v58 = vpop.eup %9129 }
0x299b   :  { %7540 = vperm.xlu0 %8844, %v12938_v27   ;;  %v12948_v59 = vpop.eup %9131 }
0x299c   :  { %7534 = vperm.xlu1 %8843, %v12941_v36   ;;  %v12952_v42 = vpop.eup %9133 }
0x299d   :  { %v12955_v45 = vpop.eup %9135 }
0x299e   :  { %v12959_v13 = vpop.eup %9137 }
0x299f   :  { %7546 = vperm.xlu0 %8844, %v12945_v58   ;;  %v12961_v23 = vpop.eup %9139 }
0x29a0   :  { %7537 = vperm.xlu1 %8843, %v12948_v59   ;;  %v12965_v51 = vpop.eup %9141 }
0x29a1   :  { %v12967_v26 = vpop.eup %9143 }
0x29a2   :  { %v12971_v28 = vpop.eup %9145 }
0x29a3   :  { %7552 = vperm.xlu0 %8844, %v12952_v42   ;;  %v12973_v40 = vpop.eup %9147 }
0x29a4   :  { %7543 = vperm.xlu1 %8843, %v12955_v45   ;;  %v12977_v6 = vpop.eup %9149 }
0x29a5   :  { %v12980_v17 = vpop.eup %9151 }
0x29a7   :  { %7558 = vperm.xlu0 %8844, %v12959_v13  }
0x29a8   :  { %7549 = vperm.xlu1 %8843, %v12961_v23  }
0x29ab   :  { %7564 = vperm.xlu0 %8844, %v12965_v51  }
0x29ac   :  { %7555 = vperm.xlu1 %8843, %v12967_v26  }
0x29af   :  { %7570 = vperm.xlu0 %8844, %v12971_v28  }
0x29b0   :  { %7561 = vperm.xlu1 %8843, %v12973_v40  }
0x29b4   :  { %7567 = vperm.xlu1 %8843, %v12977_v6  }
0x29b8   :  { %7573 = vperm.xlu1 %8843, %v12980_v17  }
0x2a12   :  { %v7529_v57 = vpop.permute.xlu0 %7528 }
0x2a13   :  { %v7532_v63 = vpop.permute.xlu1 %7531  ;;  %v7578_v10 = vrot.slane %v7529_v57, %v9897_v7 }
0x2a14   :  { %v7582_v34 = vrot.slane %v7532_v63, %v9900_v9 }
0x2a16   :  { %v7541_v15 = vpop.permute.xlu0 %7540  ;;  %v7583_v57 = vsel %vm674_vm3, %v7582_v34, %v7578_v10 }
0x2a17   :  { %v7535_v11 = vpop.permute.xlu1 %7534  ;;  %v7596_v60 = vrot.slane %v7541_v15, %v9897_v7 }
0x2a18   :  { %v7587_v47 = vrot.slane %v7535_v11, %v9897_v7 }
0x2a1a   :  { %v7547_v16 = vpop.permute.xlu0 %7546 }
0x2a1b   :  { %v7538_v14 = vpop.permute.xlu1 %7537 }
0x2a1c   :  { %v7591_v37 = vrot.slane %v7538_v14, %v9900_v9  ;;  %v7605_v14 = vrot.slane %v7547_v16, %v9897_v7 }
0x2a1e   :  { %v7553_v50 = vpop.permute.xlu0 %7552  ;;  %v7592_v41 = vsel %vm674_vm3, %v7591_v37, %v7587_v47 }
0x2a1f   :  { %v7544_v8 = vpop.permute.xlu1 %7543  ;;  %v7614_v63 = vrot.slane %v7553_v50, %v9897_v7 }
0x2a20   :  { %v7600_v33 = vrot.slane %v7544_v8, %v9900_v9 }
0x2a22   :  { %v7559_v1 = vpop.permute.xlu0 %7558  ;;  %v7601_v52 = vsel %vm674_vm3, %v7600_v33, %v7596_v60 }
0x2a23   :  { %v7550_v38 = vpop.permute.xlu1 %7549 }
0x2a24   :  { %v7609_v18 = vrot.slane %v7550_v38, %v9900_v9  ;;  %v7623_v38 = vrot.slane %v7559_v1, %v9897_v7 }
0x2a26   :  { %v7565_v62 = vpop.permute.xlu0 %7564  ;;  %v7610_v11 = vsel %vm674_vm3, %v7609_v18, %v7605_v14 }
0x2a27   :  { %v7556_v4 = vpop.permute.xlu1 %7555  ;;  %v7632_v16 = vrot.slane %v7565_v62, %v9897_v7 }
0x2a28   :  { %v7618_v53 = vrot.slane %v7556_v4, %v9900_v9  ;;  %v7647_v4 = vsel %vm739_vm4, %v7592_v41, %v7583_v57 }
0x2a29   :  { %v7648_v60 = vsel %vm741_vm5, %v7601_v52, %v7647_v4 }
0x2a2a   :  { %v7619_v37 = vsel %vm674_vm3, %v7618_v53, %v7614_v63  ;;  %v7649_v33 = vsel %vm743_vm6, %v7610_v11, %v7648_v60 }
0x2a2b   :  { %v7562_v49 = vpop.permute.xlu1 %7561  ;;  %v7650_v1 = vsel %vm745_vm7, %v7619_v37, %v7649_v33 }
0x2a2c   :  { %v7627_v8 = vrot.slane %v7562_v49, %v9900_v9  ;;  %v7571_v49 = vpop.permute.xlu0 %7570 }
0x2a2e   :  { %v7628_v50 = vsel %vm674_vm3, %v7627_v8, %v7623_v38 }
0x2a2f   :  { %v7568_v55 = vpop.permute.xlu1 %7567  ;;  %v7651_v53 = vsel %vm747_vm8, %v7628_v50, %v7650_v1 }
0x2a30   :  { %v7636_v15 = vrot.slane %v7568_v55, %v9900_v9  ;;  %v7641_v55 = vrot.slane %v7571_v49, %v9897_v7 }
0x2a32   :  { %v7637_v34 = vsel %vm674_vm3, %v7636_v15, %v7632_v16 }
0x2a33   :  { %v7574_v10 = vpop.permute.xlu1 %7573  ;;  %v7652_v47 = vsel %vm749_vm9, %v7637_v34, %v7651_v53 }
0x2a34   :  { %v7645_v41 = vrot.slane %v7574_v10, %v9900_v9 }
0x2a36   :  { %v7646_v62 = vsel %vm674_vm3, %v7645_v41, %v7641_v55 }
0x2a37   :  { %v7653_v52 = vsel %vm751_vm10, %v7646_v62, %v7652_v47 }
0x2a38   :  { %v7655_v18 = vsel %vm754_vm11, %v7653_v52, 0.0 }
0x2a39   :  { %7656 = vadd.xlane.f32.xlu0 %v7655_v18 }
0x2ac2   :  { %v7657_v14 = vpop.xlane.xlu0 %7656 }
0x2ac3   :  { %9153 = vrcp.f32 %v7657_v14 }
0x2ad0   :  { %v9154_v8 = vpop.eup %9153 }
0x2ad1   :  { %v7675_v63 = vrot.slane %v9154_v8, %v9977_v2  ;;  %v7663_v57 = vrot.slane %v9154_v8, %v9744_v22  ;;  %v7691_v15 = vrot.slane %v9154_v8, %v10002_v31  ;;  %v7667_v16 = vrot.slane %v9154_v8, %v9969_v46 }
0x2ad2   :  { %v7671_v31 = vrot.slane %v9154_v8, %v9972_v54 }
0x2ad3   :  { %v7707_v11 = vmul.f32 %v12961_v23, %v7675_v63  ;;  %v7700_v38 = vmul.f32 %v12930_v21, %v7663_v57  ;;  %v7714_v4 = vmul.f32 %v12971_v28, %v7691_v15  ;;  %v7701_v37 = vmul.f32 %v12933_v5, %v7663_v57 }
0x2ad4   :  { %v7702_v2 = vmul.f32 %v12941_v36, %v7667_v16  ;;  %v7703_v22 = vmul.f32 %v12948_v59, %v7667_v16  ;;  %v7704_v21 = vmul.f32 %v12938_v27, %v7671_v31  ;;  %v7705_v5 = vmul.f32 %v12955_v45, %v7671_v31 }
0x2ad5   :  { %7753 = vperm.xlu0 %8844, %v7707_v11   ;;  %7718 = vperm.xlu1 %8843, %v7700_v38   ;;  %v7706_v46 = vmul.f32 %v12945_v58, %v7675_v63  ;;  %v7679_v23 = vrot.slane %v9154_v8, %v9984_v25  ;;  %v7683_v59 = vrot.slane %v9154_v8, %v9990_v43 }
0x2ad6   :  { %v7687_v45 = vrot.slane %v9154_v8, %v9996_v56 }
0x2ad7   :  { %v7708_v36 = vmul.f32 %v12952_v42, %v7679_v23  ;;  %v7710_v54 = vmul.f32 %v12959_v13, %v7683_v59  ;;  %v7711_v27 = vmul.f32 %v12973_v40, %v7683_v59  ;;  %v7715_v42 = vmul.f32 %v12980_v17, %v7691_v15 }
0x2ad8   :  { %v7712_v58 = vmul.f32 %v12965_v51, %v7687_v45  ;;  %v7713_v25 = vmul.f32 %v12977_v6, %v7687_v45 }
0x2ad9   :  { %7788 = vperm.xlu0 %8844, %v7714_v4   ;;  %7723 = vperm.xlu1 %8843, %v7701_v37  }
0x2add   :  { %6907 = vrot.lane.b32.xlu0 %v12491_v12, %s9447_s16  ;;  %7728 = vperm.xlu1 %8843, %v7702_v2   ;;  %v7709_v12 = vmul.f32 %v12967_v26, %v7679_v23 }
0x2ae1   :  { %7733 = vperm.xlu1 %8843, %v7703_v22  }
0x2ae5   :  { %7738 = vperm.xlu1 %8843, %v7704_v21  }
0x2ae9   :  { %7743 = vperm.xlu1 %8843, %v7705_v5  }
0x2aed   :  { %7748 = vperm.xlu1 %8843, %v7706_v46  }
0x2af1   :  { %7758 = vperm.xlu1 %8843, %v7708_v36   ;;  %v13319_v36 = vld [vmem:[#allocation14_spill] sm:$0xff] }
0x2af5   :  { %7763 = vperm.xlu1 %8843, %v7709_v12  }
0x2af9   :  { %7768 = vperm.xlu1 %8843, %v7710_v54  }
0x2afd   :  { %7773 = vperm.xlu1 %8843, %v7711_v27  }
0x2b01   :  { %7778 = vperm.xlu1 %8843, %v7712_v58  }
0x2b05   :  { %7783 = vperm.xlu1 %8843, %v7713_v25  }
0x2b09   :  { %7793 = vperm.xlu1 %8843, %v7715_v42  }
0x2b0d   :  { %7093 = vrot.lane.b32.xlu1 %v12687_v29, %s9447_s16  ;;  %s8144_s16 = sshll.u32 %s9449_s3, 4  ;;  %s8145_s16 = int_to_ptr.vmem [resolvable:$true] %s8144_s16 }
0x2b0e   :  { %s9356_s27 = scalar_lea.vmem %s8145_s16, 768  ;;  %p9361_p1 = scmp.lt.s32.totalorder %s8145_s16, %s8145_s16 }
0x2b0f   :  { %p9357_p0 = scmp.ne.s32.totalorder %s8145_s16, %s9356_s27  ;;  %p9362_p2 = scmp.lt.s32.totalorder %s9356_s27, %s9356_s27 }
0x2b11   :  { %p9363_p3 = por %p9362_p2, %p9361_p1 }
0x2b13   :  { %p9364_p4 = pnand %p9363_p3, %p9357_p0 }
0x2b50   :  { %v13043_v43 = vpop.permute.xlu0 %7753  ;;  %v13045_v13 = vpop.permute.xlu1 %7718 }
0x2b51   :  { %v7796_v49 = vmul.f32 %v12734_v32, %v13045_v13  ;;  %v7803_v47 = vmul.f32 %v12801_v61, %v13043_v43  ;;  %v8079_v16 = vrot.slane %v13043_v43, %v9900_v9 }
0x2b53   :  { %v7812_v10 = vsel %vm54_vm0, %v7796_v49, 0.0  ;;  %v7840_v11 = vsel %vm601_vm2, %v7803_v47, 0.0 }
0x2b54   :  { %v13047_v26 = vpop.permute.xlu0 %7788  ;;  %v13049_v56 = vpop.permute.xlu1 %7723 }
0x2b55   :  { %v7797_v29 = vmul.f32 %v12728_v39, %v13049_v56  ;;  %v7810_v2 = vmul.f32 %v12824_v3, %v13047_v26  ;;  %v8052_v46 = vrot.slane %v13049_v56, %v9900_v9  ;;  %v8111_v59 = vrot.slane %v13047_v26, %v9897_v7 }
0x2b57   :  { %v7813_v33 = vsel %vm601_vm2, %v7797_v29, 0.0  ;;  %v7875_v42 = vsel %vm54_vm0, %v7810_v2, 0.0 }
0x2b58   :  { %v6908_v28 = vpop.permute.xlu0 %6907  ;;  %v7729_v51 = vpop.permute.xlu1 %7728  ;;  %v7814_v55 = vadd.f32 %v7813_v33, %v7812_v10 }
0x2b59   :  { %6910 = vst.msk [vmem:[#allocation7] sm:$0xff] %vm54_vm0, %v6908_v28  ;;  %v7798_v34 = vmul.f32 %v12749_v24, %v7729_v51  ;;  %v8057_v22 = vrot.slane %v7729_v51, %v9897_v7 }
0x2b5a   :  { %v7815_v52 = vrot.slane %v7814_v55, 4 }
0x2b5b   :  { %v7821_v32 = vsel %vm54_vm0, %v7798_v34, 0.0 }
0x2b5c   :  { %v7734_v40 = vpop.permute.xlu1 %7733  ;;  %v7816_v61 = vadd.f32 %v7815_v52, %v7814_v55  ;;  %v13320_v55 = vld [vmem:[#allocation20_spill] sm:$0xff] }
0x2b5d   :  { %v7799_v50 = vmul.f32 %v12755_v0, %v7734_v40  ;;  %v8061_v15 = vrot.slane %v7734_v40, %v9900_v9 }
0x2b5e   :  { %v7817_v5 = vrot.slane %v7816_v61, 2 }
0x2b5f   :  { %v7822_v41 = vsel %vm601_vm2, %v7799_v50, 0.0  ;;  %v8062_v54 = vsel %vm674_vm3, %v8061_v15, %v8057_v22 }
0x2b60   :  { %v13052_v6 = vpop.permute.xlu1 %7738  ;;  %v7823_v0 = vadd.f32 %v7822_v41, %v7821_v32  ;;  %v13112_v26 = vadd.f32 %v7817_v5, %v7816_v61 }
0x2b61   :  { %v7800_v62 = vmul.f32 %v12743_v44, %v13052_v6  ;;  %v8066_v40 = vrot.slane %v13052_v6, %v9897_v7 }
0x2b62   :  { %v7824_v8 = vrot.slane %v7823_v0, 4 }
0x2b63   :  { %v7830_v63 = vsel %vm54_vm0, %v7800_v62, 0.0 }
0x2b64   :  { %v13054_v17 = vpop.permute.xlu1 %7743  ;;  %v7825_v31 = vadd.f32 %v7824_v8, %v7823_v0 }
0x2b65   :  { %v7801_v39 = vmul.f32 %v12771_v20, %v13054_v17  ;;  %v8070_v27 = vrot.slane %v13054_v17, %v9900_v9 }
0x2b66   :  { %v7826_v43 = vrot.slane %v7825_v31, 2 }
0x2b67   :  { %v7831_v20 = vsel %vm601_vm2, %v7801_v39, 0.0  ;;  %v8071_v34 = vsel %vm674_vm3, %v8070_v27, %v8066_v40 }
0x2b68   :  { %v13060_v60 = vpop.permute.xlu1 %7748  ;;  %v7832_v38 = vadd.f32 %v7831_v20, %v7830_v63  ;;  %v7827_v39 = vadd.f32 %v7826_v43, %v7825_v31 }
0x2b69   :  { %v7802_v53 = vmul.f32 %v12779_v35, %v13060_v60 }
0x2b6a   :  { %v7833_v23 = vrot.slane %v7832_v38, 4  ;;  %v7828_v2 = vrot.slane %v7827_v39, 1 }
0x2b6b   :  { %v7839_v35 = vsel %vm54_vm0, %v7802_v53, 0.0 }
0x2b6c   :  { %v13066_v1 = vpop.permute.xlu1 %7758  ;;  %v7834_v17 = vadd.f32 %v7833_v23, %v7832_v38 }
0x2b6d   :  { %v7804_v14 = vmul.f32 %v12764_v30, %v13066_v1  ;;  %v8084_v6 = vrot.slane %v13066_v1, %v9897_v7 }
0x2b6e   :  { %v7835_v62 = vrot.slane %v7834_v17, 2 }
0x2b6f   :  { %v7848_v4 = vsel %vm54_vm0, %v7804_v14, 0.0 }
0x2b70   :  { %v13076_v24 = vpop.permute.xlu1 %7763 }
0x2b71   :  { %v7805_v18 = vmul.f32 %v12787_v19, %v13076_v24  ;;  %v7841_v19 = vadd.f32 %v7840_v11, %v7839_v35  ;;  %v8088_v50 = vrot.slane %v13076_v24, %v9900_v9  ;;  %v13321_v24 = vld [vmem:[#allocation17_spill] sm:$0xff] }
0x2b73   :  { %v7849_v44 = vsel %vm601_vm2, %v7805_v18, 0.0  ;;  %v7842_v3 = vrot.slane %v7841_v19, 4  ;;  %v8089_v35 = vsel %vm674_vm3, %v8088_v50, %v8084_v6 }
0x2b74   :  { %v7769_v57 = vpop.permute.xlu1 %7768  ;;  %v7850_v37 = vadd.f32 %v7849_v44, %v7848_v4  ;;  %v7836_v4 = vadd.f32 %v7835_v62, %v7834_v17 }
0x2b75   :  { %v7806_v30 = vmul.f32 %v12794_v48, %v7769_v57  ;;  %v8048_v48 = vrot.slane %v13045_v13, %v9897_v7  ;;  %v8075_v13 = vrot.slane %v13060_v60, %v9897_v7  ;;  %v7843_v49 = vadd.f32 %v7842_v3, %v7841_v19 }
0x2b76   :  { %v7851_v45 = vrot.slane %v7850_v37, 4  ;;  %v8093_v47 = vrot.slane %v7769_v57, %v9897_v7 }
0x2b77   :  { %v7857_v58 = vsel %vm54_vm0, %v7806_v30, 0.0  ;;  %v8053_v51 = vsel %vm674_vm3, %v8052_v46, %v8048_v48  ;;  %v8080_v32 = vsel %vm674_vm3, %v8079_v16, %v8075_v13  ;;  %v7844_v14 = vrot.slane %v7843_v49, 2  ;;  %v13322_v30 = vld [vmem:[#allocation15_spill] sm:$0xff] }
0x2b78   :  { %v7774_v21 = vpop.permute.xlu1 %7773  ;;  %v8117_v29 = vsel %vm739_vm4, %v8062_v54, %v8053_v51  ;;  %v7852_v60 = vadd.f32 %v7851_v45, %v7850_v37  ;;  %v7837_v45 = vrot.slane %v7836_v4, 1 }
0x2b79   :  { %v7807_v12 = vmul.f32 %v13319_v36, %v7774_v21  ;;  %v8097_v10 = vrot.slane %v7774_v21, %v9900_v9  ;;  %v8118_v20 = vsel %vm741_vm5, %v8071_v34, %v8117_v29  ;;  %v7845_v22 = vadd.f32 %v7844_v14, %v7843_v49 }
0x2b7a   :  { %v7853_v63 = vrot.slane %v7852_v60, 2  ;;  %v8119_v57 = vsel %vm743_vm6, %v8080_v32, %v8118_v20  ;;  %v7838_v40 = vadd.f32 %v7837_v45, %v7836_v4 }
0x2b7b   :  { %v7858_v25 = vsel %vm601_vm2, %v7807_v12, 0.0  ;;  %v8098_v44 = vsel %vm674_vm3, %v8097_v10, %v8093_v47  ;;  %v8120_v37 = vsel %vm745_vm7, %v8089_v35, %v8119_v57 }
0x2b7c   :  { %v7859_v56 = vadd.f32 %v7858_v25, %v7857_v58  ;;  %v7779_v28 = vpop.permute.xlu1 %7778  ;;  %v8121_v31 = vsel %vm747_vm8, %v8098_v44, %v8120_v37  ;;  %v7854_v5 = vadd.f32 %v7853_v63, %v7852_v60  ;;  %v7846_v58 = vrot.slane %v7845_v22, 1 }
0x2b7d   :  { %v7808_v41 = vmul.f32 %v13320_v55, %v7779_v28  ;;  %v8102_v8 = vrot.slane %v7779_v28, %v9897_v7 }
0x2b7e   :  { %v7860_v33 = vrot.slane %v7859_v56, 4  ;;  %v7855_v13 = vrot.slane %v7854_v5, 1  ;;  %v7847_v17 = vadd.f32 %v7846_v58, %v7845_v22 }
0x2b7f   :  { %v7866_v1 = vsel %vm54_vm0, %v7808_v41, 0.0 }
0x2b80   :  { %v7861_v53 = vadd.f32 %v7860_v33, %v7859_v56  ;;  %v7784_v0 = vpop.permute.xlu1 %7783  ;;  %v7829_v56 = vadd.f32 %v7828_v2, %v7827_v39  ;;  %v7856_v50 = vadd.f32 %v7855_v13, %v7854_v5 }
0x2b81   :  { %v7809_v52 = vmul.f32 %v13321_v24, %v7784_v0  ;;  %v8106_v18 = vrot.slane %v7784_v0, %v9900_v9 }
0x2b82   :  { %v7862_v61 = vrot.slane %v7861_v53, 2 }
0x2b83   :  { %v7867_v11 = vsel %vm601_vm2, %v7809_v52, 0.0  ;;  %v8107_v15 = vsel %vm674_vm3, %v8106_v18, %v8102_v8 }
0x2b84   :  { %v7868_v38 = vadd.f32 %v7867_v11, %v7866_v1  ;;  %v7794_v19 = vpop.permute.xlu1 %7793  ;;  %v8122_v46 = vsel %vm749_vm9, %v8107_v15, %v8121_v31  ;;  %v7863_v12 = vadd.f32 %v7862_v61, %v7861_v53 }
0x2b85   :  { %v7811_v16 = vmul.f32 %v13322_v30, %v7794_v19  ;;  %v8115_v7 = vrot.slane %v7794_v19, %v9900_v9  ;;  %v7819_v9 = vrot.slane %v13112_v26, 1 }
0x2b86   :  { %v7869_v21 = vrot.slane %v7868_v38, 4  ;;  %v7864_v28 = vrot.slane %v7863_v12, 1 }
0x2b87   :  { %v7876_v23 = vsel %vm601_vm2, %v7811_v16, 0.0  ;;  %v8116_v36 = vsel %vm674_vm3, %v8115_v7, %v8111_v59 }
0x2b88   :  { %v7870_v48 = vadd.f32 %v7869_v21, %v7868_v38  ;;  %v7877_v54 = vadd.f32 %v7876_v23, %v7875_v42  ;;  %v8123_v3 = vsel %vm751_vm10, %v8116_v36, %v8122_v46  ;;  %v7094_v27 = vpop.permute.xlu1 %7093  ;;  %v7820_v42 = vadd.f32 %v7819_v9, %v13112_v26 }
0x2b89   :  { %8126 = vst.msk [vmem:[#allocation4 + $0x28] sm:$0xff] %vm754_vm11, %v8123_v3  ;;  %v7865_v34 = vadd.f32 %v7864_v28, %v7863_v12 }
0x2b8a   :  { %7096 = vst.msk [vmem:[#allocation7 + $0x8] sm:$0xff] %vm54_vm0, %v7094_v27  ;;  %v7871_v25 = vrot.slane %v7870_v48, 2  ;;  %v7878_v43 = vrot.slane %v7877_v54, 4  ;;  %v7962_v33 = vsel %vm739_vm4, %v7829_v56, %v7820_v42 }
0x2b8b   :  { %v7963_v10 = vsel %vm741_vm5, %v7838_v40, %v7962_v33 }
0x2b8c   :  { %v7872_v59 = vadd.f32 %v7871_v25, %v7870_v48  ;;  %v7879_v51 = vadd.f32 %v7878_v43, %v7877_v54  ;;  %v7964_v39 = vsel %vm743_vm6, %v7847_v17, %v7963_v10 }
0x2b8d   :  { %v7965_v32 = vsel %vm745_vm7, %v7856_v50, %v7964_v39 }
0x2b8e   :  { %v7873_v29 = vrot.slane %v7872_v59, 1  ;;  %v7880_v49 = vrot.slane %v7879_v51, 2  ;;  %v7966_v53 = vsel %vm747_vm8, %v7865_v34, %v7965_v32 }
0x2b90   :  { %v7881_v60 = vadd.f32 %v7880_v49, %v7879_v51  ;;  %v7874_v55 = vadd.f32 %v7873_v29, %v7872_v59 }
0x2b92   :  { %v7882_v41 = vrot.slane %v7881_v60, 1  ;;  %v7967_v26 = vsel %vm749_vm9, %v7874_v55, %v7966_v53 }
0x2b94   :  { %v7883_v6 = vadd.f32 %v7882_v41, %v7881_v60 }
0x2b96   :  { %v7968_v0 = vsel %vm751_vm10, %v7883_v6, %v7967_v26 }
0x2b97   :  { %8828 = vmatmul.mubr.msk.f32.vlgmr.msra.gmra.mxu1 %vm54_vm0, %v7968_v0 }
0x2b98   :  { %9367 = shalt.err (!%p9364_p4)
}
0x2b99   :  { %s9450_s28 = smov 128   ;;  %s9451_s29 = smov 8  }
0x2b9a   :  { %8150 = dma.vmem_to_hbm [thread:$0]  %s8145_s16, 768, %s13199_s13, [#allocation5], %s9450_s28, %s9450_s28, %s9451_s29  }
0x2b9b   :  { %s9452_s7 = smov [#allocation6]   ;;  %s9453_s10 = smov [#allocation7]  }
0x2b9c   :  { %s8156_s6 = sshll.u32 %s9452_s7, 4  ;;  %s8168_s17 = sshll.u32 %s9453_s10, 4  ;;  %s8157_s6 = int_to_ptr.vmem [resolvable:$true] %s8156_s6  ;;  %s8169_s17 = int_to_ptr.vmem [resolvable:$true] %s8168_s17 }
0x2b9d   :  { %s9376_s20 = scalar_lea.vmem %s8157_s6, 256  ;;  %p9381_p6 = scmp.lt.s32.totalorder %s8157_s6, %s8157_s6 }
0x2b9e   :  { %p9377_p5 = scmp.ne.s32.totalorder %s8157_s6, %s9376_s20  ;;  %p9382_p7 = scmp.lt.s32.totalorder %s9376_s20, %s9376_s20 }
0x2ba0   :  { %p9383_p8 = por %p9382_p7, %p9381_p6 }
0x2ba2   :  { %p9384_p9 = pnand %p9383_p8, %p9377_p5 }
0x2ba4   :  { %9387 = shalt.err (!%p9384_p9)
}
0x2ba5   :  { %8162 = dma.vmem_to_hbm [thread:$0]  %s8157_s6, 256, %s13200_s14, [#allocation5], %s9450_s28, %s9450_s28, %s9451_s29  }
0x2ba6   :  { %s9396_s13 = scalar_lea.vmem %s8169_s17, 256  ;;  %p9401_p11 = scmp.lt.s32.totalorder %s8169_s17, %s8169_s17 }
0x2ba7   :  { %p9397_p10 = scmp.ne.s32.totalorder %s8169_s17, %s9396_s13  ;;  %p9402_p12 = scmp.lt.s32.totalorder %s9396_s13, %s9396_s13 }
0x2ba9   :  { %p9403_p13 = por %p9402_p12, %p9401_p11 }
0x2bab   :  { %p9404_p0 = pnand %p9403_p13, %p9397_p10 }
0x2bad   :  { %9407 = shalt.err (!%p9404_p0)
}
0x2bae   :  { %8174 = dma.vmem_to_hbm [thread:$0]  %s8169_s17, 256, %s13201_s15, [#allocation8], %s9450_s28, %s9450_s28, %s9451_s29   ;;  %v13323_v47 = vld [vmem:[#allocation16_spill] sm:$0xff] }
0x2baf   :  { %v9355_v18 = vld [vmem:[%s13197_s11] ss:$0 sm:$0xff]  ;;  %s9454_s1 = smov [#allocation2]  }
0x2bb0   :  { %s8132_s8 = sshll.u32 %s9454_s1, 4  ;;  %s8133_s8 = int_to_ptr.vmem [resolvable:$true] %s8132_s8 }
0x2bb1   :  { %s9416_s9 = scalar_lea.vmem %s8133_s8, 768  ;;  %p9421_p2 = scmp.lt.s32.totalorder %s8133_s8, %s8133_s8 }
0x2bb2   :  { %p9417_p1 = scmp.ne.s32.totalorder %s8133_s8, %s9416_s9  ;;  %p9422_p3 = scmp.lt.s32.totalorder %s9416_s9, %s9416_s9 }
0x2bb4   :  { %p9423_p4 = por %p9422_p3, %p9421_p2 }
0x2bb6   :  { %p9424_p5 = pnand %p9423_p4, %p9417_p1 }
0x2c57   :  { %v8037_v62 = vpop.f32.mrf.mxu1 }
0x2c58   :  { %v8038_v24 = vadd.f32 %v8037_v62, %v13323_v47 }
0x2c59   :  { %v8829_v52 = vpop.f32.mrf.mxu1 }
0x2c5a   :  { %v8041_v20 = vadd.f32 %v9355_v18, %v8038_v24 }
0x2c5c   :  { %9155 = vtanh.f32 %v8041_v20 }
0x2c69   :  { %v9156_v14 = vpop.eup %9155 }
0x2c6a   :  { %8044 = vst.msk [vmem:[#allocation2 + $0x28] sm:$0xff] %vm54_vm0, %v9156_v14 }
0x2c6b   :  { %9427 = shalt.err (!%p9424_p5)
}
0x2c6c   :  { %8138 = dma.vmem_to_hbm [thread:$0]  %s8133_s8, 768, %s13198_s12, [#allocation3], %s9450_s28, %s9450_s28, %s9451_s29  }
0x2c6d   :  { %9436 = dma.done.wait [#allocation3], 768  }
0x2c6e   :  { %9437 = vsyncadd [#allocation3], 4294966528 }
0x2c6f   :  { %9438 = dma.done.wait [#allocation5], 1024  }
0x2c70   :  { %9439 = vsyncadd [#allocation5], 4294966272 }
0x2c71   :  { %9440 = dma.done.wait [#allocation8], 256  }
0x2c72   :  { %9441 = vsyncadd [#allocation8], 4294967040 }
0x2c73   :  { %8187 = vsyncpa [#allocation3], 1 }
0x2c74   :  { %8188 = vsyncpa [#allocation5], 1 }
0x2c75   :  { %8189 = vsyncpa [#allocation8], 1 }

</bundles_post_ra>
